<compile_context>
chip_gen: v6e
topology: v6e:2x2x1
jax: 0.10.0
libtpu: 0.0.40
codegen_flags: <defaults>
</compile_context>

<pallas_src>
import functools
import math

import jax
import jax.numpy as jnp
from jax.experimental import pallas as pl
from jax.experimental.pallas import tpu as pltpu


_VMEM = pl.BlockSpec(memory_space=pltpu.MemorySpace.VMEM)


def _round_up(n, m):
    return ((n + m - 1) // m) * m


# ----------------------------------------------------------------------------
# Pallas kernel
# ----------------------------------------------------------------------------
def _bidir_recurrence(gi_ref, whh_ref, bhn_ref, seq_ref, *, T, Bp, Hp):
    """Serial bidirectional GRU recurrence; input gates are precomputed.

    gi_ref : (T*Bp, 6*Hp)  precomputed x@Wih + combined bias, [fwd | bwd],
                           each direction 3*Hp wide, gate order (r, z, n),
                           each gate padded to Hp lanes.
    whh_ref: (Hp, 6*Hp)    [Whh_fwd | Whh_bwd], transposed + gate-padded.
    bhn_ref: (1, 2*Hp)     [b_hn_fwd | b_hn_bwd] (only the n-gate hidden bias
                           must stay separate; r/z hidden biases are folded
                           into gi already).
    seq_ref: (T*Bp, 2*Hp)  output, [h_fwd | h_bwd] per (t, b) row.
    """
    H3 = 3 * Hp
    h_f = jnp.zeros((Bp, Hp), jnp.float32)
    h_b = jnp.zeros((Bp, Hp), jnp.float32)
    # Hoist bias broadcasts out of the time loop (JAX does not CSE them).
    bhn_f = jnp.broadcast_to(bhn_ref[0:1, 0:Hp], (Bp, Hp))
    bhn_b = jnp.broadcast_to(bhn_ref[0:1, Hp:2 * Hp], (Bp, Hp))

    # Fully unrolled static time loop: lets the scheduler overlap the two small
    # independent MXU matmuls, the EUP sigmoid/tanh and the stores of both
    # directions within a step.
    for t in range(T):
        rf = t * Bp             # fwd consumes / produces timestep t
        rb = (T - 1 - t) * Bp   # bwd consumes / produces timestep T-1-t

        gi_f = gi_ref[rf:rf + Bp, 0:H3]
        gi_b = gi_ref[rb:rb + Bp, H3:2 * H3]

        gh_f = jnp.dot(h_f, whh_ref[:, 0:H3], preferred_element_type=jnp.float32)
        gh_b = jnp.dot(h_b, whh_ref[:, H3:2 * H3], preferred_element_type=jnp.float32)

        # PyTorch gate order: r, z, n ; each gate is a full (Bp, Hp) tile.
        r_f = jax.nn.sigmoid(gi_f[:, 0:Hp] + gh_f[:, 0:Hp])
        z_f = jax.nn.sigmoid(gi_f[:, Hp:2 * Hp] + gh_f[:, Hp:2 * Hp])
        n_f = jnp.tanh(gi_f[:, 2 * Hp:H3] + r_f * (gh_f[:, 2 * Hp:H3] + bhn_f))
        h_f = (1.0 - z_f) * n_f + z_f * h_f

        r_b = jax.nn.sigmoid(gi_b[:, 0:Hp] + gh_b[:, 0:Hp])
        z_b = jax.nn.sigmoid(gi_b[:, Hp:2 * Hp] + gh_b[:, Hp:2 * Hp])
        n_b = jnp.tanh(gi_b[:, 2 * Hp:H3] + r_b * (gh_b[:, 2 * Hp:H3] + bhn_b))
        h_b = (1.0 - z_b) * n_b + z_b * h_b

        # Lane-dense, sublane-aligned (8, 128) stores.
        seq_ref[rf:rf + Bp, 0:Hp] = h_f
        seq_ref[rb:rb + Bp, Hp:2 * Hp] = h_b


def _make_model_kernel(T, Bp, Hp):
    def kernel(x_ref,
               wih0_ref, whh0_ref, bias0_ref, bhn0_ref,
               wih1_ref, whh1_ref, bias1_ref, bhn1_ref,
               fcw_ref, fcb_ref,
               out_ref,
               gi_ref, seq0_ref, seq1_ref):
        # ---- layer 0: one hoisted input-gate matmul for all T steps, both dirs
        gi_ref[...] = (
            jnp.dot(x_ref[...], wih0_ref[...], preferred_element_type=jnp.float32)
            + bias0_ref[...])
        _bidir_recurrence(gi_ref, whh0_ref, bhn0_ref, seq0_ref, T=T, Bp=Bp, Hp=Hp)

        # ---- layer 1: input = [h_fwd | h_bwd] of layer 0, still in VMEM
        gi_ref[...] = (
            jnp.dot(seq0_ref[...], wih1_ref[...], preferred_element_type=jnp.float32)
            + bias1_ref[...])
        _bidir_recurrence(gi_ref, whh1_ref, bhn1_ref, seq1_ref, T=T, Bp=Bp, Hp=Hp)

        # ---- FC on the last 3 timesteps (lane-dense padded output)
        last3 = seq1_ref[(T - 3) * Bp:T * Bp, :]        # (3*Bp, 2*Hp)
        out_ref[...] = (
            jnp.dot(last3, fcw_ref[...], preferred_element_type=jnp.float32)
            + fcb_ref[...])

    return kernel


# ----------------------------------------------------------------------------
# Parameter init (PyTorch layout) and one-time kernel-layout preparation
# ----------------------------------------------------------------------------
def init_params(key, input_dim, hidden_dim, output_dim):
    """Deterministic PyTorch-style params: U(-1/sqrt(H), 1/sqrt(H))."""
    k = 1.0 / math.sqrt(hidden_dim)
    params = {}
    for layer in range(2):
        in_dim = input_dim if layer == 0 else 2 * hidden_dim
        lp = {}
        for tag in ("f", "b"):
            key, k1, k2, k3, k4 = jax.random.split(key, 5)
            lp[f"wih_{tag}"] = jax.random.uniform(k1, (3 * hidden_dim, in_dim), jnp.float32, -k, k)
            lp[f"whh_{tag}"] = jax.random.uniform(k2, (3 * hidden_dim, hidden_dim), jnp.float32, -k, k)
            lp[f"bih_{tag}"] = jax.random.uniform(k3, (3 * hidden_dim,), jnp.float32, -k, k)
            lp[f"bhh_{tag}"] = jax.random.uniform(k4, (3 * hidden_dim,), jnp.float32, -k, k)
        params[f"layer{layer}"] = lp
    key, k1, k2 = jax.random.split(key, 3)
    kf = 1.0 / math.sqrt(2 * hidden_dim)
    params["fc_w"] = jax.random.uniform(k1, (output_dim, 2 * hidden_dim), jnp.float32, -kf, kf)
    params["fc_b"] = jax.random.uniform(k2, (output_dim,), jnp.float32, -kf, kf)
    return params


def _pad_gate_cols(w, H, Hp):
    """(rows, 3H) -> (rows, 3Hp): gate g's H columns placed at g*Hp (rest 0)."""
    rows = w.shape[0]
    out = jnp.zeros((rows, 3 * Hp), jnp.float32)
    for g in range(3):
        out = out.at[:, g * Hp:g * Hp + H].set(w[:, g * H:(g + 1) * H])
    return out


def _remap_bidir_rows(w, H, Hp):
    """(2H, C) -> (2Hp, C): rows [0:H]->[0:H], [H:2H]->[Hp:Hp+H] (rest 0)."""
    C = w.shape[1]
    out = jnp.zeros((2 * Hp, C), jnp.float32)
    out = out.at[0:H, :].set(w[0:H, :])
    out = out.at[Hp:Hp + H, :].set(w[H:2 * H, :])
    return out


def prepare_params(params, input_dim, hidden_dim, output_dim, lane=128):
    """One-time: transpose, fold r/z hidden biases, pad to lane-dense tiles."""
    H = hidden_dim
    Hp = _round_up(H, lane)
    Op = _round_up(output_dim, lane)
    prepped = {}
    for layer in range(2):
        lp = params[f"layer{layer}"]
        wih_d, whh_d, bias_d, bhn_d = [], [], [], []
        for tag in ("f", "b"):
            wih_t = lp[f"wih_{tag}"].T.astype(jnp.float32)      # (in, 3H)
            whh_t = lp[f"whh_{tag}"].T.astype(jnp.float32)      # (H, 3H)
            bih = lp[f"bih_{tag}"].astype(jnp.float32)
            bhh = lp[f"bhh_{tag}"].astype(jnp.float32)
            # Fold b_hr / b_hz into the precomputed input-gate bias; keep b_hn.
            comb = jnp.concatenate([bih[0:H] + bhh[0:H],
                                    bih[H:2 * H] + bhh[H:2 * H],
                                    bih[2 * H:3 * H]])
            wih_p = _pad_gate_cols(wih_t, H, Hp)                # (in, 3Hp)
            if layer == 1:
                wih_p = _remap_bidir_rows(wih_p, H, Hp)         # (2Hp, 3Hp)
            whh_p = _pad_gate_cols(whh_t, H, Hp)                # (H, 3Hp)
            whh_p = jnp.zeros((Hp, 3 * Hp), jnp.float32).at[0:H, :].set(whh_p)
            bias_p = _pad_gate_cols(comb[None, :], H, Hp)       # (1, 3Hp)
            bhn_p = jnp.zeros((1, Hp), jnp.float32).at[0, 0:H].set(bhh[2 * H:3 * H])
            wih_d.append(wih_p); whh_d.append(whh_p)
            bias_d.append(bias_p); bhn_d.append(bhn_p)
        prepped[f"wih{layer}"] = jnp.concatenate(wih_d, axis=1)    # (in_p, 6Hp)
        prepped[f"whh{layer}"] = jnp.concatenate(whh_d, axis=1)    # (Hp, 6Hp)
        prepped[f"bias{layer}"] = jnp.concatenate(bias_d, axis=1)  # (1, 6Hp)
        prepped[f"bhn{layer}"] = jnp.concatenate(bhn_d, axis=1)    # (1, 2Hp)
    fcw_t = params["fc_w"].T.astype(jnp.float32)                   # (2H, O)
    fcw_p = _remap_bidir_rows(fcw_t, H, Hp)                        # (2Hp, O)
    prepped["fc_w"] = jnp.zeros((2 * Hp, Op), jnp.float32).at[:, 0:output_dim].set(fcw_p)
    prepped["fc_b"] = jnp.zeros((1, Op), jnp.float32).at[0, 0:output_dim].set(
        params["fc_b"].astype(jnp.float32))
    return prepped


# ----------------------------------------------------------------------------
# Forward
# ----------------------------------------------------------------------------
@functools.partial(jax.jit, static_argnames=("output_dim",))
def gru_model_forward(x, prepped, output_dim):
    """x: (B, T, input_dim) -> squeeze(fc(GRU(x)[:, -3:, :]))."""
    B, T, Din = x.shape
    assert T >= 3, "model takes the last 3 timesteps"
    Hp = prepped["whh0"].shape[0]
    Op = prepped["fc_b"].shape[1]
    Bp = _round_up(max(B, 8), 8)

    # Time-major, batch padded to a full sublane tile, flattened to 2-D rows
    # (row index = t*Bp + b) so each timestep is a sublane-aligned row block.
    xt = jnp.transpose(x, (1, 0, 2)).astype(jnp.float32)     # (T, B, Din)
    xt = jnp.pad(xt, ((0, 0), (0, Bp - B), (0, 0)))          # (T, Bp, Din)
    x2 = xt.reshape(T * Bp, Din)

    kernel = _make_model_kernel(T, Bp, Hp)
    y = pl.pallas_call(
        kernel,
        out_shape=jax.ShapeDtypeStruct((3 * Bp, Op), jnp.float32),
        in_specs=[_VMEM] * 11,
        out_specs=_VMEM,
        scratch_shapes=[
            pltpu.VMEM((T * Bp, 6 * Hp), jnp.float32),  # gi buffer (reused per layer)
            pltpu.VMEM((T * Bp, 2 * Hp), jnp.float32),  # layer-0 output sequence
            pltpu.VMEM((T * Bp, 2 * Hp), jnp.float32),  # layer-1 output sequence
        ],
    )(x2,
      prepped["wih0"], prepped["whh0"], prepped["bias0"], prepped["bhn0"],
      prepped["wih1"], prepped["whh1"], prepped["bias1"], prepped["bhn1"],
      prepped["fc_w"], prepped["fc_b"])

    y = y.reshape(3, Bp, Op)                                 # rows are (time, batch)
    y = jnp.transpose(y, (1, 0, 2))[:B, :, :output_dim]      # (B, 3, O)
    return jnp.squeeze(y)                                    # matches torch.squeeze


# ----------------------------------------------------------------------------
# Pure-JAX reference (for correctness check)
# ----------------------------------------------------------------------------
def _reference_forward(x, params, hidden_dim):
    H = hidden_dim

    def gru_dir(seq, wih, whh, bih, bhh):
        def step(h, x_t):
            gi = x_t @ wih.T + bih
            gh = h @ whh.T + bhh
            r = jax.nn.sigmoid(gi[:, :H] + gh[:, :H])
            z = jax.nn.sigmoid(gi[:, H:2 * H] + gh[:, H:2 * H])
            n = jnp.tanh(gi[:, 2 * H:] + r * gh[:, 2 * H:])
            h = (1.0 - z) * n + z * h
            return h, h
        h0 = jnp.zeros((seq.shape[1], H), jnp.float32)
        _, ys = jax.lax.scan(step, h0, seq)
        return ys

    inp = jnp.transpose(x, (1, 0, 2))
    for layer in range(2):
        lp = params[f"layer{layer}"]
        fwd = gru_dir(inp, lp["wih_f"], lp["whh_f"], lp["bih_f"], lp["bhh_f"])
        bwd = gru_dir(inp[::-1], lp["wih_b"], lp["whh_b"], lp["bih_b"], lp["bhh_b"])[::-1]
        inp = jnp.concatenate([fwd, bwd], axis=-1)
    out = jnp.transpose(inp, (1, 0, 2))
    y = out[:, -3:, :] @ params["fc_w"].T + params["fc_b"]
    return jnp.squeeze(y)


if __name__ == "__main__":
    B, T = 2, 8
    input_dim, hidden_dim, output_dim = 16, 32, 4

    key = jax.random.PRNGKey(0)
    key, xk = jax.random.split(key)
    x = jax.random.normal(xk, (B, T, input_dim), jnp.float32)

    params = init_params(key, input_dim, hidden_dim, output_dim)
    prepped = prepare_params(params, input_dim, hidden_dim, output_dim)

    out = gru_model_forward(x, prepped, output_dim)
    out = jax.block_until_ready(out)
    assert out.shape == (B, 3, output_dim), out.shape

    ref = jax.block_until_ready(_reference_forward(x, params, hidden_dim))
    assert jnp.allclose(out, ref, rtol=2e-3, atol=2e-3), \
        float(jnp.max(jnp.abs(out - ref)))

    print("KERNEL_OK")
</pallas_src>

<mosaic_0001>
module attributes {stable_mosaic.version = 11 : i64} {
  func.func @kernel(%arg0: memref<64x16xf32, #tpu.memory_space<vmem>>, %arg1: memref<16x768xf32, #tpu.memory_space<vmem>>, %arg2: memref<128x768xf32, #tpu.memory_space<vmem>>, %arg3: memref<1x768xf32, #tpu.memory_space<vmem>>, %arg4: memref<1x256xf32, #tpu.memory_space<vmem>>, %arg5: memref<256x768xf32, #tpu.memory_space<vmem>>, %arg6: memref<128x768xf32, #tpu.memory_space<vmem>>, %arg7: memref<1x768xf32, #tpu.memory_space<vmem>>, %arg8: memref<1x256xf32, #tpu.memory_space<vmem>>, %arg9: memref<256x128xf32, #tpu.memory_space<vmem>>, %arg10: memref<1x128xf32, #tpu.memory_space<vmem>>, %arg11: memref<24x128xf32, #tpu.memory_space<vmem>>, %arg12: memref<64x768xf32, #tpu.memory_space<vmem>>, %arg13: memref<64x256xf32, #tpu.memory_space<vmem>>, %arg14: memref<64x256xf32, #tpu.memory_space<vmem>>) attributes {dimension_semantics = [], scalar_prefetch = 0 : i64, scratch_operands = 3 : i64, tpu.core_type = #tpu.core_type<tc>} {
    %c0 = arith.constant 0 : index
    %c0_0 = arith.constant 0 : index
    %0 = vector.load %arg0[%c0, %c0_0] : memref<64x16xf32, #tpu.memory_space<vmem>>, vector<64x16xf32>
    %c0_1 = arith.constant 0 : index
    %c0_2 = arith.constant 0 : index
    %1 = vector.load %arg1[%c0_1, %c0_2] : memref<16x768xf32, #tpu.memory_space<vmem>>, vector<16x768xf32>
    %cst = arith.constant dense<0.000000e+00> : vector<64x768xf32>
    %2 = tpu.matmul %0, %1, %cst {dimension_numbers = #tpu.dot_dimension_numbers<[1], [0], [0], [1], [0, 0, 1, 1], [], []>} : vector<64x16xf32>, vector<16x768xf32>, vector<64x768xf32> -> vector<64x768xf32>
    %c0_3 = arith.constant 0 : index
    %c0_4 = arith.constant 0 : index
    %3 = vector.load %arg3[%c0_3, %c0_4] : memref<1x768xf32, #tpu.memory_space<vmem>>, vector<1x768xf32>
    %4 = vector.broadcast %3 : vector<1x768xf32> to vector<64x768xf32>
    %5 = arith.addf %2, %4 : vector<64x768xf32>
    %c0_5 = arith.constant 0 : index
    %c0_6 = arith.constant 0 : index
    %6 = vector.load %arg12[%c0_5, %c0_6] : memref<64x768xf32, #tpu.memory_space<vmem>>, vector<64x768xf32>
    tpu.vector_store %arg12[%c0_5, %c0_6], %5 {strides = array<i32>} : memref<64x768xf32, #tpu.memory_space<vmem>>, vector<64x768xf32>,
    %cst_7 = arith.constant 0.000000e+00 : f32
    %7 = vector.broadcast %cst_7 : f32 to vector<8x128xf32>
    %cst_8 = arith.constant 0.000000e+00 : f32
    %8 = vector.broadcast %cst_8 : f32 to vector<8x128xf32>
    %c0_9 = arith.constant 0 : index
    %c0_10 = arith.constant 0 : index
    %9 = vector.load %arg4[%c0_9, %c0_10] : memref<1x256xf32, #tpu.memory_space<vmem>>, vector<1x128xf32>
    %10 = vector.shape_cast %9 : vector<1x128xf32> to vector<1x128xf32>
    %11 = vector.broadcast %10 : vector<1x128xf32> to vector<8x128xf32>
    %c0_11 = arith.constant 0 : index
    %c128 = arith.constant 128 : index
    %12 = vector.load %arg4[%c0_11, %c128] : memref<1x256xf32, #tpu.memory_space<vmem>>, vector<1x128xf32>
    %13 = vector.shape_cast %12 : vector<1x128xf32> to vector<1x128xf32>
    %14 = vector.broadcast %13 : vector<1x128xf32> to vector<8x128xf32>
    %c0_12 = arith.constant 0 : index
    %c0_13 = arith.constant 0 : index
    %15 = vector.load %arg12[%c0_12, %c0_13] : memref<64x768xf32, #tpu.memory_space<vmem>>, vector<8x384xf32>
    %c56 = arith.constant 56 : index
    %c384 = arith.constant 384 : index
    %16 = vector.load %arg12[%c56, %c384] : memref<64x768xf32, #tpu.memory_space<vmem>>, vector<8x384xf32>
    %c0_14 = arith.constant 0 : index
    %c0_15 = arith.constant 0 : index
    %17 = vector.load %arg2[%c0_14, %c0_15] : memref<128x768xf32, #tpu.memory_space<vmem>>, vector<128x384xf32>
    %cst_16 = arith.constant dense<0.000000e+00> : vector<8x384xf32>
    %18 = tpu.matmul %7, %17, %cst_16 {dimension_numbers = #tpu.dot_dimension_numbers<[1], [0], [0], [1], [0, 0, 1, 1], [], []>} : vector<8x128xf32>, vector<128x384xf32>, vector<8x384xf32> -> vector<8x384xf32>
    %c0_17 = arith.constant 0 : index
    %c384_18 = arith.constant 384 : index
    %19 = vector.load %arg2[%c0_17, %c384_18] : memref<128x768xf32, #tpu.memory_space<vmem>>, vector<128x384xf32>
    %cst_19 = arith.constant dense<0.000000e+00> : vector<8x384xf32>
    %20 = tpu.matmul %8, %19, %cst_19 {dimension_numbers = #tpu.dot_dimension_numbers<[1], [0], [0], [1], [0, 0, 1, 1], [], []>} : vector<8x128xf32>, vector<128x384xf32>, vector<8x384xf32> -> vector<8x384xf32>
    %21 = vector.extract_strided_slice %15 {offsets = [0, 0], sizes = [8, 128], strides = [1, 1]} : vector<8x384xf32> to vector<8x128xf32>
    %22 = vector.extract_strided_slice %18 {offsets = [0, 0], sizes = [8, 128], strides = [1, 1]} : vector<8x384xf32> to vector<8x128xf32>
    %23 = arith.addf %21, %22 : vector<8x128xf32>
    %24 = arith.negf %23 : vector<8x128xf32>
    %25 = math.exp %24 : vector<8x128xf32>
    %cst_20 = arith.constant 1.000000e+00 : f32
    %26 = vector.broadcast %cst_20 : f32 to vector<8x128xf32>
    %27 = arith.addf %26, %25 : vector<8x128xf32>
    %28 = arith.divf %26, %27 : vector<8x128xf32>
    %29 = vector.extract_strided_slice %15 {offsets = [0, 128], sizes = [8, 128], strides = [1, 1]} : vector<8x384xf32> to vector<8x128xf32>
    %30 = vector.extract_strided_slice %18 {offsets = [0, 128], sizes = [8, 128], strides = [1, 1]} : vector<8x384xf32> to vector<8x128xf32>
    %31 = arith.addf %29, %30 : vector<8x128xf32>
    %32 = arith.negf %31 : vector<8x128xf32>
    %33 = math.exp %32 : vector<8x128xf32>
    %cst_21 = arith.constant 1.000000e+00 : f32
    %34 = vector.broadcast %cst_21 : f32 to vector<8x128xf32>
    %35 = arith.addf %34, %33 : vector<8x128xf32>
    %36 = arith.divf %34, %35 : vector<8x128xf32>
    %37 = vector.extract_strided_slice %15 {offsets = [0, 256], sizes = [8, 128], strides = [1, 1]} : vector<8x384xf32> to vector<8x128xf32>
    %38 = vector.extract_strided_slice %18 {offsets = [0, 256], sizes = [8, 128], strides = [1, 1]} : vector<8x384xf32> to vector<8x128xf32>
    %39 = arith.addf %38, %11 : vector<8x128xf32>
    %40 = arith.mulf %28, %39 : vector<8x128xf32>
    %41 = arith.addf %37, %40 : vector<8x128xf32>
    %42 = math.tanh %41 : vector<8x128xf32>
    %cst_22 = arith.constant 1.000000e+00 : f32
    %43 = vector.broadcast %cst_22 : f32 to vector<8x128xf32>
    %44 = arith.subf %43, %36 : vector<8x128xf32>
    %45 = arith.mulf %44, %42 : vector<8x128xf32>
    %46 = arith.mulf %36, %7 : vector<8x128xf32>
    %47 = arith.addf %45, %46 : vector<8x128xf32>
    %48 = vector.extract_strided_slice %16 {offsets = [0, 0], sizes = [8, 128], strides = [1, 1]} : vector<8x384xf32> to vector<8x128xf32>
    %49 = vector.extract_strided_slice %20 {offsets = [0, 0], sizes = [8, 128], strides = [1, 1]} : vector<8x384xf32> to vector<8x128xf32>
    %50 = arith.addf %48, %49 : vector<8x128xf32>
    %51 = arith.negf %50 : vector<8x128xf32>
    %52 = math.exp %51 : vector<8x128xf32>
    %cst_23 = arith.constant 1.000000e+00 : f32
    %53 = vector.broadcast %cst_23 : f32 to vector<8x128xf32>
    %54 = arith.addf %53, %52 : vector<8x128xf32>
    %55 = arith.divf %53, %54 : vector<8x128xf32>
    %56 = vector.extract_strided_slice %16 {offsets = [0, 128], sizes = [8, 128], strides = [1, 1]} : vector<8x384xf32> to vector<8x128xf32>
    %57 = vector.extract_strided_slice %20 {offsets = [0, 128], sizes = [8, 128], strides = [1, 1]} : vector<8x384xf32> to vector<8x128xf32>
    %58 = arith.addf %56, %57 : vector<8x128xf32>
    %59 = arith.negf %58 : vector<8x128xf32>
    %60 = math.exp %59 : vector<8x128xf32>
    %cst_24 = arith.constant 1.000000e+00 : f32
    %61 = vector.broadcast %cst_24 : f32 to vector<8x128xf32>
    %62 = arith.addf %61, %60 : vector<8x128xf32>
    %63 = arith.divf %61, %62 : vector<8x128xf32>
    %64 = vector.extract_strided_slice %16 {offsets = [0, 256], sizes = [8, 128], strides = [1, 1]} : vector<8x384xf32> to vector<8x128xf32>
    %65 = vector.extract_strided_slice %20 {offsets = [0, 256], sizes = [8, 128], strides = [1, 1]} : vector<8x384xf32> to vector<8x128xf32>
    %66 = arith.addf %65, %14 : vector<8x128xf32>
    %67 = arith.mulf %55, %66 : vector<8x128xf32>
    %68 = arith.addf %64, %67 : vector<8x128xf32>
    %69 = math.tanh %68 : vector<8x128xf32>
    %cst_25 = arith.constant 1.000000e+00 : f32
    %70 = vector.broadcast %cst_25 : f32 to vector<8x128xf32>
    %71 = arith.subf %70, %63 : vector<8x128xf32>
    %72 = arith.mulf %71, %69 : vector<8x128xf32>
    %73 = arith.mulf %63, %8 : vector<8x128xf32>
    %74 = arith.addf %72, %73 : vector<8x128xf32>
    %c0_26 = arith.constant 0 : index
    %c0_27 = arith.constant 0 : index
    %75 = vector.load %arg13[%c0_26, %c0_27] : memref<64x256xf32, #tpu.memory_space<vmem>>, vector<8x128xf32>
    tpu.vector_store %arg13[%c0_26, %c0_27], %47 {strides = array<i32>} : memref<64x256xf32, #tpu.memory_space<vmem>>, vector<8x128xf32>,
    %c56_28 = arith.constant 56 : index
    %c128_29 = arith.constant 128 : index
    %76 = vector.load %arg13[%c56_28, %c128_29] : memref<64x256xf32, #tpu.memory_space<vmem>>, vector<8x128xf32>
    tpu.vector_store %arg13[%c56_28, %c128_29], %74 {strides = array<i32>} : memref<64x256xf32, #tpu.memory_space<vmem>>, vector<8x128xf32>,
    %c8 = arith.constant 8 : index
    %c0_30 = arith.constant 0 : index
    %77 = vector.load %arg12[%c8, %c0_30] : memref<64x768xf32, #tpu.memory_space<vmem>>, vector<8x384xf32>
    %c48 = arith.constant 48 : index
    %c384_31 = arith.constant 384 : index
    %78 = vector.load %arg12[%c48, %c384_31] : memref<64x768xf32, #tpu.memory_space<vmem>>, vector<8x384xf32>
    %c0_32 = arith.constant 0 : index
    %c0_33 = arith.constant 0 : index
    %79 = vector.load %arg2[%c0_32, %c0_33] : memref<128x768xf32, #tpu.memory_space<vmem>>, vector<128x384xf32>
    %cst_34 = arith.constant dense<0.000000e+00> : vector<8x384xf32>
    %80 = tpu.matmul %47, %79, %cst_34 {dimension_numbers = #tpu.dot_dimension_numbers<[1], [0], [0], [1], [0, 0, 1, 1], [], []>} : vector<8x128xf32>, vector<128x384xf32>, vector<8x384xf32> -> vector<8x384xf32>
    %c0_35 = arith.constant 0 : index
    %c384_36 = arith.constant 384 : index
    %81 = vector.load %arg2[%c0_35, %c384_36] : memref<128x768xf32, #tpu.memory_space<vmem>>, vector<128x384xf32>
    %cst_37 = arith.constant dense<0.000000e+00> : vector<8x384xf32>
    %82 = tpu.matmul %74, %81, %cst_37 {dimension_numbers = #tpu.dot_dimension_numbers<[1], [0], [0], [1], [0, 0, 1, 1], [], []>} : vector<8x128xf32>, vector<128x384xf32>, vector<8x384xf32> -> vector<8x384xf32>
    %83 = vector.extract_strided_slice %77 {offsets = [0, 0], sizes = [8, 128], strides = [1, 1]} : vector<8x384xf32> to vector<8x128xf32>
    %84 = vector.extract_strided_slice %80 {offsets = [0, 0], sizes = [8, 128], strides = [1, 1]} : vector<8x384xf32> to vector<8x128xf32>
    %85 = arith.addf %83, %84 : vector<8x128xf32>
    %86 = arith.negf %85 : vector<8x128xf32>
    %87 = math.exp %86 : vector<8x128xf32>
    %cst_38 = arith.constant 1.000000e+00 : f32
    %88 = vector.broadcast %cst_38 : f32 to vector<8x128xf32>
    %89 = arith.addf %88, %87 : vector<8x128xf32>
    %90 = arith.divf %88, %89 : vector<8x128xf32>
    %91 = vector.extract_strided_slice %77 {offsets = [0, 128], sizes = [8, 128], strides = [1, 1]} : vector<8x384xf32> to vector<8x128xf32>
    %92 = vector.extract_strided_slice %80 {offsets = [0, 128], sizes = [8, 128], strides = [1, 1]} : vector<8x384xf32> to vector<8x128xf32>
    %93 = arith.addf %91, %92 : vector<8x128xf32>
    %94 = arith.negf %93 : vector<8x128xf32>
    %95 = math.exp %94 : vector<8x128xf32>
    %cst_39 = arith.constant 1.000000e+00 : f32
    %96 = vector.broadcast %cst_39 : f32 to vector<8x128xf32>
    %97 = arith.addf %96, %95 : vector<8x128xf32>
    %98 = arith.divf %96, %97 : vector<8x128xf32>
    %99 = vector.extract_strided_slice %77 {offsets = [0, 256], sizes = [8, 128], strides = [1, 1]} : vector<8x384xf32> to vector<8x128xf32>
    %100 = vector.extract_strided_slice %80 {offsets = [0, 256], sizes = [8, 128], strides = [1, 1]} : vector<8x384xf32> to vector<8x128xf32>
    %101 = arith.addf %100, %11 : vector<8x128xf32>
    %102 = arith.mulf %90, %101 : vector<8x128xf32>
    %103 = arith.addf %99, %102 : vector<8x128xf32>
    %104 = math.tanh %103 : vector<8x128xf32>
    %cst_40 = arith.constant 1.000000e+00 : f32
    %105 = vector.broadcast %cst_40 : f32 to vector<8x128xf32>
    %106 = arith.subf %105, %98 : vector<8x128xf32>
    %107 = arith.mulf %106, %104 : vector<8x128xf32>
    %108 = arith.mulf %98, %47 : vector<8x128xf32>
    %109 = arith.addf %107, %108 : vector<8x128xf32>
    %110 = vector.extract_strided_slice %78 {offsets = [0, 0], sizes = [8, 128], strides = [1, 1]} : vector<8x384xf32> to vector<8x128xf32>
    %111 = vector.extract_strided_slice %82 {offsets = [0, 0], sizes = [8, 128], strides = [1, 1]} : vector<8x384xf32> to vector<8x128xf32>
    %112 = arith.addf %110, %111 : vector<8x128xf32>
    %113 = arith.negf %112 : vector<8x128xf32>
    %114 = math.exp %113 : vector<8x128xf32>
    %cst_41 = arith.constant 1.000000e+00 : f32
    %115 = vector.broadcast %cst_41 : f32 to vector<8x128xf32>
    %116 = arith.addf %115, %114 : vector<8x128xf32>
    %117 = arith.divf %115, %116 : vector<8x128xf32>
    %118 = vector.extract_strided_slice %78 {offsets = [0, 128], sizes = [8, 128], strides = [1, 1]} : vector<8x384xf32> to vector<8x128xf32>
    %119 = vector.extract_strided_slice %82 {offsets = [0, 128], sizes = [8, 128], strides = [1, 1]} : vector<8x384xf32> to vector<8x128xf32>
    %120 = arith.addf %118, %119 : vector<8x128xf32>
    %121 = arith.negf %120 : vector<8x128xf32>
    %122 = math.exp %121 : vector<8x128xf32>
    %cst_42 = arith.constant 1.000000e+00 : f32
    %123 = vector.broadcast %cst_42 : f32 to vector<8x128xf32>
    %124 = arith.addf %123, %122 : vector<8x128xf32>
    %125 = arith.divf %123, %124 : vector<8x128xf32>
    %126 = vector.extract_strided_slice %78 {offsets = [0, 256], sizes = [8, 128], strides = [1, 1]} : vector<8x384xf32> to vector<8x128xf32>
    %127 = vector.extract_strided_slice %82 {offsets = [0, 256], sizes = [8, 128], strides = [1, 1]} : vector<8x384xf32> to vector<8x128xf32>
    %128 = arith.addf %127, %14 : vector<8x128xf32>
    %129 = arith.mulf %117, %128 : vector<8x128xf32>
    %130 = arith.addf %126, %129 : vector<8x128xf32>
    %131 = math.tanh %130 : vector<8x128xf32>
    %cst_43 = arith.constant 1.000000e+00 : f32
    %132 = vector.broadcast %cst_43 : f32 to vector<8x128xf32>
    %133 = arith.subf %132, %125 : vector<8x128xf32>
    %134 = arith.mulf %133, %131 : vector<8x128xf32>
    %135 = arith.mulf %125, %74 : vector<8x128xf32>
    %136 = arith.addf %134, %135 : vector<8x128xf32>
    %c8_44 = arith.constant 8 : index
    %c0_45 = arith.constant 0 : index
    %137 = vector.load %arg13[%c8_44, %c0_45] : memref<64x256xf32, #tpu.memory_space<vmem>>, vector<8x128xf32>
    tpu.vector_store %arg13[%c8_44, %c0_45], %109 {strides = array<i32>} : memref<64x256xf32, #tpu.memory_space<vmem>>, vector<8x128xf32>,
    %c48_46 = arith.constant 48 : index
    %c128_47 = arith.constant 128 : index
    %138 = vector.load %arg13[%c48_46, %c128_47] : memref<64x256xf32, #tpu.memory_space<vmem>>, vector<8x128xf32>
    tpu.vector_store %arg13[%c48_46, %c128_47], %136 {strides = array<i32>} : memref<64x256xf32, #tpu.memory_space<vmem>>, vector<8x128xf32>,
    %c16 = arith.constant 16 : index
    %c0_48 = arith.constant 0 : index
    %139 = vector.load %arg12[%c16, %c0_48] : memref<64x768xf32, #tpu.memory_space<vmem>>, vector<8x384xf32>
    %c40 = arith.constant 40 : index
    %c384_49 = arith.constant 384 : index
    %140 = vector.load %arg12[%c40, %c384_49] : memref<64x768xf32, #tpu.memory_space<vmem>>, vector<8x384xf32>
    %c0_50 = arith.constant 0 : index
    %c0_51 = arith.constant 0 : index
    %141 = vector.load %arg2[%c0_50, %c0_51] : memref<128x768xf32, #tpu.memory_space<vmem>>, vector<128x384xf32>
    %cst_52 = arith.constant dense<0.000000e+00> : vector<8x384xf32>
    %142 = tpu.matmul %109, %141, %cst_52 {dimension_numbers = #tpu.dot_dimension_numbers<[1], [0], [0], [1], [0, 0, 1, 1], [], []>} : vector<8x128xf32>, vector<128x384xf32>, vector<8x384xf32> -> vector<8x384xf32>
    %c0_53 = arith.constant 0 : index
    %c384_54 = arith.constant 384 : index
    %143 = vector.load %arg2[%c0_53, %c384_54] : memref<128x768xf32, #tpu.memory_space<vmem>>, vector<128x384xf32>
    %cst_55 = arith.constant dense<0.000000e+00> : vector<8x384xf32>
    %144 = tpu.matmul %136, %143, %cst_55 {dimension_numbers = #tpu.dot_dimension_numbers<[1], [0], [0], [1], [0, 0, 1, 1], [], []>} : vector<8x128xf32>, vector<128x384xf32>, vector<8x384xf32> -> vector<8x384xf32>
    %145 = vector.extract_strided_slice %139 {offsets = [0, 0], sizes = [8, 128], strides = [1, 1]} : vector<8x384xf32> to vector<8x128xf32>
    %146 = vector.extract_strided_slice %142 {offsets = [0, 0], sizes = [8, 128], strides = [1, 1]} : vector<8x384xf32> to vector<8x128xf32>
    %147 = arith.addf %145, %146 : vector<8x128xf32>
    %148 = arith.negf %147 : vector<8x128xf32>
    %149 = math.exp %148 : vector<8x128xf32>
    %cst_56 = arith.constant 1.000000e+00 : f32
    %150 = vector.broadcast %cst_56 : f32 to vector<8x128xf32>
    %151 = arith.addf %150, %149 : vector<8x128xf32>
    %152 = arith.divf %150, %151 : vector<8x128xf32>
    %153 = vector.extract_strided_slice %139 {offsets = [0, 128], sizes = [8, 128], strides = [1, 1]} : vector<8x384xf32> to vector<8x128xf32>
    %154 = vector.extract_strided_slice %142 {offsets = [0, 128], sizes = [8, 128], strides = [1, 1]} : vector<8x384xf32> to vector<8x128xf32>
    %155 = arith.addf %153, %154 : vector<8x128xf32>
    %156 = arith.negf %155 : vector<8x128xf32>
    %157 = math.exp %156 : vector<8x128xf32>
    %cst_57 = arith.constant 1.000000e+00 : f32
    %158 = vector.broadcast %cst_57 : f32 to vector<8x128xf32>
    %159 = arith.addf %158, %157 : vector<8x128xf32>
    %160 = arith.divf %158, %159 : vector<8x128xf32>
    %161 = vector.extract_strided_slice %139 {offsets = [0, 256], sizes = [8, 128], strides = [1, 1]} : vector<8x384xf32> to vector<8x128xf32>
    %162 = vector.extract_strided_slice %142 {offsets = [0, 256], sizes = [8, 128], strides = [1, 1]} : vector<8x384xf32> to vector<8x128xf32>
    %163 = arith.addf %162, %11 : vector<8x128xf32>
    %164 = arith.mulf %152, %163 : vector<8x128xf32>
    %165 = arith.addf %161, %164 : vector<8x128xf32>
    %166 = math.tanh %165 : vector<8x128xf32>
    %cst_58 = arith.constant 1.000000e+00 : f32
    %167 = vector.broadcast %cst_58 : f32 to vector<8x128xf32>
    %168 = arith.subf %167, %160 : vector<8x128xf32>
    %169 = arith.mulf %168, %166 : vector<8x128xf32>
    %170 = arith.mulf %160, %109 : vector<8x128xf32>
    %171 = arith.addf %169, %170 : vector<8x128xf32>
    %172 = vector.extract_strided_slice %140 {offsets = [0, 0], sizes = [8, 128], strides = [1, 1]} : vector<8x384xf32> to vector<8x128xf32>
    %173 = vector.extract_strided_slice %144 {offsets = [0, 0], sizes = [8, 128], strides = [1, 1]} : vector<8x384xf32> to vector<8x128xf32>
    %174 = arith.addf %172, %173 : vector<8x128xf32>
    %175 = arith.negf %174 : vector<8x128xf32>
    %176 = math.exp %175 : vector<8x128xf32>
    %cst_59 = arith.constant 1.000000e+00 : f32
    %177 = vector.broadcast %cst_59 : f32 to vector<8x128xf32>
    %178 = arith.addf %177, %176 : vector<8x128xf32>
    %179 = arith.divf %177, %178 : vector<8x128xf32>
    %180 = vector.extract_strided_slice %140 {offsets = [0, 128], sizes = [8, 128], strides = [1, 1]} : vector<8x384xf32> to vector<8x128xf32>
    %181 = vector.extract_strided_slice %144 {offsets = [0, 128], sizes = [8, 128], strides = [1, 1]} : vector<8x384xf32> to vector<8x128xf32>
    %182 = arith.addf %180, %181 : vector<8x128xf32>
    %183 = arith.negf %182 : vector<8x128xf32>
    %184 = math.exp %183 : vector<8x128xf32>
    %cst_60 = arith.constant 1.000000e+00 : f32
    %185 = vector.broadcast %cst_60 : f32 to vector<8x128xf32>
    %186 = arith.addf %185, %184 : vector<8x128xf32>
    %187 = arith.divf %185, %186 : vector<8x128xf32>
    %188 = vector.extract_strided_slice %140 {offsets = [0, 256], sizes = [8, 128], strides = [1, 1]} : vector<8x384xf32> to vector<8x128xf32>
    %189 = vector.extract_strided_slice %144 {offsets = [0, 256], sizes = [8, 128], strides = [1, 1]} : vector<8x384xf32> to vector<8x128xf32>
    %190 = arith.addf %189, %14 : vector<8x128xf32>
    %191 = arith.mulf %179, %190 : vector<8x128xf32>
    %192 = arith.addf %188, %191 : vector<8x128xf32>
    %193 = math.tanh %192 : vector<8x128xf32>
    %cst_61 = arith.constant 1.000000e+00 : f32
    %194 = vector.broadcast %cst_61 : f32 to vector<8x128xf32>
    %195 = arith.subf %194, %187 : vector<8x128xf32>
    %196 = arith.mulf %195, %193 : vector<8x128xf32>
    %197 = arith.mulf %187, %136 : vector<8x128xf32>
    %198 = arith.addf %196, %197 : vector<8x128xf32>
    %c16_62 = arith.constant 16 : index
    %c0_63 = arith.constant 0 : index
    %199 = vector.load %arg13[%c16_62, %c0_63] : memref<64x256xf32, #tpu.memory_space<vmem>>, vector<8x128xf32>
    tpu.vector_store %arg13[%c16_62, %c0_63], %171 {strides = array<i32>} : memref<64x256xf32, #tpu.memory_space<vmem>>, vector<8x128xf32>,
    %c40_64 = arith.constant 40 : index
    %c128_65 = arith.constant 128 : index
    %200 = vector.load %arg13[%c40_64, %c128_65] : memref<64x256xf32, #tpu.memory_space<vmem>>, vector<8x128xf32>
    tpu.vector_store %arg13[%c40_64, %c128_65], %198 {strides = array<i32>} : memref<64x256xf32, #tpu.memory_space<vmem>>, vector<8x128xf32>,
    %c24 = arith.constant 24 : index
    %c0_66 = arith.constant 0 : index
    %201 = vector.load %arg12[%c24, %c0_66] : memref<64x768xf32, #tpu.memory_space<vmem>>, vector<8x384xf32>
    %c32 = arith.constant 32 : index
    %c384_67 = arith.constant 384 : index
    %202 = vector.load %arg12[%c32, %c384_67] : memref<64x768xf32, #tpu.memory_space<vmem>>, vector<8x384xf32>
    %c0_68 = arith.constant 0 : index
    %c0_69 = arith.constant 0 : index
    %203 = vector.load %arg2[%c0_68, %c0_69] : memref<128x768xf32, #tpu.memory_space<vmem>>, vector<128x384xf32>
    %cst_70 = arith.constant dense<0.000000e+00> : vector<8x384xf32>
    %204 = tpu.matmul %171, %203, %cst_70 {dimension_numbers = #tpu.dot_dimension_numbers<[1], [0], [0], [1], [0, 0, 1, 1], [], []>} : vector<8x128xf32>, vector<128x384xf32>, vector<8x384xf32> -> vector<8x384xf32>
    %c0_71 = arith.constant 0 : index
    %c384_72 = arith.constant 384 : index
    %205 = vector.load %arg2[%c0_71, %c384_72] : memref<128x768xf32, #tpu.memory_space<vmem>>, vector<128x384xf32>
    %cst_73 = arith.constant dense<0.000000e+00> : vector<8x384xf32>
    %206 = tpu.matmul %198, %205, %cst_73 {dimension_numbers = #tpu.dot_dimension_numbers<[1], [0], [0], [1], [0, 0, 1, 1], [], []>} : vector<8x128xf32>, vector<128x384xf32>, vector<8x384xf32> -> vector<8x384xf32>
    %207 = vector.extract_strided_slice %201 {offsets = [0, 0], sizes = [8, 128], strides = [1, 1]} : vector<8x384xf32> to vector<8x128xf32>
    %208 = vector.extract_strided_slice %204 {offsets = [0, 0], sizes = [8, 128], strides = [1, 1]} : vector<8x384xf32> to vector<8x128xf32>
    %209 = arith.addf %207, %208 : vector<8x128xf32>
    %210 = arith.negf %209 : vector<8x128xf32>
    %211 = math.exp %210 : vector<8x128xf32>
    %cst_74 = arith.constant 1.000000e+00 : f32
    %212 = vector.broadcast %cst_74 : f32 to vector<8x128xf32>
    %213 = arith.addf %212, %211 : vector<8x128xf32>
    %214 = arith.divf %212, %213 : vector<8x128xf32>
    %215 = vector.extract_strided_slice %201 {offsets = [0, 128], sizes = [8, 128], strides = [1, 1]} : vector<8x384xf32> to vector<8x128xf32>
    %216 = vector.extract_strided_slice %204 {offsets = [0, 128], sizes = [8, 128], strides = [1, 1]} : vector<8x384xf32> to vector<8x128xf32>
    %217 = arith.addf %215, %216 : vector<8x128xf32>
    %218 = arith.negf %217 : vector<8x128xf32>
    %219 = math.exp %218 : vector<8x128xf32>
    %cst_75 = arith.constant 1.000000e+00 : f32
    %220 = vector.broadcast %cst_75 : f32 to vector<8x128xf32>
    %221 = arith.addf %220, %219 : vector<8x128xf32>
    %222 = arith.divf %220, %221 : vector<8x128xf32>
    %223 = vector.extract_strided_slice %201 {offsets = [0, 256], sizes = [8, 128], strides = [1, 1]} : vector<8x384xf32> to vector<8x128xf32>
    %224 = vector.extract_strided_slice %204 {offsets = [0, 256], sizes = [8, 128], strides = [1, 1]} : vector<8x384xf32> to vector<8x128xf32>
    %225 = arith.addf %224, %11 : vector<8x128xf32>
    %226 = arith.mulf %214, %225 : vector<8x128xf32>
    %227 = arith.addf %223, %226 : vector<8x128xf32>
    %228 = math.tanh %227 : vector<8x128xf32>
    %cst_76 = arith.constant 1.000000e+00 : f32
    %229 = vector.broadcast %cst_76 : f32 to vector<8x128xf32>
    %230 = arith.subf %229, %222 : vector<8x128xf32>
    %231 = arith.mulf %230, %228 : vector<8x128xf32>
    %232 = arith.mulf %222, %171 : vector<8x128xf32>
    %233 = arith.addf %231, %232 : vector<8x128xf32>
    %234 = vector.extract_strided_slice %202 {offsets = [0, 0], sizes = [8, 128], strides = [1, 1]} : vector<8x384xf32> to vector<8x128xf32>
    %235 = vector.extract_strided_slice %206 {offsets = [0, 0], sizes = [8, 128], strides = [1, 1]} : vector<8x384xf32> to vector<8x128xf32>
    %236 = arith.addf %234, %235 : vector<8x128xf32>
    %237 = arith.negf %236 : vector<8x128xf32>
    %238 = math.exp %237 : vector<8x128xf32>
    %cst_77 = arith.constant 1.000000e+00 : f32
    %239 = vector.broadcast %cst_77 : f32 to vector<8x128xf32>
    %240 = arith.addf %239, %238 : vector<8x128xf32>
    %241 = arith.divf %239, %240 : vector<8x128xf32>
    %242 = vector.extract_strided_slice %202 {offsets = [0, 128], sizes = [8, 128], strides = [1, 1]} : vector<8x384xf32> to vector<8x128xf32>
    %243 = vector.extract_strided_slice %206 {offsets = [0, 128], sizes = [8, 128], strides = [1, 1]} : vector<8x384xf32> to vector<8x128xf32>
    %244 = arith.addf %242, %243 : vector<8x128xf32>
    %245 = arith.negf %244 : vector<8x128xf32>
    %246 = math.exp %245 : vector<8x128xf32>
    %cst_78 = arith.constant 1.000000e+00 : f32
    %247 = vector.broadcast %cst_78 : f32 to vector<8x128xf32>
    %248 = arith.addf %247, %246 : vector<8x128xf32>
    %249 = arith.divf %247, %248 : vector<8x128xf32>
    %250 = vector.extract_strided_slice %202 {offsets = [0, 256], sizes = [8, 128], strides = [1, 1]} : vector<8x384xf32> to vector<8x128xf32>
    %251 = vector.extract_strided_slice %206 {offsets = [0, 256], sizes = [8, 128], strides = [1, 1]} : vector<8x384xf32> to vector<8x128xf32>
    %252 = arith.addf %251, %14 : vector<8x128xf32>
    %253 = arith.mulf %241, %252 : vector<8x128xf32>
    %254 = arith.addf %250, %253 : vector<8x128xf32>
    %255 = math.tanh %254 : vector<8x128xf32>
    %cst_79 = arith.constant 1.000000e+00 : f32
    %256 = vector.broadcast %cst_79 : f32 to vector<8x128xf32>
    %257 = arith.subf %256, %249 : vector<8x128xf32>
    %258 = arith.mulf %257, %255 : vector<8x128xf32>
    %259 = arith.mulf %249, %198 : vector<8x128xf32>
    %260 = arith.addf %258, %259 : vector<8x128xf32>
    %c24_80 = arith.constant 24 : index
    %c0_81 = arith.constant 0 : index
    %261 = vector.load %arg13[%c24_80, %c0_81] : memref<64x256xf32, #tpu.memory_space<vmem>>, vector<8x128xf32>
    tpu.vector_store %arg13[%c24_80, %c0_81], %233 {strides = array<i32>} : memref<64x256xf32, #tpu.memory_space<vmem>>, vector<8x128xf32>,
    %c32_82 = arith.constant 32 : index
    %c128_83 = arith.constant 128 : index
    %262 = vector.load %arg13[%c32_82, %c128_83] : memref<64x256xf32, #tpu.memory_space<vmem>>, vector<8x128xf32>
    tpu.vector_store %arg13[%c32_82, %c128_83], %260 {strides = array<i32>} : memref<64x256xf32, #tpu.memory_space<vmem>>, vector<8x128xf32>,
    %c32_84 = arith.constant 32 : index
    %c0_85 = arith.constant 0 : index
    %263 = vector.load %arg12[%c32_84, %c0_85] : memref<64x768xf32, #tpu.memory_space<vmem>>, vector<8x384xf32>
    %c24_86 = arith.constant 24 : index
    %c384_87 = arith.constant 384 : index
    %264 = vector.load %arg12[%c24_86, %c384_87] : memref<64x768xf32, #tpu.memory_space<vmem>>, vector<8x384xf32>
    %c0_88 = arith.constant 0 : index
    %c0_89 = arith.constant 0 : index
    %265 = vector.load %arg2[%c0_88, %c0_89] : memref<128x768xf32, #tpu.memory_space<vmem>>, vector<128x384xf32>
    %cst_90 = arith.constant dense<0.000000e+00> : vector<8x384xf32>
    %266 = tpu.matmul %233, %265, %cst_90 {dimension_numbers = #tpu.dot_dimension_numbers<[1], [0], [0], [1], [0, 0, 1, 1], [], []>} : vector<8x128xf32>, vector<128x384xf32>, vector<8x384xf32> -> vector<8x384xf32>
    %c0_91 = arith.constant 0 : index
    %c384_92 = arith.constant 384 : index
    %267 = vector.load %arg2[%c0_91, %c384_92] : memref<128x768xf32, #tpu.memory_space<vmem>>, vector<128x384xf32>
    %cst_93 = arith.constant dense<0.000000e+00> : vector<8x384xf32>
    %268 = tpu.matmul %260, %267, %cst_93 {dimension_numbers = #tpu.dot_dimension_numbers<[1], [0], [0], [1], [0, 0, 1, 1], [], []>} : vector<8x128xf32>, vector<128x384xf32>, vector<8x384xf32> -> vector<8x384xf32>
    %269 = vector.extract_strided_slice %263 {offsets = [0, 0], sizes = [8, 128], strides = [1, 1]} : vector<8x384xf32> to vector<8x128xf32>
    %270 = vector.extract_strided_slice %266 {offsets = [0, 0], sizes = [8, 128], strides = [1, 1]} : vector<8x384xf32> to vector<8x128xf32>
    %271 = arith.addf %269, %270 : vector<8x128xf32>
    %272 = arith.negf %271 : vector<8x128xf32>
    %273 = math.exp %272 : vector<8x128xf32>
    %cst_94 = arith.constant 1.000000e+00 : f32
    %274 = vector.broadcast %cst_94 : f32 to vector<8x128xf32>
    %275 = arith.addf %274, %273 : vector<8x128xf32>
    %276 = arith.divf %274, %275 : vector<8x128xf32>
    %277 = vector.extract_strided_slice %263 {offsets = [0, 128], sizes = [8, 128], strides = [1, 1]} : vector<8x384xf32> to vector<8x128xf32>
    %278 = vector.extract_strided_slice %266 {offsets = [0, 128], sizes = [8, 128], strides = [1, 1]} : vector<8x384xf32> to vector<8x128xf32>
    %279 = arith.addf %277, %278 : vector<8x128xf32>
    %280 = arith.negf %279 : vector<8x128xf32>
    %281 = math.exp %280 : vector<8x128xf32>
    %cst_95 = arith.constant 1.000000e+00 : f32
    %282 = vector.broadcast %cst_95 : f32 to vector<8x128xf32>
    %283 = arith.addf %282, %281 : vector<8x128xf32>
    %284 = arith.divf %282, %283 : vector<8x128xf32>
    %285 = vector.extract_strided_slice %263 {offsets = [0, 256], sizes = [8, 128], strides = [1, 1]} : vector<8x384xf32> to vector<8x128xf32>
    %286 = vector.extract_strided_slice %266 {offsets = [0, 256], sizes = [8, 128], strides = [1, 1]} : vector<8x384xf32> to vector<8x128xf32>
    %287 = arith.addf %286, %11 : vector<8x128xf32>
    %288 = arith.mulf %276, %287 : vector<8x128xf32>
    %289 = arith.addf %285, %288 : vector<8x128xf32>
    %290 = math.tanh %289 : vector<8x128xf32>
    %cst_96 = arith.constant 1.000000e+00 : f32
    %291 = vector.broadcast %cst_96 : f32 to vector<8x128xf32>
    %292 = arith.subf %291, %284 : vector<8x128xf32>
    %293 = arith.mulf %292, %290 : vector<8x128xf32>
    %294 = arith.mulf %284, %233 : vector<8x128xf32>
    %295 = arith.addf %293, %294 : vector<8x128xf32>
    %296 = vector.extract_strided_slice %264 {offsets = [0, 0], sizes = [8, 128], strides = [1, 1]} : vector<8x384xf32> to vector<8x128xf32>
    %297 = vector.extract_strided_slice %268 {offsets = [0, 0], sizes = [8, 128], strides = [1, 1]} : vector<8x384xf32> to vector<8x128xf32>
    %298 = arith.addf %296, %297 : vector<8x128xf32>
    %299 = arith.negf %298 : vector<8x128xf32>
    %300 = math.exp %299 : vector<8x128xf32>
    %cst_97 = arith.constant 1.000000e+00 : f32
    %301 = vector.broadcast %cst_97 : f32 to vector<8x128xf32>
    %302 = arith.addf %301, %300 : vector<8x128xf32>
    %303 = arith.divf %301, %302 : vector<8x128xf32>
    %304 = vector.extract_strided_slice %264 {offsets = [0, 128], sizes = [8, 128], strides = [1, 1]} : vector<8x384xf32> to vector<8x128xf32>
    %305 = vector.extract_strided_slice %268 {offsets = [0, 128], sizes = [8, 128], strides = [1, 1]} : vector<8x384xf32> to vector<8x128xf32>
    %306 = arith.addf %304, %305 : vector<8x128xf32>
    %307 = arith.negf %306 : vector<8x128xf32>
    %308 = math.exp %307 : vector<8x128xf32>
    %cst_98 = arith.constant 1.000000e+00 : f32
    %309 = vector.broadcast %cst_98 : f32 to vector<8x128xf32>
    %310 = arith.addf %309, %308 : vector<8x128xf32>
    %311 = arith.divf %309, %310 : vector<8x128xf32>
    %312 = vector.extract_strided_slice %264 {offsets = [0, 256], sizes = [8, 128], strides = [1, 1]} : vector<8x384xf32> to vector<8x128xf32>
    %313 = vector.extract_strided_slice %268 {offsets = [0, 256], sizes = [8, 128], strides = [1, 1]} : vector<8x384xf32> to vector<8x128xf32>
    %314 = arith.addf %313, %14 : vector<8x128xf32>
    %315 = arith.mulf %303, %314 : vector<8x128xf32>
    %316 = arith.addf %312, %315 : vector<8x128xf32>
    %317 = math.tanh %316 : vector<8x128xf32>
    %cst_99 = arith.constant 1.000000e+00 : f32
    %318 = vector.broadcast %cst_99 : f32 to vector<8x128xf32>
    %319 = arith.subf %318, %311 : vector<8x128xf32>
    %320 = arith.mulf %319, %317 : vector<8x128xf32>
    %321 = arith.mulf %311, %260 : vector<8x128xf32>
    %322 = arith.addf %320, %321 : vector<8x128xf32>
    %c32_100 = arith.constant 32 : index
    %c0_101 = arith.constant 0 : index
    %323 = vector.load %arg13[%c32_100, %c0_101] : memref<64x256xf32, #tpu.memory_space<vmem>>, vector<8x128xf32>
    tpu.vector_store %arg13[%c32_100, %c0_101], %295 {strides = array<i32>} : memref<64x256xf32, #tpu.memory_space<vmem>>, vector<8x128xf32>,
    %c24_102 = arith.constant 24 : index
    %c128_103 = arith.constant 128 : index
    %324 = vector.load %arg13[%c24_102, %c128_103] : memref<64x256xf32, #tpu.memory_space<vmem>>, vector<8x128xf32>
    tpu.vector_store %arg13[%c24_102, %c128_103], %322 {strides = array<i32>} : memref<64x256xf32, #tpu.memory_space<vmem>>, vector<8x128xf32>,
    %c40_104 = arith.constant 40 : index
    %c0_105 = arith.constant 0 : index
    %325 = vector.load %arg12[%c40_104, %c0_105] : memref<64x768xf32, #tpu.memory_space<vmem>>, vector<8x384xf32>
    %c16_106 = arith.constant 16 : index
    %c384_107 = arith.constant 384 : index
    %326 = vector.load %arg12[%c16_106, %c384_107] : memref<64x768xf32, #tpu.memory_space<vmem>>, vector<8x384xf32>
    %c0_108 = arith.constant 0 : index
    %c0_109 = arith.constant 0 : index
    %327 = vector.load %arg2[%c0_108, %c0_109] : memref<128x768xf32, #tpu.memory_space<vmem>>, vector<128x384xf32>
    %cst_110 = arith.constant dense<0.000000e+00> : vector<8x384xf32>
    %328 = tpu.matmul %295, %327, %cst_110 {dimension_numbers = #tpu.dot_dimension_numbers<[1], [0], [0], [1], [0, 0, 1, 1], [], []>} : vector<8x128xf32>, vector<128x384xf32>, vector<8x384xf32> -> vector<8x384xf32>
    %c0_111 = arith.constant 0 : index
    %c384_112 = arith.constant 384 : index
    %329 = vector.load %arg2[%c0_111, %c384_112] : memref<128x768xf32, #tpu.memory_space<vmem>>, vector<128x384xf32>
    %cst_113 = arith.constant dense<0.000000e+00> : vector<8x384xf32>
    %330 = tpu.matmul %322, %329, %cst_113 {dimension_numbers = #tpu.dot_dimension_numbers<[1], [0], [0], [1], [0, 0, 1, 1], [], []>} : vector<8x128xf32>, vector<128x384xf32>, vector<8x384xf32> -> vector<8x384xf32>
    %331 = vector.extract_strided_slice %325 {offsets = [0, 0], sizes = [8, 128], strides = [1, 1]} : vector<8x384xf32> to vector<8x128xf32>
    %332 = vector.extract_strided_slice %328 {offsets = [0, 0], sizes = [8, 128], strides = [1, 1]} : vector<8x384xf32> to vector<8x128xf32>
    %333 = arith.addf %331, %332 : vector<8x128xf32>
    %334 = arith.negf %333 : vector<8x128xf32>
    %335 = math.exp %334 : vector<8x128xf32>
    %cst_114 = arith.constant 1.000000e+00 : f32
    %336 = vector.broadcast %cst_114 : f32 to vector<8x128xf32>
    %337 = arith.addf %336, %335 : vector<8x128xf32>
    %338 = arith.divf %336, %337 : vector<8x128xf32>
    %339 = vector.extract_strided_slice %325 {offsets = [0, 128], sizes = [8, 128], strides = [1, 1]} : vector<8x384xf32> to vector<8x128xf32>
    %340 = vector.extract_strided_slice %328 {offsets = [0, 128], sizes = [8, 128], strides = [1, 1]} : vector<8x384xf32> to vector<8x128xf32>
    %341 = arith.addf %339, %340 : vector<8x128xf32>
    %342 = arith.negf %341 : vector<8x128xf32>
    %343 = math.exp %342 : vector<8x128xf32>
    %cst_115 = arith.constant 1.000000e+00 : f32
    %344 = vector.broadcast %cst_115 : f32 to vector<8x128xf32>
    %345 = arith.addf %344, %343 : vector<8x128xf32>
    %346 = arith.divf %344, %345 : vector<8x128xf32>
    %347 = vector.extract_strided_slice %325 {offsets = [0, 256], sizes = [8, 128], strides = [1, 1]} : vector<8x384xf32> to vector<8x128xf32>
    %348 = vector.extract_strided_slice %328 {offsets = [0, 256], sizes = [8, 128], strides = [1, 1]} : vector<8x384xf32> to vector<8x128xf32>
    %349 = arith.addf %348, %11 : vector<8x128xf32>
    %350 = arith.mulf %338, %349 : vector<8x128xf32>
    %351 = arith.addf %347, %350 : vector<8x128xf32>
    %352 = math.tanh %351 : vector<8x128xf32>
    %cst_116 = arith.constant 1.000000e+00 : f32
    %353 = vector.broadcast %cst_116 : f32 to vector<8x128xf32>
    %354 = arith.subf %353, %346 : vector<8x128xf32>
    %355 = arith.mulf %354, %352 : vector<8x128xf32>
    %356 = arith.mulf %346, %295 : vector<8x128xf32>
    %357 = arith.addf %355, %356 : vector<8x128xf32>
    %358 = vector.extract_strided_slice %326 {offsets = [0, 0], sizes = [8, 128], strides = [1, 1]} : vector<8x384xf32> to vector<8x128xf32>
    %359 = vector.extract_strided_slice %330 {offsets = [0, 0], sizes = [8, 128], strides = [1, 1]} : vector<8x384xf32> to vector<8x128xf32>
    %360 = arith.addf %358, %359 : vector<8x128xf32>
    %361 = arith.negf %360 : vector<8x128xf32>
    %362 = math.exp %361 : vector<8x128xf32>
    %cst_117 = arith.constant 1.000000e+00 : f32
    %363 = vector.broadcast %cst_117 : f32 to vector<8x128xf32>
    %364 = arith.addf %363, %362 : vector<8x128xf32>
    %365 = arith.divf %363, %364 : vector<8x128xf32>
    %366 = vector.extract_strided_slice %326 {offsets = [0, 128], sizes = [8, 128], strides = [1, 1]} : vector<8x384xf32> to vector<8x128xf32>
    %367 = vector.extract_strided_slice %330 {offsets = [0, 128], sizes = [8, 128], strides = [1, 1]} : vector<8x384xf32> to vector<8x128xf32>
    %368 = arith.addf %366, %367 : vector<8x128xf32>
    %369 = arith.negf %368 : vector<8x128xf32>
    %370 = math.exp %369 : vector<8x128xf32>
    %cst_118 = arith.constant 1.000000e+00 : f32
    %371 = vector.broadcast %cst_118 : f32 to vector<8x128xf32>
    %372 = arith.addf %371, %370 : vector<8x128xf32>
    %373 = arith.divf %371, %372 : vector<8x128xf32>
    %374 = vector.extract_strided_slice %326 {offsets = [0, 256], sizes = [8, 128], strides = [1, 1]} : vector<8x384xf32> to vector<8x128xf32>
    %375 = vector.extract_strided_slice %330 {offsets = [0, 256], sizes = [8, 128], strides = [1, 1]} : vector<8x384xf32> to vector<8x128xf32>
    %376 = arith.addf %375, %14 : vector<8x128xf32>
    %377 = arith.mulf %365, %376 : vector<8x128xf32>
    %378 = arith.addf %374, %377 : vector<8x128xf32>
    %379 = math.tanh %378 : vector<8x128xf32>
    %cst_119 = arith.constant 1.000000e+00 : f32
    %380 = vector.broadcast %cst_119 : f32 to vector<8x128xf32>
    %381 = arith.subf %380, %373 : vector<8x128xf32>
    %382 = arith.mulf %381, %379 : vector<8x128xf32>
    %383 = arith.mulf %373, %322 : vector<8x128xf32>
    %384 = arith.addf %382, %383 : vector<8x128xf32>
    %c40_120 = arith.constant 40 : index
    %c0_121 = arith.constant 0 : index
    %385 = vector.load %arg13[%c40_120, %c0_121] : memref<64x256xf32, #tpu.memory_space<vmem>>, vector<8x128xf32>
    tpu.vector_store %arg13[%c40_120, %c0_121], %357 {strides = array<i32>} : memref<64x256xf32, #tpu.memory_space<vmem>>, vector<8x128xf32>,
    %c16_122 = arith.constant 16 : index
    %c128_123 = arith.constant 128 : index
    %386 = vector.load %arg13[%c16_122, %c128_123] : memref<64x256xf32, #tpu.memory_space<vmem>>, vector<8x128xf32>
    tpu.vector_store %arg13[%c16_122, %c128_123], %384 {strides = array<i32>} : memref<64x256xf32, #tpu.memory_space<vmem>>, vector<8x128xf32>,
    %c48_124 = arith.constant 48 : index
    %c0_125 = arith.constant 0 : index
    %387 = vector.load %arg12[%c48_124, %c0_125] : memref<64x768xf32, #tpu.memory_space<vmem>>, vector<8x384xf32>
    %c8_126 = arith.constant 8 : index
    %c384_127 = arith.constant 384 : index
    %388 = vector.load %arg12[%c8_126, %c384_127] : memref<64x768xf32, #tpu.memory_space<vmem>>, vector<8x384xf32>
    %c0_128 = arith.constant 0 : index
    %c0_129 = arith.constant 0 : index
    %389 = vector.load %arg2[%c0_128, %c0_129] : memref<128x768xf32, #tpu.memory_space<vmem>>, vector<128x384xf32>
    %cst_130 = arith.constant dense<0.000000e+00> : vector<8x384xf32>
    %390 = tpu.matmul %357, %389, %cst_130 {dimension_numbers = #tpu.dot_dimension_numbers<[1], [0], [0], [1], [0, 0, 1, 1], [], []>} : vector<8x128xf32>, vector<128x384xf32>, vector<8x384xf32> -> vector<8x384xf32>
    %c0_131 = arith.constant 0 : index
    %c384_132 = arith.constant 384 : index
    %391 = vector.load %arg2[%c0_131, %c384_132] : memref<128x768xf32, #tpu.memory_space<vmem>>, vector<128x384xf32>
    %cst_133 = arith.constant dense<0.000000e+00> : vector<8x384xf32>
    %392 = tpu.matmul %384, %391, %cst_133 {dimension_numbers = #tpu.dot_dimension_numbers<[1], [0], [0], [1], [0, 0, 1, 1], [], []>} : vector<8x128xf32>, vector<128x384xf32>, vector<8x384xf32> -> vector<8x384xf32>
    %393 = vector.extract_strided_slice %387 {offsets = [0, 0], sizes = [8, 128], strides = [1, 1]} : vector<8x384xf32> to vector<8x128xf32>
    %394 = vector.extract_strided_slice %390 {offsets = [0, 0], sizes = [8, 128], strides = [1, 1]} : vector<8x384xf32> to vector<8x128xf32>
    %395 = arith.addf %393, %394 : vector<8x128xf32>
    %396 = arith.negf %395 : vector<8x128xf32>
    %397 = math.exp %396 : vector<8x128xf32>
    %cst_134 = arith.constant 1.000000e+00 : f32
    %398 = vector.broadcast %cst_134 : f32 to vector<8x128xf32>
    %399 = arith.addf %398, %397 : vector<8x128xf32>
    %400 = arith.divf %398, %399 : vector<8x128xf32>
    %401 = vector.extract_strided_slice %387 {offsets = [0, 128], sizes = [8, 128], strides = [1, 1]} : vector<8x384xf32> to vector<8x128xf32>
    %402 = vector.extract_strided_slice %390 {offsets = [0, 128], sizes = [8, 128], strides = [1, 1]} : vector<8x384xf32> to vector<8x128xf32>
    %403 = arith.addf %401, %402 : vector<8x128xf32>
    %404 = arith.negf %403 : vector<8x128xf32>
    %405 = math.exp %404 : vector<8x128xf32>
    %cst_135 = arith.constant 1.000000e+00 : f32
    %406 = vector.broadcast %cst_135 : f32 to vector<8x128xf32>
    %407 = arith.addf %406, %405 : vector<8x128xf32>
    %408 = arith.divf %406, %407 : vector<8x128xf32>
    %409 = vector.extract_strided_slice %387 {offsets = [0, 256], sizes = [8, 128], strides = [1, 1]} : vector<8x384xf32> to vector<8x128xf32>
    %410 = vector.extract_strided_slice %390 {offsets = [0, 256], sizes = [8, 128], strides = [1, 1]} : vector<8x384xf32> to vector<8x128xf32>
    %411 = arith.addf %410, %11 : vector<8x128xf32>
    %412 = arith.mulf %400, %411 : vector<8x128xf32>
    %413 = arith.addf %409, %412 : vector<8x128xf32>
    %414 = math.tanh %413 : vector<8x128xf32>
    %cst_136 = arith.constant 1.000000e+00 : f32
    %415 = vector.broadcast %cst_136 : f32 to vector<8x128xf32>
    %416 = arith.subf %415, %408 : vector<8x128xf32>
    %417 = arith.mulf %416, %414 : vector<8x128xf32>
    %418 = arith.mulf %408, %357 : vector<8x128xf32>
    %419 = arith.addf %417, %418 : vector<8x128xf32>
    %420 = vector.extract_strided_slice %388 {offsets = [0, 0], sizes = [8, 128], strides = [1, 1]} : vector<8x384xf32> to vector<8x128xf32>
    %421 = vector.extract_strided_slice %392 {offsets = [0, 0], sizes = [8, 128], strides = [1, 1]} : vector<8x384xf32> to vector<8x128xf32>
    %422 = arith.addf %420, %421 : vector<8x128xf32>
    %423 = arith.negf %422 : vector<8x128xf32>
    %424 = math.exp %423 : vector<8x128xf32>
    %cst_137 = arith.constant 1.000000e+00 : f32
    %425 = vector.broadcast %cst_137 : f32 to vector<8x128xf32>
    %426 = arith.addf %425, %424 : vector<8x128xf32>
    %427 = arith.divf %425, %426 : vector<8x128xf32>
    %428 = vector.extract_strided_slice %388 {offsets = [0, 128], sizes = [8, 128], strides = [1, 1]} : vector<8x384xf32> to vector<8x128xf32>
    %429 = vector.extract_strided_slice %392 {offsets = [0, 128], sizes = [8, 128], strides = [1, 1]} : vector<8x384xf32> to vector<8x128xf32>
    %430 = arith.addf %428, %429 : vector<8x128xf32>
    %431 = arith.negf %430 : vector<8x128xf32>
    %432 = math.exp %431 : vector<8x128xf32>
    %cst_138 = arith.constant 1.000000e+00 : f32
    %433 = vector.broadcast %cst_138 : f32 to vector<8x128xf32>
    %434 = arith.addf %433, %432 : vector<8x128xf32>
    %435 = arith.divf %433, %434 : vector<8x128xf32>
    %436 = vector.extract_strided_slice %388 {offsets = [0, 256], sizes = [8, 128], strides = [1, 1]} : vector<8x384xf32> to vector<8x128xf32>
    %437 = vector.extract_strided_slice %392 {offsets = [0, 256], sizes = [8, 128], strides = [1, 1]} : vector<8x384xf32> to vector<8x128xf32>
    %438 = arith.addf %437, %14 : vector<8x128xf32>
    %439 = arith.mulf %427, %438 : vector<8x128xf32>
    %440 = arith.addf %436, %439 : vector<8x128xf32>
    %441 = math.tanh %440 : vector<8x128xf32>
    %cst_139 = arith.constant 1.000000e+00 : f32
    %442 = vector.broadcast %cst_139 : f32 to vector<8x128xf32>
    %443 = arith.subf %442, %435 : vector<8x128xf32>
    %444 = arith.mulf %443, %441 : vector<8x128xf32>
    %445 = arith.mulf %435, %384 : vector<8x128xf32>
    %446 = arith.addf %444, %445 : vector<8x128xf32>
    %c48_140 = arith.constant 48 : index
    %c0_141 = arith.constant 0 : index
    %447 = vector.load %arg13[%c48_140, %c0_141] : memref<64x256xf32, #tpu.memory_space<vmem>>, vector<8x128xf32>
    tpu.vector_store %arg13[%c48_140, %c0_141], %419 {strides = array<i32>} : memref<64x256xf32, #tpu.memory_space<vmem>>, vector<8x128xf32>,
    %c8_142 = arith.constant 8 : index
    %c128_143 = arith.constant 128 : index
    %448 = vector.load %arg13[%c8_142, %c128_143] : memref<64x256xf32, #tpu.memory_space<vmem>>, vector<8x128xf32>
    tpu.vector_store %arg13[%c8_142, %c128_143], %446 {strides = array<i32>} : memref<64x256xf32, #tpu.memory_space<vmem>>, vector<8x128xf32>,
    %c56_144 = arith.constant 56 : index
    %c0_145 = arith.constant 0 : index
    %449 = vector.load %arg12[%c56_144, %c0_145] : memref<64x768xf32, #tpu.memory_space<vmem>>, vector<8x384xf32>
    %c0_146 = arith.constant 0 : index
    %c384_147 = arith.constant 384 : index
    %450 = vector.load %arg12[%c0_146, %c384_147] : memref<64x768xf32, #tpu.memory_space<vmem>>, vector<8x384xf32>
    %c0_148 = arith.constant 0 : index
    %c0_149 = arith.constant 0 : index
    %451 = vector.load %arg2[%c0_148, %c0_149] : memref<128x768xf32, #tpu.memory_space<vmem>>, vector<128x384xf32>
    %cst_150 = arith.constant dense<0.000000e+00> : vector<8x384xf32>
    %452 = tpu.matmul %419, %451, %cst_150 {dimension_numbers = #tpu.dot_dimension_numbers<[1], [0], [0], [1], [0, 0, 1, 1], [], []>} : vector<8x128xf32>, vector<128x384xf32>, vector<8x384xf32> -> vector<8x384xf32>
    %c0_151 = arith.constant 0 : index
    %c384_152 = arith.constant 384 : index
    %453 = vector.load %arg2[%c0_151, %c384_152] : memref<128x768xf32, #tpu.memory_space<vmem>>, vector<128x384xf32>
    %cst_153 = arith.constant dense<0.000000e+00> : vector<8x384xf32>
    %454 = tpu.matmul %446, %453, %cst_153 {dimension_numbers = #tpu.dot_dimension_numbers<[1], [0], [0], [1], [0, 0, 1, 1], [], []>} : vector<8x128xf32>, vector<128x384xf32>, vector<8x384xf32> -> vector<8x384xf32>
    %455 = vector.extract_strided_slice %449 {offsets = [0, 0], sizes = [8, 128], strides = [1, 1]} : vector<8x384xf32> to vector<8x128xf32>
    %456 = vector.extract_strided_slice %452 {offsets = [0, 0], sizes = [8, 128], strides = [1, 1]} : vector<8x384xf32> to vector<8x128xf32>
    %457 = arith.addf %455, %456 : vector<8x128xf32>
    %458 = arith.negf %457 : vector<8x128xf32>
    %459 = math.exp %458 : vector<8x128xf32>
    %cst_154 = arith.constant 1.000000e+00 : f32
    %460 = vector.broadcast %cst_154 : f32 to vector<8x128xf32>
    %461 = arith.addf %460, %459 : vector<8x128xf32>
    %462 = arith.divf %460, %461 : vector<8x128xf32>
    %463 = vector.extract_strided_slice %449 {offsets = [0, 128], sizes = [8, 128], strides = [1, 1]} : vector<8x384xf32> to vector<8x128xf32>
    %464 = vector.extract_strided_slice %452 {offsets = [0, 128], sizes = [8, 128], strides = [1, 1]} : vector<8x384xf32> to vector<8x128xf32>
    %465 = arith.addf %463, %464 : vector<8x128xf32>
    %466 = arith.negf %465 : vector<8x128xf32>
    %467 = math.exp %466 : vector<8x128xf32>
    %cst_155 = arith.constant 1.000000e+00 : f32
    %468 = vector.broadcast %cst_155 : f32 to vector<8x128xf32>
    %469 = arith.addf %468, %467 : vector<8x128xf32>
    %470 = arith.divf %468, %469 : vector<8x128xf32>
    %471 = vector.extract_strided_slice %449 {offsets = [0, 256], sizes = [8, 128], strides = [1, 1]} : vector<8x384xf32> to vector<8x128xf32>
    %472 = vector.extract_strided_slice %452 {offsets = [0, 256], sizes = [8, 128], strides = [1, 1]} : vector<8x384xf32> to vector<8x128xf32>
    %473 = arith.addf %472, %11 : vector<8x128xf32>
    %474 = arith.mulf %462, %473 : vector<8x128xf32>
    %475 = arith.addf %471, %474 : vector<8x128xf32>
    %476 = math.tanh %475 : vector<8x128xf32>
    %cst_156 = arith.constant 1.000000e+00 : f32
    %477 = vector.broadcast %cst_156 : f32 to vector<8x128xf32>
    %478 = arith.subf %477, %470 : vector<8x128xf32>
    %479 = arith.mulf %478, %476 : vector<8x128xf32>
    %480 = arith.mulf %470, %419 : vector<8x128xf32>
    %481 = arith.addf %479, %480 : vector<8x128xf32>
    %482 = vector.extract_strided_slice %450 {offsets = [0, 0], sizes = [8, 128], strides = [1, 1]} : vector<8x384xf32> to vector<8x128xf32>
    %483 = vector.extract_strided_slice %454 {offsets = [0, 0], sizes = [8, 128], strides = [1, 1]} : vector<8x384xf32> to vector<8x128xf32>
    %484 = arith.addf %482, %483 : vector<8x128xf32>
    %485 = arith.negf %484 : vector<8x128xf32>
    %486 = math.exp %485 : vector<8x128xf32>
    %cst_157 = arith.constant 1.000000e+00 : f32
    %487 = vector.broadcast %cst_157 : f32 to vector<8x128xf32>
    %488 = arith.addf %487, %486 : vector<8x128xf32>
    %489 = arith.divf %487, %488 : vector<8x128xf32>
    %490 = vector.extract_strided_slice %450 {offsets = [0, 128], sizes = [8, 128], strides = [1, 1]} : vector<8x384xf32> to vector<8x128xf32>
    %491 = vector.extract_strided_slice %454 {offsets = [0, 128], sizes = [8, 128], strides = [1, 1]} : vector<8x384xf32> to vector<8x128xf32>
    %492 = arith.addf %490, %491 : vector<8x128xf32>
    %493 = arith.negf %492 : vector<8x128xf32>
    %494 = math.exp %493 : vector<8x128xf32>
    %cst_158 = arith.constant 1.000000e+00 : f32
    %495 = vector.broadcast %cst_158 : f32 to vector<8x128xf32>
    %496 = arith.addf %495, %494 : vector<8x128xf32>
    %497 = arith.divf %495, %496 : vector<8x128xf32>
    %498 = vector.extract_strided_slice %450 {offsets = [0, 256], sizes = [8, 128], strides = [1, 1]} : vector<8x384xf32> to vector<8x128xf32>
    %499 = vector.extract_strided_slice %454 {offsets = [0, 256], sizes = [8, 128], strides = [1, 1]} : vector<8x384xf32> to vector<8x128xf32>
    %500 = arith.addf %499, %14 : vector<8x128xf32>
    %501 = arith.mulf %489, %500 : vector<8x128xf32>
    %502 = arith.addf %498, %501 : vector<8x128xf32>
    %503 = math.tanh %502 : vector<8x128xf32>
    %cst_159 = arith.constant 1.000000e+00 : f32
    %504 = vector.broadcast %cst_159 : f32 to vector<8x128xf32>
    %505 = arith.subf %504, %497 : vector<8x128xf32>
    %506 = arith.mulf %505, %503 : vector<8x128xf32>
    %507 = arith.mulf %497, %446 : vector<8x128xf32>
    %508 = arith.addf %506, %507 : vector<8x128xf32>
    %c56_160 = arith.constant 56 : index
    %c0_161 = arith.constant 0 : index
    %509 = vector.load %arg13[%c56_160, %c0_161] : memref<64x256xf32, #tpu.memory_space<vmem>>, vector<8x128xf32>
    tpu.vector_store %arg13[%c56_160, %c0_161], %481 {strides = array<i32>} : memref<64x256xf32, #tpu.memory_space<vmem>>, vector<8x128xf32>,
    %c0_162 = arith.constant 0 : index
    %c128_163 = arith.constant 128 : index
    %510 = vector.load %arg13[%c0_162, %c128_163] : memref<64x256xf32, #tpu.memory_space<vmem>>, vector<8x128xf32>
    tpu.vector_store %arg13[%c0_162, %c128_163], %508 {strides = array<i32>} : memref<64x256xf32, #tpu.memory_space<vmem>>, vector<8x128xf32>,
    %c0_164 = arith.constant 0 : index
    %c0_165 = arith.constant 0 : index
    %511 = vector.load %arg13[%c0_164, %c0_165] : memref<64x256xf32, #tpu.memory_space<vmem>>, vector<64x256xf32>
    %c0_166 = arith.constant 0 : index
    %c0_167 = arith.constant 0 : index
    %512 = vector.load %arg5[%c0_166, %c0_167] : memref<256x768xf32, #tpu.memory_space<vmem>>, vector<256x768xf32>
    %cst_168 = arith.constant dense<0.000000e+00> : vector<64x768xf32>
    %513 = tpu.matmul %511, %512, %cst_168 {dimension_numbers = #tpu.dot_dimension_numbers<[1], [0], [0], [1], [0, 0, 1, 1], [], []>} : vector<64x256xf32>, vector<256x768xf32>, vector<64x768xf32> -> vector<64x768xf32>
    %c0_169 = arith.constant 0 : index
    %c0_170 = arith.constant 0 : index
    %514 = vector.load %arg7[%c0_169, %c0_170] : memref<1x768xf32, #tpu.memory_space<vmem>>, vector<1x768xf32>
    %515 = vector.broadcast %514 : vector<1x768xf32> to vector<64x768xf32>
    %516 = arith.addf %513, %515 : vector<64x768xf32>
    %c0_171 = arith.constant 0 : index
    %c0_172 = arith.constant 0 : index
    %517 = vector.load %arg12[%c0_171, %c0_172] : memref<64x768xf32, #tpu.memory_space<vmem>>, vector<64x768xf32>
    tpu.vector_store %arg12[%c0_171, %c0_172], %516 {strides = array<i32>} : memref<64x768xf32, #tpu.memory_space<vmem>>, vector<64x768xf32>,
    %cst_173 = arith.constant 0.000000e+00 : f32
    %518 = vector.broadcast %cst_173 : f32 to vector<8x128xf32>
    %cst_174 = arith.constant 0.000000e+00 : f32
    %519 = vector.broadcast %cst_174 : f32 to vector<8x128xf32>
    %c0_175 = arith.constant 0 : index
    %c0_176 = arith.constant 0 : index
    %520 = vector.load %arg8[%c0_175, %c0_176] : memref<1x256xf32, #tpu.memory_space<vmem>>, vector<1x128xf32>
    %521 = vector.shape_cast %520 : vector<1x128xf32> to vector<1x128xf32>
    %522 = vector.broadcast %521 : vector<1x128xf32> to vector<8x128xf32>
    %c0_177 = arith.constant 0 : index
    %c128_178 = arith.constant 128 : index
    %523 = vector.load %arg8[%c0_177, %c128_178] : memref<1x256xf32, #tpu.memory_space<vmem>>, vector<1x128xf32>
    %524 = vector.shape_cast %523 : vector<1x128xf32> to vector<1x128xf32>
    %525 = vector.broadcast %524 : vector<1x128xf32> to vector<8x128xf32>
    %c0_179 = arith.constant 0 : index
    %c0_180 = arith.constant 0 : index
    %526 = vector.load %arg12[%c0_179, %c0_180] : memref<64x768xf32, #tpu.memory_space<vmem>>, vector<8x384xf32>
    %c56_181 = arith.constant 56 : index
    %c384_182 = arith.constant 384 : index
    %527 = vector.load %arg12[%c56_181, %c384_182] : memref<64x768xf32, #tpu.memory_space<vmem>>, vector<8x384xf32>
    %c0_183 = arith.constant 0 : index
    %c0_184 = arith.constant 0 : index
    %528 = vector.load %arg6[%c0_183, %c0_184] : memref<128x768xf32, #tpu.memory_space<vmem>>, vector<128x384xf32>
    %cst_185 = arith.constant dense<0.000000e+00> : vector<8x384xf32>
    %529 = tpu.matmul %518, %528, %cst_185 {dimension_numbers = #tpu.dot_dimension_numbers<[1], [0], [0], [1], [0, 0, 1, 1], [], []>} : vector<8x128xf32>, vector<128x384xf32>, vector<8x384xf32> -> vector<8x384xf32>
    %c0_186 = arith.constant 0 : index
    %c384_187 = arith.constant 384 : index
    %530 = vector.load %arg6[%c0_186, %c384_187] : memref<128x768xf32, #tpu.memory_space<vmem>>, vector<128x384xf32>
    %cst_188 = arith.constant dense<0.000000e+00> : vector<8x384xf32>
    %531 = tpu.matmul %519, %530, %cst_188 {dimension_numbers = #tpu.dot_dimension_numbers<[1], [0], [0], [1], [0, 0, 1, 1], [], []>} : vector<8x128xf32>, vector<128x384xf32>, vector<8x384xf32> -> vector<8x384xf32>
    %532 = vector.extract_strided_slice %526 {offsets = [0, 0], sizes = [8, 128], strides = [1, 1]} : vector<8x384xf32> to vector<8x128xf32>
    %533 = vector.extract_strided_slice %529 {offsets = [0, 0], sizes = [8, 128], strides = [1, 1]} : vector<8x384xf32> to vector<8x128xf32>
    %534 = arith.addf %532, %533 : vector<8x128xf32>
    %535 = arith.negf %534 : vector<8x128xf32>
    %536 = math.exp %535 : vector<8x128xf32>
    %cst_189 = arith.constant 1.000000e+00 : f32
    %537 = vector.broadcast %cst_189 : f32 to vector<8x128xf32>
    %538 = arith.addf %537, %536 : vector<8x128xf32>
    %539 = arith.divf %537, %538 : vector<8x128xf32>
    %540 = vector.extract_strided_slice %526 {offsets = [0, 128], sizes = [8, 128], strides = [1, 1]} : vector<8x384xf32> to vector<8x128xf32>
    %541 = vector.extract_strided_slice %529 {offsets = [0, 128], sizes = [8, 128], strides = [1, 1]} : vector<8x384xf32> to vector<8x128xf32>
    %542 = arith.addf %540, %541 : vector<8x128xf32>
    %543 = arith.negf %542 : vector<8x128xf32>
    %544 = math.exp %543 : vector<8x128xf32>
    %cst_190 = arith.constant 1.000000e+00 : f32
    %545 = vector.broadcast %cst_190 : f32 to vector<8x128xf32>
    %546 = arith.addf %545, %544 : vector<8x128xf32>
    %547 = arith.divf %545, %546 : vector<8x128xf32>
    %548 = vector.extract_strided_slice %526 {offsets = [0, 256], sizes = [8, 128], strides = [1, 1]} : vector<8x384xf32> to vector<8x128xf32>
    %549 = vector.extract_strided_slice %529 {offsets = [0, 256], sizes = [8, 128], strides = [1, 1]} : vector<8x384xf32> to vector<8x128xf32>
    %550 = arith.addf %549, %522 : vector<8x128xf32>
    %551 = arith.mulf %539, %550 : vector<8x128xf32>
    %552 = arith.addf %548, %551 : vector<8x128xf32>
    %553 = math.tanh %552 : vector<8x128xf32>
    %cst_191 = arith.constant 1.000000e+00 : f32
    %554 = vector.broadcast %cst_191 : f32 to vector<8x128xf32>
    %555 = arith.subf %554, %547 : vector<8x128xf32>
    %556 = arith.mulf %555, %553 : vector<8x128xf32>
    %557 = arith.mulf %547, %518 : vector<8x128xf32>
    %558 = arith.addf %556, %557 : vector<8x128xf32>
    %559 = vector.extract_strided_slice %527 {offsets = [0, 0], sizes = [8, 128], strides = [1, 1]} : vector<8x384xf32> to vector<8x128xf32>
    %560 = vector.extract_strided_slice %531 {offsets = [0, 0], sizes = [8, 128], strides = [1, 1]} : vector<8x384xf32> to vector<8x128xf32>
    %561 = arith.addf %559, %560 : vector<8x128xf32>
    %562 = arith.negf %561 : vector<8x128xf32>
    %563 = math.exp %562 : vector<8x128xf32>
    %cst_192 = arith.constant 1.000000e+00 : f32
    %564 = vector.broadcast %cst_192 : f32 to vector<8x128xf32>
    %565 = arith.addf %564, %563 : vector<8x128xf32>
    %566 = arith.divf %564, %565 : vector<8x128xf32>
    %567 = vector.extract_strided_slice %527 {offsets = [0, 128], sizes = [8, 128], strides = [1, 1]} : vector<8x384xf32> to vector<8x128xf32>
    %568 = vector.extract_strided_slice %531 {offsets = [0, 128], sizes = [8, 128], strides = [1, 1]} : vector<8x384xf32> to vector<8x128xf32>
    %569 = arith.addf %567, %568 : vector<8x128xf32>
    %570 = arith.negf %569 : vector<8x128xf32>
    %571 = math.exp %570 : vector<8x128xf32>
    %cst_193 = arith.constant 1.000000e+00 : f32
    %572 = vector.broadcast %cst_193 : f32 to vector<8x128xf32>
    %573 = arith.addf %572, %571 : vector<8x128xf32>
    %574 = arith.divf %572, %573 : vector<8x128xf32>
    %575 = vector.extract_strided_slice %527 {offsets = [0, 256], sizes = [8, 128], strides = [1, 1]} : vector<8x384xf32> to vector<8x128xf32>
    %576 = vector.extract_strided_slice %531 {offsets = [0, 256], sizes = [8, 128], strides = [1, 1]} : vector<8x384xf32> to vector<8x128xf32>
    %577 = arith.addf %576, %525 : vector<8x128xf32>
    %578 = arith.mulf %566, %577 : vector<8x128xf32>
    %579 = arith.addf %575, %578 : vector<8x128xf32>
    %580 = math.tanh %579 : vector<8x128xf32>
    %cst_194 = arith.constant 1.000000e+00 : f32
    %581 = vector.broadcast %cst_194 : f32 to vector<8x128xf32>
    %582 = arith.subf %581, %574 : vector<8x128xf32>
    %583 = arith.mulf %582, %580 : vector<8x128xf32>
    %584 = arith.mulf %574, %519 : vector<8x128xf32>
    %585 = arith.addf %583, %584 : vector<8x128xf32>
    %c0_195 = arith.constant 0 : index
    %c0_196 = arith.constant 0 : index
    %586 = vector.load %arg14[%c0_195, %c0_196] : memref<64x256xf32, #tpu.memory_space<vmem>>, vector<8x128xf32>
    tpu.vector_store %arg14[%c0_195, %c0_196], %558 {strides = array<i32>} : memref<64x256xf32, #tpu.memory_space<vmem>>, vector<8x128xf32>,
    %c56_197 = arith.constant 56 : index
    %c128_198 = arith.constant 128 : index
    %587 = vector.load %arg14[%c56_197, %c128_198] : memref<64x256xf32, #tpu.memory_space<vmem>>, vector<8x128xf32>
    tpu.vector_store %arg14[%c56_197, %c128_198], %585 {strides = array<i32>} : memref<64x256xf32, #tpu.memory_space<vmem>>, vector<8x128xf32>,
    %c8_199 = arith.constant 8 : index
    %c0_200 = arith.constant 0 : index
    %588 = vector.load %arg12[%c8_199, %c0_200] : memref<64x768xf32, #tpu.memory_space<vmem>>, vector<8x384xf32>
    %c48_201 = arith.constant 48 : index
    %c384_202 = arith.constant 384 : index
    %589 = vector.load %arg12[%c48_201, %c384_202] : memref<64x768xf32, #tpu.memory_space<vmem>>, vector<8x384xf32>
    %c0_203 = arith.constant 0 : index
    %c0_204 = arith.constant 0 : index
    %590 = vector.load %arg6[%c0_203, %c0_204] : memref<128x768xf32, #tpu.memory_space<vmem>>, vector<128x384xf32>
    %cst_205 = arith.constant dense<0.000000e+00> : vector<8x384xf32>
    %591 = tpu.matmul %558, %590, %cst_205 {dimension_numbers = #tpu.dot_dimension_numbers<[1], [0], [0], [1], [0, 0, 1, 1], [], []>} : vector<8x128xf32>, vector<128x384xf32>, vector<8x384xf32> -> vector<8x384xf32>
    %c0_206 = arith.constant 0 : index
    %c384_207 = arith.constant 384 : index
    %592 = vector.load %arg6[%c0_206, %c384_207] : memref<128x768xf32, #tpu.memory_space<vmem>>, vector<128x384xf32>
    %cst_208 = arith.constant dense<0.000000e+00> : vector<8x384xf32>
    %593 = tpu.matmul %585, %592, %cst_208 {dimension_numbers = #tpu.dot_dimension_numbers<[1], [0], [0], [1], [0, 0, 1, 1], [], []>} : vector<8x128xf32>, vector<128x384xf32>, vector<8x384xf32> -> vector<8x384xf32>
    %594 = vector.extract_strided_slice %588 {offsets = [0, 0], sizes = [8, 128], strides = [1, 1]} : vector<8x384xf32> to vector<8x128xf32>
    %595 = vector.extract_strided_slice %591 {offsets = [0, 0], sizes = [8, 128], strides = [1, 1]} : vector<8x384xf32> to vector<8x128xf32>
    %596 = arith.addf %594, %595 : vector<8x128xf32>
    %597 = arith.negf %596 : vector<8x128xf32>
    %598 = math.exp %597 : vector<8x128xf32>
    %cst_209 = arith.constant 1.000000e+00 : f32
    %599 = vector.broadcast %cst_209 : f32 to vector<8x128xf32>
    %600 = arith.addf %599, %598 : vector<8x128xf32>
    %601 = arith.divf %599, %600 : vector<8x128xf32>
    %602 = vector.extract_strided_slice %588 {offsets = [0, 128], sizes = [8, 128], strides = [1, 1]} : vector<8x384xf32> to vector<8x128xf32>
    %603 = vector.extract_strided_slice %591 {offsets = [0, 128], sizes = [8, 128], strides = [1, 1]} : vector<8x384xf32> to vector<8x128xf32>
    %604 = arith.addf %602, %603 : vector<8x128xf32>
    %605 = arith.negf %604 : vector<8x128xf32>
    %606 = math.exp %605 : vector<8x128xf32>
    %cst_210 = arith.constant 1.000000e+00 : f32
    %607 = vector.broadcast %cst_210 : f32 to vector<8x128xf32>
    %608 = arith.addf %607, %606 : vector<8x128xf32>
    %609 = arith.divf %607, %608 : vector<8x128xf32>
    %610 = vector.extract_strided_slice %588 {offsets = [0, 256], sizes = [8, 128], strides = [1, 1]} : vector<8x384xf32> to vector<8x128xf32>
    %611 = vector.extract_strided_slice %591 {offsets = [0, 256], sizes = [8, 128], strides = [1, 1]} : vector<8x384xf32> to vector<8x128xf32>
    %612 = arith.addf %611, %522 : vector<8x128xf32>
    %613 = arith.mulf %601, %612 : vector<8x128xf32>
    %614 = arith.addf %610, %613 : vector<8x128xf32>
    %615 = math.tanh %614 : vector<8x128xf32>
    %cst_211 = arith.constant 1.000000e+00 : f32
    %616 = vector.broadcast %cst_211 : f32 to vector<8x128xf32>
    %617 = arith.subf %616, %609 : vector<8x128xf32>
    %618 = arith.mulf %617, %615 : vector<8x128xf32>
    %619 = arith.mulf %609, %558 : vector<8x128xf32>
    %620 = arith.addf %618, %619 : vector<8x128xf32>
    %621 = vector.extract_strided_slice %589 {offsets = [0, 0], sizes = [8, 128], strides = [1, 1]} : vector<8x384xf32> to vector<8x128xf32>
    %622 = vector.extract_strided_slice %593 {offsets = [0, 0], sizes = [8, 128], strides = [1, 1]} : vector<8x384xf32> to vector<8x128xf32>
    %623 = arith.addf %621, %622 : vector<8x128xf32>
    %624 = arith.negf %623 : vector<8x128xf32>
    %625 = math.exp %624 : vector<8x128xf32>
    %cst_212 = arith.constant 1.000000e+00 : f32
    %626 = vector.broadcast %cst_212 : f32 to vector<8x128xf32>
    %627 = arith.addf %626, %625 : vector<8x128xf32>
    %628 = arith.divf %626, %627 : vector<8x128xf32>
    %629 = vector.extract_strided_slice %589 {offsets = [0, 128], sizes = [8, 128], strides = [1, 1]} : vector<8x384xf32> to vector<8x128xf32>
    %630 = vector.extract_strided_slice %593 {offsets = [0, 128], sizes = [8, 128], strides = [1, 1]} : vector<8x384xf32> to vector<8x128xf32>
    %631 = arith.addf %629, %630 : vector<8x128xf32>
    %632 = arith.negf %631 : vector<8x128xf32>
    %633 = math.exp %632 : vector<8x128xf32>
    %cst_213 = arith.constant 1.000000e+00 : f32
    %634 = vector.broadcast %cst_213 : f32 to vector<8x128xf32>
    %635 = arith.addf %634, %633 : vector<8x128xf32>
    %636 = arith.divf %634, %635 : vector<8x128xf32>
    %637 = vector.extract_strided_slice %589 {offsets = [0, 256], sizes = [8, 128], strides = [1, 1]} : vector<8x384xf32> to vector<8x128xf32>
    %638 = vector.extract_strided_slice %593 {offsets = [0, 256], sizes = [8, 128], strides = [1, 1]} : vector<8x384xf32> to vector<8x128xf32>
    %639 = arith.addf %638, %525 : vector<8x128xf32>
    %640 = arith.mulf %628, %639 : vector<8x128xf32>
    %641 = arith.addf %637, %640 : vector<8x128xf32>
    %642 = math.tanh %641 : vector<8x128xf32>
    %cst_214 = arith.constant 1.000000e+00 : f32
    %643 = vector.broadcast %cst_214 : f32 to vector<8x128xf32>
    %644 = arith.subf %643, %636 : vector<8x128xf32>
    %645 = arith.mulf %644, %642 : vector<8x128xf32>
    %646 = arith.mulf %636, %585 : vector<8x128xf32>
    %647 = arith.addf %645, %646 : vector<8x128xf32>
    %c8_215 = arith.constant 8 : index
    %c0_216 = arith.constant 0 : index
    %648 = vector.load %arg14[%c8_215, %c0_216] : memref<64x256xf32, #tpu.memory_space<vmem>>, vector<8x128xf32>
    tpu.vector_store %arg14[%c8_215, %c0_216], %620 {strides = array<i32>} : memref<64x256xf32, #tpu.memory_space<vmem>>, vector<8x128xf32>,
    %c48_217 = arith.constant 48 : index
    %c128_218 = arith.constant 128 : index
    %649 = vector.load %arg14[%c48_217, %c128_218] : memref<64x256xf32, #tpu.memory_space<vmem>>, vector<8x128xf32>
    tpu.vector_store %arg14[%c48_217, %c128_218], %647 {strides = array<i32>} : memref<64x256xf32, #tpu.memory_space<vmem>>, vector<8x128xf32>,
    %c16_219 = arith.constant 16 : index
    %c0_220 = arith.constant 0 : index
    %650 = vector.load %arg12[%c16_219, %c0_220] : memref<64x768xf32, #tpu.memory_space<vmem>>, vector<8x384xf32>
    %c40_221 = arith.constant 40 : index
    %c384_222 = arith.constant 384 : index
    %651 = vector.load %arg12[%c40_221, %c384_222] : memref<64x768xf32, #tpu.memory_space<vmem>>, vector<8x384xf32>
    %c0_223 = arith.constant 0 : index
    %c0_224 = arith.constant 0 : index
    %652 = vector.load %arg6[%c0_223, %c0_224] : memref<128x768xf32, #tpu.memory_space<vmem>>, vector<128x384xf32>
    %cst_225 = arith.constant dense<0.000000e+00> : vector<8x384xf32>
    %653 = tpu.matmul %620, %652, %cst_225 {dimension_numbers = #tpu.dot_dimension_numbers<[1], [0], [0], [1], [0, 0, 1, 1], [], []>} : vector<8x128xf32>, vector<128x384xf32>, vector<8x384xf32> -> vector<8x384xf32>
    %c0_226 = arith.constant 0 : index
    %c384_227 = arith.constant 384 : index
    %654 = vector.load %arg6[%c0_226, %c384_227] : memref<128x768xf32, #tpu.memory_space<vmem>>, vector<128x384xf32>
    %cst_228 = arith.constant dense<0.000000e+00> : vector<8x384xf32>
    %655 = tpu.matmul %647, %654, %cst_228 {dimension_numbers = #tpu.dot_dimension_numbers<[1], [0], [0], [1], [0, 0, 1, 1], [], []>} : vector<8x128xf32>, vector<128x384xf32>, vector<8x384xf32> -> vector<8x384xf32>
    %656 = vector.extract_strided_slice %650 {offsets = [0, 0], sizes = [8, 128], strides = [1, 1]} : vector<8x384xf32> to vector<8x128xf32>
    %657 = vector.extract_strided_slice %653 {offsets = [0, 0], sizes = [8, 128], strides = [1, 1]} : vector<8x384xf32> to vector<8x128xf32>
    %658 = arith.addf %656, %657 : vector<8x128xf32>
    %659 = arith.negf %658 : vector<8x128xf32>
    %660 = math.exp %659 : vector<8x128xf32>
    %cst_229 = arith.constant 1.000000e+00 : f32
    %661 = vector.broadcast %cst_229 : f32 to vector<8x128xf32>
    %662 = arith.addf %661, %660 : vector<8x128xf32>
    %663 = arith.divf %661, %662 : vector<8x128xf32>
    %664 = vector.extract_strided_slice %650 {offsets = [0, 128], sizes = [8, 128], strides = [1, 1]} : vector<8x384xf32> to vector<8x128xf32>
    %665 = vector.extract_strided_slice %653 {offsets = [0, 128], sizes = [8, 128], strides = [1, 1]} : vector<8x384xf32> to vector<8x128xf32>
    %666 = arith.addf %664, %665 : vector<8x128xf32>
    %667 = arith.negf %666 : vector<8x128xf32>
    %668 = math.exp %667 : vector<8x128xf32>
    %cst_230 = arith.constant 1.000000e+00 : f32
    %669 = vector.broadcast %cst_230 : f32 to vector<8x128xf32>
    %670 = arith.addf %669, %668 : vector<8x128xf32>
    %671 = arith.divf %669, %670 : vector<8x128xf32>
    %672 = vector.extract_strided_slice %650 {offsets = [0, 256], sizes = [8, 128], strides = [1, 1]} : vector<8x384xf32> to vector<8x128xf32>
    %673 = vector.extract_strided_slice %653 {offsets = [0, 256], sizes = [8, 128], strides = [1, 1]} : vector<8x384xf32> to vector<8x128xf32>
    %674 = arith.addf %673, %522 : vector<8x128xf32>
    %675 = arith.mulf %663, %674 : vector<8x128xf32>
    %676 = arith.addf %672, %675 : vector<8x128xf32>
    %677 = math.tanh %676 : vector<8x128xf32>
    %cst_231 = arith.constant 1.000000e+00 : f32
    %678 = vector.broadcast %cst_231 : f32 to vector<8x128xf32>
    %679 = arith.subf %678, %671 : vector<8x128xf32>
    %680 = arith.mulf %679, %677 : vector<8x128xf32>
    %681 = arith.mulf %671, %620 : vector<8x128xf32>
    %682 = arith.addf %680, %681 : vector<8x128xf32>
    %683 = vector.extract_strided_slice %651 {offsets = [0, 0], sizes = [8, 128], strides = [1, 1]} : vector<8x384xf32> to vector<8x128xf32>
    %684 = vector.extract_strided_slice %655 {offsets = [0, 0], sizes = [8, 128], strides = [1, 1]} : vector<8x384xf32> to vector<8x128xf32>
    %685 = arith.addf %683, %684 : vector<8x128xf32>
    %686 = arith.negf %685 : vector<8x128xf32>
    %687 = math.exp %686 : vector<8x128xf32>
    %cst_232 = arith.constant 1.000000e+00 : f32
    %688 = vector.broadcast %cst_232 : f32 to vector<8x128xf32>
    %689 = arith.addf %688, %687 : vector<8x128xf32>
    %690 = arith.divf %688, %689 : vector<8x128xf32>
    %691 = vector.extract_strided_slice %651 {offsets = [0, 128], sizes = [8, 128], strides = [1, 1]} : vector<8x384xf32> to vector<8x128xf32>
    %692 = vector.extract_strided_slice %655 {offsets = [0, 128], sizes = [8, 128], strides = [1, 1]} : vector<8x384xf32> to vector<8x128xf32>
    %693 = arith.addf %691, %692 : vector<8x128xf32>
    %694 = arith.negf %693 : vector<8x128xf32>
    %695 = math.exp %694 : vector<8x128xf32>
    %cst_233 = arith.constant 1.000000e+00 : f32
    %696 = vector.broadcast %cst_233 : f32 to vector<8x128xf32>
    %697 = arith.addf %696, %695 : vector<8x128xf32>
    %698 = arith.divf %696, %697 : vector<8x128xf32>
    %699 = vector.extract_strided_slice %651 {offsets = [0, 256], sizes = [8, 128], strides = [1, 1]} : vector<8x384xf32> to vector<8x128xf32>
    %700 = vector.extract_strided_slice %655 {offsets = [0, 256], sizes = [8, 128], strides = [1, 1]} : vector<8x384xf32> to vector<8x128xf32>
    %701 = arith.addf %700, %525 : vector<8x128xf32>
    %702 = arith.mulf %690, %701 : vector<8x128xf32>
    %703 = arith.addf %699, %702 : vector<8x128xf32>
    %704 = math.tanh %703 : vector<8x128xf32>
    %cst_234 = arith.constant 1.000000e+00 : f32
    %705 = vector.broadcast %cst_234 : f32 to vector<8x128xf32>
    %706 = arith.subf %705, %698 : vector<8x128xf32>
    %707 = arith.mulf %706, %704 : vector<8x128xf32>
    %708 = arith.mulf %698, %647 : vector<8x128xf32>
    %709 = arith.addf %707, %708 : vector<8x128xf32>
    %c16_235 = arith.constant 16 : index
    %c0_236 = arith.constant 0 : index
    %710 = vector.load %arg14[%c16_235, %c0_236] : memref<64x256xf32, #tpu.memory_space<vmem>>, vector<8x128xf32>
    tpu.vector_store %arg14[%c16_235, %c0_236], %682 {strides = array<i32>} : memref<64x256xf32, #tpu.memory_space<vmem>>, vector<8x128xf32>,
    %c40_237 = arith.constant 40 : index
    %c128_238 = arith.constant 128 : index
    %711 = vector.load %arg14[%c40_237, %c128_238] : memref<64x256xf32, #tpu.memory_space<vmem>>, vector<8x128xf32>
    tpu.vector_store %arg14[%c40_237, %c128_238], %709 {strides = array<i32>} : memref<64x256xf32, #tpu.memory_space<vmem>>, vector<8x128xf32>,
    %c24_239 = arith.constant 24 : index
    %c0_240 = arith.constant 0 : index
    %712 = vector.load %arg12[%c24_239, %c0_240] : memref<64x768xf32, #tpu.memory_space<vmem>>, vector<8x384xf32>
    %c32_241 = arith.constant 32 : index
    %c384_242 = arith.constant 384 : index
    %713 = vector.load %arg12[%c32_241, %c384_242] : memref<64x768xf32, #tpu.memory_space<vmem>>, vector<8x384xf32>
    %c0_243 = arith.constant 0 : index
    %c0_244 = arith.constant 0 : index
    %714 = vector.load %arg6[%c0_243, %c0_244] : memref<128x768xf32, #tpu.memory_space<vmem>>, vector<128x384xf32>
    %cst_245 = arith.constant dense<0.000000e+00> : vector<8x384xf32>
    %715 = tpu.matmul %682, %714, %cst_245 {dimension_numbers = #tpu.dot_dimension_numbers<[1], [0], [0], [1], [0, 0, 1, 1], [], []>} : vector<8x128xf32>, vector<128x384xf32>, vector<8x384xf32> -> vector<8x384xf32>
    %c0_246 = arith.constant 0 : index
    %c384_247 = arith.constant 384 : index
    %716 = vector.load %arg6[%c0_246, %c384_247] : memref<128x768xf32, #tpu.memory_space<vmem>>, vector<128x384xf32>
    %cst_248 = arith.constant dense<0.000000e+00> : vector<8x384xf32>
    %717 = tpu.matmul %709, %716, %cst_248 {dimension_numbers = #tpu.dot_dimension_numbers<[1], [0], [0], [1], [0, 0, 1, 1], [], []>} : vector<8x128xf32>, vector<128x384xf32>, vector<8x384xf32> -> vector<8x384xf32>
    %718 = vector.extract_strided_slice %712 {offsets = [0, 0], sizes = [8, 128], strides = [1, 1]} : vector<8x384xf32> to vector<8x128xf32>
    %719 = vector.extract_strided_slice %715 {offsets = [0, 0], sizes = [8, 128], strides = [1, 1]} : vector<8x384xf32> to vector<8x128xf32>
    %720 = arith.addf %718, %719 : vector<8x128xf32>
    %721 = arith.negf %720 : vector<8x128xf32>
    %722 = math.exp %721 : vector<8x128xf32>
    %cst_249 = arith.constant 1.000000e+00 : f32
    %723 = vector.broadcast %cst_249 : f32 to vector<8x128xf32>
    %724 = arith.addf %723, %722 : vector<8x128xf32>
    %725 = arith.divf %723, %724 : vector<8x128xf32>
    %726 = vector.extract_strided_slice %712 {offsets = [0, 128], sizes = [8, 128], strides = [1, 1]} : vector<8x384xf32> to vector<8x128xf32>
    %727 = vector.extract_strided_slice %715 {offsets = [0, 128], sizes = [8, 128], strides = [1, 1]} : vector<8x384xf32> to vector<8x128xf32>
    %728 = arith.addf %726, %727 : vector<8x128xf32>
    %729 = arith.negf %728 : vector<8x128xf32>
    %730 = math.exp %729 : vector<8x128xf32>
    %cst_250 = arith.constant 1.000000e+00 : f32
    %731 = vector.broadcast %cst_250 : f32 to vector<8x128xf32>
    %732 = arith.addf %731, %730 : vector<8x128xf32>
    %733 = arith.divf %731, %732 : vector<8x128xf32>
    %734 = vector.extract_strided_slice %712 {offsets = [0, 256], sizes = [8, 128], strides = [1, 1]} : vector<8x384xf32> to vector<8x128xf32>
    %735 = vector.extract_strided_slice %715 {offsets = [0, 256], sizes = [8, 128], strides = [1, 1]} : vector<8x384xf32> to vector<8x128xf32>
    %736 = arith.addf %735, %522 : vector<8x128xf32>
    %737 = arith.mulf %725, %736 : vector<8x128xf32>
    %738 = arith.addf %734, %737 : vector<8x128xf32>
    %739 = math.tanh %738 : vector<8x128xf32>
    %cst_251 = arith.constant 1.000000e+00 : f32
    %740 = vector.broadcast %cst_251 : f32 to vector<8x128xf32>
    %741 = arith.subf %740, %733 : vector<8x128xf32>
    %742 = arith.mulf %741, %739 : vector<8x128xf32>
    %743 = arith.mulf %733, %682 : vector<8x128xf32>
    %744 = arith.addf %742, %743 : vector<8x128xf32>
    %745 = vector.extract_strided_slice %713 {offsets = [0, 0], sizes = [8, 128], strides = [1, 1]} : vector<8x384xf32> to vector<8x128xf32>
    %746 = vector.extract_strided_slice %717 {offsets = [0, 0], sizes = [8, 128], strides = [1, 1]} : vector<8x384xf32> to vector<8x128xf32>
    %747 = arith.addf %745, %746 : vector<8x128xf32>
    %748 = arith.negf %747 : vector<8x128xf32>
    %749 = math.exp %748 : vector<8x128xf32>
    %cst_252 = arith.constant 1.000000e+00 : f32
    %750 = vector.broadcast %cst_252 : f32 to vector<8x128xf32>
    %751 = arith.addf %750, %749 : vector<8x128xf32>
    %752 = arith.divf %750, %751 : vector<8x128xf32>
    %753 = vector.extract_strided_slice %713 {offsets = [0, 128], sizes = [8, 128], strides = [1, 1]} : vector<8x384xf32> to vector<8x128xf32>
    %754 = vector.extract_strided_slice %717 {offsets = [0, 128], sizes = [8, 128], strides = [1, 1]} : vector<8x384xf32> to vector<8x128xf32>
    %755 = arith.addf %753, %754 : vector<8x128xf32>
    %756 = arith.negf %755 : vector<8x128xf32>
    %757 = math.exp %756 : vector<8x128xf32>
    %cst_253 = arith.constant 1.000000e+00 : f32
    %758 = vector.broadcast %cst_253 : f32 to vector<8x128xf32>
    %759 = arith.addf %758, %757 : vector<8x128xf32>
    %760 = arith.divf %758, %759 : vector<8x128xf32>
    %761 = vector.extract_strided_slice %713 {offsets = [0, 256], sizes = [8, 128], strides = [1, 1]} : vector<8x384xf32> to vector<8x128xf32>
    %762 = vector.extract_strided_slice %717 {offsets = [0, 256], sizes = [8, 128], strides = [1, 1]} : vector<8x384xf32> to vector<8x128xf32>
    %763 = arith.addf %762, %525 : vector<8x128xf32>
    %764 = arith.mulf %752, %763 : vector<8x128xf32>
    %765 = arith.addf %761, %764 : vector<8x128xf32>
    %766 = math.tanh %765 : vector<8x128xf32>
    %cst_254 = arith.constant 1.000000e+00 : f32
    %767 = vector.broadcast %cst_254 : f32 to vector<8x128xf32>
    %768 = arith.subf %767, %760 : vector<8x128xf32>
    %769 = arith.mulf %768, %766 : vector<8x128xf32>
    %770 = arith.mulf %760, %709 : vector<8x128xf32>
    %771 = arith.addf %769, %770 : vector<8x128xf32>
    %c24_255 = arith.constant 24 : index
    %c0_256 = arith.constant 0 : index
    %772 = vector.load %arg14[%c24_255, %c0_256] : memref<64x256xf32, #tpu.memory_space<vmem>>, vector<8x128xf32>
    tpu.vector_store %arg14[%c24_255, %c0_256], %744 {strides = array<i32>} : memref<64x256xf32, #tpu.memory_space<vmem>>, vector<8x128xf32>,
    %c32_257 = arith.constant 32 : index
    %c128_258 = arith.constant 128 : index
    %773 = vector.load %arg14[%c32_257, %c128_258] : memref<64x256xf32, #tpu.memory_space<vmem>>, vector<8x128xf32>
    tpu.vector_store %arg14[%c32_257, %c128_258], %771 {strides = array<i32>} : memref<64x256xf32, #tpu.memory_space<vmem>>, vector<8x128xf32>,
    %c32_259 = arith.constant 32 : index
    %c0_260 = arith.constant 0 : index
    %774 = vector.load %arg12[%c32_259, %c0_260] : memref<64x768xf32, #tpu.memory_space<vmem>>, vector<8x384xf32>
    %c24_261 = arith.constant 24 : index
    %c384_262 = arith.constant 384 : index
    %775 = vector.load %arg12[%c24_261, %c384_262] : memref<64x768xf32, #tpu.memory_space<vmem>>, vector<8x384xf32>
    %c0_263 = arith.constant 0 : index
    %c0_264 = arith.constant 0 : index
    %776 = vector.load %arg6[%c0_263, %c0_264] : memref<128x768xf32, #tpu.memory_space<vmem>>, vector<128x384xf32>
    %cst_265 = arith.constant dense<0.000000e+00> : vector<8x384xf32>
    %777 = tpu.matmul %744, %776, %cst_265 {dimension_numbers = #tpu.dot_dimension_numbers<[1], [0], [0], [1], [0, 0, 1, 1], [], []>} : vector<8x128xf32>, vector<128x384xf32>, vector<8x384xf32> -> vector<8x384xf32>
    %c0_266 = arith.constant 0 : index
    %c384_267 = arith.constant 384 : index
    %778 = vector.load %arg6[%c0_266, %c384_267] : memref<128x768xf32, #tpu.memory_space<vmem>>, vector<128x384xf32>
    %cst_268 = arith.constant dense<0.000000e+00> : vector<8x384xf32>
    %779 = tpu.matmul %771, %778, %cst_268 {dimension_numbers = #tpu.dot_dimension_numbers<[1], [0], [0], [1], [0, 0, 1, 1], [], []>} : vector<8x128xf32>, vector<128x384xf32>, vector<8x384xf32> -> vector<8x384xf32>
    %780 = vector.extract_strided_slice %774 {offsets = [0, 0], sizes = [8, 128], strides = [1, 1]} : vector<8x384xf32> to vector<8x128xf32>
    %781 = vector.extract_strided_slice %777 {offsets = [0, 0], sizes = [8, 128], strides = [1, 1]} : vector<8x384xf32> to vector<8x128xf32>
    %782 = arith.addf %780, %781 : vector<8x128xf32>
    %783 = arith.negf %782 : vector<8x128xf32>
    %784 = math.exp %783 : vector<8x128xf32>
    %cst_269 = arith.constant 1.000000e+00 : f32
    %785 = vector.broadcast %cst_269 : f32 to vector<8x128xf32>
    %786 = arith.addf %785, %784 : vector<8x128xf32>
    %787 = arith.divf %785, %786 : vector<8x128xf32>
    %788 = vector.extract_strided_slice %774 {offsets = [0, 128], sizes = [8, 128], strides = [1, 1]} : vector<8x384xf32> to vector<8x128xf32>
    %789 = vector.extract_strided_slice %777 {offsets = [0, 128], sizes = [8, 128], strides = [1, 1]} : vector<8x384xf32> to vector<8x128xf32>
    %790 = arith.addf %788, %789 : vector<8x128xf32>
    %791 = arith.negf %790 : vector<8x128xf32>
    %792 = math.exp %791 : vector<8x128xf32>
    %cst_270 = arith.constant 1.000000e+00 : f32
    %793 = vector.broadcast %cst_270 : f32 to vector<8x128xf32>
    %794 = arith.addf %793, %792 : vector<8x128xf32>
    %795 = arith.divf %793, %794 : vector<8x128xf32>
    %796 = vector.extract_strided_slice %774 {offsets = [0, 256], sizes = [8, 128], strides = [1, 1]} : vector<8x384xf32> to vector<8x128xf32>
    %797 = vector.extract_strided_slice %777 {offsets = [0, 256], sizes = [8, 128], strides = [1, 1]} : vector<8x384xf32> to vector<8x128xf32>
    %798 = arith.addf %797, %522 : vector<8x128xf32>
    %799 = arith.mulf %787, %798 : vector<8x128xf32>
    %800 = arith.addf %796, %799 : vector<8x128xf32>
    %801 = math.tanh %800 : vector<8x128xf32>
    %cst_271 = arith.constant 1.000000e+00 : f32
    %802 = vector.broadcast %cst_271 : f32 to vector<8x128xf32>
    %803 = arith.subf %802, %795 : vector<8x128xf32>
    %804 = arith.mulf %803, %801 : vector<8x128xf32>
    %805 = arith.mulf %795, %744 : vector<8x128xf32>
    %806 = arith.addf %804, %805 : vector<8x128xf32>
    %807 = vector.extract_strided_slice %775 {offsets = [0, 0], sizes = [8, 128], strides = [1, 1]} : vector<8x384xf32> to vector<8x128xf32>
    %808 = vector.extract_strided_slice %779 {offsets = [0, 0], sizes = [8, 128], strides = [1, 1]} : vector<8x384xf32> to vector<8x128xf32>
    %809 = arith.addf %807, %808 : vector<8x128xf32>
    %810 = arith.negf %809 : vector<8x128xf32>
    %811 = math.exp %810 : vector<8x128xf32>
    %cst_272 = arith.constant 1.000000e+00 : f32
    %812 = vector.broadcast %cst_272 : f32 to vector<8x128xf32>
    %813 = arith.addf %812, %811 : vector<8x128xf32>
    %814 = arith.divf %812, %813 : vector<8x128xf32>
    %815 = vector.extract_strided_slice %775 {offsets = [0, 128], sizes = [8, 128], strides = [1, 1]} : vector<8x384xf32> to vector<8x128xf32>
    %816 = vector.extract_strided_slice %779 {offsets = [0, 128], sizes = [8, 128], strides = [1, 1]} : vector<8x384xf32> to vector<8x128xf32>
    %817 = arith.addf %815, %816 : vector<8x128xf32>
    %818 = arith.negf %817 : vector<8x128xf32>
    %819 = math.exp %818 : vector<8x128xf32>
    %cst_273 = arith.constant 1.000000e+00 : f32
    %820 = vector.broadcast %cst_273 : f32 to vector<8x128xf32>
    %821 = arith.addf %820, %819 : vector<8x128xf32>
    %822 = arith.divf %820, %821 : vector<8x128xf32>
    %823 = vector.extract_strided_slice %775 {offsets = [0, 256], sizes = [8, 128], strides = [1, 1]} : vector<8x384xf32> to vector<8x128xf32>
    %824 = vector.extract_strided_slice %779 {offsets = [0, 256], sizes = [8, 128], strides = [1, 1]} : vector<8x384xf32> to vector<8x128xf32>
    %825 = arith.addf %824, %525 : vector<8x128xf32>
    %826 = arith.mulf %814, %825 : vector<8x128xf32>
    %827 = arith.addf %823, %826 : vector<8x128xf32>
    %828 = math.tanh %827 : vector<8x128xf32>
    %cst_274 = arith.constant 1.000000e+00 : f32
    %829 = vector.broadcast %cst_274 : f32 to vector<8x128xf32>
    %830 = arith.subf %829, %822 : vector<8x128xf32>
    %831 = arith.mulf %830, %828 : vector<8x128xf32>
    %832 = arith.mulf %822, %771 : vector<8x128xf32>
    %833 = arith.addf %831, %832 : vector<8x128xf32>
    %c32_275 = arith.constant 32 : index
    %c0_276 = arith.constant 0 : index
    %834 = vector.load %arg14[%c32_275, %c0_276] : memref<64x256xf32, #tpu.memory_space<vmem>>, vector<8x128xf32>
    tpu.vector_store %arg14[%c32_275, %c0_276], %806 {strides = array<i32>} : memref<64x256xf32, #tpu.memory_space<vmem>>, vector<8x128xf32>,
    %c24_277 = arith.constant 24 : index
    %c128_278 = arith.constant 128 : index
    %835 = vector.load %arg14[%c24_277, %c128_278] : memref<64x256xf32, #tpu.memory_space<vmem>>, vector<8x128xf32>
    tpu.vector_store %arg14[%c24_277, %c128_278], %833 {strides = array<i32>} : memref<64x256xf32, #tpu.memory_space<vmem>>, vector<8x128xf32>,
    %c40_279 = arith.constant 40 : index
    %c0_280 = arith.constant 0 : index
    %836 = vector.load %arg12[%c40_279, %c0_280] : memref<64x768xf32, #tpu.memory_space<vmem>>, vector<8x384xf32>
    %c16_281 = arith.constant 16 : index
    %c384_282 = arith.constant 384 : index
    %837 = vector.load %arg12[%c16_281, %c384_282] : memref<64x768xf32, #tpu.memory_space<vmem>>, vector<8x384xf32>
    %c0_283 = arith.constant 0 : index
    %c0_284 = arith.constant 0 : index
    %838 = vector.load %arg6[%c0_283, %c0_284] : memref<128x768xf32, #tpu.memory_space<vmem>>, vector<128x384xf32>
    %cst_285 = arith.constant dense<0.000000e+00> : vector<8x384xf32>
    %839 = tpu.matmul %806, %838, %cst_285 {dimension_numbers = #tpu.dot_dimension_numbers<[1], [0], [0], [1], [0, 0, 1, 1], [], []>} : vector<8x128xf32>, vector<128x384xf32>, vector<8x384xf32> -> vector<8x384xf32>
    %c0_286 = arith.constant 0 : index
    %c384_287 = arith.constant 384 : index
    %840 = vector.load %arg6[%c0_286, %c384_287] : memref<128x768xf32, #tpu.memory_space<vmem>>, vector<128x384xf32>
    %cst_288 = arith.constant dense<0.000000e+00> : vector<8x384xf32>
    %841 = tpu.matmul %833, %840, %cst_288 {dimension_numbers = #tpu.dot_dimension_numbers<[1], [0], [0], [1], [0, 0, 1, 1], [], []>} : vector<8x128xf32>, vector<128x384xf32>, vector<8x384xf32> -> vector<8x384xf32>
    %842 = vector.extract_strided_slice %836 {offsets = [0, 0], sizes = [8, 128], strides = [1, 1]} : vector<8x384xf32> to vector<8x128xf32>
    %843 = vector.extract_strided_slice %839 {offsets = [0, 0], sizes = [8, 128], strides = [1, 1]} : vector<8x384xf32> to vector<8x128xf32>
    %844 = arith.addf %842, %843 : vector<8x128xf32>
    %845 = arith.negf %844 : vector<8x128xf32>
    %846 = math.exp %845 : vector<8x128xf32>
    %cst_289 = arith.constant 1.000000e+00 : f32
    %847 = vector.broadcast %cst_289 : f32 to vector<8x128xf32>
    %848 = arith.addf %847, %846 : vector<8x128xf32>
    %849 = arith.divf %847, %848 : vector<8x128xf32>
    %850 = vector.extract_strided_slice %836 {offsets = [0, 128], sizes = [8, 128], strides = [1, 1]} : vector<8x384xf32> to vector<8x128xf32>
    %851 = vector.extract_strided_slice %839 {offsets = [0, 128], sizes = [8, 128], strides = [1, 1]} : vector<8x384xf32> to vector<8x128xf32>
    %852 = arith.addf %850, %851 : vector<8x128xf32>
    %853 = arith.negf %852 : vector<8x128xf32>
    %854 = math.exp %853 : vector<8x128xf32>
    %cst_290 = arith.constant 1.000000e+00 : f32
    %855 = vector.broadcast %cst_290 : f32 to vector<8x128xf32>
    %856 = arith.addf %855, %854 : vector<8x128xf32>
    %857 = arith.divf %855, %856 : vector<8x128xf32>
    %858 = vector.extract_strided_slice %836 {offsets = [0, 256], sizes = [8, 128], strides = [1, 1]} : vector<8x384xf32> to vector<8x128xf32>
    %859 = vector.extract_strided_slice %839 {offsets = [0, 256], sizes = [8, 128], strides = [1, 1]} : vector<8x384xf32> to vector<8x128xf32>
    %860 = arith.addf %859, %522 : vector<8x128xf32>
    %861 = arith.mulf %849, %860 : vector<8x128xf32>
    %862 = arith.addf %858, %861 : vector<8x128xf32>
    %863 = math.tanh %862 : vector<8x128xf32>
    %cst_291 = arith.constant 1.000000e+00 : f32
    %864 = vector.broadcast %cst_291 : f32 to vector<8x128xf32>
    %865 = arith.subf %864, %857 : vector<8x128xf32>
    %866 = arith.mulf %865, %863 : vector<8x128xf32>
    %867 = arith.mulf %857, %806 : vector<8x128xf32>
    %868 = arith.addf %866, %867 : vector<8x128xf32>
    %869 = vector.extract_strided_slice %837 {offsets = [0, 0], sizes = [8, 128], strides = [1, 1]} : vector<8x384xf32> to vector<8x128xf32>
    %870 = vector.extract_strided_slice %841 {offsets = [0, 0], sizes = [8, 128], strides = [1, 1]} : vector<8x384xf32> to vector<8x128xf32>
    %871 = arith.addf %869, %870 : vector<8x128xf32>
    %872 = arith.negf %871 : vector<8x128xf32>
    %873 = math.exp %872 : vector<8x128xf32>
    %cst_292 = arith.constant 1.000000e+00 : f32
    %874 = vector.broadcast %cst_292 : f32 to vector<8x128xf32>
    %875 = arith.addf %874, %873 : vector<8x128xf32>
    %876 = arith.divf %874, %875 : vector<8x128xf32>
    %877 = vector.extract_strided_slice %837 {offsets = [0, 128], sizes = [8, 128], strides = [1, 1]} : vector<8x384xf32> to vector<8x128xf32>
    %878 = vector.extract_strided_slice %841 {offsets = [0, 128], sizes = [8, 128], strides = [1, 1]} : vector<8x384xf32> to vector<8x128xf32>
    %879 = arith.addf %877, %878 : vector<8x128xf32>
    %880 = arith.negf %879 : vector<8x128xf32>
    %881 = math.exp %880 : vector<8x128xf32>
    %cst_293 = arith.constant 1.000000e+00 : f32
    %882 = vector.broadcast %cst_293 : f32 to vector<8x128xf32>
    %883 = arith.addf %882, %881 : vector<8x128xf32>
    %884 = arith.divf %882, %883 : vector<8x128xf32>
    %885 = vector.extract_strided_slice %837 {offsets = [0, 256], sizes = [8, 128], strides = [1, 1]} : vector<8x384xf32> to vector<8x128xf32>
    %886 = vector.extract_strided_slice %841 {offsets = [0, 256], sizes = [8, 128], strides = [1, 1]} : vector<8x384xf32> to vector<8x128xf32>
    %887 = arith.addf %886, %525 : vector<8x128xf32>
    %888 = arith.mulf %876, %887 : vector<8x128xf32>
    %889 = arith.addf %885, %888 : vector<8x128xf32>
    %890 = math.tanh %889 : vector<8x128xf32>
    %cst_294 = arith.constant 1.000000e+00 : f32
    %891 = vector.broadcast %cst_294 : f32 to vector<8x128xf32>
    %892 = arith.subf %891, %884 : vector<8x128xf32>
    %893 = arith.mulf %892, %890 : vector<8x128xf32>
    %894 = arith.mulf %884, %833 : vector<8x128xf32>
    %895 = arith.addf %893, %894 : vector<8x128xf32>
    %c40_295 = arith.constant 40 : index
    %c0_296 = arith.constant 0 : index
    %896 = vector.load %arg14[%c40_295, %c0_296] : memref<64x256xf32, #tpu.memory_space<vmem>>, vector<8x128xf32>
    tpu.vector_store %arg14[%c40_295, %c0_296], %868 {strides = array<i32>} : memref<64x256xf32, #tpu.memory_space<vmem>>, vector<8x128xf32>,
    %c16_297 = arith.constant 16 : index
    %c128_298 = arith.constant 128 : index
    %897 = vector.load %arg14[%c16_297, %c128_298] : memref<64x256xf32, #tpu.memory_space<vmem>>, vector<8x128xf32>
    tpu.vector_store %arg14[%c16_297, %c128_298], %895 {strides = array<i32>} : memref<64x256xf32, #tpu.memory_space<vmem>>, vector<8x128xf32>,
    %c48_299 = arith.constant 48 : index
    %c0_300 = arith.constant 0 : index
    %898 = vector.load %arg12[%c48_299, %c0_300] : memref<64x768xf32, #tpu.memory_space<vmem>>, vector<8x384xf32>
    %c8_301 = arith.constant 8 : index
    %c384_302 = arith.constant 384 : index
    %899 = vector.load %arg12[%c8_301, %c384_302] : memref<64x768xf32, #tpu.memory_space<vmem>>, vector<8x384xf32>
    %c0_303 = arith.constant 0 : index
    %c0_304 = arith.constant 0 : index
    %900 = vector.load %arg6[%c0_303, %c0_304] : memref<128x768xf32, #tpu.memory_space<vmem>>, vector<128x384xf32>
    %cst_305 = arith.constant dense<0.000000e+00> : vector<8x384xf32>
    %901 = tpu.matmul %868, %900, %cst_305 {dimension_numbers = #tpu.dot_dimension_numbers<[1], [0], [0], [1], [0, 0, 1, 1], [], []>} : vector<8x128xf32>, vector<128x384xf32>, vector<8x384xf32> -> vector<8x384xf32>
    %c0_306 = arith.constant 0 : index
    %c384_307 = arith.constant 384 : index
    %902 = vector.load %arg6[%c0_306, %c384_307] : memref<128x768xf32, #tpu.memory_space<vmem>>, vector<128x384xf32>
    %cst_308 = arith.constant dense<0.000000e+00> : vector<8x384xf32>
    %903 = tpu.matmul %895, %902, %cst_308 {dimension_numbers = #tpu.dot_dimension_numbers<[1], [0], [0], [1], [0, 0, 1, 1], [], []>} : vector<8x128xf32>, vector<128x384xf32>, vector<8x384xf32> -> vector<8x384xf32>
    %904 = vector.extract_strided_slice %898 {offsets = [0, 0], sizes = [8, 128], strides = [1, 1]} : vector<8x384xf32> to vector<8x128xf32>
    %905 = vector.extract_strided_slice %901 {offsets = [0, 0], sizes = [8, 128], strides = [1, 1]} : vector<8x384xf32> to vector<8x128xf32>
    %906 = arith.addf %904, %905 : vector<8x128xf32>
    %907 = arith.negf %906 : vector<8x128xf32>
    %908 = math.exp %907 : vector<8x128xf32>
    %cst_309 = arith.constant 1.000000e+00 : f32
    %909 = vector.broadcast %cst_309 : f32 to vector<8x128xf32>
    %910 = arith.addf %909, %908 : vector<8x128xf32>
    %911 = arith.divf %909, %910 : vector<8x128xf32>
    %912 = vector.extract_strided_slice %898 {offsets = [0, 128], sizes = [8, 128], strides = [1, 1]} : vector<8x384xf32> to vector<8x128xf32>
    %913 = vector.extract_strided_slice %901 {offsets = [0, 128], sizes = [8, 128], strides = [1, 1]} : vector<8x384xf32> to vector<8x128xf32>
    %914 = arith.addf %912, %913 : vector<8x128xf32>
    %915 = arith.negf %914 : vector<8x128xf32>
    %916 = math.exp %915 : vector<8x128xf32>
    %cst_310 = arith.constant 1.000000e+00 : f32
    %917 = vector.broadcast %cst_310 : f32 to vector<8x128xf32>
    %918 = arith.addf %917, %916 : vector<8x128xf32>
    %919 = arith.divf %917, %918 : vector<8x128xf32>
    %920 = vector.extract_strided_slice %898 {offsets = [0, 256], sizes = [8, 128], strides = [1, 1]} : vector<8x384xf32> to vector<8x128xf32>
    %921 = vector.extract_strided_slice %901 {offsets = [0, 256], sizes = [8, 128], strides = [1, 1]} : vector<8x384xf32> to vector<8x128xf32>
    %922 = arith.addf %921, %522 : vector<8x128xf32>
    %923 = arith.mulf %911, %922 : vector<8x128xf32>
    %924 = arith.addf %920, %923 : vector<8x128xf32>
    %925 = math.tanh %924 : vector<8x128xf32>
    %cst_311 = arith.constant 1.000000e+00 : f32
    %926 = vector.broadcast %cst_311 : f32 to vector<8x128xf32>
    %927 = arith.subf %926, %919 : vector<8x128xf32>
    %928 = arith.mulf %927, %925 : vector<8x128xf32>
    %929 = arith.mulf %919, %868 : vector<8x128xf32>
    %930 = arith.addf %928, %929 : vector<8x128xf32>
    %931 = vector.extract_strided_slice %899 {offsets = [0, 0], sizes = [8, 128], strides = [1, 1]} : vector<8x384xf32> to vector<8x128xf32>
    %932 = vector.extract_strided_slice %903 {offsets = [0, 0], sizes = [8, 128], strides = [1, 1]} : vector<8x384xf32> to vector<8x128xf32>
    %933 = arith.addf %931, %932 : vector<8x128xf32>
    %934 = arith.negf %933 : vector<8x128xf32>
    %935 = math.exp %934 : vector<8x128xf32>
    %cst_312 = arith.constant 1.000000e+00 : f32
    %936 = vector.broadcast %cst_312 : f32 to vector<8x128xf32>
    %937 = arith.addf %936, %935 : vector<8x128xf32>
    %938 = arith.divf %936, %937 : vector<8x128xf32>
    %939 = vector.extract_strided_slice %899 {offsets = [0, 128], sizes = [8, 128], strides = [1, 1]} : vector<8x384xf32> to vector<8x128xf32>
    %940 = vector.extract_strided_slice %903 {offsets = [0, 128], sizes = [8, 128], strides = [1, 1]} : vector<8x384xf32> to vector<8x128xf32>
    %941 = arith.addf %939, %940 : vector<8x128xf32>
    %942 = arith.negf %941 : vector<8x128xf32>
    %943 = math.exp %942 : vector<8x128xf32>
    %cst_313 = arith.constant 1.000000e+00 : f32
    %944 = vector.broadcast %cst_313 : f32 to vector<8x128xf32>
    %945 = arith.addf %944, %943 : vector<8x128xf32>
    %946 = arith.divf %944, %945 : vector<8x128xf32>
    %947 = vector.extract_strided_slice %899 {offsets = [0, 256], sizes = [8, 128], strides = [1, 1]} : vector<8x384xf32> to vector<8x128xf32>
    %948 = vector.extract_strided_slice %903 {offsets = [0, 256], sizes = [8, 128], strides = [1, 1]} : vector<8x384xf32> to vector<8x128xf32>
    %949 = arith.addf %948, %525 : vector<8x128xf32>
    %950 = arith.mulf %938, %949 : vector<8x128xf32>
    %951 = arith.addf %947, %950 : vector<8x128xf32>
    %952 = math.tanh %951 : vector<8x128xf32>
    %cst_314 = arith.constant 1.000000e+00 : f32
    %953 = vector.broadcast %cst_314 : f32 to vector<8x128xf32>
    %954 = arith.subf %953, %946 : vector<8x128xf32>
    %955 = arith.mulf %954, %952 : vector<8x128xf32>
    %956 = arith.mulf %946, %895 : vector<8x128xf32>
    %957 = arith.addf %955, %956 : vector<8x128xf32>
    %c48_315 = arith.constant 48 : index
    %c0_316 = arith.constant 0 : index
    %958 = vector.load %arg14[%c48_315, %c0_316] : memref<64x256xf32, #tpu.memory_space<vmem>>, vector<8x128xf32>
    tpu.vector_store %arg14[%c48_315, %c0_316], %930 {strides = array<i32>} : memref<64x256xf32, #tpu.memory_space<vmem>>, vector<8x128xf32>,
    %c8_317 = arith.constant 8 : index
    %c128_318 = arith.constant 128 : index
    %959 = vector.load %arg14[%c8_317, %c128_318] : memref<64x256xf32, #tpu.memory_space<vmem>>, vector<8x128xf32>
    tpu.vector_store %arg14[%c8_317, %c128_318], %957 {strides = array<i32>} : memref<64x256xf32, #tpu.memory_space<vmem>>, vector<8x128xf32>,
    %c56_319 = arith.constant 56 : index
    %c0_320 = arith.constant 0 : index
    %960 = vector.load %arg12[%c56_319, %c0_320] : memref<64x768xf32, #tpu.memory_space<vmem>>, vector<8x384xf32>
    %c0_321 = arith.constant 0 : index
    %c384_322 = arith.constant 384 : index
    %961 = vector.load %arg12[%c0_321, %c384_322] : memref<64x768xf32, #tpu.memory_space<vmem>>, vector<8x384xf32>
    %c0_323 = arith.constant 0 : index
    %c0_324 = arith.constant 0 : index
    %962 = vector.load %arg6[%c0_323, %c0_324] : memref<128x768xf32, #tpu.memory_space<vmem>>, vector<128x384xf32>
    %cst_325 = arith.constant dense<0.000000e+00> : vector<8x384xf32>
    %963 = tpu.matmul %930, %962, %cst_325 {dimension_numbers = #tpu.dot_dimension_numbers<[1], [0], [0], [1], [0, 0, 1, 1], [], []>} : vector<8x128xf32>, vector<128x384xf32>, vector<8x384xf32> -> vector<8x384xf32>
    %c0_326 = arith.constant 0 : index
    %c384_327 = arith.constant 384 : index
    %964 = vector.load %arg6[%c0_326, %c384_327] : memref<128x768xf32, #tpu.memory_space<vmem>>, vector<128x384xf32>
    %cst_328 = arith.constant dense<0.000000e+00> : vector<8x384xf32>
    %965 = tpu.matmul %957, %964, %cst_328 {dimension_numbers = #tpu.dot_dimension_numbers<[1], [0], [0], [1], [0, 0, 1, 1], [], []>} : vector<8x128xf32>, vector<128x384xf32>, vector<8x384xf32> -> vector<8x384xf32>
    %966 = vector.extract_strided_slice %960 {offsets = [0, 0], sizes = [8, 128], strides = [1, 1]} : vector<8x384xf32> to vector<8x128xf32>
    %967 = vector.extract_strided_slice %963 {offsets = [0, 0], sizes = [8, 128], strides = [1, 1]} : vector<8x384xf32> to vector<8x128xf32>
    %968 = arith.addf %966, %967 : vector<8x128xf32>
    %969 = arith.negf %968 : vector<8x128xf32>
    %970 = math.exp %969 : vector<8x128xf32>
    %cst_329 = arith.constant 1.000000e+00 : f32
    %971 = vector.broadcast %cst_329 : f32 to vector<8x128xf32>
    %972 = arith.addf %971, %970 : vector<8x128xf32>
    %973 = arith.divf %971, %972 : vector<8x128xf32>
    %974 = vector.extract_strided_slice %960 {offsets = [0, 128], sizes = [8, 128], strides = [1, 1]} : vector<8x384xf32> to vector<8x128xf32>
    %975 = vector.extract_strided_slice %963 {offsets = [0, 128], sizes = [8, 128], strides = [1, 1]} : vector<8x384xf32> to vector<8x128xf32>
    %976 = arith.addf %974, %975 : vector<8x128xf32>
    %977 = arith.negf %976 : vector<8x128xf32>
    %978 = math.exp %977 : vector<8x128xf32>
    %cst_330 = arith.constant 1.000000e+00 : f32
    %979 = vector.broadcast %cst_330 : f32 to vector<8x128xf32>
    %980 = arith.addf %979, %978 : vector<8x128xf32>
    %981 = arith.divf %979, %980 : vector<8x128xf32>
    %982 = vector.extract_strided_slice %960 {offsets = [0, 256], sizes = [8, 128], strides = [1, 1]} : vector<8x384xf32> to vector<8x128xf32>
    %983 = vector.extract_strided_slice %963 {offsets = [0, 256], sizes = [8, 128], strides = [1, 1]} : vector<8x384xf32> to vector<8x128xf32>
    %984 = arith.addf %983, %522 : vector<8x128xf32>
    %985 = arith.mulf %973, %984 : vector<8x128xf32>
    %986 = arith.addf %982, %985 : vector<8x128xf32>
    %987 = math.tanh %986 : vector<8x128xf32>
    %cst_331 = arith.constant 1.000000e+00 : f32
    %988 = vector.broadcast %cst_331 : f32 to vector<8x128xf32>
    %989 = arith.subf %988, %981 : vector<8x128xf32>
    %990 = arith.mulf %989, %987 : vector<8x128xf32>
    %991 = arith.mulf %981, %930 : vector<8x128xf32>
    %992 = arith.addf %990, %991 : vector<8x128xf32>
    %993 = vector.extract_strided_slice %961 {offsets = [0, 0], sizes = [8, 128], strides = [1, 1]} : vector<8x384xf32> to vector<8x128xf32>
    %994 = vector.extract_strided_slice %965 {offsets = [0, 0], sizes = [8, 128], strides = [1, 1]} : vector<8x384xf32> to vector<8x128xf32>
    %995 = arith.addf %993, %994 : vector<8x128xf32>
    %996 = arith.negf %995 : vector<8x128xf32>
    %997 = math.exp %996 : vector<8x128xf32>
    %cst_332 = arith.constant 1.000000e+00 : f32
    %998 = vector.broadcast %cst_332 : f32 to vector<8x128xf32>
    %999 = arith.addf %998, %997 : vector<8x128xf32>
    %1000 = arith.divf %998, %999 : vector<8x128xf32>
    %1001 = vector.extract_strided_slice %961 {offsets = [0, 128], sizes = [8, 128], strides = [1, 1]} : vector<8x384xf32> to vector<8x128xf32>
    %1002 = vector.extract_strided_slice %965 {offsets = [0, 128], sizes = [8, 128], strides = [1, 1]} : vector<8x384xf32> to vector<8x128xf32>
    %1003 = arith.addf %1001, %1002 : vector<8x128xf32>
    %1004 = arith.negf %1003 : vector<8x128xf32>
    %1005 = math.exp %1004 : vector<8x128xf32>
    %cst_333 = arith.constant 1.000000e+00 : f32
    %1006 = vector.broadcast %cst_333 : f32 to vector<8x128xf32>
    %1007 = arith.addf %1006, %1005 : vector<8x128xf32>
    %1008 = arith.divf %1006, %1007 : vector<8x128xf32>
    %1009 = vector.extract_strided_slice %961 {offsets = [0, 256], sizes = [8, 128], strides = [1, 1]} : vector<8x384xf32> to vector<8x128xf32>
    %1010 = vector.extract_strided_slice %965 {offsets = [0, 256], sizes = [8, 128], strides = [1, 1]} : vector<8x384xf32> to vector<8x128xf32>
    %1011 = arith.addf %1010, %525 : vector<8x128xf32>
    %1012 = arith.mulf %1000, %1011 : vector<8x128xf32>
    %1013 = arith.addf %1009, %1012 : vector<8x128xf32>
    %1014 = math.tanh %1013 : vector<8x128xf32>
    %cst_334 = arith.constant 1.000000e+00 : f32
    %1015 = vector.broadcast %cst_334 : f32 to vector<8x128xf32>
    %1016 = arith.subf %1015, %1008 : vector<8x128xf32>
    %1017 = arith.mulf %1016, %1014 : vector<8x128xf32>
    %1018 = arith.mulf %1008, %957 : vector<8x128xf32>
    %1019 = arith.addf %1017, %1018 : vector<8x128xf32>
    %c56_335 = arith.constant 56 : index
    %c0_336 = arith.constant 0 : index
    %1020 = vector.load %arg14[%c56_335, %c0_336] : memref<64x256xf32, #tpu.memory_space<vmem>>, vector<8x128xf32>
    tpu.vector_store %arg14[%c56_335, %c0_336], %992 {strides = array<i32>} : memref<64x256xf32, #tpu.memory_space<vmem>>, vector<8x128xf32>,
    %c0_337 = arith.constant 0 : index
    %c128_338 = arith.constant 128 : index
    %1021 = vector.load %arg14[%c0_337, %c128_338] : memref<64x256xf32, #tpu.memory_space<vmem>>, vector<8x128xf32>
    tpu.vector_store %arg14[%c0_337, %c128_338], %1019 {strides = array<i32>} : memref<64x256xf32, #tpu.memory_space<vmem>>, vector<8x128xf32>,
    %c40_339 = arith.constant 40 : index
    %c0_340 = arith.constant 0 : index
    %1022 = vector.load %arg14[%c40_339, %c0_340] : memref<64x256xf32, #tpu.memory_space<vmem>>, vector<24x256xf32>
    %c0_341 = arith.constant 0 : index
    %c0_342 = arith.constant 0 : index
    %1023 = vector.load %arg9[%c0_341, %c0_342] : memref<256x128xf32, #tpu.memory_space<vmem>>, vector<256x128xf32>
    %cst_343 = arith.constant dense<0.000000e+00> : vector<24x128xf32>
    %1024 = tpu.matmul %1022, %1023, %cst_343 {dimension_numbers = #tpu.dot_dimension_numbers<[1], [0], [0], [1], [0, 0, 1, 1], [], []>} : vector<24x256xf32>, vector<256x128xf32>, vector<24x128xf32> -> vector<24x128xf32>
    %c0_344 = arith.constant 0 : index
    %c0_345 = arith.constant 0 : index
    %1025 = vector.load %arg10[%c0_344, %c0_345] : memref<1x128xf32, #tpu.memory_space<vmem>>, vector<1x128xf32>
    %1026 = vector.broadcast %1025 : vector<1x128xf32> to vector<24x128xf32>
    %1027 = arith.addf %1024, %1026 : vector<24x128xf32>
    %c0_346 = arith.constant 0 : index
    %c0_347 = arith.constant 0 : index
    %1028 = vector.load %arg11[%c0_346, %c0_347] : memref<24x128xf32, #tpu.memory_space<vmem>>, vector<24x128xf32>
    tpu.vector_store %arg11[%c0_346, %c0_347], %1027 {strides = array<i32>} : memref<24x128xf32, #tpu.memory_space<vmem>>, vector<24x128xf32>,
    return
  }
}

</mosaic_0001>

<bundles_post_ra>
// kernel: gru_model_forward.1
= control target key start
LH: loop header
LB: loop body
LE: loop exit
PB: predicated region body
PF: predicated region fallthrough
CT: control target
= control target key end

     0   :  { %16 = vsyncpa [#allocation6], 0  ;;  %s15085_s0 = inlined_call_operand.vmem [shape: f32[64,16], index: 0, kind: input, shape index: {}]   ;;  %s15086_s1 = inlined_call_operand.vmem [shape: f32[16,768], index: 1, kind: input, shape index: {}]   ;;  %s15087_s2 = inlined_call_operand.hbm [shape: f32[128,768], index: 2, kind: input, shape index: {}]   ;;  %s15088_s3 = inlined_call_operand.vmem [shape: f32[1,768], index: 3, kind: input, shape index: {}]   ;;  %s15089_s4 = inlined_call_operand.vmem [shape: f32[1,256], index: 4, kind: input, shape index: {}]   ;;  %s15090_s5 = inlined_call_operand.hbm [shape: f32[256,768], index: 5, kind: input, shape index: {}]   ;;  %s15091_s6 = inlined_call_operand.hbm [shape: f32[128,768], index: 6, kind: input, shape index: {}]   ;;  %s15092_s7 = inlined_call_operand.vmem [shape: f32[1,768], index: 7, kind: input, shape index: {}]   ;;  %s15093_s8 = inlined_call_operand.vmem [shape: f32[1,256], index: 8, kind: input, shape index: {}]   ;;  %s15094_s9 = inlined_call_operand.hbm [shape: f32[256,128], index: 9, kind: input, shape index: {}]   ;;  %s15095_s10 = inlined_call_operand.vmem [shape: f32[1,128], index: 10, kind: input, shape index: {}]   ;;  %s15096_s11 = inlined_call_operand.vmem [shape: f32[24,128], index: 11, kind: output, shape index: {}]  }
   0x1   :  { %17 = vsyncpa [#allocation8], 0 }
   0x2   :  { %18 = vsyncpa [#allocation11], 0  ;;  %s10439_s17 = smov [#allocation7]   ;;  %s10440_s19 = smov [#allocation5]  }
   0x3   :  { %s44_s18 = sshll.u32 %s10439_s17, 4  ;;  %s28_s20 = sshll.u32 %s10440_s19, 4  ;;  %s45_s18 = int_to_ptr.vmem [resolvable:$true] %s44_s18  ;;  %s29_s20 = int_to_ptr.vmem [resolvable:$true] %s28_s20 }
   0x4   :  { %s10361_s21 = scalar_lea.vmem %s45_s18, 24576  ;;  %p10366_p1 = scmp.lt.s32.totalorder %s45_s18, %s45_s18 }
   0x5   :  { %p10362_p0 = scmp.ne.s32.totalorder %s45_s18, %s10361_s21  ;;  %p10367_p2 = scmp.lt.s32.totalorder %s10361_s21, %s10361_s21 }
   0x7   :  { %p10368_p3 = por %p10367_p2, %p10366_p1 }
   0x9   :  { %p10369_p4 = pnand %p10368_p3, %p10362_p0 }
   0xb   :  { %10372 = shalt.err (!%p10369_p4)
}
   0xc   :  { %s10441_s22 = smov 768   ;;  %s10442_s23 = smov 48  }
   0xd   :  { %50 = dma.hbm_to_vmem [thread:$0]  %s15090_s5, 24576, %s45_s18, [#allocation8], %s10441_s22, %s10441_s22, %s10442_s23  }
   0xe   :  { %s10381_s26 = scalar_lea.vmem %s29_s20, 12288  ;;  %p10386_p6 = scmp.lt.s32.totalorder %s29_s20, %s29_s20 }
   0xf   :  { %p10382_p5 = scmp.ne.s32.totalorder %s29_s20, %s10381_s26  ;;  %p10387_p7 = scmp.lt.s32.totalorder %s10381_s26, %s10381_s26 }
  0x11   :  { %p10388_p8 = por %p10387_p7, %p10386_p6 }
  0x13   :  { %p10389_p9 = pnand %p10388_p8, %p10382_p5 }
  0x15   :  { %10392 = shalt.err (!%p10389_p9)
}
  0x16   :  { %34 = dma.hbm_to_vmem [thread:$0]  %s15087_s2, 12288, %s29_s20, [#allocation6], %s10441_s22, %s10441_s22, %s10442_s23  }
  0x17   :  { %s10443_s29 = smov [#allocation9]   ;;  %s10444_s12 = smov [#allocation10]  }
  0x18   :  { %s56_s30 = sshll.u32 %s10443_s29, 4  ;;  %s72_s13 = sshll.u32 %s10444_s12, 4  ;;  %s57_s30 = int_to_ptr.vmem [resolvable:$true] %s56_s30  ;;  %s73_s13 = int_to_ptr.vmem [resolvable:$true] %s72_s13 }
  0x19   :  { %s10401_s14 = scalar_lea.vmem %s57_s30, 12288  ;;  %p10406_p11 = scmp.lt.s32.totalorder %s57_s30, %s57_s30 }
  0x1a   :  { %p10402_p10 = scmp.ne.s32.totalorder %s57_s30, %s10401_s14  ;;  %p10407_p12 = scmp.lt.s32.totalorder %s10401_s14, %s10401_s14 }
  0x1c   :  { %p10408_p13 = por %p10407_p12, %p10406_p11 }
  0x1e   :  { %p10409_p0 = pnand %p10408_p13, %p10402_p10 }
  0x20   :  { %10412 = shalt.err (!%p10409_p0)
}
  0x21   :  { %62 = dma.hbm_to_vmem [thread:$0]  %s15091_s6, 12288, %s57_s30, [#allocation8], %s10441_s22, %s10441_s22, %s10442_s23  }
  0x22   :  { %s10421_s16 = scalar_lea.vmem %s73_s13, 4096  ;;  %p10426_p2 = scmp.lt.s32.totalorder %s73_s13, %s73_s13 }
  0x23   :  { %p10422_p1 = scmp.ne.s32.totalorder %s73_s13, %s10421_s16  ;;  %p10427_p3 = scmp.lt.s32.totalorder %s10421_s16, %s10421_s16 }
  0x25   :  { %p10428_p4 = por %p10427_p3, %p10426_p2 }
  0x27   :  { %p10429_p5 = pnand %p10428_p4, %p10422_p1 }
  0x29   :  { %10432 = shalt.err (!%p10429_p5)
}
  0x2a   :  { %s10445_s2 = smov 128   ;;  %s10446_s17 = smov 8  }
  0x2b   :  { %78 = dma.hbm_to_vmem [thread:$0]  %s15094_s9, 4096, %s73_s13, [#allocation11], %s10445_s2, %s10445_s2, %s10446_s17  }
  0x2c   :  { %10433 = dma.done.wait [#allocation6], 12288  }
  0x2d   :  { %10434 = vsyncadd [#allocation6], 4294955008 }
  0x2e   :  { %10435 = dma.done.wait [#allocation8], 36864  }
  0x2f   :  { %10436 = vsyncadd [#allocation8], 4294930432 }
  0x30   :  { %10437 = dma.done.wait [#allocation11], 4096  }
  0x31   :  { %10438 = vsyncadd [#allocation11], 4294963200  ;;  %v15123_v0 = vmov 0.0   ;;  %v108_v1 = vld [vmem:[%s15086_s1 + $0x38] sm:$0xff]  ;;  %v110_v2 = vld [vmem:[%s15086_s1 + $0x48] sm:$0xff]  ;;  %vm145_vm0 = vcmask 130048  }
  0x32   :  { %234 = vmatprep.mubr.f32.mxu0 %v15123_v0  ;;  %347 = vmatprep.mubr.f32.mxu1 %v15123_v0  ;;  %v107_v3 = vld [vmem:[%s15086_s1 + $0x30] sm:$0xff]  ;;  %v109_v4 = vld [vmem:[%s15086_s1 + $0x40] sm:$0xff]  ;;  %v102_v5 = vld [vmem:[%s15086_s1 + $0x8] sm:$0xff]  ;;  %vm10448_vm1 = vmmov 0  }
  0x33   :  { %198 = vmatprep.subr.mxu0 %v108_v1  ;;  %311 = vmatprep.subr.mxu1 %v110_v2  ;;  %v104_v6 = vld [vmem:[%s15086_s1 + $0x18] sm:$0xff]  ;;  %v101_v7 = vld [vmem:[%s15086_s1] sm:$0xff]  ;;  %v103_v8 = vld [vmem:[%s15086_s1 + $0x10] sm:$0xff] }
  0x34   :  { %199 = vmatpush1.msra.mxu0 %v107_v3  ;;  %312 = vmatpush1.msra.mxu1 %v109_v4  ;;  %v10550_v9 = vld [vmem:[%s15085_s0] sm:$0xff]  ;;  %v112_v10 = vld [vmem:[%s15086_s1 + $0x58] sm:$0xff]  ;;  %v111_v12 = vld [vmem:[%s15086_s1 + $0x50] sm:$0xff] }
  0x35   :  { %200 = vmatprep.subr.mxu0 %v102_v5  ;;  %313 = vmatprep.subr.mxu1 %v104_v6  ;;  %v10555_v11 = vld [vmem:[#allocation5 + $0x2d8] sm:$0xff]  ;;  %v10560_v13 = vld [vmem:[#allocation5 + $0x2d0] sm:$0xff]  ;;  %v10566_v14 = vld [vmem:[#allocation5 + $0x2a8] sm:$0xff] }
  0x36   :  { %201 = vmatpush1.msra.mxu0 %v101_v7  ;;  %314 = vmatpush1.msra.mxu1 %v103_v8  ;;  %v10569_v15 = vld [vmem:[#allocation5 + $0x2a0] sm:$0xff]  ;;  %v10575_v16 = vld [vmem:[%s15085_s0 + $0x8] sm:$0xff]  ;;  %v10579_v17 = vld [vmem:[#allocation5 + $0x278] sm:$0xff] }
  0x37   :  { %8227 = vmatmul.mubr.msk.f32.vlgmr.msra.gmra.mxu0 %vm145_vm0, %v10550_v9  ;;  %8235 = vmatmul.mubr.msk.f32.vlgmr.msra.gmra.mxu1 %vm145_vm0, %v10550_v9  ;;  %v10583_v18 = vld [vmem:[#allocation5 + $0x270] sm:$0xff]  ;;  %v10589_v19 = vld [vmem:[#allocation5 + $0x248] sm:$0xff]  ;;  %v10596_v21 = vld [vmem:[#allocation5 + $0x240] sm:$0xff] }
  0x38   :  { %424 = vmatprep.subr.mxu0 %v112_v10  ;;  %625 = vmatprep.subr.mxu1 %v10555_v11  ;;  %v106_v20 = vld [vmem:[%s15086_s1 + $0x28] sm:$0xff]  ;;  %v10601_v22 = vld [vmem:[%s15085_s0 + $0x10] sm:$0xff]  ;;  %v10605_v23 = vld [vmem:[#allocation5 + $0x218] sm:$0xff] }
  0x39   :  { %425 = vmatpush1.msra.mxu0 %v111_v12  ;;  %626 = vmatpush1.msra.mxu1 %v10560_v13  ;;  %v10608_v24 = vld [vmem:[#allocation5 + $0x210] sm:$0xff]  ;;  %v10613_v25 = vld [vmem:[#allocation5 + $0x1e8] sm:$0xff]  ;;  %v10618_v26 = vld [vmem:[#allocation5 + $0x1e0] sm:$0xff] }
  0x3a   :  { %627 = vmatprep.subr.mxu1 %v10566_v14  ;;  %240 = vmatprep.mubr.f32.mxu0 %v15123_v0  ;;  %v10623_v27 = vld [vmem:[%s15085_s0 + $0x18] sm:$0xff]  ;;  %v10631_v29 = vld [vmem:[#allocation5 + $0x1b0] sm:$0xff]  ;;  %v10636_v30 = vld [vmem:[#allocation5 + $0x188] sm:$0xff] }
  0x3b   :  { %353 = vmatprep.mubr.f32.mxu1 %v15123_v0  ;;  %628 = vmatpush1.msra.mxu1 %v10569_v15  ;;  %v10627_v28 = vld [vmem:[#allocation5 + $0x1b8] sm:$0xff]  ;;  %v10641_v31 = vld [vmem:[#allocation5 + $0x180] sm:$0xff]  ;;  %v10657_v35 = vld [vmem:[#allocation5 + $0x150] sm:$0xff] }
  0x3c   :  { %8228 = vmatmul.mubr.msk.f32.gmra.mxu0 %vm145_vm0, %v10575_v16  ;;  %8236 = vmatmul.mubr.msk.f32.gmra.mxu1 %vm145_vm0, %v10575_v16  ;;  %v10646_v32 = vld [vmem:[%s15085_s0 + $0x20] sm:$0xff]  ;;  %v10650_v33 = vld [vmem:[#allocation5 + $0x158] sm:$0xff]  ;;  %v10662_v36 = vld [vmem:[#allocation5 + $0x128] sm:$0xff] }
  0x3d   :  { %629 = vmatprep.subr.mxu1 %v10579_v17  ;;  %246 = vmatprep.mubr.f32.mxu0 %v15123_v0  ;;  %v105_v34 = vld [vmem:[%s15086_s1 + $0x20] sm:$0xff]  ;;  %v10673_v38 = vld [vmem:[%s15085_s0 + $0x28] sm:$0xff]  ;;  %v10677_v39 = vld [vmem:[#allocation5 + $0xf8] sm:$0xff] }
  0x3e   :  { %630 = vmatpush1.msra.mxu1 %v10583_v18  ;;  %359 = vmatprep.mubr.f32.mxu1 %v15123_v0  ;;  %v10667_v37 = vld [vmem:[#allocation5 + $0x120] sm:$0xff]  ;;  %v10681_v40 = vld [vmem:[#allocation5 + $0xf0] sm:$0xff]  ;;  %v10687_v41 = vld [vmem:[#allocation5 + $0xc8] sm:$0xff] }
  0x3f   :  { %631 = vmatprep.subr.mxu1 %v10589_v19  ;;  %426 = vmatprep.subr.mxu0 %v106_v20  ;;  %v10691_v42 = vld [vmem:[#allocation5 + $0xc0] sm:$0xff]  ;;  %v10696_v43 = vld [vmem:[%s15085_s0 + $0x30] sm:$0xff]  ;;  %v10700_v44 = vld [vmem:[#allocation5 + $0x98] sm:$0xff] }
  0x40   :  { %632 = vmatpush1.msra.mxu1 %v10596_v21  ;;  %8229 = vmatmul.mubr.msk.f32.gmra.mxu0 %vm145_vm0, %v10601_v22  ;;  %v10703_v45 = vld [vmem:[#allocation5 + $0x90] sm:$0xff]  ;;  %v10709_v46 = vld [vmem:[#allocation5 + $0x68] sm:$0xff]  ;;  %v10714_v47 = vld [vmem:[#allocation5 + $0x60] sm:$0xff] }
  0x41   :  { %8237 = vmatmul.mubr.msk.f32.gmra.mxu1 %vm145_vm0, %v10601_v22  ;;  %633 = vmatprep.subr.mxu1 %v10605_v23  ;;  %v10719_v48 = vld [vmem:[%s15085_s0 + $0x38] sm:$0xff]  ;;  %v10727_v50 = vld [vmem:[#allocation5 + $0x30] sm:$0xff]  ;;  %v10732_v51 = vld [vmem:[#allocation5 + $0x8] sm:$0xff] }
  0x42   :  { %634 = vmatpush1.msra.mxu1 %v10608_v24  ;;  %252 = vmatprep.mubr.f32.mxu0 %v15123_v0  ;;  %v10723_v49 = vld [vmem:[#allocation5 + $0x38] sm:$0xff]  ;;  %v10737_v52 = vld [vmem:[#allocation5] sm:$0xff]  ;;  %v10745_v54 = vld [vmem:[#allocation5 + $0x2f0] sm:$0xff] }
  0x43   :  { %635 = vmatprep.subr.mxu1 %v10613_v25  ;;  %365 = vmatprep.mubr.f32.mxu1 %v15123_v0  ;;  %v10741_v53 = vld [vmem:[#allocation5 + $0x2e0] sm:$0xff]  ;;  %v10750_v55 = vld [vmem:[#allocation5 + $0x2e8] sm:$0xff]  ;;  %v10752_v56 = vld [vmem:[#allocation5 + $0x2b0] sm:$0xff] }
  0x44   :  { %636 = vmatpush1.msra.mxu1 %v10618_v26  ;;  %8230 = vmatmul.mubr.msk.f32.gmra.mxu0 %vm145_vm0, %v10623_v27  ;;  %v10756_v57 = vld [vmem:[#allocation5 + $0x2c0] sm:$0xff]  ;;  %v10760_v58 = vld [vmem:[#allocation5 + $0x2b8] sm:$0xff]  ;;  %v10764_v59 = vld [vmem:[#allocation5 + $0x290] sm:$0xff] }
  0x45   :  { %8238 = vmatmul.mubr.msk.f32.gmra.mxu1 %vm145_vm0, %v10623_v27  ;;  %637 = vmatprep.subr.mxu1 %v10627_v28  ;;  %v10768_v60 = vld [vmem:[#allocation5 + $0x280] sm:$0xff]  ;;  %v10770_v61 = vld [vmem:[#allocation5 + $0x288] sm:$0xff]  ;;  %v10779_v63 = vld [vmem:[#allocation5 + $0x250] sm:$0xff] }
  0x46   :  { %638 = vmatpush1.msra.mxu1 %v10631_v29  ;;  %258 = vmatprep.mubr.f32.mxu0 %v15123_v0  ;;  %v10774_v62 = vld [vmem:[#allocation5 + $0x260] sm:$0xff]  ;;  %v10783_v1 = vld [vmem:[#allocation5 + $0x258] sm:$0xff]  ;;  %v10787_v2 = vld [vmem:[#allocation5 + $0x230] sm:$0xff] }
  0x47   :  { %639 = vmatprep.subr.mxu1 %v10636_v30  ;;  %371 = vmatprep.mubr.f32.mxu1 %v15123_v0  ;;  %v10791_v3 = vld [vmem:[#allocation5 + $0x220] sm:$0xff]  ;;  %v10793_v4 = vld [vmem:[#allocation5 + $0x228] sm:$0xff]  ;;  %v10802_v6 = vld [vmem:[#allocation5 + $0x1f0] sm:$0xff] }
  0x48   :  { %640 = vmatpush1.msra.mxu1 %v10641_v31  ;;  %8231 = vmatmul.mubr.msk.f32.gmra.mxu0 %vm145_vm0, %v10646_v32  ;;  %15458 = vst [vmem:[#allocation15_spill] sm:$0xff] %v10793_v4  ;;  %v10797_v5 = vld [vmem:[#allocation5 + $0x200] sm:$0xff]  ;;  %v10806_v7 = vld [vmem:[#allocation5 + $0x1f8] sm:$0xff]  ;;  %v10810_v8 = vld [vmem:[#allocation5 + $0x1d0] sm:$0xff] }
  0x49   :  { %8239 = vmatmul.mubr.msk.f32.gmra.mxu1 %vm145_vm0, %v10646_v32  ;;  %641 = vmatprep.subr.mxu1 %v10650_v33  ;;  %15459 = vst [vmem:[#allocation16_spill] sm:$0xff] %v10797_v5  ;;  %15460 = vst [vmem:[#allocation17_spill] sm:$0xff] %v10806_v7  ;;  %v10816_v10 = vld [vmem:[#allocation5 + $0x1c8] sm:$0xff]  ;;  %v10820_v12 = vld [vmem:[#allocation5 + $0x1a0] sm:$0xff] }
  0x4a   :  { %427 = vmatpush1.msra.mxu0 %v105_v34  ;;  %642 = vmatpush1.msra.mxu1 %v10657_v35  ;;  %15461 = vst [vmem:[#allocation18_spill] sm:$0xff] %v10810_v8  ;;  %15462 = vst [vmem:[#allocation19_spill] sm:$0xff] %v10816_v10  ;;  %v10829_v20 = vld [vmem:[#allocation5 + $0x198] sm:$0xff]  ;;  %v10839_v34 = vld [vmem:[#allocation5 + $0x168] sm:$0xff] }
  0x4b   :  { %643 = vmatprep.subr.mxu1 %v10662_v36  ;;  %264 = vmatprep.mubr.f32.mxu0 %v15123_v0  ;;  %15463 = vst [vmem:[#allocation20_spill] sm:$0xff] %v10820_v12  ;;  %15464 = vst [vmem:[#allocation21_spill] sm:$0xff] %v10829_v20 }
  0x4c   :  { %377 = vmatprep.mubr.f32.mxu1 %v15123_v0  ;;  %644 = vmatpush1.msra.mxu1 %v10667_v37  ;;  %15466 = vst [vmem:[#allocation23_spill] sm:$0xff] %v10839_v34 }
  0x4d   :  { %8232 = vmatmul.mubr.msk.f32.gmra.mxu0 %vm145_vm0, %v10673_v38  ;;  %8240 = vmatmul.mubr.msk.f32.gmra.mxu1 %vm145_vm0, %v10673_v38 }
  0x4e   :  { %645 = vmatprep.subr.mxu1 %v10677_v39  ;;  %270 = vmatprep.mubr.f32.mxu0 %v15123_v0 }
  0x4f   :  { %646 = vmatpush1.msra.mxu1 %v10681_v40  ;;  %383 = vmatprep.mubr.f32.mxu1 %v15123_v0 }
  0x50   :  { %647 = vmatprep.subr.mxu1 %v10687_v41  ;;  %8905 = vmatprep.subr.mxu0 %v15123_v0 }
  0x51   :  { %648 = vmatpush1.msra.mxu1 %v10691_v42  ;;  %8233 = vmatmul.mubr.msk.f32.gmra.mxu0 %vm145_vm0, %v10696_v43 }
  0x52   :  { %8241 = vmatmul.mubr.msk.f32.gmra.mxu1 %vm145_vm0, %v10696_v43  ;;  %649 = vmatprep.subr.mxu1 %v10700_v44 }
  0x53   :  { %650 = vmatpush1.msra.mxu1 %v10703_v45  ;;  %276 = vmatprep.mubr.f32.mxu0 %v15123_v0 }
  0x54   :  { %651 = vmatprep.subr.mxu1 %v10709_v46  ;;  %389 = vmatprep.mubr.f32.mxu1 %v15123_v0 }
  0x55   :  { %652 = vmatpush1.msra.mxu1 %v10714_v47  ;;  %8234 = vmatmul.mubr.msk.f32.gmra.mxu0 %vm145_vm0, %v10719_v48 }
  0x56   :  { %8242 = vmatmul.mubr.msk.f32.gmra.mxu1 %vm145_vm0, %v10719_v48  ;;  %653 = vmatprep.subr.mxu1 %v10723_v49 }
  0x57   :  { %654 = vmatpush1.msra.mxu1 %v10727_v50  ;;  %460 = vmatprep.mubr.f32.mxu0 %v15123_v0 }
  0x58   :  { %655 = vmatprep.subr.mxu1 %v10732_v51  ;;  %689 = vmatprep.mubr.f32.mxu1 %v15123_v0 }
  0x59   :  { %656 = vmatpush1.msra.mxu1 %v10737_v52  ;;  %8243 = vmatmul.mubr.msk.f32.vlgmr.msra.gmra.mxu0 %vm145_vm0, %v10550_v9  ;;  %v10814_v9 = vld [vmem:[#allocation5 + $0x1c0] sm:$0xff] }
  0x5a   :  { %690 = vmatmul.mubr.f32.vlgmr.msra.gmra.mxu1 %v15123_v0  ;;  %8906 = vmatpush3.msra.mxu0 %v10741_v53 }
  0x5b   :  { %814 = vmatprep.subr.mxu1 %v10745_v54  ;;  %8907 = vmatprep.subr.mxu0 %v15123_v0 }
  0x5c   :  { %815 = vmatpush1.msra.mxu1 %v10750_v55  ;;  %8908 = vmatpush3.msra.mxu0 %v10752_v56 }
  0x5d   :  { %816 = vmatprep.subr.mxu1 %v10756_v57  ;;  %466 = vmatprep.mubr.f32.mxu0 %v15123_v0 }
  0x5e   :  { %8909 = vmatprep.subr.mxu0 %v15123_v0  ;;  %817 = vmatpush1.msra.mxu1 %v10760_v58 }
  0x5f   :  { %8244 = vmatmul.mubr.msk.f32.gmra.mxu0 %vm145_vm0, %v10575_v16  ;;  %818 = vmatprep.subr.mxu1 %v10764_v59  ;;  %v10825_v16 = vld [vmem:[#allocation5 + $0x190] sm:$0xff] }
  0x60   :  { %8910 = vmatpush3.msra.mxu0 %v10768_v60  ;;  %819 = vmatpush1.msra.mxu1 %v10770_v61 }
  0x61   :  { %8911 = vmatprep.subr.mxu0 %v15123_v0  ;;  %820 = vmatprep.subr.mxu1 %v10774_v62 }
  0x62   :  { %8912 = vmatpush3.msra.mxu0 %v10779_v63  ;;  %472 = vmatprep.mubr.f32.mxu0 %v15123_v0 }
  0x63   :  { %8913 = vmatprep.subr.mxu0 %v15123_v0  ;;  %821 = vmatpush1.msra.mxu1 %v10783_v1 }
  0x64   :  { %8245 = vmatmul.mubr.msk.f32.gmra.mxu0 %vm145_vm0, %v10601_v22  ;;  %822 = vmatprep.subr.mxu1 %v10787_v2  ;;  %v10833_v22 = vld [vmem:[#allocation5 + $0x170] sm:$0xff] }
  0x65   :  { %8914 = vmatpush3.msra.mxu0 %v10791_v3  ;;  %823 = vmatpush1.msra.mxu1 %v10793_v4  ;;  %15465 = vst [vmem:[#allocation22_spill] sm:$0xff] %v10833_v22  ;;  %v10921_v4 = vld [vmem:[#allocation5 + $0x18] sm:$0xff] }
  0x66   :  { %8915 = vmatprep.subr.mxu0 %v15123_v0  ;;  %824 = vmatprep.subr.mxu1 %v10797_v5  ;;  %v10898_v5 = vld [vmem:[#allocation5 + $0x78] sm:$0xff]  ;;  %15479 = vst [vmem:[#allocation36_spill] sm:$0xff] %v10921_v4 }
  0x67   :  { %8916 = vmatpush3.msra.mxu0 %v10802_v6  ;;  %478 = vmatprep.mubr.f32.mxu0 %v15123_v0 }
  0x68   :  { %8917 = vmatprep.subr.mxu0 %v15123_v0  ;;  %825 = vmatpush1.msra.mxu1 %v10806_v7  ;;  %v10875_v7 = vld [vmem:[#allocation5 + $0xd8] sm:$0xff] }
  0x69   :  { %8246 = vmatmul.mubr.msk.f32.gmra.mxu0 %vm145_vm0, %v10623_v27  ;;  %826 = vmatprep.subr.mxu1 %v10810_v8  ;;  %v10837_v27 = vld [vmem:[#allocation5 + $0x160] sm:$0xff]  ;;  %v10852_v8 = vld [vmem:[#allocation5 + $0x138] sm:$0xff]  ;;  %15472 = vst [vmem:[#allocation29_spill] sm:$0xff] %v10875_v7 }
  0x6a   :  { %8918 = vmatpush3.msra.mxu0 %v10814_v9  ;;  %827 = vmatpush1.msra.mxu1 %v10816_v10  ;;  %v10843_v10 = vld [vmem:[#allocation5 + $0x140] sm:$0xff]  ;;  %15468 = vst [vmem:[#allocation25_spill] sm:$0xff] %v10852_v8 }
  0x6b   :  { %8919 = vmatprep.subr.mxu0 %v15123_v0  ;;  %828 = vmatprep.subr.mxu1 %v10820_v12  ;;  %15467 = vst [vmem:[#allocation24_spill] sm:$0xff] %v10843_v10  ;;  %v10848_v12 = vld [vmem:[#allocation5 + $0x130] sm:$0xff] }
  0x6c   :  { %8920 = vmatpush3.msra.mxu0 %v10825_v16  ;;  %484 = vmatprep.mubr.f32.mxu0 %v15123_v0 }
  0x6d   :  { %8921 = vmatprep.subr.mxu0 %v15123_v0  ;;  %829 = vmatpush1.msra.mxu1 %v10829_v20  ;;  %v10856_v20 = vld [vmem:[#allocation5 + $0x110] sm:$0xff] }
  0x6e   :  { %8247 = vmatmul.mubr.msk.f32.gmra.mxu0 %vm145_vm0, %v10646_v32  ;;  %830 = vmatprep.subr.mxu1 %v10833_v22  ;;  %15469 = vst [vmem:[#allocation26_spill] sm:$0xff] %v10856_v20  ;;  %v10860_v32 = vld [vmem:[#allocation5 + $0x100] sm:$0xff]  ;;  %v10862_v22 = vld [vmem:[#allocation5 + $0x108] sm:$0xff] }
  0x6f   :  { %8922 = vmatpush3.msra.mxu0 %v10837_v27  ;;  %831 = vmatpush1.msra.mxu1 %v10839_v34  ;;  %15470 = vst [vmem:[#allocation27_spill] sm:$0xff] %v10862_v22  ;;  %v10866_v34 = vld [vmem:[#allocation5 + $0xe0] sm:$0xff] }
  0x70   :  { %8923 = vmatprep.subr.mxu0 %v15123_v0  ;;  %832 = vmatprep.subr.mxu1 %v10843_v10  ;;  %15471 = vst [vmem:[#allocation28_spill] sm:$0xff] %v10866_v34  ;;  %v10871_v10 = vld [vmem:[#allocation5 + $0xd0] sm:$0xff] }
  0x71   :  { %8924 = vmatpush3.msra.mxu0 %v10848_v12  ;;  %490 = vmatprep.mubr.f32.mxu0 %v15123_v0 }
  0x72   :  { %8925 = vmatprep.subr.mxu0 %v15123_v0  ;;  %833 = vmatpush1.msra.mxu1 %v10852_v8  ;;  %v10879_v8 = vld [vmem:[#allocation5 + $0xb0] sm:$0xff] }
  0x73   :  { %8248 = vmatmul.mubr.msk.f32.gmra.mxu0 %vm145_vm0, %v10673_v38  ;;  %834 = vmatprep.subr.mxu1 %v10856_v20  ;;  %15473 = vst [vmem:[#allocation30_spill] sm:$0xff] %v10879_v8  ;;  %v10883_v38 = vld [vmem:[#allocation5 + $0xa0] sm:$0xff]  ;;  %v10885_v20 = vld [vmem:[#allocation5 + $0xa8] sm:$0xff] }
  0x74   :  { %8926 = vmatpush3.msra.mxu0 %v10860_v32  ;;  %835 = vmatpush1.msra.mxu1 %v10862_v22  ;;  %15474 = vst [vmem:[#allocation31_spill] sm:$0xff] %v10885_v20  ;;  %v10889_v22 = vld [vmem:[#allocation5 + $0x80] sm:$0xff] }
  0x75   :  { %8927 = vmatprep.subr.mxu0 %v15123_v0  ;;  %836 = vmatprep.subr.mxu1 %v10866_v34  ;;  %15475 = vst [vmem:[#allocation32_spill] sm:$0xff] %v10889_v22  ;;  %v10894_v34 = vld [vmem:[#allocation5 + $0x70] sm:$0xff] }
  0x76   :  { %8928 = vmatpush3.msra.mxu0 %v10871_v10  ;;  %496 = vmatprep.mubr.f32.mxu0 %v15123_v0 }
  0x77   :  { %8929 = vmatprep.subr.mxu0 %v15123_v0  ;;  %837 = vmatpush1.msra.mxu1 %v10875_v7  ;;  %v10902_v7 = vld [vmem:[#allocation5 + $0x50] sm:$0xff] }
  0x78   :  { %8249 = vmatmul.mubr.msk.f32.gmra.mxu0 %vm145_vm0, %v10696_v43  ;;  %838 = vmatprep.subr.mxu1 %v10879_v8  ;;  %15476 = vst [vmem:[#allocation33_spill] sm:$0xff] %v10902_v7  ;;  %v10906_v43 = vld [vmem:[#allocation5 + $0x40] sm:$0xff]  ;;  %v10908_v8 = vld [vmem:[#allocation5 + $0x48] sm:$0xff] }
  0x79   :  { %8930 = vmatpush3.msra.mxu0 %v10883_v38  ;;  %839 = vmatpush1.msra.mxu1 %v10885_v20  ;;  %15477 = vst [vmem:[#allocation34_spill] sm:$0xff] %v10908_v8  ;;  %v10912_v20 = vld [vmem:[#allocation5 + $0x20] sm:$0xff] }
  0x7a   :  { %8931 = vmatprep.subr.mxu0 %v15123_v0  ;;  %840 = vmatprep.subr.mxu1 %v10889_v22  ;;  %15478 = vst [vmem:[#allocation35_spill] sm:$0xff] %v10912_v20  ;;  %v10917_v22 = vld [vmem:[#allocation5 + $0x10] sm:$0xff] }
  0x7b   :  { %8932 = vmatpush3.msra.mxu0 %v10894_v34  ;;  %502 = vmatprep.mubr.f32.mxu0 %v15123_v0 }
  0x7c   :  { %8933 = vmatprep.subr.mxu0 %v15123_v0  ;;  %841 = vmatpush1.msra.mxu1 %v10898_v5 }
  0x7d   :  { %8250 = vmatmul.mubr.msk.f32.gmra.mxu0 %vm145_vm0, %v10719_v48  ;;  %842 = vmatprep.subr.mxu1 %v10902_v7  ;;  %v10928_v48 = vld [vmem:[#allocation5 + $0x2f8] sm:$0xff] }
  0x7e   :  { %8934 = vmatpush3.msra.mxu0 %v10906_v43  ;;  %843 = vmatpush1.msra.mxu1 %v10908_v8  ;;  %v10934_v8 = vld [vmem:[#allocation5 + $0x2c8] sm:$0xff]  ;;  %v10952_v7 = vld [vmem:[#allocation5 + $0x238] sm:$0xff] }
  0x7f   :  { %8935 = vmatprep.subr.mxu0 %v15123_v0  ;;  %844 = vmatprep.subr.mxu1 %v10912_v20  ;;  %v10939_v20 = vld [vmem:[#allocation5 + $0x298] sm:$0xff] }
  0x80   :  { %8936 = vmatpush3.msra.mxu0 %v10917_v22  ;;  %8937 = vmatprep.mubr.msk.f32.mxu0 %vm10448_vm1, %v15123_v0 }
  0x81   :  { %845 = vmatpush1.msra.mxu1 %v10921_v4  ;;  %878 = vmatprep.mubr.f32.mxu1 %v15123_v0  ;;  %v10946_v4 = vld [vmem:[#allocation5 + $0x268] sm:$0xff] }
  0x82   :  { %8940 = vmatprep.subr.mxu0 %v15123_v0  ;;  %8938 = vmatmul.mubr.f32.vlgmr.msra.gmra.mxu0 %v15123_v0 }
  0x83   :  { %879 = vmatmul.mubr.f32.vlgmr.msra.gmra.mxu1 %v15123_v0  ;;  %8941 = vmatpush3.msra.mxu0 %v10928_v48 }
  0x84   :  { %8942 = vmatprep.subr.mxu0 %v15123_v0  ;;  %8972 = vmatprep.mubr.msk.f32.mxu0 %vm10448_vm1, %v15123_v0 }
  0x85   :  { %8943 = vmatpush3.msra.mxu0 %v10934_v8  ;;  %1055 = vmatprep.subr.mxu1 %v10555_v11  ;;  %v10958_v11 = vld [vmem:[#allocation5 + $0x208] sm:$0xff] }
  0x86   :  { %8944 = vmatprep.subr.mxu0 %v15123_v0  ;;  %1056 = vmatpush1.msra.mxu1 %v10560_v13  ;;  %v10964_v13 = vld [vmem:[#allocation5 + $0x1d8] sm:$0xff] }
  0x87   :  { %8945 = vmatpush3.msra.mxu0 %v10939_v20  ;;  %1057 = vmatprep.subr.mxu1 %v10566_v14  ;;  %v10970_v14 = vld [vmem:[#allocation5 + $0x1a8] sm:$0xff] }
  0x88   :  { %8946 = vmatprep.subr.mxu0 %v15123_v0  ;;  %1058 = vmatpush1.msra.mxu1 %v10569_v15  ;;  %v10976_v15 = vld [vmem:[#allocation5 + $0x178] sm:$0xff] }
  0x89   :  { %8947 = vmatpush3.msra.mxu0 %v10946_v4  ;;  %1059 = vmatprep.subr.mxu1 %v10579_v17  ;;  %v10982_v17 = vld [vmem:[#allocation5 + $0x148] sm:$0xff] }
  0x8a   :  { %8948 = vmatprep.subr.mxu0 %v15123_v0  ;;  %1060 = vmatpush1.msra.mxu1 %v10583_v18  ;;  %v10988_v18 = vld [vmem:[#allocation5 + $0x118] sm:$0xff] }
  0x8b   :  { %8949 = vmatpush3.msra.mxu0 %v10952_v7  ;;  %1061 = vmatprep.subr.mxu1 %v10589_v19  ;;  %v10994_v19 = vld [vmem:[#allocation5 + $0xe8] sm:$0xff] }
  0x8c   :  { %8950 = vmatprep.subr.mxu0 %v15123_v0  ;;  %1062 = vmatpush1.msra.mxu1 %v10596_v21  ;;  %v11000_v21 = vld [vmem:[#allocation5 + $0xb8] sm:$0xff] }
  0x8d   :  { %8951 = vmatpush3.msra.mxu0 %v10958_v11  ;;  %1063 = vmatprep.subr.mxu1 %v10605_v23  ;;  %v11006_v23 = vld [vmem:[#allocation5 + $0x88] sm:$0xff] }
  0x8e   :  { %8952 = vmatprep.subr.mxu0 %v15123_v0  ;;  %1064 = vmatpush1.msra.mxu1 %v10608_v24  ;;  %v11012_v24 = vld [vmem:[#allocation5 + $0x58] sm:$0xff] }
  0x8f   :  { %8953 = vmatpush3.msra.mxu0 %v10964_v13  ;;  %1065 = vmatprep.subr.mxu1 %v10613_v25  ;;  %v11018_v25 = vld [vmem:[#allocation5 + $0x28] sm:$0xff] }
  0x90   :  { %8954 = vmatprep.subr.mxu0 %v15123_v0  ;;  %1066 = vmatpush1.msra.mxu1 %v10618_v26  ;;  %v115_v26 = vlaneseq }
  0x91   :  { %8955 = vmatpush3.msra.mxu0 %v10970_v14  ;;  %1067 = vmatprep.subr.mxu1 %v10627_v28 }
  0x92   :  { %8956 = vmatprep.subr.mxu0 %v15123_v0  ;;  %1068 = vmatpush1.msra.mxu1 %v10631_v29  ;;  %v11068_v28 = vshrl.u32 %v115_v26, 7 }
  0x93   :  { %8957 = vmatpush3.msra.mxu0 %v10976_v15  ;;  %1069 = vmatprep.subr.mxu1 %v10636_v30 }
  0x94   :  { %8958 = vmatprep.subr.mxu0 %v15123_v0  ;;  %1070 = vmatpush1.msra.mxu1 %v10641_v31  ;;  %15480 = vst [vmem:[#allocation37_spill] sm:$0xff] %v11068_v28  ;;  %v15122_v29 = vsub.s32 0, %v11068_v28  ;;  %v15121_v31 = vsub.s32 2, %v11068_v28 }
  0x95   :  { %8959 = vmatpush3.msra.mxu0 %v10982_v17  ;;  %1071 = vmatprep.subr.mxu1 %v10650_v33 }
  0x96   :  { %8960 = vmatprep.subr.mxu0 %v15123_v0  ;;  %1072 = vmatpush1.msra.mxu1 %v10657_v35  ;;  %v11079_v35 = vld [vmem:[%s15088_s3] sm:$0x3f] }
  0x97   :  { %8961 = vmatpush3.msra.mxu0 %v10988_v18  ;;  %1073 = vmatprep.subr.mxu1 %v10662_v36  ;;  %v15119_v36 = vsub.s32 1, %v11068_v28 }
  0x98   :  { %8962 = vmatprep.subr.mxu0 %v15123_v0  ;;  %1074 = vmatpush1.msra.mxu1 %v10667_v37 }
  0x99   :  { %8963 = vmatpush3.msra.mxu0 %v10994_v19  ;;  %1075 = vmatprep.subr.mxu1 %v10677_v39 }
  0x9a   :  { %8964 = vmatprep.subr.mxu0 %v15123_v0  ;;  %1076 = vmatpush1.msra.mxu1 %v10681_v40  ;;  %v11089_v40 = vrot.slane %v11079_v35, %v15122_v29  ;;  %v15125_v29 = vsub.s32 4, %v11068_v28 }
  0x9b   :  { %8965 = vmatpush3.msra.mxu0 %v11000_v21  ;;  %1077 = vmatprep.subr.mxu1 %v10687_v41  ;;  %v11094_v41 = vrot.slane %v11079_v35, %v15121_v31 }
  0x9c   :  { %8966 = vmatprep.subr.mxu0 %v15123_v0  ;;  %1078 = vmatpush1.msra.mxu1 %v10691_v42 }
  0x9d   :  { %8967 = vmatpush3.msra.mxu0 %v11006_v23  ;;  %1079 = vmatprep.subr.mxu1 %v10700_v44 }
  0x9e   :  { %8968 = vmatprep.subr.mxu0 %v15123_v0  ;;  %1080 = vmatpush1.msra.mxu1 %v10703_v45  ;;  %v11099_v45 = vrot.slane %v11079_v35, %v15119_v36 }
  0x9f   :  { %8969 = vmatpush3.msra.mxu0 %v11012_v24  ;;  %1081 = vmatprep.subr.mxu1 %v10709_v46 }
  0xa0   :  { %8970 = vmatprep.subr.mxu0 %v15123_v0  ;;  %1082 = vmatpush1.msra.mxu1 %v10714_v47 }
  0xa1   :  { %8971 = vmatpush3.msra.mxu0 %v11018_v25  ;;  %1083 = vmatprep.subr.mxu1 %v10723_v49  ;;  %v15120_v49 = vsub.s32 3, %v11068_v28 }
  0xa2   :  { %8973 = vmatmul.mubr.f32.vlgmr.msra.gmra.mxu0 %v15123_v0  ;;  %8975 = vmatprep.subr.mxu0 %v15123_v0 }
  0xa3   :  { %8976 = vmatpush3.msra.mxu0 %v10741_v53  ;;  %1084 = vmatpush1.msra.mxu1 %v10727_v50 }
  0xa4   :  { %8977 = vmatprep.subr.mxu0 %v15123_v0  ;;  %1085 = vmatprep.subr.mxu1 %v10732_v51 }
  0xa5   :  { %8978 = vmatpush3.msra.mxu0 %v10752_v56  ;;  %1086 = vmatpush1.msra.mxu1 %v10737_v52 }
  0xa6   :  { %8979 = vmatprep.subr.mxu0 %v15123_v0  ;;  %1119 = vmatprep.mubr.f32.mxu1 %v15123_v0 }
  0xa7   :  { %8980 = vmatpush3.msra.mxu0 %v10768_v60  ;;  %9007 = vmatprep.mubr.msk.f32.mxu0 %vm10448_vm1, %v15123_v0  ;;  %v11119_v60 = vrot.slane %v11079_v35, %v15120_v49 }
  0xa8   :  { %8981 = vmatprep.subr.mxu0 %v15123_v0  ;;  %1244 = vmatprep.subr.mxu1 %v10745_v54 }
  0xa9   :  { %8982 = vmatpush3.msra.mxu0 %v10779_v63  ;;  %15484 = vst [vmem:[#allocation41_spill] sm:$0xff] %v11119_v60 }
  0xaa   :  { %8983 = vmatprep.subr.mxu0 %v15123_v0 }
  0xab   :  { %8984 = vmatpush3.msra.mxu0 %v10791_v3 }
  0xac   :  { %8985 = vmatprep.subr.mxu0 %v15123_v0 }
  0xad   :  { %8986 = vmatpush3.msra.mxu0 %v10802_v6 }
  0xae   :  { %8987 = vmatprep.subr.mxu0 %v15123_v0 }
  0xaf   :  { %8988 = vmatpush3.msra.mxu0 %v10814_v9 }
  0xb0   :  { %8989 = vmatprep.subr.mxu0 %v15123_v0 }
  0xb1   :  { %8990 = vmatpush3.msra.mxu0 %v10825_v16 }
  0xb2   :  { %8991 = vmatprep.subr.mxu0 %v15123_v0 }
  0xb3   :  { %8992 = vmatpush3.msra.mxu0 %v10837_v27 }
  0xb4   :  { %8993 = vmatprep.subr.mxu0 %v15123_v0 }
  0xb5   :  { %8994 = vmatpush3.msra.mxu0 %v10848_v12 }
  0xb6   :  { %8995 = vmatprep.subr.mxu0 %v15123_v0 }
  0xb7   :  { %8996 = vmatpush3.msra.mxu0 %v10860_v32 }
  0xb8   :  { %8997 = vmatprep.subr.mxu0 %v15123_v0 }
  0xb9   :  { %8998 = vmatpush3.msra.mxu0 %v10871_v10 }
  0xba   :  { %8999 = vmatprep.subr.mxu0 %v15123_v0 }
  0xbb   :  { %9000 = vmatpush3.msra.mxu0 %v10883_v38 }
  0xbc   :  { %9001 = vmatprep.subr.mxu0 %v15123_v0 }
  0xbd   :  { %9002 = vmatpush3.msra.mxu0 %v10894_v34 }
  0xbe   :  { %9003 = vmatprep.subr.mxu0 %v15123_v0 }
  0xbf   :  { %9004 = vmatpush3.msra.mxu0 %v10906_v43 }
  0xc0   :  { %9005 = vmatprep.subr.mxu0 %v15123_v0 }
  0xc1   :  { %9006 = vmatpush3.msra.mxu0 %v10917_v22 }
  0xc2   :  { %9010 = vmatprep.subr.mxu0 %v15123_v0 }
  0xf7   :  { %v11071_v30 = vpop.f32.mrf.mxu0  ;;  %v11074_v33 = vpop.f32.mrf.mxu1 }
  0xf9   :  { %v11082_v37 = vpop.f32.mrf.mxu0  ;;  %v11084_v39 = vpop.f32.mrf.mxu1 }
  0xfa   :  { %15481 = vst [vmem:[#allocation38_spill] sm:$0xff] %v11084_v39 }
  0xfc   :  { %v242_v42 = vpop.f32.mrf.mxu0  ;;  %v355_v44 = vpop.f32.mrf.mxu1 }
  0xfd   :  { %v11102_v46 = vadd.f32 %v242_v42, %v11089_v40  ;;  %v11105_v47 = vadd.f32 %v355_v44, %v11094_v41 }
  0xfe   :  { %v244_v50 = vpop.f32.mrf.mxu0  ;;  %v11108_v51 = vpop.f32.mrf.mxu1 }
  0xff   :  { %15482 = vst [vmem:[#allocation39_spill] sm:$0xff] %v11108_v51  ;;  %v11111_v52 = vadd.f32 %v244_v50, %v11099_v45 }
 0x100   :  { %v248_v53 = vpop.f32.mrf.mxu0 }
 0x101   :  { %v11114_v54 = vadd.f32 %v248_v53, %v11089_v40  ;;  %v361_v56 = vpop.f32.mrf.mxu1 }
 0x102   :  { %v11122_v63 = vadd.f32 %v361_v56, %v11094_v41  ;;  %v250_v3 = vpop.f32.mrf.mxu0 }
 0x103   :  { %15483 = vst [vmem:[#allocation40_spill] sm:$0xff] %v11114_v54  ;;  %v11125_v6 = vadd.f32 %v250_v3, %v11099_v45  ;;  %v363_v9 = vpop.f32.mrf.mxu1 }
 0x104   :  { %15485 = vst [vmem:[#allocation42_spill] sm:$0xff] %v11122_v63  ;;  %v11128_v10 = vadd.f32 %v363_v9, %v11119_v60  ;;  %v254_v12 = vpop.f32.mrf.mxu0 }
 0x105   :  { %15486 = vst [vmem:[#allocation43_spill] sm:$0xff] %v11125_v6  ;;  %v11131_v16 = vadd.f32 %v254_v12, %v11089_v40  ;;  %v367_v22 = vpop.f32.mrf.mxu1 }
 0x106   :  { %15487 = vst [vmem:[#allocation44_spill] sm:$0xff] %v11128_v10  ;;  %v11134_v27 = vadd.f32 %v367_v22, %v11094_v41  ;;  %v256_v34 = vpop.f32.mrf.mxu0 }
 0x107   :  { %15488 = vst [vmem:[#allocation45_spill] sm:$0xff] %v11131_v16  ;;  %v11137_v32 = vadd.f32 %v256_v34, %v11099_v45  ;;  %v369_v38 = vpop.f32.mrf.mxu1  ;;  %v11492_v16 = vld [vmem:[#allocation5] sm:$0xff] }
 0x108   :  { %15489 = vst [vmem:[#allocation46_spill] sm:$0xff] %v11134_v27  ;;  %v11140_v43 = vadd.f32 %v369_v38, %v11119_v60  ;;  %v260_v26 = vpop.f32.mrf.mxu0 }
 0x109   :  { %15490 = vst [vmem:[#allocation47_spill] sm:$0xff] %v11137_v32  ;;  %v11143_v42 = vadd.f32 %v260_v26, %v11089_v40  ;;  %v373_v44 = vpop.f32.mrf.mxu1 }
 0x10a   :  { %15491 = vst [vmem:[#allocation48_spill] sm:$0xff] %v11140_v43  ;;  %v11146_v50 = vadd.f32 %v373_v44, %v11094_v41  ;;  %v262_v53 = vpop.f32.mrf.mxu0 }
 0x10b   :  { %15492 = vst [vmem:[#allocation49_spill] sm:$0xff] %v11143_v42  ;;  %v11149_v56 = vadd.f32 %v262_v53, %v11099_v45  ;;  %v375_v3 = vpop.f32.mrf.mxu1 }
 0x10c   :  { %15493 = vst [vmem:[#allocation50_spill] sm:$0xff] %v11146_v50  ;;  %v11152_v9 = vadd.f32 %v375_v3, %v11119_v60 }
 0x10d   :  { %15494 = vst [vmem:[#allocation51_spill] sm:$0xff] %v11149_v56  ;;  %v266_v12 = vpop.f32.mrf.mxu0  ;;  %v379_v22 = vpop.f32.mrf.mxu1 }
 0x10e   :  { %15495 = vst [vmem:[#allocation52_spill] sm:$0xff] %v11152_v9  ;;  %v11155_v34 = vadd.f32 %v266_v12, %v11089_v40  ;;  %v11158_v38 = vadd.f32 %v379_v22, %v11094_v41 }
 0x10f   :  { %v268_v26 = vpop.f32.mrf.mxu0  ;;  %v381_v36 = vpop.f32.mrf.mxu1 }
 0x110   :  { %15496 = vst [vmem:[#allocation53_spill] sm:$0xff] %v11155_v34  ;;  %15497 = vst [vmem:[#allocation54_spill] sm:$0xff] %v11158_v38  ;;  %v11161_v44 = vadd.f32 %v268_v26, %v11099_v45  ;;  %v11164_v53 = vadd.f32 %v381_v36, %v11119_v60 }
 0x111   :  { %v272_v49 = vpop.f32.mrf.mxu0 }
 0x112   :  { %15498 = vst [vmem:[#allocation55_spill] sm:$0xff] %v11161_v44  ;;  %15499 = vst [vmem:[#allocation56_spill] sm:$0xff] %v11164_v53  ;;  %v11167_v3 = vadd.f32 %v272_v49, %v11089_v40  ;;  %v385_v31 = vpop.f32.mrf.mxu1 }
 0x113   :  { %v11171_v12 = vadd.f32 %v385_v31, %v11094_v41  ;;  %v274_v22 = vpop.f32.mrf.mxu0  ;;  %v11186_v31 = vrot.slane %v11079_v35, %v15125_v29 }
 0x114   :  { %15500 = vst [vmem:[#allocation57_spill] sm:$0xff] %v11167_v3  ;;  %v11174_v0 = vadd.f32 %v274_v22, %v11099_v45  ;;  %v387_v39 = vpop.f32.mrf.mxu1 }
 0x115   :  { %15501 = vst [vmem:[#allocation58_spill] sm:$0xff] %v11171_v12  ;;  %v11178_v36 = vadd.f32 %v387_v39, %v11119_v60  ;;  %v278_v51 = vpop.f32.mrf.mxu0  ;;  %v15506_v39 = vsub.s32 5, %v11068_v28 }
 0x116   :  { %15502 = vst [vmem:[#allocation59_spill] sm:$0xff] %v11174_v0  ;;  %v11181_v49 = vadd.f32 %v278_v51, %v11089_v40  ;;  %v391_v3 = vpop.f32.mrf.mxu1  ;;  %v237_v51 = vadd.f32 %v11071_v30, %v11089_v40 }
 0x117   :  { %v11189_v12 = vadd.f32 %v391_v3, %v11094_v41  ;;  %v280_v22 = vpop.f32.mrf.mxu0  ;;  %v11197_v38 = vrot.slane %v11079_v35, %v15506_v39 }
 0x118   :  { %15503 = vst [vmem:[#allocation60_spill] sm:$0xff] %v11181_v49  ;;  %v11192_v0 = vadd.f32 %v280_v22, %v11099_v45  ;;  %v393_v26 = vpop.f32.mrf.mxu1 }
 0x119   :  { %15504 = vst [vmem:[#allocation61_spill] sm:$0xff] %v11189_v12  ;;  %v462_v49 = vpop.f32.mrf.mxu0 }
 0x11a   :  { %15505 = vst [vmem:[#allocation62_spill] sm:$0xff] %v11192_v0  ;;  %v11202_v29 = vadd.f32 %v462_v49, %v11186_v31  ;;  %v691_v10 = vpop.f32.mrf.mxu1 }
 0x11b   :  { %v955_v3 = vadd.f32 %v691_v10, %v237_v51  ;;  %v464_v12 = vpop.f32.mrf.mxu0 }
 0x11c   :  { %15507 = vst [vmem:[#allocation63_spill] sm:$0xff] %v11202_v29  ;;  %v11205_v44 = vadd.f32 %v464_v12, %v11197_v38  ;;  %v693_v49 = vpop.f32.mrf.mxu1  ;;  %v239_v12 = vadd.f32 %v11082_v37, %v11099_v45 }
 0x11d   :  { %v8253_v22 = vmul.f32 -1.442695, %v955_v3 }
 0x11e   :  { %15508 = vst [vmem:[#allocation64_spill] sm:$0xff] %v11205_v44  ;;  %v962_v3 = vadd.f32 %v693_v49, %v239_v12 }
 0x11f   :  { %v468_v0 = vpop.f32.mrf.mxu0  ;;  %10035 = vpow2.f32 %v8253_v22 }
 0x120   :  { %v11208_v28 = vadd.f32 %v468_v0, %v11186_v31  ;;  %v8254_v29 = vmul.f32 -1.442695, %v962_v3 }
 0x121   :  { %v470_v35 = vpop.f32.mrf.mxu0 }
 0x122   :  { %15509 = vst [vmem:[#allocation65_spill] sm:$0xff] %v11208_v28  ;;  %v11211_v39 = vadd.f32 %v470_v35, %v11197_v38  ;;  %10037 = vpow2.f32 %v8254_v29 }
 0x124   :  { %15510 = vst [vmem:[#allocation66_spill] sm:$0xff] %v11211_v39  ;;  %v474_v30 = vpop.f32.mrf.mxu0 }
 0x125   :  { %v11214_v40 = vadd.f32 %v474_v30, %v11186_v31 }
 0x126   :  { %v476_v10 = vpop.f32.mrf.mxu0 }
 0x127   :  { %15511 = vst [vmem:[#allocation67_spill] sm:$0xff] %v11214_v40  ;;  %v11219_v51 = vadd.f32 %v476_v10, %v11197_v38 }
 0x129   :  { %15512 = vst [vmem:[#allocation68_spill] sm:$0xff] %v11219_v51  ;;  %v480_v0 = vpop.f32.mrf.mxu0 }
 0x12a   :  { %v11222_v22 = vadd.f32 %v480_v0, %v11186_v31 }
 0x12b   :  { %v482_v44 = vpop.f32.mrf.mxu0 }
 0x12c   :  { %15513 = vst [vmem:[#allocation69_spill] sm:$0xff] %v11222_v22  ;;  %v11225_v35 = vadd.f32 %v482_v44, %v11197_v38  ;;  %v10036_v30 = vpop.eup %10035 }
 0x12d   :  { %v959_v37 = vadd.f32 1.0, %v10036_v30 }
 0x12e   :  { %15514 = vst [vmem:[#allocation70_spill] sm:$0xff] %v11225_v35  ;;  %v486_v39 = vpop.f32.mrf.mxu0 }
 0x12f   :  { %v11228_v28 = vadd.f32 %v486_v39, %v11186_v31  ;;  %10039 = vrcp.f32 %v959_v37 }
 0x130   :  { %v488_v40 = vpop.f32.mrf.mxu0 }
 0x131   :  { %15515 = vst [vmem:[#allocation71_spill] sm:$0xff] %v11228_v28  ;;  %v11231_v45 = vadd.f32 %v488_v40, %v11197_v38  ;;  %v10038_v40 = vpop.eup %10037 }
 0x132   :  { %v966_v37 = vadd.f32 1.0, %v10038_v40 }
 0x133   :  { %15516 = vst [vmem:[#allocation72_spill] sm:$0xff] %v11231_v45  ;;  %v492_v49 = vpop.f32.mrf.mxu0 }
 0x134   :  { %v11234_v10 = vadd.f32 %v492_v49, %v11186_v31  ;;  %v11248_v49 = vld [vmem:[%s15089_s4] ss:$0 sm:$0xff]  ;;  %10041 = vrcp.f32 %v966_v37 }
 0x135   :  { %v494_v12 = vpop.f32.mrf.mxu0  ;;  %15519 = vst [vmem:[#allocation75_spill] sm:$0xff] %v11248_v49  ;;  %v15542_v37 = vld [vmem:[#allocation35_spill] sm:$0xff] }
 0x136   :  { %15517 = vst [vmem:[#allocation73_spill] sm:$0xff] %v11234_v10  ;;  %v11237_v44 = vadd.f32 %v494_v12, %v11197_v38  ;;  %v394_v12 = vadd.f32 %v393_v26, %v11119_v60  ;;  %v11498_v10 = vld [vmem:[#allocation5 + $0x2f0] sm:$0xff] }
 0x138   :  { %15518 = vst [vmem:[#allocation74_spill] sm:$0xff] %v11237_v44  ;;  %v498_v3 = vpop.f32.mrf.mxu0  ;;  %v11494_v44 = vld [vmem:[#allocation5 + $0x10] sm:$0xff] }
 0x139   :  { %v11240_v0 = vadd.f32 %v498_v3, %v11186_v31 }
 0x13a   :  { %v500_v39 = vpop.f32.mrf.mxu0 }
 0x13b   :  { %v11243_v30 = vadd.f32 %v500_v39, %v11197_v38  ;;  %v350_v39 = vadd.f32 %v11074_v33, %v11094_v41 }
 0x13c   :  { %v10040_v34 = vpop.eup %10039 }
 0x13d   :  { %v504_v29 = vpop.f32.mrf.mxu0 }
 0x13e   :  { %v505_v27 = vadd.f32 %v504_v29, %v11186_v31  ;;  %v15539_v31 = vld [vmem:[#allocation32_spill] sm:$0xff]  ;;  %v15541_v29 = vld [vmem:[#allocation34_spill] sm:$0xff] }
 0x13f   :  { %v506_v51 = vpop.f32.mrf.mxu0 }
 0x141   :  { %v10042_v60 = vpop.eup %10041 }
 0x142   :  { %v762_v35 = vpop.f32.mrf.mxu0  ;;  %v973_v9 = vsub.f32 1.0, %v10042_v60  ;;  %v975_v32 = vmul.f32 0.0, %v10042_v60 }
 0x143   :  { %v969_v3 = vadd.f32 %v11248_v49, %v762_v35  ;;  %v880_v22 = vpop.f32.mrf.mxu1 }
 0x144   :  { %v977_v50 = vadd.f32 %v880_v22, %v394_v12  ;;  %v8939_v43 = vpop.f32.mrf.mxu0 }
 0x145   :  { %v970_v56 = vmul.f32 %v10040_v34, %v969_v3  ;;  %v882_v28 = vpop.f32.mrf.mxu1  ;;  %v15543_v3 = vld [vmem:[#allocation36_spill] sm:$0xff] }
 0x146   :  { %v8255_v42 = vmul.f32 -1.442695, %v977_v50  ;;  %v984_v40 = vadd.f32 %v882_v28, %v505_v27  ;;  %v15521_v28 = vmov 0.0   ;;  %v15526_v27 = vld [vmem:[#allocation19_spill] sm:$0xff]  ;;  %v15531_v50 = vld [vmem:[#allocation24_spill] sm:$0xff] }
 0x147   :  { %v971_v45 = vadd.f32 %v970_v56, %v350_v39  ;;  %v15533_v56 = vld [vmem:[#allocation26_spill] sm:$0xff]  ;;  %v11348_v39 = vld [vmem:[#allocation5 + $0x2a8] sm:$0xff] }
 0x148   :  { %10043 = vpow2.f32 %v8255_v42  ;;  %v8256_v26 = vmul.f32 -1.442695, %v984_v40  ;;  %v15529_v42 = vld [vmem:[#allocation22_spill] sm:$0xff]  ;;  %v11352_v40 = vld [vmem:[#allocation5 + $0x2a0] sm:$0xff]  ;;  %15555 = vst [vmem:[#allocation26_spill] sm:$0xff] %v11494_v44 }
 0x149   :  { %10045 = vtanh.f32 %v971_v45 }
 0x14a   :  { %10047 = vpow2.f32 %v8256_v26  ;;  %v11354_v26 = vld [vmem:[#allocation5 + $0x2b0] sm:$0xff] }
 0x155   :  { %v10044_v35 = vpop.eup %10043 }
 0x156   :  { %v10046_v22 = vpop.eup %10045  ;;  %v981_v43 = vadd.f32 1.0, %v10044_v35  ;;  %v11358_v35 = vld [vmem:[#allocation5 + $0x278] sm:$0xff] }
 0x157   :  { %v974_v12 = vmul.f32 %v10046_v22, %v973_v9  ;;  %v10048_v41 = vpop.eup %10047  ;;  %v15535_v9 = vld [vmem:[#allocation28_spill] sm:$0xff]  ;;  %v11362_v22 = vld [vmem:[#allocation5 + $0x270] sm:$0xff] }
 0x158   :  { %10049 = vrcp.f32 %v981_v43  ;;  %v11364_v43 = vld [vmem:[#allocation5 + $0x280] sm:$0xff] }
 0x159   :  { %v11255_v33 = vadd.f32 %v975_v32, %v974_v12  ;;  %v15528_v32 = vld [vmem:[#allocation21_spill] sm:$0xff]  ;;  %v11368_v12 = vld [vmem:[#allocation5 + $0x248] sm:$0xff] }
 0x15b   :  { %15520 = vst [vmem:[#allocation76_spill] sm:$0xff] %v11255_v33  ;;  %1120 = vmatmul.mubr.f32.vlgmr.msra.gmra.mxu1 %v11255_v33  ;;  %9008 = vmatmul.mubr.f32.vlgmr.msra.gmra.mxu0 %v11255_v33 }
 0x15c   :  { %1245 = vmatpush1.msra.mxu1 %v10750_v55  ;;  %9011 = vmatpush3.msra.mxu0 %v10928_v48  ;;  %v11272_v55 = vld [vmem:[%s15089_s4 + $0x1] ss:$0 sm:$0xff]  ;;  %v15524_v48 = vld [vmem:[#allocation17_spill] sm:$0xff] }
 0x15d   :  { %1246 = vmatprep.subr.mxu1 %v10756_v57  ;;  %9012 = vmatprep.subr.mxu0 %v15521_v28  ;;  %v988_v57 = vadd.f32 1.0, %v10048_v41  ;;  %v11372_v41 = vld [vmem:[#allocation5 + $0x240] sm:$0xff] }
 0x15e   :  { %1247 = vmatpush1.msra.mxu1 %v10760_v58  ;;  %9013 = vmatpush3.msra.mxu0 %v10934_v8  ;;  %v15522_v8 = vld [vmem:[#allocation15_spill] sm:$0xff] }
 0x15f   :  { %1248 = vmatprep.subr.mxu1 %v10764_v59  ;;  %9014 = vmatprep.subr.mxu0 %v15521_v28  ;;  %10051 = vrcp.f32 %v988_v57  ;;  %v11374_v57 = vld [vmem:[#allocation5 + $0x250] sm:$0xff] }
 0x160   :  { %1249 = vmatpush1.msra.mxu1 %v10770_v61  ;;  %9015 = vmatpush3.msra.mxu0 %v10939_v20  ;;  %v15523_v20 = vld [vmem:[#allocation16_spill] sm:$0xff] }
 0x161   :  { %1250 = vmatprep.subr.mxu1 %v10774_v62  ;;  %9016 = vmatprep.subr.mxu0 %v15521_v28 }
 0x162   :  { %v951_v58 = vpop.f32.mrf.mxu0  ;;  %1251 = vmatpush1.msra.mxu1 %v10783_v1  ;;  %9017 = vmatpush3.msra.mxu0 %v10946_v4  ;;  %v507_v1 = vadd.f32 %v506_v51, %v11197_v38  ;;  %v15537_v38 = vld [vmem:[#allocation30_spill] sm:$0xff] }
 0x163   :  { %v991_v59 = vadd.f32 %v11272_v55, %v951_v58  ;;  %1252 = vmatprep.subr.mxu1 %v10787_v2  ;;  %9018 = vmatprep.subr.mxu0 %v15521_v28  ;;  %v15525_v2 = vld [vmem:[#allocation18_spill] sm:$0xff] }
 0x164   :  { %v8974_v61 = vpop.f32.mrf.mxu0  ;;  %1253 = vmatpush1.msra.mxu1 %v15522_v8  ;;  %9019 = vmatpush3.msra.mxu0 %v10952_v7  ;;  %v15527_v7 = vld [vmem:[#allocation20_spill] sm:$0xff]  ;;  %v11378_v58 = vld [vmem:[#allocation5 + $0x218] sm:$0xff] }
 0x165   :  { %v10050_v62 = vpop.eup %10049  ;;  %1254 = vmatprep.subr.mxu1 %v15523_v20  ;;  %9020 = vmatprep.subr.mxu0 %v15521_v28  ;;  %v11384_v61 = vld [vmem:[#allocation5 + $0x220] sm:$0xff]  ;;  %v11388_v8 = vld [vmem:[#allocation5 + $0x1e8] sm:$0xff]  ;;  %v11394_v20 = vld [vmem:[#allocation5 + $0x1f0] sm:$0xff] }
 0x166   :  { %v992_v4 = vmul.f32 %v10050_v62, %v991_v59  ;;  %1255 = vmatpush1.msra.mxu1 %v15524_v48  ;;  %9021 = vmatpush3.msra.mxu0 %v10958_v11  ;;  %v15530_v11 = vld [vmem:[#allocation23_spill] sm:$0xff]  ;;  %v11382_v59 = vld [vmem:[#allocation5 + $0x210] sm:$0xff] }
 0x167   :  { %1256 = vmatprep.subr.mxu1 %v15525_v2  ;;  %9022 = vmatprep.subr.mxu0 %v15521_v28  ;;  %v11392_v62 = vld [vmem:[#allocation5 + $0x1e0] sm:$0xff]  ;;  %v11408_v2 = vld [vmem:[#allocation5 + $0x188] sm:$0xff] }
 0x168   :  { %v993_v60 = vadd.f32 %v992_v4, %v507_v1  ;;  %1257 = vmatpush1.msra.mxu1 %v15526_v27  ;;  %9023 = vmatpush3.msra.mxu0 %v10964_v13  ;;  %v15532_v13 = vld [vmem:[#allocation25_spill] sm:$0xff]  ;;  %v11398_v1 = vld [vmem:[#allocation5 + $0x1b8] sm:$0xff]  ;;  %v11404_v48 = vld [vmem:[#allocation5 + $0x1c0] sm:$0xff] }
 0x169   :  { %1258 = vmatprep.subr.mxu1 %v15527_v7  ;;  %9024 = vmatprep.subr.mxu0 %v15521_v28  ;;  %v11402_v4 = vld [vmem:[#allocation5 + $0x1b0] sm:$0xff]  ;;  %v11418_v7 = vld [vmem:[#allocation5 + $0x158] sm:$0xff]  ;;  %15554 = vst [vmem:[#allocation25_spill] sm:$0xff] %v11492_v16 }
 0x16a   :  { %10053 = vtanh.f32 %v993_v60  ;;  %1259 = vmatpush1.msra.mxu1 %v15528_v32  ;;  %9025 = vmatpush3.msra.mxu0 %v10970_v14  ;;  %v15534_v14 = vld [vmem:[#allocation27_spill] sm:$0xff]  ;;  %v11414_v27 = vld [vmem:[#allocation5 + $0x190] sm:$0xff] }
 0x16b   :  { %1260 = vmatprep.subr.mxu1 %v15529_v42  ;;  %9026 = vmatprep.subr.mxu0 %v15521_v28  ;;  %v11412_v60 = vld [vmem:[#allocation5 + $0x180] sm:$0xff]  ;;  %v11422_v32 = vld [vmem:[#allocation5 + $0x150] sm:$0xff]  ;;  %15556 = vst [vmem:[#allocation27_spill] sm:$0xff] %v11498_v10 }
 0x16c   :  { %1261 = vmatpush1.msra.mxu1 %v15530_v11  ;;  %9027 = vmatpush3.msra.mxu0 %v10976_v15  ;;  %v15536_v15 = vld [vmem:[#allocation29_spill] sm:$0xff]  ;;  %v10052_v34 = vpop.eup %10051  ;;  %v11424_v42 = vld [vmem:[#allocation5 + $0x160] sm:$0xff]  ;;  %v11428_v11 = vld [vmem:[#allocation5 + $0x128] sm:$0xff] }
 0x16d   :  { %1262 = vmatprep.subr.mxu1 %v15531_v50  ;;  %9028 = vmatprep.subr.mxu0 %v15521_v28  ;;  %v11432_v50 = vld [vmem:[#allocation5 + $0x120] sm:$0xff] }
 0x16e   :  { %1263 = vmatpush1.msra.mxu1 %v15532_v13  ;;  %9029 = vmatpush3.msra.mxu0 %v10982_v17  ;;  %v15538_v17 = vld [vmem:[#allocation31_spill] sm:$0xff]  ;;  %v11434_v13 = vld [vmem:[#allocation5 + $0x130] sm:$0xff] }
 0x16f   :  { %1264 = vmatprep.subr.mxu1 %v15533_v56  ;;  %9030 = vmatprep.subr.mxu0 %v15521_v28  ;;  %v11438_v56 = vld [vmem:[#allocation5 + $0xf8] sm:$0xff] }
 0x170   :  { %1265 = vmatpush1.msra.mxu1 %v15534_v14  ;;  %9031 = vmatpush3.msra.mxu0 %v10988_v18  ;;  %v995_v18 = vsub.f32 1.0, %v10052_v34  ;;  %v11442_v14 = vld [vmem:[#allocation5 + $0xf0] sm:$0xff] }
 0x171   :  { %1266 = vmatprep.subr.mxu1 %v15535_v9  ;;  %9032 = vmatprep.subr.mxu0 %v15521_v28  ;;  %v11444_v9 = vld [vmem:[#allocation5 + $0x100] sm:$0xff] }
 0x172   :  { %1267 = vmatpush1.msra.mxu1 %v15536_v15  ;;  %9033 = vmatpush3.msra.mxu0 %v10994_v19  ;;  %v15540_v19 = vld [vmem:[#allocation33_spill] sm:$0xff]  ;;  %v11448_v15 = vld [vmem:[#allocation5 + $0xc8] sm:$0xff] }
 0x173   :  { %1268 = vmatprep.subr.mxu1 %v15537_v38  ;;  %9034 = vmatprep.subr.mxu0 %v15521_v28  ;;  %v11454_v38 = vld [vmem:[#allocation5 + $0xd0] sm:$0xff] }
 0x174   :  { %1269 = vmatpush1.msra.mxu1 %v15538_v17  ;;  %9035 = vmatpush3.msra.mxu0 %v11000_v21  ;;  %v997_v21 = vmul.f32 0.0, %v10052_v34  ;;  %v11452_v34 = vld [vmem:[#allocation5 + $0xc0] sm:$0xff]  ;;  %v11458_v17 = vld [vmem:[#allocation5 + $0x98] sm:$0xff] }
 0x175   :  { %1270 = vmatprep.subr.mxu1 %v15539_v31  ;;  %9036 = vmatprep.subr.mxu0 %v15521_v28  ;;  %v11462_v31 = vld [vmem:[#allocation5 + $0x90] sm:$0xff] }
 0x176   :  { %1271 = vmatpush1.msra.mxu1 %v10898_v5  ;;  %9037 = vmatpush3.msra.mxu0 %v11006_v23  ;;  %v11339_v23 = vld [vmem:[#allocation5 + $0x2d8] sm:$0xff]  ;;  %15545 = vst [vmem:[#allocation16_spill] sm:$0xff] %v11462_v31 }
 0x177   :  { %v10054_v51 = vpop.eup %10053  ;;  %1272 = vmatprep.subr.mxu1 %v15540_v19  ;;  %9038 = vmatprep.subr.mxu0 %v15521_v28  ;;  %v11472_v19 = vld [vmem:[#allocation5 + $0x60] sm:$0xff] }
 0x178   :  { %v996_v45 = vmul.f32 %v10054_v51, %v995_v18  ;;  %1273 = vmatpush1.msra.mxu1 %v15541_v29  ;;  %9039 = vmatpush3.msra.mxu0 %v11012_v24  ;;  %v11342_v24 = vld [vmem:[#allocation5 + $0x2d0] sm:$0xff]  ;;  %v11464_v18 = vld [vmem:[#allocation5 + $0xa0] sm:$0xff]  ;;  %v11468_v51 = vld [vmem:[#allocation5 + $0x68] sm:$0xff]  ;;  %15548 = vst [vmem:[#allocation19_spill] sm:$0xff] %v11472_v19 }
 0x179   :  { %1274 = vmatprep.subr.mxu1 %v15542_v37  ;;  %9040 = vmatprep.subr.mxu0 %v15521_v28  ;;  %15546 = vst [vmem:[#allocation17_spill] sm:$0xff] %v11464_v18  ;;  %15547 = vst [vmem:[#allocation18_spill] sm:$0xff] %v11468_v51  ;;  %v11478_v29 = vld [vmem:[#allocation5 + $0x38] sm:$0xff]  ;;  %v11484_v37 = vld [vmem:[#allocation5 + $0x40] sm:$0xff] }
 0x17a   :  { %1275 = vmatpush1.msra.mxu1 %v15543_v3  ;;  %1308 = vmatprep.mubr.f32.mxu1 %v15521_v28  ;;  %v11328_v5 = vadd.f32 %v997_v21, %v996_v45  ;;  %v11474_v45 = vld [vmem:[#allocation5 + $0x70] sm:$0xff]  ;;  %15550 = vst [vmem:[#allocation21_spill] sm:$0xff] %v11478_v29  ;;  %15552 = vst [vmem:[#allocation23_spill] sm:$0xff] %v11484_v37  ;;  %v11488_v3 = vld [vmem:[#allocation5 + $0x8] sm:$0xff] }
 0x17b   :  { %9041 = vmatpush3.msra.mxu0 %v11018_v25  ;;  %9042 = vmatprep.mubr.msk.f32.mxu0 %vm10448_vm1, %v15521_v28  ;;  %v11344_v25 = vld [vmem:[#allocation5 + $0x2e0] sm:$0xff]  ;;  %15549 = vst [vmem:[#allocation20_spill] sm:$0xff] %v11474_v45  ;;  %v11482_v21 = vld [vmem:[#allocation5 + $0x30] sm:$0xff]  ;;  %15553 = vst [vmem:[#allocation24_spill] sm:$0xff] %v11488_v3 }
 0x17c   :  { %15544 = vst [vmem:[#allocation15_spill] sm:$0xff] %v11328_v5  ;;  %1309 = vmatmul.mubr.f32.vlgmr.msra.gmra.mxu1 %v11328_v5  ;;  %9043 = vmatmul.mubr.f32.vlgmr.msra.gmra.mxu0 %v11328_v5  ;;  %15551 = vst [vmem:[#allocation22_spill] sm:$0xff] %v11482_v21 }
 0x17d   :  { %9045 = vmatprep.subr.mxu0 %v15521_v28  ;;  %1549 = vmatprep.mubr.f32.mxu1 %v15521_v28 }
 0x17e   :  { %9077 = vmatprep.mubr.msk.f32.mxu0 %vm10448_vm1, %v15521_v28  ;;  %1485 = vmatprep.subr.mxu1 %v11339_v23 }
 0x17f   :  { %1486 = vmatpush1.msra.mxu1 %v11342_v24  ;;  %9046 = vmatpush3.msra.mxu0 %v11344_v25 }
 0x180   :  { %1487 = vmatprep.subr.mxu1 %v11348_v39  ;;  %9047 = vmatprep.subr.mxu0 %v15521_v28 }
 0x181   :  { %1488 = vmatpush1.msra.mxu1 %v11352_v40  ;;  %9048 = vmatpush3.msra.mxu0 %v11354_v26 }
 0x182   :  { %1489 = vmatprep.subr.mxu1 %v11358_v35  ;;  %9049 = vmatprep.subr.mxu0 %v15521_v28 }
 0x183   :  { %1490 = vmatpush1.msra.mxu1 %v11362_v22  ;;  %9050 = vmatpush3.msra.mxu0 %v11364_v43 }
 0x184   :  { %1491 = vmatprep.subr.mxu1 %v11368_v12  ;;  %9051 = vmatprep.subr.mxu0 %v15521_v28 }
 0x185   :  { %1492 = vmatpush1.msra.mxu1 %v11372_v41  ;;  %9052 = vmatpush3.msra.mxu0 %v11374_v57 }
 0x186   :  { %1493 = vmatprep.subr.mxu1 %v11378_v58  ;;  %9053 = vmatprep.subr.mxu0 %v15521_v28 }
 0x187   :  { %1494 = vmatpush1.msra.mxu1 %v11382_v59  ;;  %9054 = vmatpush3.msra.mxu0 %v11384_v61 }
 0x188   :  { %1495 = vmatprep.subr.mxu1 %v11388_v8  ;;  %9055 = vmatprep.subr.mxu0 %v15521_v28 }
 0x189   :  { %1496 = vmatpush1.msra.mxu1 %v11392_v62  ;;  %9056 = vmatpush3.msra.mxu0 %v11394_v20 }
 0x18a   :  { %1497 = vmatprep.subr.mxu1 %v11398_v1  ;;  %9057 = vmatprep.subr.mxu0 %v15521_v28 }
 0x18b   :  { %1498 = vmatpush1.msra.mxu1 %v11402_v4  ;;  %9058 = vmatpush3.msra.mxu0 %v11404_v48 }
 0x18c   :  { %1499 = vmatprep.subr.mxu1 %v11408_v2  ;;  %9059 = vmatprep.subr.mxu0 %v15521_v28 }
 0x18d   :  { %1500 = vmatpush1.msra.mxu1 %v11412_v60  ;;  %9060 = vmatpush3.msra.mxu0 %v11414_v27 }
 0x18e   :  { %1501 = vmatprep.subr.mxu1 %v11418_v7  ;;  %9061 = vmatprep.subr.mxu0 %v15521_v28 }
 0x18f   :  { %1502 = vmatpush1.msra.mxu1 %v11422_v32  ;;  %9062 = vmatpush3.msra.mxu0 %v11424_v42 }
 0x190   :  { %1503 = vmatprep.subr.mxu1 %v11428_v11  ;;  %9063 = vmatprep.subr.mxu0 %v15521_v28 }
 0x191   :  { %1504 = vmatpush1.msra.mxu1 %v11432_v50  ;;  %9064 = vmatpush3.msra.mxu0 %v11434_v13 }
 0x192   :  { %1505 = vmatprep.subr.mxu1 %v11438_v56  ;;  %9065 = vmatprep.subr.mxu0 %v15521_v28 }
 0x193   :  { %1506 = vmatpush1.msra.mxu1 %v11442_v14  ;;  %9066 = vmatpush3.msra.mxu0 %v11444_v9 }
 0x194   :  { %1507 = vmatprep.subr.mxu1 %v11448_v15  ;;  %9067 = vmatprep.subr.mxu0 %v15521_v28 }
 0x195   :  { %1508 = vmatpush1.msra.mxu1 %v11452_v34  ;;  %9068 = vmatpush3.msra.mxu0 %v11454_v38 }
 0x196   :  { %1509 = vmatprep.subr.mxu1 %v11458_v17  ;;  %9069 = vmatprep.subr.mxu0 %v15521_v28 }
 0x197   :  { %1510 = vmatpush1.msra.mxu1 %v11462_v31  ;;  %9070 = vmatpush3.msra.mxu0 %v11464_v18 }
 0x198   :  { %1511 = vmatprep.subr.mxu1 %v11468_v51  ;;  %9071 = vmatprep.subr.mxu0 %v15521_v28 }
 0x199   :  { %1512 = vmatpush1.msra.mxu1 %v11472_v19  ;;  %9072 = vmatpush3.msra.mxu0 %v11474_v45 }
 0x19a   :  { %1513 = vmatprep.subr.mxu1 %v11478_v29  ;;  %9073 = vmatprep.subr.mxu0 %v15521_v28 }
 0x19b   :  { %1514 = vmatpush1.msra.mxu1 %v11482_v21  ;;  %9074 = vmatpush3.msra.mxu0 %v11484_v37 }
 0x19c   :  { %1515 = vmatprep.subr.mxu1 %v11488_v3  ;;  %9075 = vmatprep.subr.mxu0 %v15521_v28 }
 0x19d   :  { %1516 = vmatpush1.msra.mxu1 %v11492_v16  ;;  %9076 = vmatpush3.msra.mxu0 %v11494_v44 }
 0x19e   :  { %1674 = vmatprep.subr.mxu1 %v11498_v10  ;;  %9080 = vmatprep.subr.mxu0 %v15521_v28 }
 0x21b   :  { %v1121_v63 = vpop.f32.mrf.mxu1  ;;  %v1192_v53 = vpop.f32.mrf.mxu0 }
 0x21c   :  { %v1385_v6 = vadd.f32 %v1121_v63, %v11102_v46  ;;  %v1399_v10 = vadd.f32 %v11248_v49, %v1192_v53 }
 0x21d   :  { %v9009_v54 = vpop.f32.mrf.mxu0  ;;  %v1123_v37 = vpop.f32.mrf.mxu1 }
 0x21e   :  { %v8257_v3 = vmul.f32 -1.442695, %v1385_v6  ;;  %v1392_v21 = vadd.f32 %v1123_v37, %v11111_v52 }
 0x220   :  { %10055 = vpow2.f32 %v8257_v3  ;;  %v8258_v29 = vmul.f32 -1.442695, %v1392_v21 }
 0x222   :  { %10057 = vpow2.f32 %v8258_v29 }
 0x22d   :  { %v10056_v16 = vpop.eup %10055 }
 0x22e   :  { %v1389_v44 = vadd.f32 1.0, %v10056_v16 }
 0x22f   :  { %v10058_v45 = vpop.eup %10057 }
 0x230   :  { %10059 = vrcp.f32 %v1389_v44  ;;  %v1396_v19 = vadd.f32 1.0, %v10058_v45 }
 0x232   :  { %10061 = vrcp.f32 %v1396_v19  ;;  %v11521_v19 = vld [vmem:[#allocation5 + $0x2c8] sm:$0xff] }
 0x23c   :  { %v1310_v51 = vpop.f32.mrf.mxu1  ;;  %v1381_v18 = vpop.f32.mrf.mxu0 }
 0x23d   :  { %v10060_v31 = vpop.eup %10059  ;;  %v1407_v46 = vadd.f32 %v1310_v51, %v11178_v36  ;;  %v11515_v51 = vld [vmem:[#allocation5 + $0x2c0] sm:$0xff] }
 0x23e   :  { %v1400_v54 = vmul.f32 %v10060_v31, %v1399_v10  ;;  %v9044_v63 = vpop.f32.mrf.mxu0  ;;  %v1312_v21 = vpop.f32.mrf.mxu1  ;;  %v11511_v31 = vld [vmem:[#allocation5 + $0x2e8] sm:$0xff] }
 0x23f   :  { %v8259_v6 = vmul.f32 -1.442695, %v1407_v46  ;;  %v1414_v16 = vadd.f32 %v1312_v21, %v11240_v0  ;;  %v10062_v45 = vpop.eup %10061  ;;  %v11519_v0 = vld [vmem:[#allocation5 + $0x2b8] sm:$0xff]  ;;  %v11529_v46 = vld [vmem:[#allocation5 + $0x288] sm:$0xff]  ;;  %v11535_v63 = vld [vmem:[#allocation5 + $0x260] sm:$0xff] }
 0x240   :  { %v1401_v52 = vadd.f32 %v1400_v54, %v11105_v47  ;;  %v1403_v29 = vsub.f32 1.0, %v10062_v45  ;;  %v1405_v36 = vmul.f32 %v10062_v45, %v11255_v33  ;;  %v11513_v47 = vld [vmem:[#allocation5 + $0x2f8] sm:$0xff]  ;;  %v11541_v21 = vld [vmem:[#allocation5 + $0x268] sm:$0xff] }
 0x241   :  { %10063 = vpow2.f32 %v8259_v6  ;;  %v8260_v44 = vmul.f32 -1.442695, %v1414_v16  ;;  %v11531_v54 = vld [vmem:[#allocation5 + $0x298] sm:$0xff]  ;;  %15559 = vst [vmem:[#allocation30_spill] sm:$0xff] %v11541_v21  ;;  %v11545_v16 = vld [vmem:[#allocation5 + $0x230] sm:$0xff] }
 0x242   :  { %10065 = vtanh.f32 %v1401_v52  ;;  %v11539_v52 = vld [vmem:[#allocation5 + $0x258] sm:$0xff]  ;;  %15560 = vst [vmem:[#allocation31_spill] sm:$0xff] %v11545_v16 }
 0x243   :  { %10067 = vpow2.f32 %v8260_v44  ;;  %15558 = vst [vmem:[#allocation29_spill] sm:$0xff] %v11539_v52  ;;  %v11549_v44 = vld [vmem:[#allocation5 + $0x228] sm:$0xff]  ;;  %v11551_v45 = vld [vmem:[#allocation5 + $0x238] sm:$0xff] }
 0x244   :  { %15561 = vst [vmem:[#allocation32_spill] sm:$0xff] %v11549_v44  ;;  %15562 = vst [vmem:[#allocation33_spill] sm:$0xff] %v11551_v45 }
 0x24e   :  { %v10064_v53 = vpop.eup %10063 }
 0x24f   :  { %v10066_v37 = vpop.eup %10065  ;;  %v1411_v3 = vadd.f32 1.0, %v10064_v53 }
 0x250   :  { %v1404_v49 = vmul.f32 %v10066_v37, %v1403_v29  ;;  %v10068_v6 = vpop.eup %10067  ;;  %v11555_v29 = vld [vmem:[#allocation5 + $0x200] sm:$0xff]  ;;  %v11559_v37 = vld [vmem:[#allocation5 + $0x1f8] sm:$0xff] }
 0x251   :  { %10069 = vrcp.f32 %v1411_v3  ;;  %v1418_v53 = vadd.f32 1.0, %v10068_v6  ;;  %15563 = vst [vmem:[#allocation34_spill] sm:$0xff] %v11555_v29  ;;  %v11561_v3 = vld [vmem:[#allocation5 + $0x208] sm:$0xff]  ;;  %v11566_v6 = vld [vmem:[#allocation5 + $0x1d0] sm:$0xff] }
 0x252   :  { %v11509_v10 = vadd.f32 %v1405_v36, %v1404_v49  ;;  %v11525_v49 = vld [vmem:[#allocation5 + $0x290] sm:$0xff]  ;;  %v1421_v36 = vadd.f32 %v11272_v55, %v1381_v18  ;;  %15564 = vst [vmem:[#allocation35_spill] sm:$0xff] %v11566_v6  ;;  %v11576_v18 = vld [vmem:[#allocation5 + $0x1a0] sm:$0xff] }
 0x253   :  { %10071 = vrcp.f32 %v1418_v53  ;;  %15567 = vst [vmem:[#allocation78_spill] sm:$0xff] %v11576_v18  ;;  %v11591_v53 = vld [vmem:[#allocation5 + $0x168] sm:$0xff] }
 0x254   :  { %15557 = vst [vmem:[#allocation28_spill] sm:$0xff] %v11509_v10  ;;  %1550 = vmatmul.mubr.f32.vlgmr.msra.gmra.mxu1 %v11509_v10  ;;  %9078 = vmatmul.mubr.f32.vlgmr.msra.gmra.mxu0 %v11509_v10  ;;  %15571 = vst [vmem:[#allocation82_spill] sm:$0xff] %v11591_v53 }
 0x255   :  { %1675 = vmatpush1.msra.mxu1 %v11511_v31  ;;  %9081 = vmatpush3.msra.mxu0 %v11513_v47 }
 0x256   :  { %1676 = vmatprep.subr.mxu1 %v11515_v51  ;;  %9082 = vmatprep.subr.mxu0 %v15521_v28 }
 0x257   :  { %1677 = vmatpush1.msra.mxu1 %v11519_v0  ;;  %9083 = vmatpush3.msra.mxu0 %v11521_v19 }
 0x258   :  { %1678 = vmatprep.subr.mxu1 %v11525_v49  ;;  %9084 = vmatprep.subr.mxu0 %v15521_v28 }
 0x259   :  { %1679 = vmatpush1.msra.mxu1 %v11529_v46  ;;  %9085 = vmatpush3.msra.mxu0 %v11531_v54 }
 0x25a   :  { %1680 = vmatprep.subr.mxu1 %v11535_v63  ;;  %9086 = vmatprep.subr.mxu0 %v15521_v28 }
 0x25b   :  { %1681 = vmatpush1.msra.mxu1 %v11539_v52  ;;  %9087 = vmatpush3.msra.mxu0 %v11541_v21  ;;  %v11572_v21 = vld [vmem:[#allocation5 + $0x1d8] sm:$0xff] }
 0x25c   :  { %1682 = vmatprep.subr.mxu1 %v11545_v16  ;;  %9088 = vmatprep.subr.mxu0 %v15521_v28  ;;  %v11570_v16 = vld [vmem:[#allocation5 + $0x1c8] sm:$0xff]  ;;  %15566 = vst [vmem:[#allocation77_spill] sm:$0xff] %v11572_v21 }
 0x25d   :  { %1683 = vmatpush1.msra.mxu1 %v11549_v44  ;;  %9089 = vmatpush3.msra.mxu0 %v11551_v45  ;;  %15565 = vst [vmem:[#allocation36_spill] sm:$0xff] %v11570_v16  ;;  %v11580_v45 = vld [vmem:[#allocation5 + $0x198] sm:$0xff] }
 0x25e   :  { %v10070_v33 = vpop.eup %10069  ;;  %1684 = vmatprep.subr.mxu1 %v11555_v29  ;;  %9090 = vmatprep.subr.mxu0 %v15521_v28  ;;  %15568 = vst [vmem:[#allocation79_spill] sm:$0xff] %v11580_v45  ;;  %v11582_v29 = vld [vmem:[#allocation5 + $0x1a8] sm:$0xff] }
 0x25f   :  { %v1422_v52 = vmul.f32 %v10070_v33, %v1421_v36  ;;  %1685 = vmatpush1.msra.mxu1 %v11559_v37  ;;  %9091 = vmatpush3.msra.mxu0 %v11561_v3  ;;  %15569 = vst [vmem:[#allocation80_spill] sm:$0xff] %v11582_v29  ;;  %v11587_v33 = vld [vmem:[#allocation5 + $0x170] sm:$0xff]  ;;  %v11593_v36 = vld [vmem:[#allocation5 + $0x178] sm:$0xff] }
 0x260   :  { %1686 = vmatprep.subr.mxu1 %v11566_v6  ;;  %9092 = vmatprep.subr.mxu0 %v15521_v28  ;;  %15570 = vst [vmem:[#allocation81_spill] sm:$0xff] %v11587_v33  ;;  %15572 = vst [vmem:[#allocation83_spill] sm:$0xff] %v11593_v36 }
 0x261   :  { %v1423_v44 = vadd.f32 %v1422_v52, %v11243_v30  ;;  %1687 = vmatpush1.msra.mxu1 %v11570_v16  ;;  %9093 = vmatpush3.msra.mxu0 %v11572_v21  ;;  %v11597_v30 = vld [vmem:[#allocation5 + $0x140] sm:$0xff]  ;;  %v11601_v52 = vld [vmem:[#allocation5 + $0x138] sm:$0xff]  ;;  %v11607_v21 = vld [vmem:[#allocation5 + $0x110] sm:$0xff] }
 0x262   :  { %1688 = vmatprep.subr.mxu1 %v11576_v18  ;;  %9094 = vmatprep.subr.mxu0 %v15521_v28  ;;  %15573 = vst [vmem:[#allocation84_spill] sm:$0xff] %v11597_v30  ;;  %15574 = vst [vmem:[#allocation85_spill] sm:$0xff] %v11601_v52  ;;  %v11603_v18 = vld [vmem:[#allocation5 + $0x148] sm:$0xff]  ;;  %v11657_v16 = vld [vmem:[#allocation5 + $0x20] sm:$0xff] }
 0x263   :  { %10073 = vtanh.f32 %v1423_v44  ;;  %1689 = vmatpush1.msra.mxu1 %v11580_v45  ;;  %9095 = vmatpush3.msra.mxu0 %v11582_v29  ;;  %15575 = vst [vmem:[#allocation86_spill] sm:$0xff] %v11603_v18  ;;  %15576 = vst [vmem:[#allocation87_spill] sm:$0xff] %v11607_v21  ;;  %v11611_v44 = vld [vmem:[#allocation5 + $0x108] sm:$0xff]  ;;  %v11613_v29 = vld [vmem:[#allocation5 + $0x118] sm:$0xff]  ;;  %v10072_v45 = vpop.eup %10071 }
 0x264   :  { %1690 = vmatprep.subr.mxu1 %v11587_v33  ;;  %9096 = vmatprep.subr.mxu0 %v15521_v28  ;;  %15577 = vst [vmem:[#allocation88_spill] sm:$0xff] %v11611_v44  ;;  %15578 = vst [vmem:[#allocation89_spill] sm:$0xff] %v11613_v29  ;;  %v11617_v33 = vld [vmem:[#allocation5 + $0xe0] sm:$0xff] }
 0x265   :  { %1691 = vmatpush1.msra.mxu1 %v11591_v53  ;;  %9097 = vmatpush3.msra.mxu0 %v11593_v36  ;;  %15579 = vst [vmem:[#allocation90_spill] sm:$0xff] %v11617_v33  ;;  %v11621_v36 = vld [vmem:[#allocation5 + $0xd8] sm:$0xff]  ;;  %v11623_v53 = vld [vmem:[#allocation5 + $0xe8] sm:$0xff] }
 0x266   :  { %1692 = vmatprep.subr.mxu1 %v11597_v30  ;;  %9098 = vmatprep.subr.mxu0 %v15521_v28  ;;  %15580 = vst [vmem:[#allocation91_spill] sm:$0xff] %v11621_v36  ;;  %15581 = vst [vmem:[#allocation92_spill] sm:$0xff] %v11623_v53  ;;  %v11627_v30 = vld [vmem:[#allocation5 + $0xb0] sm:$0xff] }
 0x267   :  { %1693 = vmatpush1.msra.mxu1 %v11601_v52  ;;  %9099 = vmatpush3.msra.mxu0 %v11603_v18  ;;  %15582 = vst [vmem:[#allocation93_spill] sm:$0xff] %v11627_v30  ;;  %v11631_v18 = vld [vmem:[#allocation5 + $0xa8] sm:$0xff]  ;;  %v11633_v52 = vld [vmem:[#allocation5 + $0xb8] sm:$0xff] }
 0x268   :  { %1694 = vmatprep.subr.mxu1 %v11607_v21  ;;  %9100 = vmatprep.subr.mxu0 %v15521_v28  ;;  %15583 = vst [vmem:[#allocation94_spill] sm:$0xff] %v11631_v18  ;;  %15584 = vst [vmem:[#allocation95_spill] sm:$0xff] %v11633_v52  ;;  %v11637_v21 = vld [vmem:[#allocation5 + $0x80] sm:$0xff] }
 0x269   :  { %1695 = vmatpush1.msra.mxu1 %v11611_v44  ;;  %9101 = vmatpush3.msra.mxu0 %v11613_v29  ;;  %15585 = vst [vmem:[#allocation96_spill] sm:$0xff] %v11637_v21  ;;  %v11641_v29 = vld [vmem:[#allocation5 + $0x78] sm:$0xff]  ;;  %v11647_v44 = vld [vmem:[#allocation5 + $0x50] sm:$0xff] }
 0x26a   :  { %1696 = vmatprep.subr.mxu1 %v11617_v33  ;;  %9102 = vmatprep.subr.mxu0 %v15521_v28  ;;  %15586 = vst [vmem:[#allocation97_spill] sm:$0xff] %v11641_v29  ;;  %v11643_v33 = vld [vmem:[#allocation5 + $0x88] sm:$0xff]  ;;  %15587 = vst [vmem:[#allocation98_spill] sm:$0xff] %v11647_v44 }
 0x26b   :  { %1697 = vmatpush1.msra.mxu1 %v11621_v36  ;;  %9103 = vmatpush3.msra.mxu0 %v11623_v53  ;;  %v11651_v53 = vld [vmem:[#allocation5 + $0x48] sm:$0xff]  ;;  %v11653_v36 = vld [vmem:[#allocation5 + $0x58] sm:$0xff] }
 0x26c   :  { %1698 = vmatprep.subr.mxu1 %v11627_v30  ;;  %9104 = vmatprep.subr.mxu0 %v15521_v28  ;;  %v1425_v30 = vsub.f32 1.0, %v10072_v45 }
 0x26d   :  { %1699 = vmatpush1.msra.mxu1 %v11631_v18  ;;  %9105 = vmatpush3.msra.mxu0 %v11633_v52  ;;  %v11661_v52 = vld [vmem:[#allocation5 + $0x18] sm:$0xff] }
 0x26e   :  { %1700 = vmatprep.subr.mxu1 %v11637_v21  ;;  %9106 = vmatprep.subr.mxu0 %v15521_v28  ;;  %v11665_v21 = vld [vmem:[#allocation5 + $0x28] sm:$0xff] }
 0x26f   :  { %1701 = vmatpush1.msra.mxu1 %v11641_v29  ;;  %9107 = vmatpush3.msra.mxu0 %v11643_v33  ;;  %v1427_v29 = vmul.f32 %v10072_v45, %v11328_v5 }
 0x270   :  { %v10074_v18 = vpop.eup %10073  ;;  %1702 = vmatprep.subr.mxu1 %v11647_v44  ;;  %9108 = vmatprep.subr.mxu0 %v15521_v28 }
 0x271   :  { %1703 = vmatpush1.msra.mxu1 %v11651_v53  ;;  %9109 = vmatpush3.msra.mxu0 %v11653_v36  ;;  %v1426_v6 = vmul.f32 %v10074_v18, %v1425_v30 }
 0x272   :  { %1704 = vmatprep.subr.mxu1 %v11657_v16  ;;  %9110 = vmatprep.subr.mxu0 %v15521_v28 }
 0x273   :  { %1705 = vmatpush1.msra.mxu1 %v11661_v52  ;;  %1738 = vmatprep.mubr.f32.mxu1 %v15521_v28  ;;  %v11672_v44 = vadd.f32 %v1427_v29, %v1426_v6  ;;  %v15606_v6 = vld [vmem:[#allocation73_spill] sm:$0xff] }
 0x274   :  { %9111 = vmatpush3.msra.mxu0 %v11665_v21  ;;  %9112 = vmatprep.mubr.msk.f32.mxu0 %vm10448_vm1, %v15521_v28 }
 0x275   :  { %15588 = vst [vmem:[#allocation99_spill] sm:$0xff] %v11672_v44  ;;  %1739 = vmatmul.mubr.f32.vlgmr.msra.gmra.mxu1 %v11672_v44  ;;  %9113 = vmatmul.mubr.f32.vlgmr.msra.gmra.mxu0 %v11672_v44 }
 0x276   :  { %1915 = vmatprep.subr.mxu1 %v11339_v23  ;;  %9115 = vmatprep.subr.mxu0 %v15521_v28  ;;  %v15589_v23 = vld [vmem:[#allocation16_spill] sm:$0xff] }
 0x277   :  { %1916 = vmatpush1.msra.mxu1 %v11342_v24  ;;  %9116 = vmatpush3.msra.mxu0 %v11344_v25  ;;  %v15590_v24 = vld [vmem:[#allocation17_spill] sm:$0xff]  ;;  %v15591_v25 = vld [vmem:[#allocation18_spill] sm:$0xff] }
 0x278   :  { %1917 = vmatprep.subr.mxu1 %v11348_v39  ;;  %9117 = vmatprep.subr.mxu0 %v15521_v28  ;;  %v15592_v39 = vld [vmem:[#allocation19_spill] sm:$0xff] }
 0x279   :  { %1918 = vmatpush1.msra.mxu1 %v11352_v40  ;;  %9118 = vmatpush3.msra.mxu0 %v11354_v26  ;;  %v15593_v40 = vld [vmem:[#allocation20_spill] sm:$0xff]  ;;  %v15594_v26 = vld [vmem:[#allocation21_spill] sm:$0xff] }
 0x27a   :  { %1919 = vmatprep.subr.mxu1 %v11358_v35  ;;  %9119 = vmatprep.subr.mxu0 %v15521_v28  ;;  %v15595_v35 = vld [vmem:[#allocation22_spill] sm:$0xff] }
 0x27b   :  { %1920 = vmatpush1.msra.mxu1 %v11362_v22  ;;  %9120 = vmatpush3.msra.mxu0 %v11364_v43  ;;  %v15596_v22 = vld [vmem:[#allocation23_spill] sm:$0xff]  ;;  %v15597_v43 = vld [vmem:[#allocation24_spill] sm:$0xff] }
 0x27c   :  { %1921 = vmatprep.subr.mxu1 %v11368_v12  ;;  %9121 = vmatprep.subr.mxu0 %v15521_v28  ;;  %v15598_v12 = vld [vmem:[#allocation25_spill] sm:$0xff] }
 0x27d   :  { %1922 = vmatpush1.msra.mxu1 %v11372_v41  ;;  %9122 = vmatpush3.msra.mxu0 %v11374_v57  ;;  %v15599_v41 = vld [vmem:[#allocation26_spill] sm:$0xff]  ;;  %v15600_v57 = vld [vmem:[#allocation27_spill] sm:$0xff] }
 0x27e   :  { %1923 = vmatprep.subr.mxu1 %v11378_v58  ;;  %9123 = vmatprep.subr.mxu0 %v15521_v28 }
 0x27f   :  { %1924 = vmatpush1.msra.mxu1 %v11382_v59  ;;  %9124 = vmatpush3.msra.mxu0 %v11384_v61  ;;  %v15601_v61 = vld [vmem:[#allocation40_spill] sm:$0xff] }
 0x280   :  { %1925 = vmatprep.subr.mxu1 %v11388_v8  ;;  %9125 = vmatprep.subr.mxu0 %v15521_v28 }
 0x281   :  { %1926 = vmatpush1.msra.mxu1 %v11392_v62  ;;  %9126 = vmatpush3.msra.mxu0 %v11394_v20 }
 0x282   :  { %1927 = vmatprep.subr.mxu1 %v11398_v1  ;;  %9127 = vmatprep.subr.mxu0 %v15521_v28 }
 0x283   :  { %1928 = vmatpush1.msra.mxu1 %v11402_v4  ;;  %9128 = vmatpush3.msra.mxu0 %v11404_v48  ;;  %v15602_v4 = vld [vmem:[#allocation43_spill] sm:$0xff] }
 0x284   :  { %1929 = vmatprep.subr.mxu1 %v11408_v2  ;;  %9129 = vmatprep.subr.mxu0 %v15521_v28 }
 0x285   :  { %1930 = vmatpush1.msra.mxu1 %v11412_v60  ;;  %9130 = vmatpush3.msra.mxu0 %v11414_v27 }
 0x286   :  { %1931 = vmatprep.subr.mxu1 %v11418_v7  ;;  %9131 = vmatprep.subr.mxu0 %v15521_v28 }
 0x287   :  { %1932 = vmatpush1.msra.mxu1 %v11422_v32  ;;  %9132 = vmatpush3.msra.mxu0 %v11424_v42  ;;  %v15603_v42 = vld [vmem:[#allocation75_spill] sm:$0xff] }
 0x288   :  { %1933 = vmatprep.subr.mxu1 %v11428_v11  ;;  %9133 = vmatprep.subr.mxu0 %v15521_v28 }
 0x289   :  { %1934 = vmatpush1.msra.mxu1 %v11432_v50  ;;  %9134 = vmatpush3.msra.mxu0 %v11434_v13 }
 0x28a   :  { %1935 = vmatprep.subr.mxu1 %v11438_v56  ;;  %9135 = vmatprep.subr.mxu0 %v15521_v28 }
 0x28b   :  { %1936 = vmatpush1.msra.mxu1 %v11442_v14  ;;  %9136 = vmatpush3.msra.mxu0 %v11444_v9  ;;  %v15604_v14 = vld [vmem:[#allocation56_spill] sm:$0xff] }
 0x28c   :  { %1937 = vmatprep.subr.mxu1 %v11448_v15  ;;  %9137 = vmatprep.subr.mxu0 %v15521_v28 }
 0x28d   :  { %1938 = vmatpush1.msra.mxu1 %v11452_v34  ;;  %9138 = vmatpush3.msra.mxu0 %v11454_v38 }
 0x28e   :  { %1939 = vmatprep.subr.mxu1 %v11458_v17  ;;  %9139 = vmatprep.subr.mxu0 %v15521_v28  ;;  %v15605_v17 = vld [vmem:[#allocation42_spill] sm:$0xff] }
 0x28f   :  { %1940 = vmatpush1.msra.mxu1 %v15589_v23  ;;  %9140 = vmatpush3.msra.mxu0 %v15590_v24 }
 0x290   :  { %1941 = vmatprep.subr.mxu1 %v15591_v25  ;;  %9141 = vmatprep.subr.mxu0 %v15521_v28 }
 0x291   :  { %1942 = vmatpush1.msra.mxu1 %v15592_v39  ;;  %9142 = vmatpush3.msra.mxu0 %v15593_v40 }
 0x292   :  { %1943 = vmatprep.subr.mxu1 %v15594_v26  ;;  %9143 = vmatprep.subr.mxu0 %v15521_v28 }
 0x293   :  { %1944 = vmatpush1.msra.mxu1 %v15595_v35  ;;  %9144 = vmatpush3.msra.mxu0 %v15596_v22 }
 0x294   :  { %1945 = vmatprep.subr.mxu1 %v15597_v43  ;;  %9145 = vmatprep.subr.mxu0 %v15521_v28 }
 0x295   :  { %1946 = vmatpush1.msra.mxu1 %v15598_v12  ;;  %1979 = vmatprep.mubr.f32.mxu1 %v15521_v28  ;;  %v15613_v12 = vld [vmem:[#allocation34_spill] sm:$0xff] }
 0x296   :  { %9146 = vmatpush3.msra.mxu0 %v15599_v41  ;;  %9147 = vmatprep.mubr.msk.f32.mxu0 %vm10448_vm1, %v15521_v28  ;;  %v15614_v41 = vld [vmem:[#allocation35_spill] sm:$0xff] }
 0x297   :  { %2104 = vmatprep.subr.mxu1 %v15600_v57  ;;  %9150 = vmatprep.subr.mxu0 %v15521_v28 }
 0x314   :  { %v1551_v58 = vpop.f32.mrf.mxu1  ;;  %v1622_v59 = vpop.f32.mrf.mxu0 }
 0x315   :  { %v1815_v8 = vadd.f32 %v1551_v58, %v15601_v61  ;;  %v1829_v11 = vadd.f32 %v15603_v42, %v1622_v59  ;;  %v15616_v58 = vld [vmem:[#allocation36_spill] sm:$0xff]  ;;  %v15617_v59 = vld [vmem:[#allocation77_spill] sm:$0xff]  ;;  %v15618_v61 = vld [vmem:[#allocation78_spill] sm:$0xff] }
 0x316   :  { %v9079_v62 = vpop.f32.mrf.mxu0  ;;  %v1553_v1 = vpop.f32.mrf.mxu1  ;;  %v15632_v42 = vld [vmem:[#allocation92_spill] sm:$0xff] }
 0x317   :  { %v8261_v20 = vmul.f32 -1.442695, %v1815_v8  ;;  %v1822_v48 = vadd.f32 %v1553_v1, %v15602_v4  ;;  %v15619_v8 = vld [vmem:[#allocation79_spill] sm:$0xff]  ;;  %v15622_v62 = vld [vmem:[#allocation82_spill] sm:$0xff]  ;;  %v15624_v1 = vld [vmem:[#allocation84_spill] sm:$0xff] }
 0x318   :  { %v15625_v4 = vld [vmem:[#allocation85_spill] sm:$0xff] }
 0x319   :  { %10075 = vpow2.f32 %v8261_v20  ;;  %v8262_v2 = vmul.f32 -1.442695, %v1822_v48  ;;  %v15623_v20 = vld [vmem:[#allocation83_spill] sm:$0xff]  ;;  %v15626_v48 = vld [vmem:[#allocation86_spill] sm:$0xff] }
 0x31b   :  { %10077 = vpow2.f32 %v8262_v2  ;;  %v15627_v2 = vld [vmem:[#allocation87_spill] sm:$0xff] }
 0x326   :  { %v10076_v60 = vpop.eup %10075 }
 0x327   :  { %v1819_v27 = vadd.f32 1.0, %v10076_v60  ;;  %v15628_v60 = vld [vmem:[#allocation88_spill] sm:$0xff] }
 0x328   :  { %v10078_v7 = vpop.eup %10077 }
 0x329   :  { %10079 = vrcp.f32 %v1819_v27  ;;  %v1826_v32 = vadd.f32 1.0, %v10078_v7  ;;  %v15629_v27 = vld [vmem:[#allocation89_spill] sm:$0xff]  ;;  %v15630_v7 = vld [vmem:[#allocation90_spill] sm:$0xff] }
 0x32b   :  { %10081 = vrcp.f32 %v1826_v32  ;;  %v15631_v32 = vld [vmem:[#allocation91_spill] sm:$0xff] }
 0x335   :  { %v1740_v50 = vpop.f32.mrf.mxu1  ;;  %v1811_v13 = vpop.f32.mrf.mxu0 }
 0x336   :  { %v10080_v56 = vpop.eup %10079  ;;  %v1837_v9 = vadd.f32 %v1740_v50, %v15604_v14  ;;  %v15633_v50 = vld [vmem:[#allocation93_spill] sm:$0xff]  ;;  %v15636_v14 = vld [vmem:[#allocation96_spill] sm:$0xff] }
 0x337   :  { %v1830_v15 = vmul.f32 %v10080_v56, %v1829_v11  ;;  %v9114_v34 = vpop.f32.mrf.mxu0  ;;  %v1742_v29 = vpop.f32.mrf.mxu1  ;;  %v15635_v56 = vld [vmem:[#allocation95_spill] sm:$0xff] }
 0x338   :  { %v8263_v38 = vmul.f32 -1.442695, %v1837_v9  ;;  %v1844_v18 = vadd.f32 %v1742_v29, %v15606_v6  ;;  %v10082_v23 = vpop.eup %10081  ;;  %v11850_v29 = vld [vmem:[#allocation5 + $0x2b0] sm:$0xff]  ;;  %v11854_v6 = vld [vmem:[#allocation5 + $0x278] sm:$0xff] }
 0x339   :  { %v1831_v45 = vadd.f32 %v1830_v15, %v15605_v17  ;;  %v1833_v25 = vsub.f32 1.0, %v10082_v23  ;;  %v1835_v35 = vmul.f32 %v10082_v23, %v11509_v10  ;;  %v15637_v15 = vld [vmem:[#allocation97_spill] sm:$0xff]  ;;  %v11864_v23 = vld [vmem:[#allocation5 + $0x248] sm:$0xff] }
 0x33a   :  { %10083 = vpow2.f32 %v8263_v38  ;;  %v8264_v30 = vmul.f32 -1.442695, %v1844_v18  ;;  %v15638_v38 = vld [vmem:[#allocation98_spill] sm:$0xff]  ;;  %v11858_v18 = vld [vmem:[#allocation5 + $0x270] sm:$0xff] }
 0x33b   :  { %10085 = vtanh.f32 %v1831_v45 }
 0x33c   :  { %10087 = vpow2.f32 %v8264_v30  ;;  %v11860_v30 = vld [vmem:[#allocation5 + $0x280] sm:$0xff] }
 0x347   :  { %v10084_v24 = vpop.eup %10083 }
 0x348   :  { %v10086_v39 = vpop.eup %10085  ;;  %v1841_v40 = vadd.f32 1.0, %v10084_v24  ;;  %v11868_v24 = vld [vmem:[#allocation5 + $0x240] sm:$0xff] }
 0x349   :  { %v1834_v26 = vmul.f32 %v10086_v39, %v1833_v25  ;;  %v10088_v43 = vpop.eup %10087  ;;  %v11870_v25 = vld [vmem:[#allocation5 + $0x250] sm:$0xff]  ;;  %v11874_v39 = vld [vmem:[#allocation5 + $0x218] sm:$0xff] }
 0x34a   :  { %10089 = vrcp.f32 %v1841_v40  ;;  %v11878_v40 = vld [vmem:[#allocation5 + $0x210] sm:$0xff] }
 0x34b   :  { %v11755_v22 = vadd.f32 %v1835_v35, %v1834_v26  ;;  %v11880_v26 = vld [vmem:[#allocation5 + $0x220] sm:$0xff]  ;;  %v11884_v35 = vld [vmem:[#allocation5 + $0x1e8] sm:$0xff] }
 0x34d   :  { %15607 = vst [vmem:[#allocation16_spill] sm:$0xff] %v11755_v22  ;;  %1980 = vmatmul.mubr.f32.vlgmr.msra.gmra.mxu1 %v11755_v22  ;;  %9148 = vmatmul.mubr.f32.vlgmr.msra.gmra.mxu0 %v11755_v22 }
 0x34e   :  { %2105 = vmatpush1.msra.mxu1 %v11511_v31  ;;  %9151 = vmatpush3.msra.mxu0 %v11513_v47  ;;  %v1848_v31 = vadd.f32 1.0, %v10088_v43  ;;  %v15608_v47 = vld [vmem:[#allocation29_spill] sm:$0xff]  ;;  %v11888_v43 = vld [vmem:[#allocation5 + $0x1e0] sm:$0xff] }
 0x34f   :  { %2106 = vmatprep.subr.mxu1 %v11515_v51  ;;  %9152 = vmatprep.subr.mxu0 %v15521_v28  ;;  %v15609_v51 = vld [vmem:[#allocation30_spill] sm:$0xff] }
 0x350   :  { %2107 = vmatpush1.msra.mxu1 %v11519_v0  ;;  %9153 = vmatpush3.msra.mxu0 %v11521_v19  ;;  %v15610_v0 = vld [vmem:[#allocation31_spill] sm:$0xff]  ;;  %v1851_v19 = vadd.f32 %v11272_v55, %v1811_v13  ;;  %10091 = vrcp.f32 %v1848_v31  ;;  %v15615_v55 = vld [vmem:[#allocation74_spill] sm:$0xff]  ;;  %v11890_v31 = vld [vmem:[#allocation5 + $0x1f0] sm:$0xff] }
 0x351   :  { %2108 = vmatprep.subr.mxu1 %v11525_v49  ;;  %9154 = vmatprep.subr.mxu0 %v15521_v28  ;;  %v15611_v49 = vld [vmem:[#allocation32_spill] sm:$0xff]  ;;  %v15634_v13 = vld [vmem:[#allocation94_spill] sm:$0xff] }
 0x352   :  { %2109 = vmatpush1.msra.mxu1 %v11529_v46  ;;  %9155 = vmatpush3.msra.mxu0 %v11531_v54  ;;  %v15612_v46 = vld [vmem:[#allocation33_spill] sm:$0xff] }
 0x353   :  { %2110 = vmatprep.subr.mxu1 %v11535_v63  ;;  %9156 = vmatprep.subr.mxu0 %v15521_v28 }
 0x354   :  { %2111 = vmatpush1.msra.mxu1 %v15608_v47  ;;  %9157 = vmatpush3.msra.mxu0 %v15609_v51  ;;  %v11894_v47 = vld [vmem:[#allocation5 + $0x1b8] sm:$0xff]  ;;  %v11898_v51 = vld [vmem:[#allocation5 + $0x1b0] sm:$0xff] }
 0x355   :  { %2112 = vmatprep.subr.mxu1 %v15610_v0  ;;  %9158 = vmatprep.subr.mxu0 %v15521_v28  ;;  %v11900_v0 = vld [vmem:[#allocation5 + $0x1c0] sm:$0xff] }
 0x356   :  { %2113 = vmatpush1.msra.mxu1 %v15611_v49  ;;  %9159 = vmatpush3.msra.mxu0 %v15612_v46  ;;  %v11908_v49 = vld [vmem:[#allocation5 + $0x180] sm:$0xff]  ;;  %v11910_v46 = vld [vmem:[#allocation5 + $0x190] sm:$0xff] }
 0x357   :  { %v10090_v54 = vpop.eup %10089  ;;  %2114 = vmatprep.subr.mxu1 %v15613_v12  ;;  %9160 = vmatprep.subr.mxu0 %v15521_v28  ;;  %v11918_v12 = vld [vmem:[#allocation5 + $0x150] sm:$0xff] }
 0x358   :  { %v1852_v63 = vmul.f32 %v10090_v54, %v1851_v19  ;;  %2115 = vmatpush1.msra.mxu1 %v11559_v37  ;;  %9161 = vmatpush3.msra.mxu0 %v11561_v3  ;;  %v15620_v37 = vld [vmem:[#allocation80_spill] sm:$0xff]  ;;  %v15621_v3 = vld [vmem:[#allocation81_spill] sm:$0xff]  ;;  %v11914_v54 = vld [vmem:[#allocation5 + $0x158] sm:$0xff] }
 0x359   :  { %2116 = vmatprep.subr.mxu1 %v15614_v41  ;;  %9162 = vmatprep.subr.mxu0 %v15521_v28  ;;  %v11904_v19 = vld [vmem:[#allocation5 + $0x188] sm:$0xff] }
 0x35a   :  { %v1853_v57 = vadd.f32 %v1852_v63, %v15615_v55  ;;  %2117 = vmatpush1.msra.mxu1 %v15616_v58  ;;  %9163 = vmatpush3.msra.mxu0 %v15617_v59  ;;  %v11920_v63 = vld [vmem:[#allocation5 + $0x160] sm:$0xff]  ;;  %v11924_v41 = vld [vmem:[#allocation5 + $0x128] sm:$0xff]  ;;  %v11934_v58 = vld [vmem:[#allocation5 + $0xf8] sm:$0xff] }
 0x35b   :  { %2118 = vmatprep.subr.mxu1 %v15618_v61  ;;  %9164 = vmatprep.subr.mxu0 %v15521_v28  ;;  %v11928_v55 = vld [vmem:[#allocation5 + $0x120] sm:$0xff]  ;;  %v11938_v59 = vld [vmem:[#allocation5 + $0xf0] sm:$0xff] }
 0x35c   :  { %10093 = vtanh.f32 %v1853_v57  ;;  %2119 = vmatpush1.msra.mxu1 %v15619_v8  ;;  %9165 = vmatpush3.msra.mxu0 %v15620_v37  ;;  %v11930_v57 = vld [vmem:[#allocation5 + $0x130] sm:$0xff]  ;;  %v11940_v61 = vld [vmem:[#allocation5 + $0x100] sm:$0xff]  ;;  %v11944_v8 = vld [vmem:[#allocation5 + $0xc8] sm:$0xff] }
 0x35d   :  { %2120 = vmatprep.subr.mxu1 %v15621_v3  ;;  %9166 = vmatprep.subr.mxu0 %v15521_v28  ;;  %v10092_v11 = vpop.eup %10091  ;;  %v11948_v37 = vld [vmem:[#allocation5 + $0xc0] sm:$0xff]  ;;  %v11950_v3 = vld [vmem:[#allocation5 + $0xd0] sm:$0xff] }
 0x35e   :  { %2121 = vmatpush1.msra.mxu1 %v15622_v62  ;;  %9167 = vmatpush3.msra.mxu0 %v15623_v20  ;;  %v1855_v9 = vsub.f32 1.0, %v10092_v11  ;;  %v1857_v45 = vmul.f32 %v10092_v11, %v11672_v44  ;;  %v11954_v62 = vld [vmem:[#allocation5 + $0x98] sm:$0xff]  ;;  %v11958_v20 = vld [vmem:[#allocation5 + $0x90] sm:$0xff] }
 0x35f   :  { %2122 = vmatprep.subr.mxu1 %v15624_v1  ;;  %9168 = vmatprep.subr.mxu0 %v15521_v28  ;;  %v11960_v1 = vld [vmem:[#allocation5 + $0xa0] sm:$0xff]  ;;  %v11990_v11 = vld [vmem:[#allocation5 + $0x10] sm:$0xff] }
 0x360   :  { %2123 = vmatpush1.msra.mxu1 %v15625_v4  ;;  %9169 = vmatpush3.msra.mxu0 %v15626_v48  ;;  %v11964_v4 = vld [vmem:[#allocation5 + $0x68] sm:$0xff]  ;;  %v11968_v48 = vld [vmem:[#allocation5 + $0x60] sm:$0xff]  ;;  %15648 = vst [vmem:[#allocation26_spill] sm:$0xff] %v11990_v11 }
 0x361   :  { %2124 = vmatprep.subr.mxu1 %v15627_v2  ;;  %9170 = vmatprep.subr.mxu0 %v15521_v28  ;;  %15640 = vst [vmem:[#allocation18_spill] sm:$0xff] %v11964_v4  ;;  %15641 = vst [vmem:[#allocation19_spill] sm:$0xff] %v11968_v48  ;;  %v11970_v2 = vld [vmem:[#allocation5 + $0x70] sm:$0xff] }
 0x362   :  { %2125 = vmatpush1.msra.mxu1 %v15628_v60  ;;  %9171 = vmatpush3.msra.mxu0 %v15629_v27  ;;  %15642 = vst [vmem:[#allocation20_spill] sm:$0xff] %v11970_v2  ;;  %v11974_v60 = vld [vmem:[#allocation5 + $0x38] sm:$0xff]  ;;  %v11978_v27 = vld [vmem:[#allocation5 + $0x30] sm:$0xff] }
 0x363   :  { %2126 = vmatprep.subr.mxu1 %v15630_v7  ;;  %9172 = vmatprep.subr.mxu0 %v15521_v28  ;;  %15643 = vst [vmem:[#allocation21_spill] sm:$0xff] %v11974_v60  ;;  %15644 = vst [vmem:[#allocation22_spill] sm:$0xff] %v11978_v27  ;;  %v11980_v7 = vld [vmem:[#allocation5 + $0x40] sm:$0xff] }
 0x364   :  { %2127 = vmatpush1.msra.mxu1 %v15631_v32  ;;  %9173 = vmatpush3.msra.mxu0 %v15632_v42  ;;  %15645 = vst [vmem:[#allocation23_spill] sm:$0xff] %v11980_v7  ;;  %v11984_v32 = vld [vmem:[#allocation5 + $0x8] sm:$0xff]  ;;  %v11988_v42 = vld [vmem:[#allocation5] sm:$0xff] }
 0x365   :  { %2128 = vmatprep.subr.mxu1 %v15633_v50  ;;  %9174 = vmatprep.subr.mxu0 %v15521_v28  ;;  %15646 = vst [vmem:[#allocation24_spill] sm:$0xff] %v11984_v32  ;;  %15647 = vst [vmem:[#allocation25_spill] sm:$0xff] %v11988_v42  ;;  %v11994_v50 = vld [vmem:[#allocation5 + $0x2f0] sm:$0xff] }
 0x366   :  { %2129 = vmatpush1.msra.mxu1 %v15634_v13  ;;  %9175 = vmatpush3.msra.mxu0 %v15635_v56  ;;  %15649 = vst [vmem:[#allocation27_spill] sm:$0xff] %v11994_v50 }
 0x367   :  { %2130 = vmatprep.subr.mxu1 %v15636_v14  ;;  %9176 = vmatprep.subr.mxu0 %v15521_v28  ;;  %v15650_v14 = vld [vmem:[#allocation45_spill] sm:$0xff] }
 0x368   :  { %2131 = vmatpush1.msra.mxu1 %v15637_v15  ;;  %9177 = vmatpush3.msra.mxu0 %v11643_v33 }
 0x369   :  { %v10094_v34 = vpop.eup %10093  ;;  %2132 = vmatprep.subr.mxu1 %v15638_v38  ;;  %9178 = vmatprep.subr.mxu0 %v15521_v28 }
 0x36a   :  { %2133 = vmatpush1.msra.mxu1 %v11651_v53  ;;  %9179 = vmatpush3.msra.mxu0 %v11653_v36  ;;  %v1856_v17 = vmul.f32 %v10094_v34, %v1855_v9  ;;  %v11838_v53 = vld [vmem:[#allocation5 + $0x2d0] sm:$0xff]  ;;  %v11844_v36 = vld [vmem:[#allocation5 + $0x2a8] sm:$0xff] }
 0x36b   :  { %2134 = vmatprep.subr.mxu1 %v11657_v16  ;;  %9180 = vmatprep.subr.mxu0 %v15521_v28  ;;  %v11835_v16 = vld [vmem:[#allocation5 + $0x2d8] sm:$0xff] }
 0x36c   :  { %2135 = vmatpush1.msra.mxu1 %v11661_v52  ;;  %2168 = vmatprep.mubr.f32.mxu1 %v15521_v28  ;;  %v11824_v33 = vadd.f32 %v1857_v45, %v1856_v17  ;;  %v11848_v52 = vld [vmem:[#allocation5 + $0x2a0] sm:$0xff] }
 0x36d   :  { %9181 = vmatpush3.msra.mxu0 %v11665_v21  ;;  %9182 = vmatprep.mubr.msk.f32.mxu0 %vm10448_vm1, %v15521_v28  ;;  %v11840_v21 = vld [vmem:[#allocation5 + $0x2e0] sm:$0xff] }
 0x36e   :  { %15639 = vst [vmem:[#allocation17_spill] sm:$0xff] %v11824_v33  ;;  %2169 = vmatmul.mubr.f32.vlgmr.msra.gmra.mxu1 %v11824_v33  ;;  %9183 = vmatmul.mubr.f32.vlgmr.msra.gmra.mxu0 %v11824_v33  ;;  %v15651_v17 = vld [vmem:[#allocation47_spill] sm:$0xff] }
 0x36f   :  { %9185 = vmatprep.subr.mxu0 %v15521_v28  ;;  %2409 = vmatprep.mubr.f32.mxu1 %v15521_v28 }
 0x370   :  { %9217 = vmatprep.mubr.msk.f32.mxu0 %vm10448_vm1, %v15521_v28  ;;  %2345 = vmatprep.subr.mxu1 %v11835_v16 }
 0x371   :  { %2346 = vmatpush1.msra.mxu1 %v11838_v53  ;;  %9186 = vmatpush3.msra.mxu0 %v11840_v21 }
 0x372   :  { %2347 = vmatprep.subr.mxu1 %v11844_v36  ;;  %9187 = vmatprep.subr.mxu0 %v15521_v28 }
 0x373   :  { %2348 = vmatpush1.msra.mxu1 %v11848_v52  ;;  %9188 = vmatpush3.msra.mxu0 %v11850_v29 }
 0x374   :  { %2349 = vmatprep.subr.mxu1 %v11854_v6  ;;  %9189 = vmatprep.subr.mxu0 %v15521_v28 }
 0x375   :  { %2350 = vmatpush1.msra.mxu1 %v11858_v18  ;;  %9190 = vmatpush3.msra.mxu0 %v11860_v30 }
 0x376   :  { %2351 = vmatprep.subr.mxu1 %v11864_v23  ;;  %9191 = vmatprep.subr.mxu0 %v15521_v28 }
 0x377   :  { %2352 = vmatpush1.msra.mxu1 %v11868_v24  ;;  %9192 = vmatpush3.msra.mxu0 %v11870_v25 }
 0x378   :  { %2353 = vmatprep.subr.mxu1 %v11874_v39  ;;  %9193 = vmatprep.subr.mxu0 %v15521_v28 }
 0x379   :  { %2354 = vmatpush1.msra.mxu1 %v11878_v40  ;;  %9194 = vmatpush3.msra.mxu0 %v11880_v26 }
 0x37a   :  { %2355 = vmatprep.subr.mxu1 %v11884_v35  ;;  %9195 = vmatprep.subr.mxu0 %v15521_v28 }
 0x37b   :  { %2356 = vmatpush1.msra.mxu1 %v11888_v43  ;;  %9196 = vmatpush3.msra.mxu0 %v11890_v31 }
 0x37c   :  { %2357 = vmatprep.subr.mxu1 %v11894_v47  ;;  %9197 = vmatprep.subr.mxu0 %v15521_v28 }
 0x37d   :  { %2358 = vmatpush1.msra.mxu1 %v11898_v51  ;;  %9198 = vmatpush3.msra.mxu0 %v11900_v0 }
 0x37e   :  { %2359 = vmatprep.subr.mxu1 %v11904_v19  ;;  %9199 = vmatprep.subr.mxu0 %v15521_v28 }
 0x37f   :  { %2360 = vmatpush1.msra.mxu1 %v11908_v49  ;;  %9200 = vmatpush3.msra.mxu0 %v11910_v46 }
 0x380   :  { %2361 = vmatprep.subr.mxu1 %v11914_v54  ;;  %9201 = vmatprep.subr.mxu0 %v15521_v28 }
 0x381   :  { %2362 = vmatpush1.msra.mxu1 %v11918_v12  ;;  %9202 = vmatpush3.msra.mxu0 %v11920_v63 }
 0x382   :  { %2363 = vmatprep.subr.mxu1 %v11924_v41  ;;  %9203 = vmatprep.subr.mxu0 %v15521_v28 }
 0x383   :  { %2364 = vmatpush1.msra.mxu1 %v11928_v55  ;;  %9204 = vmatpush3.msra.mxu0 %v11930_v57 }
 0x384   :  { %2365 = vmatprep.subr.mxu1 %v11934_v58  ;;  %9205 = vmatprep.subr.mxu0 %v15521_v28 }
 0x385   :  { %2366 = vmatpush1.msra.mxu1 %v11938_v59  ;;  %9206 = vmatpush3.msra.mxu0 %v11940_v61 }
 0x386   :  { %2367 = vmatprep.subr.mxu1 %v11944_v8  ;;  %9207 = vmatprep.subr.mxu0 %v15521_v28 }
 0x387   :  { %2368 = vmatpush1.msra.mxu1 %v11948_v37  ;;  %9208 = vmatpush3.msra.mxu0 %v11950_v3 }
 0x388   :  { %2369 = vmatprep.subr.mxu1 %v11954_v62  ;;  %9209 = vmatprep.subr.mxu0 %v15521_v28 }
 0x389   :  { %2370 = vmatpush1.msra.mxu1 %v11958_v20  ;;  %9210 = vmatpush3.msra.mxu0 %v11960_v1 }
 0x38a   :  { %2371 = vmatprep.subr.mxu1 %v11964_v4  ;;  %9211 = vmatprep.subr.mxu0 %v15521_v28 }
 0x38b   :  { %2372 = vmatpush1.msra.mxu1 %v11968_v48  ;;  %9212 = vmatpush3.msra.mxu0 %v11970_v2 }
 0x38c   :  { %2373 = vmatprep.subr.mxu1 %v11974_v60  ;;  %9213 = vmatprep.subr.mxu0 %v15521_v28 }
 0x38d   :  { %2374 = vmatpush1.msra.mxu1 %v11978_v27  ;;  %9214 = vmatpush3.msra.mxu0 %v11980_v7 }
 0x38e   :  { %2375 = vmatprep.subr.mxu1 %v11984_v32  ;;  %9215 = vmatprep.subr.mxu0 %v15521_v28 }
 0x38f   :  { %2376 = vmatpush1.msra.mxu1 %v11988_v42  ;;  %9216 = vmatpush3.msra.mxu0 %v11990_v11 }
 0x390   :  { %2534 = vmatprep.subr.mxu1 %v11994_v50  ;;  %9220 = vmatprep.subr.mxu0 %v15521_v28  ;;  %v12003_v50 = vld [vmem:[%s15089_s4] ss:$0 sm:$0xff] }
 0x391   :  { %15652 = vst [vmem:[#allocation40_spill] sm:$0xff] %v12003_v50 }
 0x40d   :  { %v1981_v13 = vpop.f32.mrf.mxu1  ;;  %v2052_v56 = vpop.f32.mrf.mxu0 }
 0x40e   :  { %v2245_v9 = vadd.f32 %v1981_v13, %v15650_v14  ;;  %v2259_v13 = vadd.f32 %v12003_v50, %v2052_v56 }
 0x40f   :  { %v9149_v15 = vpop.f32.mrf.mxu0  ;;  %v1983_v38 = vpop.f32.mrf.mxu1 }
 0x410   :  { %v8265_v34 = vmul.f32 -1.442695, %v2245_v9  ;;  %v2252_v45 = vadd.f32 %v1983_v38, %v15651_v17 }
 0x412   :  { %10095 = vpow2.f32 %v8265_v34  ;;  %v8266_v5 = vmul.f32 -1.442695, %v2252_v45  ;;  %v15653_v34 = vld [vmem:[#allocation52_spill] sm:$0xff] }
 0x414   :  { %10097 = vpow2.f32 %v8266_v5 }
 0x41f   :  { %v10096_v44 = vpop.eup %10095 }
 0x420   :  { %v2249_v10 = vadd.f32 1.0, %v10096_v44  ;;  %v15654_v44 = vld [vmem:[#allocation46_spill] sm:$0xff] }
 0x421   :  { %v10098_v11 = vpop.eup %10097 }
 0x422   :  { %10099 = vrcp.f32 %v2249_v10  ;;  %v2256_v42 = vadd.f32 1.0, %v10098_v11  ;;  %v15655_v11 = vld [vmem:[#allocation71_spill] sm:$0xff] }
 0x424   :  { %10101 = vrcp.f32 %v2256_v42 }
 0x42e   :  { %v2170_v14 = vpop.f32.mrf.mxu1  ;;  %v2241_v9 = vpop.f32.mrf.mxu0 }
 0x42f   :  { %v10100_v15 = vpop.eup %10099  ;;  %v2267_v32 = vadd.f32 %v2170_v14, %v15653_v34  ;;  %v12014_v14 = vld [vmem:[#allocation5 + $0x2f8] sm:$0xff] }
 0x430   :  { %v2260_v38 = vmul.f32 %v10100_v15, %v2259_v13  ;;  %v9184_v5 = vpop.f32.mrf.mxu0  ;;  %v2172_v45 = vpop.f32.mrf.mxu1  ;;  %v12016_v15 = vld [vmem:[#allocation5 + $0x2c0] sm:$0xff]  ;;  %v12040_v34 = vld [vmem:[#allocation5 + $0x258] sm:$0xff] }
 0x431   :  { %v8267_v17 = vmul.f32 -1.442695, %v2267_v32  ;;  %v2274_v7 = vadd.f32 %v2172_v45, %v15655_v11  ;;  %v10102_v60 = vpop.eup %10101  ;;  %v12012_v32 = vld [vmem:[#allocation5 + $0x2e8] sm:$0xff]  ;;  %15658 = vst [vmem:[#allocation56_spill] sm:$0xff] %v12040_v34  ;;  %v12046_v5 = vld [vmem:[#allocation5 + $0x230] sm:$0xff]  ;;  %v12056_v45 = vld [vmem:[#allocation5 + $0x200] sm:$0xff] }
 0x432   :  { %v2261_v10 = vadd.f32 %v2260_v38, %v15654_v44  ;;  %v2263_v50 = vsub.f32 1.0, %v10102_v60  ;;  %v2265_v13 = vmul.f32 %v10102_v60, %v11755_v22  ;;  %v12036_v60 = vld [vmem:[#allocation5 + $0x260] sm:$0xff]  ;;  %v12042_v38 = vld [vmem:[#allocation5 + $0x268] sm:$0xff]  ;;  %15660 = vst [vmem:[#allocation73_spill] sm:$0xff] %v12046_v5  ;;  %v12052_v44 = vld [vmem:[#allocation5 + $0x238] sm:$0xff] }
 0x433   :  { %10103 = vpow2.f32 %v8267_v17  ;;  %v8268_v27 = vmul.f32 -1.442695, %v2274_v7  ;;  %v12022_v7 = vld [vmem:[#allocation5 + $0x2c8] sm:$0xff]  ;;  %15657 = vst [vmem:[#allocation75_spill] sm:$0xff] %v12036_v60  ;;  %15659 = vst [vmem:[#allocation42_spill] sm:$0xff] %v12042_v38  ;;  %v12060_v11 = vld [vmem:[#allocation5 + $0x1f8] sm:$0xff] }
 0x434   :  { %10105 = vtanh.f32 %v2261_v10  ;;  %v12050_v17 = vld [vmem:[#allocation5 + $0x228] sm:$0xff]  ;;  %15662 = vst [vmem:[#allocation30_spill] sm:$0xff] %v12052_v44  ;;  %15663 = vst [vmem:[#allocation31_spill] sm:$0xff] %v12056_v45  ;;  %v12072_v22 = vld [vmem:[#allocation5 + $0x1d0] sm:$0xff] }
 0x435   :  { %10107 = vpow2.f32 %v8268_v27  ;;  %v12020_v27 = vld [vmem:[#allocation5 + $0x2b8] sm:$0xff]  ;;  %15661 = vst [vmem:[#allocation29_spill] sm:$0xff] %v12050_v17  ;;  %15665 = vst [vmem:[#allocation33_spill] sm:$0xff] %v12072_v22 }
 0x440   :  { %v10104_v56 = vpop.eup %10103 }
 0x441   :  { %v10106_v2 = vpop.eup %10105  ;;  %v2271_v48 = vadd.f32 1.0, %v10104_v56  ;;  %v12062_v56 = vld [vmem:[#allocation5 + $0x208] sm:$0xff] }
 0x442   :  { %v2264_v4 = vmul.f32 %v10106_v2, %v2263_v50  ;;  %v12032_v2 = vld [vmem:[#allocation5 + $0x298] sm:$0xff]  ;;  %v10108_v50 = vpop.eup %10107 }
 0x443   :  { %10109 = vrcp.f32 %v2271_v48  ;;  %v12030_v48 = vld [vmem:[#allocation5 + $0x288] sm:$0xff]  ;;  %v2278_v10 = vadd.f32 1.0, %v10108_v50 }
 0x444   :  { %v12010_v42 = vadd.f32 %v2265_v13, %v2264_v4  ;;  %v12026_v4 = vld [vmem:[#allocation5 + $0x290] sm:$0xff]  ;;  %v12067_v13 = vld [vmem:[%s15089_s4 + $0x1] ss:$0 sm:$0xff] }
 0x445   :  { %15664 = vst [vmem:[#allocation32_spill] sm:$0xff] %v12067_v13  ;;  %v2281_v50 = vadd.f32 %v12067_v13, %v2241_v9  ;;  %10111 = vrcp.f32 %v2278_v10  ;;  %v12082_v9 = vld [vmem:[#allocation5 + $0x1a0] sm:$0xff]  ;;  %v12097_v10 = vld [vmem:[#allocation5 + $0x168] sm:$0xff] }
 0x446   :  { %15656 = vst [vmem:[#allocation43_spill] sm:$0xff] %v12010_v42  ;;  %2410 = vmatmul.mubr.f32.vlgmr.msra.gmra.mxu1 %v12010_v42  ;;  %9218 = vmatmul.mubr.f32.vlgmr.msra.gmra.mxu0 %v12010_v42  ;;  %15668 = vst [vmem:[#allocation74_spill] sm:$0xff] %v12082_v9 }
 0x447   :  { %2535 = vmatpush1.msra.mxu1 %v12012_v32  ;;  %9221 = vmatpush3.msra.mxu0 %v12014_v14  ;;  %15673 = vst [vmem:[#allocation79_spill] sm:$0xff] %v12097_v10 }
 0x448   :  { %2536 = vmatprep.subr.mxu1 %v12016_v15  ;;  %9222 = vmatprep.subr.mxu0 %v15521_v28 }
 0x449   :  { %2537 = vmatpush1.msra.mxu1 %v12020_v27  ;;  %9223 = vmatpush3.msra.mxu0 %v12022_v7 }
 0x44a   :  { %2538 = vmatprep.subr.mxu1 %v12026_v4  ;;  %9224 = vmatprep.subr.mxu0 %v15521_v28 }
 0x44b   :  { %2539 = vmatpush1.msra.mxu1 %v12030_v48  ;;  %9225 = vmatpush3.msra.mxu0 %v12032_v2 }
 0x44c   :  { %2540 = vmatprep.subr.mxu1 %v12036_v60  ;;  %9226 = vmatprep.subr.mxu0 %v15521_v28 }
 0x44d   :  { %2541 = vmatpush1.msra.mxu1 %v12040_v34  ;;  %9227 = vmatpush3.msra.mxu0 %v12042_v38  ;;  %v12076_v38 = vld [vmem:[#allocation5 + $0x1c8] sm:$0xff]  ;;  %v12078_v34 = vld [vmem:[#allocation5 + $0x1d8] sm:$0xff] }
 0x44e   :  { %2542 = vmatprep.subr.mxu1 %v12046_v5  ;;  %9228 = vmatprep.subr.mxu0 %v15521_v28  ;;  %15666 = vst [vmem:[#allocation34_spill] sm:$0xff] %v12076_v38  ;;  %15667 = vst [vmem:[#allocation35_spill] sm:$0xff] %v12078_v34 }
 0x44f   :  { %2543 = vmatpush1.msra.mxu1 %v12050_v17  ;;  %9229 = vmatpush3.msra.mxu0 %v12052_v44  ;;  %v12086_v44 = vld [vmem:[#allocation5 + $0x198] sm:$0xff]  ;;  %v15671_v17 = vld [vmem:[#allocation72_spill] sm:$0xff] }
 0x450   :  { %v10110_v5 = vpop.eup %10109  ;;  %2544 = vmatprep.subr.mxu1 %v12056_v45  ;;  %9230 = vmatprep.subr.mxu0 %v15521_v28  ;;  %15669 = vst [vmem:[#allocation36_spill] sm:$0xff] %v12086_v44  ;;  %v12088_v45 = vld [vmem:[#allocation5 + $0x1a8] sm:$0xff] }
 0x451   :  { %v2282_v60 = vmul.f32 %v10110_v5, %v2281_v50  ;;  %2545 = vmatpush1.msra.mxu1 %v12060_v11  ;;  %9231 = vmatpush3.msra.mxu0 %v12062_v56  ;;  %15670 = vst [vmem:[#allocation77_spill] sm:$0xff] %v12088_v45  ;;  %v12093_v5 = vld [vmem:[#allocation5 + $0x170] sm:$0xff]  ;;  %v12099_v50 = vld [vmem:[#allocation5 + $0x178] sm:$0xff] }
 0x452   :  { %2546 = vmatprep.subr.mxu1 %v12072_v22  ;;  %9232 = vmatprep.subr.mxu0 %v15521_v28  ;;  %15672 = vst [vmem:[#allocation78_spill] sm:$0xff] %v12093_v5  ;;  %15674 = vst [vmem:[#allocation80_spill] sm:$0xff] %v12099_v50 }
 0x453   :  { %v2283_v13 = vadd.f32 %v2282_v60, %v15671_v17  ;;  %2547 = vmatpush1.msra.mxu1 %v12076_v38  ;;  %9233 = vmatpush3.msra.mxu0 %v12078_v34  ;;  %v12103_v60 = vld [vmem:[#allocation5 + $0x140] sm:$0xff]  ;;  %v12107_v17 = vld [vmem:[#allocation5 + $0x138] sm:$0xff]  ;;  %v12113_v34 = vld [vmem:[#allocation5 + $0x110] sm:$0xff] }
 0x454   :  { %2548 = vmatprep.subr.mxu1 %v12082_v9  ;;  %9234 = vmatprep.subr.mxu0 %v15521_v28  ;;  %15675 = vst [vmem:[#allocation81_spill] sm:$0xff] %v12103_v60  ;;  %15676 = vst [vmem:[#allocation82_spill] sm:$0xff] %v12107_v17  ;;  %v12109_v9 = vld [vmem:[#allocation5 + $0x148] sm:$0xff]  ;;  %v12163_v38 = vld [vmem:[#allocation5 + $0x20] sm:$0xff] }
 0x455   :  { %10113 = vtanh.f32 %v2283_v13  ;;  %2549 = vmatpush1.msra.mxu1 %v12086_v44  ;;  %9235 = vmatpush3.msra.mxu0 %v12088_v45  ;;  %15677 = vst [vmem:[#allocation83_spill] sm:$0xff] %v12109_v9  ;;  %15678 = vst [vmem:[#allocation84_spill] sm:$0xff] %v12113_v34  ;;  %v12117_v13 = vld [vmem:[#allocation5 + $0x108] sm:$0xff]  ;;  %v12119_v45 = vld [vmem:[#allocation5 + $0x118] sm:$0xff]  ;;  %v10112_v44 = vpop.eup %10111 }
 0x456   :  { %2550 = vmatprep.subr.mxu1 %v12093_v5  ;;  %9236 = vmatprep.subr.mxu0 %v15521_v28  ;;  %15679 = vst [vmem:[#allocation85_spill] sm:$0xff] %v12117_v13  ;;  %15680 = vst [vmem:[#allocation86_spill] sm:$0xff] %v12119_v45  ;;  %v12123_v5 = vld [vmem:[#allocation5 + $0xe0] sm:$0xff] }
 0x457   :  { %2551 = vmatpush1.msra.mxu1 %v12097_v10  ;;  %9237 = vmatpush3.msra.mxu0 %v12099_v50  ;;  %15681 = vst [vmem:[#allocation87_spill] sm:$0xff] %v12123_v5  ;;  %v12127_v50 = vld [vmem:[#allocation5 + $0xd8] sm:$0xff]  ;;  %v12129_v10 = vld [vmem:[#allocation5 + $0xe8] sm:$0xff] }
 0x458   :  { %2552 = vmatprep.subr.mxu1 %v12103_v60  ;;  %9238 = vmatprep.subr.mxu0 %v15521_v28  ;;  %15682 = vst [vmem:[#allocation88_spill] sm:$0xff] %v12127_v50  ;;  %15683 = vst [vmem:[#allocation89_spill] sm:$0xff] %v12129_v10  ;;  %v12133_v60 = vld [vmem:[#allocation5 + $0xb0] sm:$0xff] }
 0x459   :  { %2553 = vmatpush1.msra.mxu1 %v12107_v17  ;;  %9239 = vmatpush3.msra.mxu0 %v12109_v9  ;;  %15684 = vst [vmem:[#allocation90_spill] sm:$0xff] %v12133_v60  ;;  %v12137_v9 = vld [vmem:[#allocation5 + $0xa8] sm:$0xff]  ;;  %v12139_v17 = vld [vmem:[#allocation5 + $0xb8] sm:$0xff] }
 0x45a   :  { %2554 = vmatprep.subr.mxu1 %v12113_v34  ;;  %9240 = vmatprep.subr.mxu0 %v15521_v28  ;;  %15685 = vst [vmem:[#allocation91_spill] sm:$0xff] %v12137_v9  ;;  %15686 = vst [vmem:[#allocation92_spill] sm:$0xff] %v12139_v17  ;;  %v12143_v34 = vld [vmem:[#allocation5 + $0x80] sm:$0xff] }
 0x45b   :  { %2555 = vmatpush1.msra.mxu1 %v12117_v13  ;;  %9241 = vmatpush3.msra.mxu0 %v12119_v45  ;;  %15687 = vst [vmem:[#allocation93_spill] sm:$0xff] %v12143_v34  ;;  %v12147_v45 = vld [vmem:[#allocation5 + $0x78] sm:$0xff]  ;;  %v12153_v13 = vld [vmem:[#allocation5 + $0x50] sm:$0xff] }
 0x45c   :  { %2556 = vmatprep.subr.mxu1 %v12123_v5  ;;  %9242 = vmatprep.subr.mxu0 %v15521_v28  ;;  %15688 = vst [vmem:[#allocation94_spill] sm:$0xff] %v12147_v45  ;;  %v12149_v5 = vld [vmem:[#allocation5 + $0x88] sm:$0xff]  ;;  %15689 = vst [vmem:[#allocation95_spill] sm:$0xff] %v12153_v13 }
 0x45d   :  { %2557 = vmatpush1.msra.mxu1 %v12127_v50  ;;  %9243 = vmatpush3.msra.mxu0 %v12129_v10  ;;  %v12157_v10 = vld [vmem:[#allocation5 + $0x48] sm:$0xff]  ;;  %v12159_v50 = vld [vmem:[#allocation5 + $0x58] sm:$0xff] }
 0x45e   :  { %2558 = vmatprep.subr.mxu1 %v12133_v60  ;;  %9244 = vmatprep.subr.mxu0 %v15521_v28  ;;  %v2285_v60 = vsub.f32 1.0, %v10112_v44 }
 0x45f   :  { %2559 = vmatpush1.msra.mxu1 %v12137_v9  ;;  %9245 = vmatpush3.msra.mxu0 %v12139_v17  ;;  %v12167_v17 = vld [vmem:[#allocation5 + $0x18] sm:$0xff] }
 0x460   :  { %2560 = vmatprep.subr.mxu1 %v12143_v34  ;;  %9246 = vmatprep.subr.mxu0 %v15521_v28  ;;  %v12171_v34 = vld [vmem:[#allocation5 + $0x28] sm:$0xff] }
 0x461   :  { %2561 = vmatpush1.msra.mxu1 %v12147_v45  ;;  %9247 = vmatpush3.msra.mxu0 %v12149_v5  ;;  %v2287_v45 = vmul.f32 %v10112_v44, %v11824_v33  ;;  %v15753_v33 = vld [vmem:[#allocation55_spill] sm:$0xff] }
 0x462   :  { %v10114_v9 = vpop.eup %10113  ;;  %2562 = vmatprep.subr.mxu1 %v12153_v13  ;;  %9248 = vmatprep.subr.mxu0 %v15521_v28 }
 0x463   :  { %2563 = vmatpush1.msra.mxu1 %v12157_v10  ;;  %9249 = vmatpush3.msra.mxu0 %v12159_v50  ;;  %v2286_v22 = vmul.f32 %v10114_v9, %v2285_v60 }
 0x464   :  { %2564 = vmatprep.subr.mxu1 %v12163_v38  ;;  %9250 = vmatprep.subr.mxu0 %v15521_v28 }
 0x465   :  { %2565 = vmatpush1.msra.mxu1 %v12167_v17  ;;  %2598 = vmatprep.mubr.f32.mxu1 %v15521_v28  ;;  %v12178_v13 = vadd.f32 %v2287_v45, %v2286_v22  ;;  %v15691_v22 = vld [vmem:[#allocation18_spill] sm:$0xff] }
 0x466   :  { %9251 = vmatpush3.msra.mxu0 %v12171_v34  ;;  %9252 = vmatprep.mubr.msk.f32.mxu0 %vm10448_vm1, %v15521_v28 }
 0x467   :  { %15690 = vst [vmem:[#allocation96_spill] sm:$0xff] %v12178_v13  ;;  %2599 = vmatmul.mubr.f32.vlgmr.msra.gmra.mxu1 %v12178_v13  ;;  %9253 = vmatmul.mubr.f32.vlgmr.msra.gmra.mxu0 %v12178_v13 }
 0x468   :  { %2775 = vmatprep.subr.mxu1 %v11835_v16  ;;  %9255 = vmatprep.subr.mxu0 %v15521_v28  ;;  %v15692_v16 = vld [vmem:[#allocation19_spill] sm:$0xff] }
 0x469   :  { %2776 = vmatpush1.msra.mxu1 %v11838_v53  ;;  %9256 = vmatpush3.msra.mxu0 %v11840_v21  ;;  %v15693_v53 = vld [vmem:[#allocation20_spill] sm:$0xff]  ;;  %v15694_v21 = vld [vmem:[#allocation21_spill] sm:$0xff] }
 0x46a   :  { %2777 = vmatprep.subr.mxu1 %v11844_v36  ;;  %9257 = vmatprep.subr.mxu0 %v15521_v28  ;;  %v15695_v36 = vld [vmem:[#allocation22_spill] sm:$0xff] }
 0x46b   :  { %2778 = vmatpush1.msra.mxu1 %v11848_v52  ;;  %9258 = vmatpush3.msra.mxu0 %v11850_v29  ;;  %v15696_v52 = vld [vmem:[#allocation23_spill] sm:$0xff]  ;;  %v15697_v29 = vld [vmem:[#allocation24_spill] sm:$0xff] }
 0x46c   :  { %2779 = vmatprep.subr.mxu1 %v11854_v6  ;;  %9259 = vmatprep.subr.mxu0 %v15521_v28  ;;  %v15698_v6 = vld [vmem:[#allocation25_spill] sm:$0xff] }
 0x46d   :  { %2780 = vmatpush1.msra.mxu1 %v11858_v18  ;;  %9260 = vmatpush3.msra.mxu0 %v11860_v30  ;;  %v15699_v18 = vld [vmem:[#allocation26_spill] sm:$0xff]  ;;  %v15700_v30 = vld [vmem:[#allocation27_spill] sm:$0xff] }
 0x46e   :  { %2781 = vmatprep.subr.mxu1 %v11864_v23  ;;  %9261 = vmatprep.subr.mxu0 %v15521_v28 }
 0x46f   :  { %2782 = vmatpush1.msra.mxu1 %v11868_v24  ;;  %9262 = vmatpush3.msra.mxu0 %v11870_v25  ;;  %v15701_v25 = vld [vmem:[#allocation49_spill] sm:$0xff] }
 0x470   :  { %2783 = vmatprep.subr.mxu1 %v11874_v39  ;;  %9263 = vmatprep.subr.mxu0 %v15521_v28 }
 0x471   :  { %2784 = vmatpush1.msra.mxu1 %v11878_v40  ;;  %9264 = vmatpush3.msra.mxu0 %v11880_v26 }
 0x472   :  { %2785 = vmatprep.subr.mxu1 %v11884_v35  ;;  %9265 = vmatprep.subr.mxu0 %v15521_v28 }
 0x473   :  { %2786 = vmatpush1.msra.mxu1 %v11888_v43  ;;  %9266 = vmatpush3.msra.mxu0 %v11890_v31  ;;  %v15702_v43 = vld [vmem:[#allocation51_spill] sm:$0xff] }
 0x474   :  { %2787 = vmatprep.subr.mxu1 %v11894_v47  ;;  %9267 = vmatprep.subr.mxu0 %v15521_v28 }
 0x475   :  { %2788 = vmatpush1.msra.mxu1 %v11898_v51  ;;  %9268 = vmatpush3.msra.mxu0 %v11900_v0 }
 0x476   :  { %2789 = vmatprep.subr.mxu1 %v11904_v19  ;;  %9269 = vmatprep.subr.mxu0 %v15521_v28 }
 0x477   :  { %2790 = vmatpush1.msra.mxu1 %v11908_v49  ;;  %9270 = vmatpush3.msra.mxu0 %v11910_v46  ;;  %v15703_v46 = vld [vmem:[#allocation40_spill] sm:$0xff] }
 0x478   :  { %2791 = vmatprep.subr.mxu1 %v11914_v54  ;;  %9271 = vmatprep.subr.mxu0 %v15521_v28 }
 0x479   :  { %2792 = vmatpush1.msra.mxu1 %v11918_v12  ;;  %9272 = vmatpush3.msra.mxu0 %v11920_v63 }
 0x47a   :  { %2793 = vmatprep.subr.mxu1 %v11924_v41  ;;  %9273 = vmatprep.subr.mxu0 %v15521_v28 }
 0x47b   :  { %2794 = vmatpush1.msra.mxu1 %v11928_v55  ;;  %9274 = vmatpush3.msra.mxu0 %v11930_v57  ;;  %v15704_v55 = vld [vmem:[#allocation48_spill] sm:$0xff] }
 0x47c   :  { %2795 = vmatprep.subr.mxu1 %v11934_v58  ;;  %9275 = vmatprep.subr.mxu0 %v15521_v28 }
 0x47d   :  { %2796 = vmatpush1.msra.mxu1 %v11938_v59  ;;  %9276 = vmatpush3.msra.mxu0 %v11940_v61 }
 0x47e   :  { %2797 = vmatprep.subr.mxu1 %v11944_v8  ;;  %9277 = vmatprep.subr.mxu0 %v15521_v28  ;;  %v15705_v8 = vld [vmem:[#allocation50_spill] sm:$0xff] }
 0x47f   :  { %2798 = vmatpush1.msra.mxu1 %v11948_v37  ;;  %9278 = vmatpush3.msra.mxu0 %v11950_v3 }
 0x480   :  { %2799 = vmatprep.subr.mxu1 %v11954_v62  ;;  %9279 = vmatprep.subr.mxu0 %v15521_v28  ;;  %v15706_v62 = vld [vmem:[#allocation69_spill] sm:$0xff] }
 0x481   :  { %2800 = vmatpush1.msra.mxu1 %v11958_v20  ;;  %9280 = vmatpush3.msra.mxu0 %v11960_v1 }
 0x482   :  { %2801 = vmatprep.subr.mxu1 %v15691_v22  ;;  %9281 = vmatprep.subr.mxu0 %v15521_v28 }
 0x483   :  { %2802 = vmatpush1.msra.mxu1 %v15692_v16  ;;  %9282 = vmatpush3.msra.mxu0 %v15693_v53 }
 0x484   :  { %2803 = vmatprep.subr.mxu1 %v15694_v21  ;;  %9283 = vmatprep.subr.mxu0 %v15521_v28 }
 0x485   :  { %2804 = vmatpush1.msra.mxu1 %v15695_v36  ;;  %9284 = vmatpush3.msra.mxu0 %v15696_v52  ;;  %v15710_v52 = vld [vmem:[#allocation42_spill] sm:$0xff] }
 0x486   :  { %2805 = vmatprep.subr.mxu1 %v15697_v29  ;;  %9285 = vmatprep.subr.mxu0 %v15521_v28  ;;  %v15713_v29 = vld [vmem:[#allocation29_spill] sm:$0xff] }
 0x487   :  { %2806 = vmatpush1.msra.mxu1 %v15698_v6  ;;  %2839 = vmatprep.mubr.f32.mxu1 %v15521_v28  ;;  %v15715_v6 = vld [vmem:[#allocation31_spill] sm:$0xff] }
 0x488   :  { %9286 = vmatpush3.msra.mxu0 %v15699_v18  ;;  %9287 = vmatprep.mubr.msk.f32.mxu0 %vm10448_vm1, %v15521_v28 }
 0x489   :  { %2964 = vmatprep.subr.mxu1 %v15700_v30  ;;  %9290 = vmatprep.subr.mxu0 %v15521_v28  ;;  %v15716_v30 = vld [vmem:[#allocation33_spill] sm:$0xff] }
 0x506   :  { %v2411_v23 = vpop.f32.mrf.mxu1  ;;  %v2482_v24 = vpop.f32.mrf.mxu0 }
 0x507   :  { %v2675_v39 = vadd.f32 %v2411_v23, %v15701_v25  ;;  %v2689_v54 = vadd.f32 %v15703_v46, %v2482_v24  ;;  %v15717_v23 = vld [vmem:[#allocation70_spill] sm:$0xff] }
 0x508   :  { %v9219_v40 = vpop.f32.mrf.mxu0  ;;  %v2413_v35 = vpop.f32.mrf.mxu1  ;;  %v15718_v25 = vld [vmem:[#allocation34_spill] sm:$0xff] }
 0x509   :  { %v8269_v26 = vmul.f32 -1.442695, %v2675_v39  ;;  %v2682_v31 = vadd.f32 %v2413_v35, %v15702_v43  ;;  %v15719_v39 = vld [vmem:[#allocation35_spill] sm:$0xff]  ;;  %v15720_v40 = vld [vmem:[#allocation74_spill] sm:$0xff]  ;;  %v15725_v43 = vld [vmem:[#allocation80_spill] sm:$0xff] }
 0x50a   :  { %v15724_v35 = vld [vmem:[#allocation79_spill] sm:$0xff] }
 0x50b   :  { %10115 = vpow2.f32 %v8269_v26  ;;  %v8270_v47 = vmul.f32 -1.442695, %v2682_v31  ;;  %v15721_v26 = vld [vmem:[#allocation36_spill] sm:$0xff]  ;;  %v15726_v31 = vld [vmem:[#allocation81_spill] sm:$0xff] }
 0x50d   :  { %10117 = vpow2.f32 %v8270_v47  ;;  %v15727_v47 = vld [vmem:[#allocation82_spill] sm:$0xff] }
 0x518   :  { %v10116_v51 = vpop.eup %10115 }
 0x519   :  { %v2679_v0 = vadd.f32 1.0, %v10116_v51  ;;  %v15728_v51 = vld [vmem:[#allocation83_spill] sm:$0xff] }
 0x51a   :  { %v10118_v19 = vpop.eup %10117 }
 0x51b   :  { %10119 = vrcp.f32 %v2679_v0  ;;  %v2686_v49 = vadd.f32 1.0, %v10118_v19  ;;  %v15729_v0 = vld [vmem:[#allocation84_spill] sm:$0xff]  ;;  %v15730_v19 = vld [vmem:[#allocation85_spill] sm:$0xff] }
 0x51d   :  { %10121 = vrcp.f32 %v2686_v49  ;;  %v15731_v49 = vld [vmem:[#allocation86_spill] sm:$0xff] }
 0x527   :  { %v2600_v12 = vpop.f32.mrf.mxu1  ;;  %v2671_v63 = vpop.f32.mrf.mxu0 }
 0x528   :  { %v10120_v41 = vpop.eup %10119  ;;  %v2697_v57 = vadd.f32 %v2600_v12, %v15704_v55  ;;  %v15733_v12 = vld [vmem:[#allocation88_spill] sm:$0xff]  ;;  %v15735_v55 = vld [vmem:[#allocation90_spill] sm:$0xff] }
 0x529   :  { %v2690_v58 = vmul.f32 %v10120_v41, %v2689_v54  ;;  %v9254_v59 = vpop.f32.mrf.mxu0  ;;  %v2602_v3 = vpop.f32.mrf.mxu1  ;;  %v15732_v54 = vld [vmem:[#allocation87_spill] sm:$0xff] }
 0x52a   :  { %v8271_v61 = vmul.f32 -1.442695, %v2697_v57  ;;  %v2704_v20 = vadd.f32 %v2602_v3, %v15706_v62  ;;  %v10122_v44 = vpop.eup %10121  ;;  %v15736_v57 = vld [vmem:[#allocation91_spill] sm:$0xff]  ;;  %v15738_v59 = vld [vmem:[#allocation93_spill] sm:$0xff] }
 0x52b   :  { %v2691_v37 = vadd.f32 %v2690_v58, %v15705_v8  ;;  %v2693_v9 = vsub.f32 1.0, %v10122_v44  ;;  %v2695_v53 = vmul.f32 %v10122_v44, %v12010_v42  ;;  %v15737_v58 = vld [vmem:[#allocation92_spill] sm:$0xff]  ;;  %v15739_v8 = vld [vmem:[#allocation94_spill] sm:$0xff]  ;;  %v15740_v3 = vld [vmem:[#allocation95_spill] sm:$0xff] }
 0x52c   :  { %10123 = vpow2.f32 %v8271_v61  ;;  %v8272_v1 = vmul.f32 -1.442695, %v2704_v20  ;;  %v12360_v44 = vld [vmem:[#allocation5 + $0x278] sm:$0xff] }
 0x52d   :  { %10125 = vtanh.f32 %v2691_v37 }
 0x52e   :  { %10127 = vpow2.f32 %v8272_v1  ;;  %v12356_v1 = vld [vmem:[#allocation5 + $0x2b0] sm:$0xff] }
 0x539   :  { %v10124_v45 = vpop.eup %10123 }
 0x53a   :  { %v10126_v60 = vpop.eup %10125  ;;  %v2701_v22 = vadd.f32 1.0, %v10124_v45  ;;  %v12364_v45 = vld [vmem:[#allocation5 + $0x270] sm:$0xff] }
 0x53b   :  { %v2694_v16 = vmul.f32 %v10126_v60, %v2693_v9  ;;  %v10128_v36 = vpop.eup %10127  ;;  %v12366_v9 = vld [vmem:[#allocation5 + $0x280] sm:$0xff]  ;;  %v12370_v60 = vld [vmem:[#allocation5 + $0x248] sm:$0xff] }
 0x53c   :  { %10129 = vrcp.f32 %v2701_v22  ;;  %v12374_v22 = vld [vmem:[#allocation5 + $0x240] sm:$0xff] }
 0x53d   :  { %v12261_v21 = vadd.f32 %v2695_v53, %v2694_v16  ;;  %v12376_v16 = vld [vmem:[#allocation5 + $0x250] sm:$0xff]  ;;  %v12380_v53 = vld [vmem:[#allocation5 + $0x218] sm:$0xff] }
 0x53f   :  { %15707 = vst [vmem:[#allocation97_spill] sm:$0xff] %v12261_v21  ;;  %2840 = vmatmul.mubr.f32.vlgmr.msra.gmra.mxu1 %v12261_v21  ;;  %9288 = vmatmul.mubr.f32.vlgmr.msra.gmra.mxu0 %v12261_v21 }
 0x540   :  { %2965 = vmatpush1.msra.mxu1 %v12012_v32  ;;  %9291 = vmatpush3.msra.mxu0 %v12014_v14  ;;  %v15708_v32 = vld [vmem:[#allocation75_spill] sm:$0xff]  ;;  %v2708_v14 = vadd.f32 1.0, %v10128_v36  ;;  %v12384_v36 = vld [vmem:[#allocation5 + $0x210] sm:$0xff] }
 0x541   :  { %2966 = vmatprep.subr.mxu1 %v12016_v15  ;;  %9292 = vmatprep.subr.mxu0 %v15521_v28  ;;  %v15709_v15 = vld [vmem:[#allocation56_spill] sm:$0xff] }
 0x542   :  { %2967 = vmatpush1.msra.mxu1 %v12020_v27  ;;  %9293 = vmatpush3.msra.mxu0 %v12022_v7  ;;  %v15711_v27 = vld [vmem:[#allocation73_spill] sm:$0xff]  ;;  %v15712_v7 = vld [vmem:[#allocation32_spill] sm:$0xff]  ;;  %10131 = vrcp.f32 %v2708_v14 }
 0x543   :  { %2968 = vmatprep.subr.mxu1 %v12026_v4  ;;  %9294 = vmatprep.subr.mxu0 %v15521_v28  ;;  %v2711_v4 = vadd.f32 %v15712_v7, %v2671_v63  ;;  %v15734_v63 = vld [vmem:[#allocation89_spill] sm:$0xff]  ;;  %v12390_v14 = vld [vmem:[#allocation5 + $0x1e8] sm:$0xff] }
 0x544   :  { %2969 = vmatpush1.msra.mxu1 %v12030_v48  ;;  %9295 = vmatpush3.msra.mxu0 %v12032_v2  ;;  %v15714_v48 = vld [vmem:[#allocation30_spill] sm:$0xff] }
 0x545   :  { %2970 = vmatprep.subr.mxu1 %v15708_v32  ;;  %9296 = vmatprep.subr.mxu0 %v15521_v28  ;;  %v12386_v32 = vld [vmem:[#allocation5 + $0x220] sm:$0xff] }
 0x546   :  { %2971 = vmatpush1.msra.mxu1 %v15709_v15  ;;  %9297 = vmatpush3.msra.mxu0 %v15710_v52  ;;  %v12394_v15 = vld [vmem:[#allocation5 + $0x1e0] sm:$0xff]  ;;  %v12396_v52 = vld [vmem:[#allocation5 + $0x1f0] sm:$0xff] }
 0x547   :  { %2972 = vmatprep.subr.mxu1 %v15711_v27  ;;  %9298 = vmatprep.subr.mxu0 %v15521_v28  ;;  %v12400_v27 = vld [vmem:[#allocation5 + $0x1b8] sm:$0xff] }
 0x548   :  { %2973 = vmatpush1.msra.mxu1 %v15713_v29  ;;  %9299 = vmatpush3.msra.mxu0 %v15714_v48  ;;  %v12406_v29 = vld [vmem:[#allocation5 + $0x1c0] sm:$0xff]  ;;  %v12410_v48 = vld [vmem:[#allocation5 + $0x188] sm:$0xff] }
 0x549   :  { %v10130_v2 = vpop.eup %10129  ;;  %2974 = vmatprep.subr.mxu1 %v15715_v6  ;;  %9300 = vmatprep.subr.mxu0 %v15521_v28  ;;  %v12416_v6 = vld [vmem:[#allocation5 + $0x190] sm:$0xff] }
 0x54a   :  { %v2712_v18 = vmul.f32 %v10130_v2, %v2711_v4  ;;  %2975 = vmatpush1.msra.mxu1 %v12060_v11  ;;  %9301 = vmatpush3.msra.mxu0 %v12062_v56  ;;  %v15722_v11 = vld [vmem:[#allocation77_spill] sm:$0xff]  ;;  %v15723_v56 = vld [vmem:[#allocation78_spill] sm:$0xff]  ;;  %v12414_v2 = vld [vmem:[#allocation5 + $0x180] sm:$0xff] }
 0x54b   :  { %2976 = vmatprep.subr.mxu1 %v15716_v30  ;;  %9302 = vmatprep.subr.mxu0 %v15521_v28  ;;  %v12404_v4 = vld [vmem:[#allocation5 + $0x1b0] sm:$0xff] }
 0x54c   :  { %v2713_v24 = vadd.f32 %v2712_v18, %v15717_v23  ;;  %2977 = vmatpush1.msra.mxu1 %v15718_v25  ;;  %9303 = vmatpush3.msra.mxu0 %v15719_v39  ;;  %v12420_v18 = vld [vmem:[#allocation5 + $0x158] sm:$0xff]  ;;  %v12424_v30 = vld [vmem:[#allocation5 + $0x150] sm:$0xff]  ;;  %v12426_v23 = vld [vmem:[#allocation5 + $0x160] sm:$0xff] }
 0x54d   :  { %2978 = vmatprep.subr.mxu1 %v15720_v40  ;;  %9304 = vmatprep.subr.mxu0 %v15521_v28  ;;  %v12434_v25 = vld [vmem:[#allocation5 + $0x120] sm:$0xff]  ;;  %v12436_v39 = vld [vmem:[#allocation5 + $0x130] sm:$0xff]  ;;  %v12440_v40 = vld [vmem:[#allocation5 + $0xf8] sm:$0xff] }
 0x54e   :  { %10133 = vtanh.f32 %v2713_v24  ;;  %2979 = vmatpush1.msra.mxu1 %v15721_v26  ;;  %9305 = vmatpush3.msra.mxu0 %v15722_v11  ;;  %v12430_v24 = vld [vmem:[#allocation5 + $0x128] sm:$0xff]  ;;  %v12444_v26 = vld [vmem:[#allocation5 + $0xf0] sm:$0xff]  ;;  %v12446_v11 = vld [vmem:[#allocation5 + $0x100] sm:$0xff] }
 0x54f   :  { %2980 = vmatprep.subr.mxu1 %v15723_v56  ;;  %9306 = vmatprep.subr.mxu0 %v15521_v28  ;;  %v10132_v41 = vpop.eup %10131  ;;  %v12450_v56 = vld [vmem:[#allocation5 + $0xc8] sm:$0xff] }
 0x550   :  { %2981 = vmatpush1.msra.mxu1 %v15724_v35  ;;  %9307 = vmatpush3.msra.mxu0 %v15725_v43  ;;  %v2715_v61 = vsub.f32 1.0, %v10132_v41  ;;  %v2717_v20 = vmul.f32 %v10132_v41, %v12178_v13  ;;  %v12454_v35 = vld [vmem:[#allocation5 + $0xc0] sm:$0xff]  ;;  %v12456_v43 = vld [vmem:[#allocation5 + $0xd0] sm:$0xff]  ;;  %v12490_v41 = vld [vmem:[#allocation5 + $0x8] sm:$0xff] }
 0x551   :  { %2982 = vmatprep.subr.mxu1 %v15726_v31  ;;  %9308 = vmatprep.subr.mxu0 %v15521_v28  ;;  %v12460_v31 = vld [vmem:[#allocation5 + $0x98] sm:$0xff]  ;;  %15748 = vst [vmem:[#allocation18_spill] sm:$0xff] %v12490_v41 }
 0x552   :  { %2983 = vmatpush1.msra.mxu1 %v15727_v47  ;;  %9309 = vmatpush3.msra.mxu0 %v15728_v51  ;;  %v12464_v47 = vld [vmem:[#allocation5 + $0x90] sm:$0xff]  ;;  %v12466_v51 = vld [vmem:[#allocation5 + $0xa0] sm:$0xff] }
 0x553   :  { %2984 = vmatprep.subr.mxu1 %v15729_v0  ;;  %9310 = vmatprep.subr.mxu0 %v15521_v28  ;;  %15741 = vst [vmem:[#allocation98_spill] sm:$0xff] %v12466_v51  ;;  %v12470_v0 = vld [vmem:[#allocation5 + $0x68] sm:$0xff] }
 0x554   :  { %2985 = vmatpush1.msra.mxu1 %v15730_v19  ;;  %9311 = vmatpush3.msra.mxu0 %v15731_v49  ;;  %15742 = vst [vmem:[#allocation45_spill] sm:$0xff] %v12470_v0  ;;  %v12474_v19 = vld [vmem:[#allocation5 + $0x60] sm:$0xff]  ;;  %v12476_v49 = vld [vmem:[#allocation5 + $0x70] sm:$0xff] }
 0x555   :  { %2986 = vmatprep.subr.mxu1 %v15732_v54  ;;  %9312 = vmatprep.subr.mxu0 %v15521_v28  ;;  %15743 = vst [vmem:[#allocation47_spill] sm:$0xff] %v12474_v19  ;;  %15744 = vst [vmem:[#allocation52_spill] sm:$0xff] %v12476_v49  ;;  %v12480_v54 = vld [vmem:[#allocation5 + $0x38] sm:$0xff] }
 0x556   :  { %2987 = vmatpush1.msra.mxu1 %v15733_v12  ;;  %9313 = vmatpush3.msra.mxu0 %v15734_v63  ;;  %15745 = vst [vmem:[#allocation46_spill] sm:$0xff] %v12480_v54  ;;  %v12484_v12 = vld [vmem:[#allocation5 + $0x30] sm:$0xff]  ;;  %v12486_v63 = vld [vmem:[#allocation5 + $0x40] sm:$0xff] }
 0x557   :  { %2988 = vmatprep.subr.mxu1 %v15735_v55  ;;  %9314 = vmatprep.subr.mxu0 %v15521_v28  ;;  %15746 = vst [vmem:[#allocation71_spill] sm:$0xff] %v12484_v12  ;;  %15747 = vst [vmem:[#allocation72_spill] sm:$0xff] %v12486_v63  ;;  %v12494_v55 = vld [vmem:[#allocation5] sm:$0xff] }
 0x558   :  { %2989 = vmatpush1.msra.mxu1 %v15736_v57  ;;  %9315 = vmatpush3.msra.mxu0 %v15737_v58  ;;  %15749 = vst [vmem:[#allocation19_spill] sm:$0xff] %v12494_v55  ;;  %v12496_v57 = vld [vmem:[#allocation5 + $0x10] sm:$0xff] }
 0x559   :  { %2990 = vmatprep.subr.mxu1 %v15738_v59  ;;  %9316 = vmatprep.subr.mxu0 %v15521_v28  ;;  %15750 = vst [vmem:[#allocation20_spill] sm:$0xff] %v12496_v57  ;;  %v12500_v58 = vld [vmem:[#allocation5 + $0x2f0] sm:$0xff] }
 0x55a   :  { %2991 = vmatpush1.msra.mxu1 %v15739_v8  ;;  %9317 = vmatpush3.msra.mxu0 %v12149_v5  ;;  %15751 = vst [vmem:[#allocation21_spill] sm:$0xff] %v12500_v58  ;;  %v15752_v8 = vld [vmem:[#allocation53_spill] sm:$0xff] }
 0x55b   :  { %v10134_v37 = vpop.eup %10133  ;;  %2992 = vmatprep.subr.mxu1 %v15740_v3  ;;  %9318 = vmatprep.subr.mxu0 %v15521_v28 }
 0x55c   :  { %2993 = vmatpush1.msra.mxu1 %v12157_v10  ;;  %9319 = vmatpush3.msra.mxu0 %v12159_v50  ;;  %v2716_v62 = vmul.f32 %v10134_v37, %v2715_v61  ;;  %v12344_v10 = vld [vmem:[#allocation5 + $0x2d0] sm:$0xff]  ;;  %v12350_v50 = vld [vmem:[#allocation5 + $0x2a8] sm:$0xff] }
 0x55d   :  { %2994 = vmatprep.subr.mxu1 %v12163_v38  ;;  %9320 = vmatprep.subr.mxu0 %v15521_v28  ;;  %v12341_v38 = vld [vmem:[#allocation5 + $0x2d8] sm:$0xff] }
 0x55e   :  { %2995 = vmatpush1.msra.mxu1 %v12167_v17  ;;  %3028 = vmatprep.mubr.f32.mxu1 %v15521_v28  ;;  %v12330_v5 = vadd.f32 %v2717_v20, %v2716_v62  ;;  %v12354_v17 = vld [vmem:[#allocation5 + $0x2a0] sm:$0xff] }
 0x55f   :  { %9321 = vmatpush3.msra.mxu0 %v12171_v34  ;;  %9322 = vmatprep.mubr.msk.f32.mxu0 %vm10448_vm1, %v15521_v28  ;;  %v12346_v34 = vld [vmem:[#allocation5 + $0x2e0] sm:$0xff] }
 0x560   :  { %3029 = vmatmul.mubr.f32.vlgmr.msra.gmra.mxu1 %v12330_v5  ;;  %9323 = vmatmul.mubr.f32.vlgmr.msra.gmra.mxu0 %v12330_v5 }
 0x561   :  { %9325 = vmatprep.subr.mxu0 %v15521_v28  ;;  %3269 = vmatprep.mubr.f32.mxu1 %v15521_v28 }
 0x562   :  { %9357 = vmatprep.mubr.msk.f32.mxu0 %vm10448_vm1, %v15521_v28  ;;  %3205 = vmatprep.subr.mxu1 %v12341_v38 }
 0x563   :  { %3206 = vmatpush1.msra.mxu1 %v12344_v10  ;;  %9326 = vmatpush3.msra.mxu0 %v12346_v34 }
 0x564   :  { %3207 = vmatprep.subr.mxu1 %v12350_v50  ;;  %9327 = vmatprep.subr.mxu0 %v15521_v28 }
 0x565   :  { %3208 = vmatpush1.msra.mxu1 %v12354_v17  ;;  %9328 = vmatpush3.msra.mxu0 %v12356_v1 }
 0x566   :  { %3209 = vmatprep.subr.mxu1 %v12360_v44  ;;  %9329 = vmatprep.subr.mxu0 %v15521_v28 }
 0x567   :  { %3210 = vmatpush1.msra.mxu1 %v12364_v45  ;;  %9330 = vmatpush3.msra.mxu0 %v12366_v9 }
 0x568   :  { %3211 = vmatprep.subr.mxu1 %v12370_v60  ;;  %9331 = vmatprep.subr.mxu0 %v15521_v28 }
 0x569   :  { %3212 = vmatpush1.msra.mxu1 %v12374_v22  ;;  %9332 = vmatpush3.msra.mxu0 %v12376_v16 }
 0x56a   :  { %3213 = vmatprep.subr.mxu1 %v12380_v53  ;;  %9333 = vmatprep.subr.mxu0 %v15521_v28 }
 0x56b   :  { %3214 = vmatpush1.msra.mxu1 %v12384_v36  ;;  %9334 = vmatpush3.msra.mxu0 %v12386_v32 }
 0x56c   :  { %3215 = vmatprep.subr.mxu1 %v12390_v14  ;;  %9335 = vmatprep.subr.mxu0 %v15521_v28 }
 0x56d   :  { %3216 = vmatpush1.msra.mxu1 %v12394_v15  ;;  %9336 = vmatpush3.msra.mxu0 %v12396_v52 }
 0x56e   :  { %3217 = vmatprep.subr.mxu1 %v12400_v27  ;;  %9337 = vmatprep.subr.mxu0 %v15521_v28 }
 0x56f   :  { %3218 = vmatpush1.msra.mxu1 %v12404_v4  ;;  %9338 = vmatpush3.msra.mxu0 %v12406_v29 }
 0x570   :  { %3219 = vmatprep.subr.mxu1 %v12410_v48  ;;  %9339 = vmatprep.subr.mxu0 %v15521_v28 }
 0x571   :  { %3220 = vmatpush1.msra.mxu1 %v12414_v2  ;;  %9340 = vmatpush3.msra.mxu0 %v12416_v6 }
 0x572   :  { %3221 = vmatprep.subr.mxu1 %v12420_v18  ;;  %9341 = vmatprep.subr.mxu0 %v15521_v28 }
 0x573   :  { %3222 = vmatpush1.msra.mxu1 %v12424_v30  ;;  %9342 = vmatpush3.msra.mxu0 %v12426_v23 }
 0x574   :  { %3223 = vmatprep.subr.mxu1 %v12430_v24  ;;  %9343 = vmatprep.subr.mxu0 %v15521_v28 }
 0x575   :  { %3224 = vmatpush1.msra.mxu1 %v12434_v25  ;;  %9344 = vmatpush3.msra.mxu0 %v12436_v39 }
 0x576   :  { %3225 = vmatprep.subr.mxu1 %v12440_v40  ;;  %9345 = vmatprep.subr.mxu0 %v15521_v28 }
 0x577   :  { %3226 = vmatpush1.msra.mxu1 %v12444_v26  ;;  %9346 = vmatpush3.msra.mxu0 %v12446_v11 }
 0x578   :  { %3227 = vmatprep.subr.mxu1 %v12450_v56  ;;  %9347 = vmatprep.subr.mxu0 %v15521_v28 }
 0x579   :  { %3228 = vmatpush1.msra.mxu1 %v12454_v35  ;;  %9348 = vmatpush3.msra.mxu0 %v12456_v43 }
 0x57a   :  { %3229 = vmatprep.subr.mxu1 %v12460_v31  ;;  %9349 = vmatprep.subr.mxu0 %v15521_v28 }
 0x57b   :  { %3230 = vmatpush1.msra.mxu1 %v12464_v47  ;;  %9350 = vmatpush3.msra.mxu0 %v12466_v51 }
 0x57c   :  { %3231 = vmatprep.subr.mxu1 %v12470_v0  ;;  %9351 = vmatprep.subr.mxu0 %v15521_v28 }
 0x57d   :  { %3232 = vmatpush1.msra.mxu1 %v12474_v19  ;;  %9352 = vmatpush3.msra.mxu0 %v12476_v49  ;;  %v15754_v19 = vld [vmem:[#allocation44_spill] sm:$0xff] }
 0x57e   :  { %3233 = vmatprep.subr.mxu1 %v12480_v54  ;;  %9353 = vmatprep.subr.mxu0 %v15521_v28 }
 0x57f   :  { %3234 = vmatpush1.msra.mxu1 %v12484_v12  ;;  %9354 = vmatpush3.msra.mxu0 %v12486_v63 }
 0x580   :  { %3235 = vmatprep.subr.mxu1 %v12490_v41  ;;  %9355 = vmatprep.subr.mxu0 %v15521_v28 }
 0x581   :  { %3236 = vmatpush1.msra.mxu1 %v12494_v55  ;;  %9356 = vmatpush3.msra.mxu0 %v12496_v57 }
 0x582   :  { %3394 = vmatprep.subr.mxu1 %v12500_v58  ;;  %9360 = vmatprep.subr.mxu0 %v15521_v28 }
 0x5ff   :  { %v2841_v59 = vpop.f32.mrf.mxu1  ;;  %v2912_v61 = vpop.f32.mrf.mxu0 }
 0x600   :  { %v3105_v37 = vadd.f32 %v2841_v59, %v15752_v8  ;;  %v3119_v58 = vadd.f32 %v15703_v46, %v2912_v61 }
 0x601   :  { %v9289_v3 = vpop.f32.mrf.mxu0  ;;  %v2843_v20 = vpop.f32.mrf.mxu1 }
 0x602   :  { %v8273_v62 = vmul.f32 -1.442695, %v3105_v37  ;;  %v3112_v13 = vadd.f32 %v2843_v20, %v15753_v33 }
 0x604   :  { %10135 = vpow2.f32 %v8273_v62  ;;  %v8274_v42 = vmul.f32 -1.442695, %v3112_v13  ;;  %v15755_v62 = vld [vmem:[#allocation54_spill] sm:$0xff] }
 0x606   :  { %10137 = vpow2.f32 %v8274_v42  ;;  %v15756_v42 = vld [vmem:[#allocation67_spill] sm:$0xff] }
 0x611   :  { %v10136_v55 = vpop.eup %10135 }
 0x612   :  { %v3109_v57 = vadd.f32 1.0, %v10136_v55 }
 0x613   :  { %v10138_v41 = vpop.eup %10137 }
 0x614   :  { %10139 = vrcp.f32 %v3109_v57  ;;  %v3116_v63 = vadd.f32 1.0, %v10138_v41 }
 0x616   :  { %10141 = vrcp.f32 %v3116_v63  ;;  %v12515_v63 = vld [vmem:[#allocation5 + $0x2f8] sm:$0xff] }
 0x620   :  { %v3030_v12 = vpop.f32.mrf.mxu1  ;;  %v3101_v54 = vpop.f32.mrf.mxu0 }
 0x621   :  { %v10140_v49 = vpop.eup %10139  ;;  %v3127_v59 = vadd.f32 %v3030_v12, %v15754_v19  ;;  %v12513_v12 = vld [vmem:[#allocation5 + $0x2e8] sm:$0xff] }
 0x622   :  { %v3120_v8 = vmul.f32 %v10140_v49, %v3119_v58  ;;  %v9324_v37 = vpop.f32.mrf.mxu0  ;;  %v3032_v13 = vpop.f32.mrf.mxu1  ;;  %v12517_v58 = vld [vmem:[#allocation5 + $0x2c0] sm:$0xff] }
 0x623   :  { %v8275_v3 = vmul.f32 -1.442695, %v3127_v59  ;;  %v3134_v55 = vadd.f32 %v3032_v13, %v15756_v42  ;;  %v10142_v41 = vpop.eup %10141  ;;  %v12521_v59 = vld [vmem:[#allocation5 + $0x2b8] sm:$0xff]  ;;  %v12543_v13 = vld [vmem:[#allocation5 + $0x268] sm:$0xff]  ;;  %v12547_v42 = vld [vmem:[#allocation5 + $0x230] sm:$0xff] }
 0x624   :  { %v3121_v33 = vadd.f32 %v3120_v8, %v15755_v62  ;;  %v3123_v61 = vsub.f32 1.0, %v10142_v41  ;;  %v3125_v19 = vmul.f32 %v10142_v41, %v12261_v21  ;;  %v12523_v8 = vld [vmem:[#allocation5 + $0x2c8] sm:$0xff]  ;;  %v12533_v37 = vld [vmem:[#allocation5 + $0x298] sm:$0xff]  ;;  %15758 = vst [vmem:[#allocation23_spill] sm:$0xff] %v12543_v13  ;;  %15759 = vst [vmem:[#allocation24_spill] sm:$0xff] %v12547_v42 }
 0x625   :  { %10143 = vpow2.f32 %v8275_v3  ;;  %v8276_v57 = vmul.f32 -1.442695, %v3134_v55  ;;  %v12537_v3 = vld [vmem:[#allocation5 + $0x260] sm:$0xff]  ;;  %v12551_v55 = vld [vmem:[#allocation5 + $0x228] sm:$0xff] }
 0x626   :  { %10145 = vtanh.f32 %v3121_v33  ;;  %v12541_v33 = vld [vmem:[#allocation5 + $0x258] sm:$0xff]  ;;  %15760 = vst [vmem:[#allocation25_spill] sm:$0xff] %v12551_v55 }
 0x627   :  { %10147 = vpow2.f32 %v8276_v57  ;;  %15757 = vst [vmem:[#allocation22_spill] sm:$0xff] %v12541_v33  ;;  %v12553_v57 = vld [vmem:[#allocation5 + $0x238] sm:$0xff] }
 0x628   :  { %15761 = vst [vmem:[#allocation26_spill] sm:$0xff] %v12553_v57 }
 0x632   :  { %v10144_v46 = vpop.eup %10143 }
 0x633   :  { %v10146_v20 = vpop.eup %10145  ;;  %v3131_v0 = vadd.f32 1.0, %v10144_v46  ;;  %v12557_v46 = vld [vmem:[#allocation5 + $0x200] sm:$0xff] }
 0x634   :  { %v3124_v51 = vmul.f32 %v10146_v20, %v3123_v61  ;;  %v10148_v62 = vpop.eup %10147  ;;  %15762 = vst [vmem:[#allocation27_spill] sm:$0xff] %v12557_v46  ;;  %v12561_v61 = vld [vmem:[#allocation5 + $0x1f8] sm:$0xff]  ;;  %v12563_v20 = vld [vmem:[#allocation5 + $0x208] sm:$0xff] }
 0x635   :  { %10149 = vrcp.f32 %v3131_v0  ;;  %v12531_v0 = vld [vmem:[#allocation5 + $0x288] sm:$0xff]  ;;  %v3138_v41 = vadd.f32 1.0, %v10148_v62  ;;  %v12568_v62 = vld [vmem:[#allocation5 + $0x1d0] sm:$0xff] }
 0x636   :  { %v12511_v49 = vadd.f32 %v3125_v19, %v3124_v51  ;;  %v12527_v51 = vld [vmem:[#allocation5 + $0x290] sm:$0xff]  ;;  %v3141_v19 = vadd.f32 %v15712_v7, %v3101_v54  ;;  %15763 = vst [vmem:[#allocation49_spill] sm:$0xff] %v12568_v62  ;;  %v12578_v7 = vld [vmem:[#allocation5 + $0x1a0] sm:$0xff]  ;;  %v12582_v54 = vld [vmem:[#allocation5 + $0x198] sm:$0xff] }
 0x637   :  { %10151 = vrcp.f32 %v3138_v41  ;;  %15766 = vst [vmem:[#allocation48_spill] sm:$0xff] %v12578_v7  ;;  %15767 = vst [vmem:[#allocation50_spill] sm:$0xff] %v12582_v54  ;;  %v12593_v41 = vld [vmem:[#allocation5 + $0x168] sm:$0xff] }
 0x638   :  { %3270 = vmatmul.mubr.f32.vlgmr.msra.gmra.mxu1 %v12511_v49  ;;  %9358 = vmatmul.mubr.f32.vlgmr.msra.gmra.mxu0 %v12511_v49  ;;  %15771 = vst [vmem:[#allocation56_spill] sm:$0xff] %v12593_v41 }
 0x639   :  { %3395 = vmatpush1.msra.mxu1 %v12513_v12  ;;  %9361 = vmatpush3.msra.mxu0 %v12515_v63 }
 0x63a   :  { %3396 = vmatprep.subr.mxu1 %v12517_v58  ;;  %9362 = vmatprep.subr.mxu0 %v15521_v28 }
 0x63b   :  { %3397 = vmatpush1.msra.mxu1 %v12521_v59  ;;  %9363 = vmatpush3.msra.mxu0 %v12523_v8 }
 0x63c   :  { %3398 = vmatprep.subr.mxu1 %v12527_v51  ;;  %9364 = vmatprep.subr.mxu0 %v15521_v28 }
 0x63d   :  { %3399 = vmatpush1.msra.mxu1 %v12531_v0  ;;  %9365 = vmatpush3.msra.mxu0 %v12533_v37 }
 0x63e   :  { %3400 = vmatprep.subr.mxu1 %v12537_v3  ;;  %9366 = vmatprep.subr.mxu0 %v15521_v28 }
 0x63f   :  { %3401 = vmatpush1.msra.mxu1 %v12541_v33  ;;  %9367 = vmatpush3.msra.mxu0 %v12543_v13  ;;  %v12574_v13 = vld [vmem:[#allocation5 + $0x1d8] sm:$0xff] }
 0x640   :  { %3402 = vmatprep.subr.mxu1 %v12547_v42  ;;  %9368 = vmatprep.subr.mxu0 %v15521_v28  ;;  %v12572_v42 = vld [vmem:[#allocation5 + $0x1c8] sm:$0xff]  ;;  %15765 = vst [vmem:[#allocation40_spill] sm:$0xff] %v12574_v13 }
 0x641   :  { %3403 = vmatpush1.msra.mxu1 %v12551_v55  ;;  %9369 = vmatpush3.msra.mxu0 %v12553_v57  ;;  %15764 = vst [vmem:[#allocation51_spill] sm:$0xff] %v12572_v42  ;;  %v15769_v57 = vld [vmem:[#allocation68_spill] sm:$0xff] }
 0x642   :  { %v10150_v21 = vpop.eup %10149  ;;  %3404 = vmatprep.subr.mxu1 %v12557_v46  ;;  %9370 = vmatprep.subr.mxu0 %v15521_v28  ;;  %v12584_v46 = vld [vmem:[#allocation5 + $0x1a8] sm:$0xff] }
 0x643   :  { %v3142_v33 = vmul.f32 %v10150_v21, %v3141_v19  ;;  %3405 = vmatpush1.msra.mxu1 %v12561_v61  ;;  %9371 = vmatpush3.msra.mxu0 %v12563_v20  ;;  %15768 = vst [vmem:[#allocation69_spill] sm:$0xff] %v12584_v46  ;;  %v12589_v21 = vld [vmem:[#allocation5 + $0x170] sm:$0xff]  ;;  %v12595_v19 = vld [vmem:[#allocation5 + $0x178] sm:$0xff] }
 0x644   :  { %3406 = vmatprep.subr.mxu1 %v12568_v62  ;;  %9372 = vmatprep.subr.mxu0 %v15521_v28  ;;  %15770 = vst [vmem:[#allocation75_spill] sm:$0xff] %v12589_v21  ;;  %15772 = vst [vmem:[#allocation42_spill] sm:$0xff] %v12595_v19 }
 0x645   :  { %v3143_v55 = vadd.f32 %v3142_v33, %v15769_v57  ;;  %3407 = vmatpush1.msra.mxu1 %v12572_v42  ;;  %9373 = vmatpush3.msra.mxu0 %v12574_v13  ;;  %v12599_v33 = vld [vmem:[#allocation5 + $0x140] sm:$0xff]  ;;  %v12603_v57 = vld [vmem:[#allocation5 + $0x138] sm:$0xff]  ;;  %v12609_v13 = vld [vmem:[#allocation5 + $0x110] sm:$0xff] }
 0x646   :  { %3408 = vmatprep.subr.mxu1 %v12578_v7  ;;  %9374 = vmatprep.subr.mxu0 %v15521_v28  ;;  %15773 = vst [vmem:[#allocation73_spill] sm:$0xff] %v12599_v33  ;;  %15774 = vst [vmem:[#allocation32_spill] sm:$0xff] %v12603_v57  ;;  %v12605_v7 = vld [vmem:[#allocation5 + $0x148] sm:$0xff]  ;;  %v12659_v42 = vld [vmem:[#allocation5 + $0x20] sm:$0xff] }
 0x647   :  { %10153 = vtanh.f32 %v3143_v55  ;;  %3409 = vmatpush1.msra.mxu1 %v12582_v54  ;;  %9375 = vmatpush3.msra.mxu0 %v12584_v46  ;;  %15775 = vst [vmem:[#allocation29_spill] sm:$0xff] %v12605_v7  ;;  %15776 = vst [vmem:[#allocation30_spill] sm:$0xff] %v12609_v13  ;;  %v12613_v55 = vld [vmem:[#allocation5 + $0x108] sm:$0xff]  ;;  %v12615_v46 = vld [vmem:[#allocation5 + $0x118] sm:$0xff]  ;;  %v10152_v54 = vpop.eup %10151 }
 0x648   :  { %3410 = vmatprep.subr.mxu1 %v12589_v21  ;;  %9376 = vmatprep.subr.mxu0 %v15521_v28  ;;  %15777 = vst [vmem:[#allocation31_spill] sm:$0xff] %v12613_v55  ;;  %15778 = vst [vmem:[#allocation33_spill] sm:$0xff] %v12615_v46  ;;  %v12619_v21 = vld [vmem:[#allocation5 + $0xe0] sm:$0xff] }
 0x649   :  { %3411 = vmatpush1.msra.mxu1 %v12593_v41  ;;  %9377 = vmatpush3.msra.mxu0 %v12595_v19  ;;  %15779 = vst [vmem:[#allocation70_spill] sm:$0xff] %v12619_v21  ;;  %v12623_v19 = vld [vmem:[#allocation5 + $0xd8] sm:$0xff]  ;;  %v12625_v41 = vld [vmem:[#allocation5 + $0xe8] sm:$0xff] }
 0x64a   :  { %3412 = vmatprep.subr.mxu1 %v12599_v33  ;;  %9378 = vmatprep.subr.mxu0 %v15521_v28  ;;  %15780 = vst [vmem:[#allocation34_spill] sm:$0xff] %v12623_v19  ;;  %15781 = vst [vmem:[#allocation35_spill] sm:$0xff] %v12625_v41  ;;  %v12629_v33 = vld [vmem:[#allocation5 + $0xb0] sm:$0xff] }
 0x64b   :  { %3413 = vmatpush1.msra.mxu1 %v12603_v57  ;;  %9379 = vmatpush3.msra.mxu0 %v12605_v7  ;;  %15782 = vst [vmem:[#allocation74_spill] sm:$0xff] %v12629_v33  ;;  %v12633_v7 = vld [vmem:[#allocation5 + $0xa8] sm:$0xff]  ;;  %v12635_v57 = vld [vmem:[#allocation5 + $0xb8] sm:$0xff] }
 0x64c   :  { %3414 = vmatprep.subr.mxu1 %v12609_v13  ;;  %9380 = vmatprep.subr.mxu0 %v15521_v28  ;;  %15783 = vst [vmem:[#allocation36_spill] sm:$0xff] %v12633_v7  ;;  %15784 = vst [vmem:[#allocation77_spill] sm:$0xff] %v12635_v57  ;;  %v12639_v13 = vld [vmem:[#allocation5 + $0x80] sm:$0xff] }
 0x64d   :  { %3415 = vmatpush1.msra.mxu1 %v12613_v55  ;;  %9381 = vmatpush3.msra.mxu0 %v12615_v46  ;;  %15785 = vst [vmem:[#allocation78_spill] sm:$0xff] %v12639_v13  ;;  %v12643_v46 = vld [vmem:[#allocation5 + $0x78] sm:$0xff]  ;;  %v12649_v55 = vld [vmem:[#allocation5 + $0x50] sm:$0xff] }
 0x64e   :  { %3416 = vmatprep.subr.mxu1 %v12619_v21  ;;  %9382 = vmatprep.subr.mxu0 %v15521_v28  ;;  %15786 = vst [vmem:[#allocation79_spill] sm:$0xff] %v12643_v46  ;;  %v12645_v21 = vld [vmem:[#allocation5 + $0x88] sm:$0xff]  ;;  %15787 = vst [vmem:[#allocation80_spill] sm:$0xff] %v12649_v55 }
 0x64f   :  { %3417 = vmatpush1.msra.mxu1 %v12623_v19  ;;  %9383 = vmatpush3.msra.mxu0 %v12625_v41  ;;  %v12653_v41 = vld [vmem:[#allocation5 + $0x48] sm:$0xff]  ;;  %v12655_v19 = vld [vmem:[#allocation5 + $0x58] sm:$0xff] }
 0x650   :  { %3418 = vmatprep.subr.mxu1 %v12629_v33  ;;  %9384 = vmatprep.subr.mxu0 %v15521_v28  ;;  %v3145_v33 = vsub.f32 1.0, %v10152_v54 }
 0x651   :  { %3419 = vmatpush1.msra.mxu1 %v12633_v7  ;;  %9385 = vmatpush3.msra.mxu0 %v12635_v57  ;;  %v12663_v57 = vld [vmem:[#allocation5 + $0x18] sm:$0xff] }
 0x652   :  { %3420 = vmatprep.subr.mxu1 %v12639_v13  ;;  %9386 = vmatprep.subr.mxu0 %v15521_v28  ;;  %v12667_v13 = vld [vmem:[#allocation5 + $0x28] sm:$0xff] }
 0x653   :  { %3421 = vmatpush1.msra.mxu1 %v12643_v46  ;;  %9387 = vmatpush3.msra.mxu0 %v12645_v21  ;;  %v3147_v46 = vmul.f32 %v10152_v54, %v12330_v5 }
 0x654   :  { %v10154_v7 = vpop.eup %10153  ;;  %3422 = vmatprep.subr.mxu1 %v12649_v55  ;;  %9388 = vmatprep.subr.mxu0 %v15521_v28 }
 0x655   :  { %3423 = vmatpush1.msra.mxu1 %v12653_v41  ;;  %9389 = vmatpush3.msra.mxu0 %v12655_v19  ;;  %v3146_v62 = vmul.f32 %v10154_v7, %v3145_v33  ;;  %v15804_v7 = vld [vmem:[#allocation65_spill] sm:$0xff] }
 0x656   :  { %3424 = vmatprep.subr.mxu1 %v12659_v42  ;;  %9390 = vmatprep.subr.mxu0 %v15521_v28 }
 0x657   :  { %3425 = vmatpush1.msra.mxu1 %v12663_v57  ;;  %3458 = vmatprep.mubr.f32.mxu1 %v15521_v28  ;;  %v12674_v55 = vadd.f32 %v3147_v46, %v3146_v62 }
 0x658   :  { %9391 = vmatpush3.msra.mxu0 %v12667_v13  ;;  %9392 = vmatprep.mubr.msk.f32.mxu0 %vm10448_vm1, %v15521_v28 }
 0x659   :  { %3459 = vmatmul.mubr.f32.vlgmr.msra.gmra.mxu1 %v12674_v55  ;;  %9393 = vmatmul.mubr.f32.vlgmr.msra.gmra.mxu0 %v12674_v55 }
 0x65a   :  { %3635 = vmatprep.subr.mxu1 %v12341_v38  ;;  %9395 = vmatprep.subr.mxu0 %v15521_v28  ;;  %v15788_v38 = vld [vmem:[#allocation98_spill] sm:$0xff] }
 0x65b   :  { %3636 = vmatpush1.msra.mxu1 %v12344_v10  ;;  %9396 = vmatpush3.msra.mxu0 %v12346_v34  ;;  %v15789_v10 = vld [vmem:[#allocation45_spill] sm:$0xff]  ;;  %v15790_v34 = vld [vmem:[#allocation47_spill] sm:$0xff] }
 0x65c   :  { %3637 = vmatprep.subr.mxu1 %v12350_v50  ;;  %9397 = vmatprep.subr.mxu0 %v15521_v28  ;;  %v15791_v50 = vld [vmem:[#allocation52_spill] sm:$0xff] }
 0x65d   :  { %3638 = vmatpush1.msra.mxu1 %v12354_v17  ;;  %9398 = vmatpush3.msra.mxu0 %v12356_v1  ;;  %v15792_v17 = vld [vmem:[#allocation46_spill] sm:$0xff]  ;;  %v15793_v1 = vld [vmem:[#allocation71_spill] sm:$0xff] }
 0x65e   :  { %3639 = vmatprep.subr.mxu1 %v12360_v44  ;;  %9399 = vmatprep.subr.mxu0 %v15521_v28  ;;  %v15794_v44 = vld [vmem:[#allocation72_spill] sm:$0xff] }
 0x65f   :  { %3640 = vmatpush1.msra.mxu1 %v12364_v45  ;;  %9400 = vmatpush3.msra.mxu0 %v12366_v9  ;;  %v15795_v45 = vld [vmem:[#allocation18_spill] sm:$0xff]  ;;  %v15796_v9 = vld [vmem:[#allocation19_spill] sm:$0xff] }
 0x660   :  { %3641 = vmatprep.subr.mxu1 %v12370_v60  ;;  %9401 = vmatprep.subr.mxu0 %v15521_v28  ;;  %v15797_v60 = vld [vmem:[#allocation20_spill] sm:$0xff] }
 0x661   :  { %3642 = vmatpush1.msra.mxu1 %v12374_v22  ;;  %9402 = vmatpush3.msra.mxu0 %v12376_v16  ;;  %v15798_v22 = vld [vmem:[#allocation21_spill] sm:$0xff] }
 0x662   :  { %3643 = vmatprep.subr.mxu1 %v12380_v53  ;;  %9403 = vmatprep.subr.mxu0 %v15521_v28 }
 0x663   :  { %3644 = vmatpush1.msra.mxu1 %v12384_v36  ;;  %9404 = vmatpush3.msra.mxu0 %v12386_v32  ;;  %v15799_v36 = vld [vmem:[#allocation57_spill] sm:$0xff] }
 0x664   :  { %3645 = vmatprep.subr.mxu1 %v12390_v14  ;;  %9405 = vmatprep.subr.mxu0 %v15521_v28 }
 0x665   :  { %3646 = vmatpush1.msra.mxu1 %v12394_v15  ;;  %9406 = vmatpush3.msra.mxu0 %v12396_v52 }
 0x666   :  { %3647 = vmatprep.subr.mxu1 %v12400_v27  ;;  %9407 = vmatprep.subr.mxu0 %v15521_v28  ;;  %v15800_v27 = vld [vmem:[#allocation59_spill] sm:$0xff] }
 0x667   :  { %3648 = vmatpush1.msra.mxu1 %v12404_v4  ;;  %9408 = vmatpush3.msra.mxu0 %v12406_v29 }
 0x668   :  { %3649 = vmatprep.subr.mxu1 %v12410_v48  ;;  %9409 = vmatprep.subr.mxu0 %v15521_v28 }
 0x669   :  { %3650 = vmatpush1.msra.mxu1 %v12414_v2  ;;  %9410 = vmatpush3.msra.mxu0 %v12416_v6 }
 0x66a   :  { %3651 = vmatprep.subr.mxu1 %v12420_v18  ;;  %9411 = vmatprep.subr.mxu0 %v15521_v28 }
 0x66b   :  { %3652 = vmatpush1.msra.mxu1 %v12424_v30  ;;  %9412 = vmatpush3.msra.mxu0 %v12426_v23  ;;  %v15801_v30 = vld [vmem:[#allocation41_spill] sm:$0xff]  ;;  %v15802_v23 = vld [vmem:[#allocation39_spill] sm:$0xff] }
 0x66c   :  { %3653 = vmatprep.subr.mxu1 %v12430_v24  ;;  %9413 = vmatprep.subr.mxu0 %v15521_v28  ;;  %v358_v24 = vadd.f32 %v15802_v23, %v15801_v30  ;;  %v15826_v23 = vld [vmem:[#allocation33_spill] sm:$0xff] }
 0x66d   :  { %3654 = vmatpush1.msra.mxu1 %v12434_v25  ;;  %9414 = vmatpush3.msra.mxu0 %v12436_v39  ;;  %v12757_v25 = vld [vmem:[%s15089_s4] ss:$0 sm:$0xff] }
 0x66e   :  { %3655 = vmatprep.subr.mxu1 %v12440_v40  ;;  %9415 = vmatprep.subr.mxu0 %v15521_v28 }
 0x66f   :  { %3656 = vmatpush1.msra.mxu1 %v12444_v26  ;;  %9416 = vmatpush3.msra.mxu0 %v12446_v11 }
 0x670   :  { %3657 = vmatprep.subr.mxu1 %v12450_v56  ;;  %9417 = vmatprep.subr.mxu0 %v15521_v28 }
 0x671   :  { %3658 = vmatpush1.msra.mxu1 %v12454_v35  ;;  %9418 = vmatpush3.msra.mxu0 %v12456_v43 }
 0x672   :  { %3659 = vmatprep.subr.mxu1 %v12460_v31  ;;  %9419 = vmatprep.subr.mxu0 %v15521_v28 }
 0x673   :  { %3660 = vmatpush1.msra.mxu1 %v12464_v47  ;;  %9420 = vmatpush3.msra.mxu0 %v15788_v38  ;;  %v15803_v47 = vld [vmem:[#allocation58_spill] sm:$0xff] }
 0x674   :  { %3661 = vmatprep.subr.mxu1 %v15789_v10  ;;  %9421 = vmatprep.subr.mxu0 %v15521_v28 }
 0x675   :  { %3662 = vmatpush1.msra.mxu1 %v15790_v34  ;;  %9422 = vmatpush3.msra.mxu0 %v15791_v50 }
 0x676   :  { %3663 = vmatprep.subr.mxu1 %v15792_v17  ;;  %9423 = vmatprep.subr.mxu0 %v15521_v28 }
 0x677   :  { %3664 = vmatpush1.msra.mxu1 %v15793_v1  ;;  %9424 = vmatpush3.msra.mxu0 %v15794_v44 }
 0x678   :  { %3665 = vmatprep.subr.mxu1 %v15795_v45  ;;  %9425 = vmatprep.subr.mxu0 %v15521_v28 }
 0x679   :  { %3666 = vmatpush1.msra.mxu1 %v15796_v9  ;;  %3699 = vmatprep.mubr.f32.mxu1 %v15521_v28 }
 0x67a   :  { %9426 = vmatpush3.msra.mxu0 %v15797_v60  ;;  %9427 = vmatprep.mubr.msk.f32.mxu0 %vm10448_vm1, %v15521_v28  ;;  %v15810_v60 = vld [vmem:[#allocation27_spill] sm:$0xff] }
 0x67b   :  { %3824 = vmatprep.subr.mxu1 %v15798_v22  ;;  %9430 = vmatprep.subr.mxu0 %v15521_v28 }
 0x6f8   :  { %v3271_v16 = vpop.f32.mrf.mxu1  ;;  %v3342_v53 = vpop.f32.mrf.mxu0 }
 0x6f9   :  { %v3535_v32 = vadd.f32 %v3271_v16, %v15799_v36  ;;  %v3549_v39 = vadd.f32 %v12757_v25, %v3342_v53  ;;  %v15811_v16 = vld [vmem:[#allocation49_spill] sm:$0xff]  ;;  %v15812_v53 = vld [vmem:[#allocation66_spill] sm:$0xff] }
 0x6fa   :  { %v9359_v14 = vpop.f32.mrf.mxu0  ;;  %v3273_v52 = vpop.f32.mrf.mxu1 }
 0x6fb   :  { %v8277_v15 = vmul.f32 -1.442695, %v3535_v32  ;;  %v3542_v4 = vadd.f32 %v3273_v52, %v15800_v27  ;;  %v15813_v32 = vld [vmem:[#allocation51_spill] sm:$0xff]  ;;  %v15814_v14 = vld [vmem:[#allocation40_spill] sm:$0xff]  ;;  %v15816_v52 = vld [vmem:[#allocation50_spill] sm:$0xff] }
 0x6fc   :  { %v15819_v27 = vld [vmem:[#allocation56_spill] sm:$0xff] }
 0x6fd   :  { %10155 = vpow2.f32 %v8277_v15  ;;  %v8278_v29 = vmul.f32 -1.442695, %v3542_v4  ;;  %v15815_v15 = vld [vmem:[#allocation48_spill] sm:$0xff]  ;;  %v15820_v4 = vld [vmem:[#allocation42_spill] sm:$0xff] }
 0x6ff   :  { %10157 = vpow2.f32 %v8278_v29  ;;  %v15821_v29 = vld [vmem:[#allocation73_spill] sm:$0xff] }
 0x70a   :  { %v10156_v48 = vpop.eup %10155 }
 0x70b   :  { %v3539_v2 = vadd.f32 1.0, %v10156_v48  ;;  %v15822_v48 = vld [vmem:[#allocation32_spill] sm:$0xff] }
 0x70c   :  { %v10158_v6 = vpop.eup %10157 }
 0x70d   :  { %10159 = vrcp.f32 %v3539_v2  ;;  %v3546_v18 = vadd.f32 1.0, %v10158_v6  ;;  %v15823_v2 = vld [vmem:[#allocation29_spill] sm:$0xff]  ;;  %v15824_v6 = vld [vmem:[#allocation30_spill] sm:$0xff] }
 0x70f   :  { %10161 = vrcp.f32 %v3546_v18  ;;  %v15825_v18 = vld [vmem:[#allocation31_spill] sm:$0xff] }
 0x719   :  { %v3460_v40 = vpop.f32.mrf.mxu1  ;;  %v3531_v26 = vpop.f32.mrf.mxu0 }
 0x71a   :  { %v10160_v11 = vpop.eup %10159  ;;  %v3557_v56 = vadd.f32 %v3460_v40, %v358_v24  ;;  %v15827_v24 = vld [vmem:[#allocation70_spill] sm:$0xff]  ;;  %v15829_v40 = vld [vmem:[#allocation35_spill] sm:$0xff] }
 0x71b   :  { %v3550_v35 = vmul.f32 %v10160_v11, %v3549_v39  ;;  %v9394_v43 = vpop.f32.mrf.mxu0  ;;  %v3462_v62 = vpop.f32.mrf.mxu1  ;;  %v15828_v39 = vld [vmem:[#allocation34_spill] sm:$0xff] }
 0x71c   :  { %v8279_v31 = vmul.f32 -1.442695, %v3557_v56  ;;  %v3564_v54 = vadd.f32 %v3462_v62, %v15804_v7  ;;  %v10162_v38 = vpop.eup %10161  ;;  %v15830_v11 = vld [vmem:[#allocation74_spill] sm:$0xff]  ;;  %v15831_v56 = vld [vmem:[#allocation36_spill] sm:$0xff] }
 0x71d   :  { %v3551_v46 = vadd.f32 %v3550_v35, %v15803_v47  ;;  %v3553_v34 = vsub.f32 1.0, %v10162_v38  ;;  %v3555_v44 = vmul.f32 %v10162_v38, %v12511_v49  ;;  %v15832_v35 = vld [vmem:[#allocation77_spill] sm:$0xff]  ;;  %v15833_v43 = vld [vmem:[#allocation78_spill] sm:$0xff]  ;;  %v15834_v47 = vld [vmem:[#allocation79_spill] sm:$0xff] }
 0x71e   :  { %10163 = vpow2.f32 %v8279_v31  ;;  %v8280_v33 = vmul.f32 -1.442695, %v3564_v54  ;;  %v15835_v62 = vld [vmem:[#allocation80_spill] sm:$0xff]  ;;  %v4114_v38 = vld [vmem:[#allocation7 + $0x2b8] sm:$0xff] }
 0x71f   :  { %10165 = vtanh.f32 %v3551_v46 }
 0x720   :  { %10167 = vpow2.f32 %v8280_v33  ;;  %v4119_v33 = vld [vmem:[#allocation7 + $0x2e0] sm:$0xff] }
 0x72b   :  { %v10164_v10 = vpop.eup %10163 }
 0x72c   :  { %v10166_v50 = vpop.eup %10165  ;;  %v3561_v17 = vadd.f32 1.0, %v10164_v10  ;;  %v4113_v10 = vld [vmem:[#allocation7 + $0x2b0] sm:$0xff] }
 0x72d   :  { %v3554_v1 = vmul.f32 %v10166_v50, %v3553_v34  ;;  %v10168_v9 = vpop.eup %10167  ;;  %v4106_v34 = vld [vmem:[#allocation7 + $0x278] sm:$0xff]  ;;  %v4108_v50 = vld [vmem:[#allocation7 + $0x288] sm:$0xff] }
 0x72e   :  { %10169 = vrcp.f32 %v3561_v17  ;;  %v4105_v17 = vld [vmem:[#allocation7 + $0x270] sm:$0xff] }
 0x72f   :  { %v12763_v45 = vadd.f32 %v3555_v44, %v3554_v1  ;;  %v4107_v1 = vld [vmem:[#allocation7 + $0x280] sm:$0xff]  ;;  %v4100_v44 = vld [vmem:[#allocation7 + $0x248] sm:$0xff] }
 0x731   :  { %3700 = vmatmul.mubr.f32.vlgmr.msra.gmra.mxu1 %v12763_v45  ;;  %9428 = vmatmul.mubr.f32.vlgmr.msra.gmra.mxu0 %v12763_v45 }
 0x732   :  { %3825 = vmatpush1.msra.mxu1 %v12513_v12  ;;  %9431 = vmatpush3.msra.mxu0 %v12515_v63  ;;  %v3568_v12 = vadd.f32 1.0, %v10168_v9  ;;  %v15805_v63 = vld [vmem:[#allocation22_spill] sm:$0xff] }
 0x733   :  { %3826 = vmatprep.subr.mxu1 %v12517_v58  ;;  %9432 = vmatprep.subr.mxu0 %v15521_v28  ;;  %v15806_v58 = vld [vmem:[#allocation23_spill] sm:$0xff]  ;;  %v4102_v9 = vld [vmem:[#allocation7 + $0x258] sm:$0xff] }
 0x734   :  { %3827 = vmatpush1.msra.mxu1 %v12521_v59  ;;  %9433 = vmatpush3.msra.mxu0 %v12523_v8  ;;  %v15807_v59 = vld [vmem:[#allocation24_spill] sm:$0xff]  ;;  %v12786_v8 = vld [vmem:[%s15089_s4 + $0x1] ss:$0 sm:$0xff]  ;;  %10171 = vrcp.f32 %v3568_v12 }
 0x735   :  { %3828 = vmatprep.subr.mxu1 %v12527_v51  ;;  %9434 = vmatprep.subr.mxu0 %v15521_v28  ;;  %v3571_v51 = vadd.f32 %v12786_v8, %v3531_v26  ;;  %v4099_v12 = vld [vmem:[#allocation7 + $0x240] sm:$0xff] }
 0x736   :  { %3829 = vmatpush1.msra.mxu1 %v12531_v0  ;;  %9435 = vmatpush3.msra.mxu0 %v12533_v37  ;;  %v15808_v0 = vld [vmem:[#allocation25_spill] sm:$0xff]  ;;  %v15809_v37 = vld [vmem:[#allocation26_spill] sm:$0xff] }
 0x737   :  { %3830 = vmatprep.subr.mxu1 %v12537_v3  ;;  %9436 = vmatprep.subr.mxu0 %v15521_v28 }
 0x738   :  { %3831 = vmatpush1.msra.mxu1 %v15805_v63  ;;  %9437 = vmatpush3.msra.mxu0 %v15806_v58  ;;  %v4101_v63 = vld [vmem:[#allocation7 + $0x250] sm:$0xff]  ;;  %v4094_v58 = vld [vmem:[#allocation7 + $0x218] sm:$0xff] }
 0x739   :  { %3832 = vmatprep.subr.mxu1 %v15807_v59  ;;  %9438 = vmatprep.subr.mxu0 %v15521_v28  ;;  %v4096_v59 = vld [vmem:[#allocation7 + $0x228] sm:$0xff] }
 0x73a   :  { %3833 = vmatpush1.msra.mxu1 %v15808_v0  ;;  %9439 = vmatpush3.msra.mxu0 %v15809_v37  ;;  %v4095_v0 = vld [vmem:[#allocation7 + $0x220] sm:$0xff]  ;;  %v4088_v37 = vld [vmem:[#allocation7 + $0x1e8] sm:$0xff] }
 0x73b   :  { %v10170_v3 = vpop.eup %10169  ;;  %3834 = vmatprep.subr.mxu1 %v15810_v60  ;;  %9440 = vmatprep.subr.mxu0 %v15521_v28  ;;  %v4087_v60 = vld [vmem:[#allocation7 + $0x1e0] sm:$0xff] }
 0x73c   :  { %v3572_v22 = vmul.f32 %v10170_v3, %v3571_v51  ;;  %3835 = vmatpush1.msra.mxu1 %v12561_v61  ;;  %9441 = vmatpush3.msra.mxu0 %v12563_v20  ;;  %v15817_v61 = vld [vmem:[#allocation69_spill] sm:$0xff]  ;;  %v15818_v20 = vld [vmem:[#allocation75_spill] sm:$0xff]  ;;  %v4090_v3 = vld [vmem:[#allocation7 + $0x1f8] sm:$0xff] }
 0x73d   :  { %3836 = vmatprep.subr.mxu1 %v15811_v16  ;;  %9442 = vmatprep.subr.mxu0 %v15521_v28  ;;  %v4093_v51 = vld [vmem:[#allocation7 + $0x210] sm:$0xff]  ;;  %v4082_v16 = vld [vmem:[#allocation7 + $0x1b8] sm:$0xff] }
 0x73e   :  { %v3573_v36 = vadd.f32 %v3572_v22, %v15812_v53  ;;  %3837 = vmatpush1.msra.mxu1 %v15813_v32  ;;  %9443 = vmatpush3.msra.mxu0 %v15814_v14  ;;  %v4089_v22 = vld [vmem:[#allocation7 + $0x1f0] sm:$0xff]  ;;  %v4084_v53 = vld [vmem:[#allocation7 + $0x1c8] sm:$0xff]  ;;  %v4083_v32 = vld [vmem:[#allocation7 + $0x1c0] sm:$0xff] }
 0x73f   :  { %3838 = vmatprep.subr.mxu1 %v15815_v15  ;;  %9444 = vmatprep.subr.mxu0 %v15521_v28  ;;  %v4076_v14 = vld [vmem:[#allocation7 + $0x188] sm:$0xff]  ;;  %v4078_v15 = vld [vmem:[#allocation7 + $0x198] sm:$0xff] }
 0x740   :  { %10173 = vtanh.f32 %v3573_v36  ;;  %3839 = vmatpush1.msra.mxu1 %v15816_v52  ;;  %9445 = vmatpush3.msra.mxu0 %v15817_v61  ;;  %v4081_v36 = vld [vmem:[#allocation7 + $0x1b0] sm:$0xff]  ;;  %v4075_v52 = vld [vmem:[#allocation7 + $0x180] sm:$0xff] }
 0x741   :  { %3840 = vmatprep.subr.mxu1 %v15818_v20  ;;  %9446 = vmatprep.subr.mxu0 %v15521_v28  ;;  %v10172_v26 = vpop.eup %10171  ;;  %v4077_v61 = vld [vmem:[#allocation7 + $0x190] sm:$0xff]  ;;  %v4070_v20 = vld [vmem:[#allocation7 + $0x158] sm:$0xff] }
 0x742   :  { %3841 = vmatpush1.msra.mxu1 %v15819_v27  ;;  %9447 = vmatpush3.msra.mxu0 %v15820_v4  ;;  %v3575_v31 = vsub.f32 1.0, %v10172_v26  ;;  %v3577_v54 = vmul.f32 %v10172_v26, %v12674_v55  ;;  %v4072_v27 = vld [vmem:[#allocation7 + $0x168] sm:$0xff]  ;;  %v4069_v4 = vld [vmem:[#allocation7 + $0x150] sm:$0xff] }
 0x743   :  { %3842 = vmatprep.subr.mxu1 %v15821_v29  ;;  %9448 = vmatprep.subr.mxu0 %v15521_v28  ;;  %v4071_v29 = vld [vmem:[#allocation7 + $0x160] sm:$0xff]  ;;  %v4052_v26 = vld [vmem:[#allocation7 + $0xc8] sm:$0xff] }
 0x744   :  { %3843 = vmatpush1.msra.mxu1 %v15822_v48  ;;  %9449 = vmatpush3.msra.mxu0 %v15823_v2  ;;  %v4064_v48 = vld [vmem:[#allocation7 + $0x128] sm:$0xff]  ;;  %v4066_v2 = vld [vmem:[#allocation7 + $0x138] sm:$0xff] }
 0x745   :  { %3844 = vmatprep.subr.mxu1 %v15824_v6  ;;  %9450 = vmatprep.subr.mxu0 %v15521_v28  ;;  %v4063_v6 = vld [vmem:[#allocation7 + $0x120] sm:$0xff] }
 0x746   :  { %3845 = vmatpush1.msra.mxu1 %v15825_v18  ;;  %9451 = vmatpush3.msra.mxu0 %v15826_v23  ;;  %v4065_v18 = vld [vmem:[#allocation7 + $0x130] sm:$0xff]  ;;  %v4058_v23 = vld [vmem:[#allocation7 + $0xf8] sm:$0xff] }
 0x747   :  { %3846 = vmatprep.subr.mxu1 %v15827_v24  ;;  %9452 = vmatprep.subr.mxu0 %v15521_v28  ;;  %v4060_v24 = vld [vmem:[#allocation7 + $0x108] sm:$0xff] }
 0x748   :  { %3847 = vmatpush1.msra.mxu1 %v15828_v39  ;;  %9453 = vmatpush3.msra.mxu0 %v15829_v40  ;;  %v4057_v39 = vld [vmem:[#allocation7 + $0xf0] sm:$0xff]  ;;  %v4059_v40 = vld [vmem:[#allocation7 + $0x100] sm:$0xff] }
 0x749   :  { %3848 = vmatprep.subr.mxu1 %v15830_v11  ;;  %9454 = vmatprep.subr.mxu0 %v15521_v28  ;;  %v4054_v11 = vld [vmem:[#allocation7 + $0xd8] sm:$0xff] }
 0x74a   :  { %3849 = vmatpush1.msra.mxu1 %v15831_v56  ;;  %9455 = vmatpush3.msra.mxu0 %v15832_v35  ;;  %v4051_v56 = vld [vmem:[#allocation7 + $0xc0] sm:$0xff]  ;;  %v4053_v35 = vld [vmem:[#allocation7 + $0xd0] sm:$0xff] }
 0x74b   :  { %3850 = vmatprep.subr.mxu1 %v15833_v43  ;;  %9456 = vmatprep.subr.mxu0 %v15521_v28  ;;  %v4046_v43 = vld [vmem:[#allocation7 + $0x98] sm:$0xff] }
 0x74c   :  { %3851 = vmatpush1.msra.mxu1 %v15834_v47  ;;  %9457 = vmatpush3.msra.mxu0 %v12645_v21  ;;  %v4045_v47 = vld [vmem:[#allocation7 + $0x90] sm:$0xff] }
 0x74d   :  { %v10174_v46 = vpop.eup %10173  ;;  %3852 = vmatprep.subr.mxu1 %v15835_v62  ;;  %9458 = vmatprep.subr.mxu0 %v15521_v28  ;;  %v4040_v62 = vld [vmem:[#allocation7 + $0x68] sm:$0xff] }
 0x74e   :  { %3853 = vmatpush1.msra.mxu1 %v12653_v41  ;;  %9459 = vmatpush3.msra.mxu0 %v12655_v19  ;;  %v3576_v7 = vmul.f32 %v10174_v46, %v3575_v31  ;;  %v4118_v41 = vld [vmem:[#allocation7 + $0x2d8] sm:$0xff]  ;;  %v4120_v19 = vld [vmem:[#allocation7 + $0x2e8] sm:$0xff]  ;;  %v4047_v46 = vld [vmem:[#allocation7 + $0xa0] sm:$0xff] }
 0x74f   :  { %3854 = vmatprep.subr.mxu1 %v12659_v42  ;;  %9460 = vmatprep.subr.mxu0 %v15521_v28  ;;  %v4117_v42 = vld [vmem:[#allocation7 + $0x2d0] sm:$0xff]  ;;  %v4048_v31 = vld [vmem:[#allocation7 + $0xa8] sm:$0xff] }
 0x750   :  { %3855 = vmatpush1.msra.mxu1 %v12663_v57  ;;  %3888 = vmatprep.mubr.f32.mxu1 %v15521_v28  ;;  %v12837_v21 = vadd.f32 %v3577_v54, %v3576_v7  ;;  %v4112_v57 = vld [vmem:[#allocation7 + $0x2a8] sm:$0xff]  ;;  %v4042_v7 = vld [vmem:[#allocation7 + $0x78] sm:$0xff]  ;;  %v4039_v54 = vld [vmem:[#allocation7 + $0x60] sm:$0xff] }
 0x751   :  { %9461 = vmatpush3.msra.mxu0 %v12667_v13  ;;  %9462 = vmatprep.mubr.msk.f32.mxu0 %vm10448_vm1, %v15521_v28  ;;  %v4111_v13 = vld [vmem:[#allocation7 + $0x2a0] sm:$0xff] }
 0x752   :  { %3889 = vmatmul.mubr.f32.vlgmr.msra.gmra.mxu1 %v12837_v21  ;;  %9463 = vmatmul.mubr.f32.vlgmr.msra.gmra.mxu0 %v12837_v21 }
 0x753   :  { %4251 = vmatprep.subr.mxu1 %v4118_v41  ;;  %4364 = vmatprep.subr.mxu0 %v4120_v19  ;;  %v4041_v41 = vld [vmem:[#allocation7 + $0x70] sm:$0xff]  ;;  %v4034_v19 = vld [vmem:[#allocation7 + $0x38] sm:$0xff] }
 0x754   :  { %4252 = vmatpush1.msra.mxu1 %v4117_v42  ;;  %4365 = vmatpush1.msra.mxu0 %v4119_v33  ;;  %v4036_v42 = vld [vmem:[#allocation7 + $0x48] sm:$0xff]  ;;  %v4033_v33 = vld [vmem:[#allocation7 + $0x30] sm:$0xff] }
 0x755   :  { %4253 = vmatprep.subr.mxu1 %v4112_v57  ;;  %4366 = vmatprep.subr.mxu0 %v4114_v38  ;;  %v4035_v57 = vld [vmem:[#allocation7 + $0x40] sm:$0xff]  ;;  %v4028_v38 = vld [vmem:[#allocation7 + $0x8] sm:$0xff] }
 0x756   :  { %4254 = vmatpush1.msra.mxu1 %v4111_v13  ;;  %4367 = vmatpush1.msra.mxu0 %v4113_v10  ;;  %v4030_v13 = vld [vmem:[#allocation7 + $0x18] sm:$0xff]  ;;  %v4027_v10 = vld [vmem:[#allocation7] sm:$0xff] }
 0x757   :  { %4255 = vmatprep.subr.mxu1 %v4106_v34  ;;  %4368 = vmatprep.subr.mxu0 %v4108_v50  ;;  %v4029_v34 = vld [vmem:[#allocation7 + $0x10] sm:$0xff]  ;;  %v4214_v50 = vld [vmem:[#allocation7 + $0x5d8] sm:$0xff] }
 0x758   :  { %4256 = vmatpush1.msra.mxu1 %v4105_v17  ;;  %4369 = vmatpush1.msra.mxu0 %v4107_v1  ;;  %v4216_v17 = vld [vmem:[#allocation7 + $0x5e8] sm:$0xff]  ;;  %v4213_v1 = vld [vmem:[#allocation7 + $0x5d0] sm:$0xff] }
 0x759   :  { %4257 = vmatprep.subr.mxu1 %v4100_v44  ;;  %4370 = vmatprep.subr.mxu0 %v4102_v9  ;;  %v4215_v44 = vld [vmem:[#allocation7 + $0x5e0] sm:$0xff]  ;;  %v4208_v9 = vld [vmem:[#allocation7 + $0x5a8] sm:$0xff] }
 0x75a   :  { %4258 = vmatpush1.msra.mxu1 %v4099_v12  ;;  %4371 = vmatpush1.msra.mxu0 %v4101_v63  ;;  %v4210_v12 = vld [vmem:[#allocation7 + $0x5b8] sm:$0xff]  ;;  %v4207_v63 = vld [vmem:[#allocation7 + $0x5a0] sm:$0xff] }
 0x75b   :  { %4259 = vmatprep.subr.mxu1 %v4094_v58  ;;  %4372 = vmatprep.subr.mxu0 %v4096_v59  ;;  %v4209_v58 = vld [vmem:[#allocation7 + $0x5b0] sm:$0xff]  ;;  %v4202_v59 = vld [vmem:[#allocation7 + $0x578] sm:$0xff] }
 0x75c   :  { %4260 = vmatpush1.msra.mxu1 %v4093_v51  ;;  %4373 = vmatpush1.msra.mxu0 %v4095_v0  ;;  %v4204_v51 = vld [vmem:[#allocation7 + $0x588] sm:$0xff]  ;;  %v4201_v0 = vld [vmem:[#allocation7 + $0x570] sm:$0xff] }
 0x75d   :  { %4261 = vmatprep.subr.mxu1 %v4088_v37  ;;  %4374 = vmatprep.subr.mxu0 %v4090_v3  ;;  %v4203_v37 = vld [vmem:[#allocation7 + $0x580] sm:$0xff]  ;;  %v4196_v3 = vld [vmem:[#allocation7 + $0x548] sm:$0xff] }
 0x75e   :  { %4262 = vmatpush1.msra.mxu1 %v4087_v60  ;;  %4375 = vmatpush1.msra.mxu0 %v4089_v22  ;;  %v4198_v60 = vld [vmem:[#allocation7 + $0x558] sm:$0xff]  ;;  %v4195_v22 = vld [vmem:[#allocation7 + $0x540] sm:$0xff] }
 0x75f   :  { %4263 = vmatprep.subr.mxu1 %v4082_v16  ;;  %4376 = vmatprep.subr.mxu0 %v4084_v53  ;;  %v4197_v16 = vld [vmem:[#allocation7 + $0x550] sm:$0xff]  ;;  %v4190_v53 = vld [vmem:[#allocation7 + $0x518] sm:$0xff] }
 0x760   :  { %4264 = vmatpush1.msra.mxu1 %v4081_v36  ;;  %4377 = vmatpush1.msra.mxu0 %v4083_v32  ;;  %v4192_v36 = vld [vmem:[#allocation7 + $0x528] sm:$0xff]  ;;  %v4189_v32 = vld [vmem:[#allocation7 + $0x510] sm:$0xff] }
 0x761   :  { %4265 = vmatprep.subr.mxu1 %v4076_v14  ;;  %4378 = vmatprep.subr.mxu0 %v4078_v15  ;;  %v4191_v14 = vld [vmem:[#allocation7 + $0x520] sm:$0xff]  ;;  %v4184_v15 = vld [vmem:[#allocation7 + $0x4e8] sm:$0xff] }
 0x762   :  { %4266 = vmatpush1.msra.mxu1 %v4075_v52  ;;  %4379 = vmatpush1.msra.mxu0 %v4077_v61  ;;  %v4186_v52 = vld [vmem:[#allocation7 + $0x4f8] sm:$0xff]  ;;  %v4183_v61 = vld [vmem:[#allocation7 + $0x4e0] sm:$0xff] }
 0x763   :  { %4267 = vmatprep.subr.mxu1 %v4070_v20  ;;  %4380 = vmatprep.subr.mxu0 %v4072_v27  ;;  %v4185_v20 = vld [vmem:[#allocation7 + $0x4f0] sm:$0xff]  ;;  %v4178_v27 = vld [vmem:[#allocation7 + $0x4b8] sm:$0xff] }
 0x764   :  { %4268 = vmatpush1.msra.mxu1 %v4069_v4  ;;  %4381 = vmatpush1.msra.mxu0 %v4071_v29  ;;  %v4180_v4 = vld [vmem:[#allocation7 + $0x4c8] sm:$0xff]  ;;  %v4177_v29 = vld [vmem:[#allocation7 + $0x4b0] sm:$0xff] }
 0x765   :  { %4269 = vmatprep.subr.mxu1 %v4064_v48  ;;  %4382 = vmatprep.subr.mxu0 %v4066_v2  ;;  %v4179_v48 = vld [vmem:[#allocation7 + $0x4c0] sm:$0xff]  ;;  %v4172_v2 = vld [vmem:[#allocation7 + $0x488] sm:$0xff] }
 0x766   :  { %4270 = vmatpush1.msra.mxu1 %v4063_v6  ;;  %4383 = vmatpush1.msra.mxu0 %v4065_v18  ;;  %v4174_v6 = vld [vmem:[#allocation7 + $0x498] sm:$0xff]  ;;  %v4171_v18 = vld [vmem:[#allocation7 + $0x480] sm:$0xff] }
 0x767   :  { %4271 = vmatprep.subr.mxu1 %v4058_v23  ;;  %4384 = vmatprep.subr.mxu0 %v4060_v24  ;;  %v4173_v23 = vld [vmem:[#allocation7 + $0x490] sm:$0xff]  ;;  %v4166_v24 = vld [vmem:[#allocation7 + $0x458] sm:$0xff] }
 0x768   :  { %4272 = vmatpush1.msra.mxu1 %v4057_v39  ;;  %4385 = vmatpush1.msra.mxu0 %v4059_v40  ;;  %v4168_v39 = vld [vmem:[#allocation7 + $0x468] sm:$0xff]  ;;  %v4165_v40 = vld [vmem:[#allocation7 + $0x450] sm:$0xff] }
 0x769   :  { %4273 = vmatprep.subr.mxu1 %v4052_v26  ;;  %4386 = vmatprep.subr.mxu0 %v4054_v11  ;;  %v4167_v26 = vld [vmem:[#allocation7 + $0x460] sm:$0xff]  ;;  %v4160_v11 = vld [vmem:[#allocation7 + $0x428] sm:$0xff] }
 0x76a   :  { %4274 = vmatpush1.msra.mxu1 %v4051_v56  ;;  %4387 = vmatpush1.msra.mxu0 %v4053_v35  ;;  %v4162_v56 = vld [vmem:[#allocation7 + $0x438] sm:$0xff]  ;;  %v4159_v35 = vld [vmem:[#allocation7 + $0x420] sm:$0xff] }
 0x76b   :  { %4275 = vmatprep.subr.mxu1 %v4046_v43  ;;  %4388 = vmatprep.subr.mxu0 %v4048_v31  ;;  %v4161_v43 = vld [vmem:[#allocation7 + $0x430] sm:$0xff]  ;;  %v4154_v31 = vld [vmem:[#allocation7 + $0x3f8] sm:$0xff] }
 0x76c   :  { %4276 = vmatpush1.msra.mxu1 %v4045_v47  ;;  %4389 = vmatpush1.msra.mxu0 %v4047_v46  ;;  %v4156_v47 = vld [vmem:[#allocation7 + $0x408] sm:$0xff]  ;;  %v4153_v46 = vld [vmem:[#allocation7 + $0x3f0] sm:$0xff] }
 0x76d   :  { %4277 = vmatprep.subr.mxu1 %v4040_v62  ;;  %4390 = vmatprep.subr.mxu0 %v4042_v7  ;;  %v4155_v62 = vld [vmem:[#allocation7 + $0x400] sm:$0xff]  ;;  %v4148_v7 = vld [vmem:[#allocation7 + $0x3c8] sm:$0xff] }
 0x76e   :  { %4278 = vmatpush1.msra.mxu1 %v4039_v54  ;;  %4391 = vmatpush1.msra.mxu0 %v4041_v41  ;;  %v4150_v54 = vld [vmem:[#allocation7 + $0x3d8] sm:$0xff]  ;;  %v4147_v41 = vld [vmem:[#allocation7 + $0x3c0] sm:$0xff] }
 0x76f   :  { %4279 = vmatprep.subr.mxu1 %v4034_v19  ;;  %4392 = vmatprep.subr.mxu0 %v4036_v42  ;;  %v4149_v19 = vld [vmem:[#allocation7 + $0x3d0] sm:$0xff]  ;;  %v4142_v42 = vld [vmem:[#allocation7 + $0x398] sm:$0xff] }
 0x770   :  { %4280 = vmatpush1.msra.mxu1 %v4033_v33  ;;  %4393 = vmatpush1.msra.mxu0 %v4035_v57  ;;  %v4144_v33 = vld [vmem:[#allocation7 + $0x3a8] sm:$0xff]  ;;  %v4141_v57 = vld [vmem:[#allocation7 + $0x390] sm:$0xff] }
 0x771   :  { %4281 = vmatprep.subr.mxu1 %v4028_v38  ;;  %4394 = vmatprep.subr.mxu0 %v4030_v13  ;;  %v4143_v38 = vld [vmem:[#allocation7 + $0x3a0] sm:$0xff]  ;;  %v4136_v13 = vld [vmem:[#allocation7 + $0x368] sm:$0xff] }
 0x772   :  { %4282 = vmatpush1.msra.mxu1 %v4027_v10  ;;  %4395 = vmatpush1.msra.mxu0 %v4029_v34  ;;  %v4138_v10 = vld [vmem:[#allocation7 + $0x378] sm:$0xff]  ;;  %v4135_v34 = vld [vmem:[#allocation7 + $0x360] sm:$0xff] }
 0x773   :  { %4283 = vmatprep.subr.mxu1 %v4214_v50  ;;  %4396 = vmatprep.subr.mxu0 %v4216_v17  ;;  %v4137_v50 = vld [vmem:[#allocation7 + $0x370] sm:$0xff]  ;;  %v4130_v17 = vld [vmem:[#allocation7 + $0x338] sm:$0xff] }
 0x774   :  { %4284 = vmatpush2.msra.mxu1 %v4213_v1  ;;  %4397 = vmatpush2.msra.mxu0 %v4215_v44  ;;  %v4132_v1 = vld [vmem:[#allocation7 + $0x348] sm:$0xff]  ;;  %v4129_v44 = vld [vmem:[#allocation7 + $0x330] sm:$0xff] }
 0x775   :  { %4285 = vmatprep.subr.mxu1 %v4208_v9  ;;  %4398 = vmatprep.subr.mxu0 %v4210_v12  ;;  %v4131_v9 = vld [vmem:[#allocation7 + $0x340] sm:$0xff]  ;;  %v4124_v12 = vld [vmem:[#allocation7 + $0x308] sm:$0xff] }
 0x776   :  { %4286 = vmatpush2.msra.mxu1 %v4207_v63  ;;  %4399 = vmatpush2.msra.mxu0 %v4209_v58  ;;  %v4126_v63 = vld [vmem:[#allocation7 + $0x318] sm:$0xff]  ;;  %v4123_v58 = vld [vmem:[#allocation7 + $0x300] sm:$0xff] }
 0x777   :  { %4287 = vmatprep.subr.mxu1 %v4202_v59  ;;  %4400 = vmatprep.subr.mxu0 %v4204_v51  ;;  %v4125_v59 = vld [vmem:[#allocation7 + $0x310] sm:$0xff]  ;;  %v4122_v51 = vld [vmem:[#allocation7 + $0x2f8] sm:$0xff] }
 0x778   :  { %4288 = vmatpush2.msra.mxu1 %v4201_v0  ;;  %4401 = vmatpush2.msra.mxu0 %v4203_v37  ;;  %v12844_v0 = vld [vmem:[#allocation9 + $0x2d8] sm:$0xff] }
 0x779   :  { %4289 = vmatprep.subr.mxu1 %v4196_v3  ;;  %4402 = vmatprep.subr.mxu0 %v4198_v60  ;;  %v15836_v60 = vld [vmem:[#allocation60_spill] sm:$0xff] }
 0x77a   :  { %4290 = vmatpush2.msra.mxu1 %v4195_v22  ;;  %4403 = vmatpush2.msra.mxu0 %v4197_v16 }
 0x77b   :  { %4291 = vmatprep.subr.mxu1 %v4190_v53  ;;  %4404 = vmatprep.subr.mxu0 %v4192_v36 }
 0x77c   :  { %4292 = vmatpush2.msra.mxu1 %v4189_v32  ;;  %4405 = vmatpush2.msra.mxu0 %v4191_v14  ;;  %v15837_v32 = vld [vmem:[#allocation62_spill] sm:$0xff] }
 0x77d   :  { %4293 = vmatprep.subr.mxu1 %v4184_v15  ;;  %4406 = vmatprep.subr.mxu0 %v4186_v52 }
 0x77e   :  { %4294 = vmatpush2.msra.mxu1 %v4183_v61  ;;  %4407 = vmatpush2.msra.mxu0 %v4185_v20 }
 0x77f   :  { %4295 = vmatprep.subr.mxu1 %v4178_v27  ;;  %4408 = vmatprep.subr.mxu0 %v4180_v4  ;;  %v15838_v4 = vld [vmem:[#allocation38_spill] sm:$0xff] }
 0x780   :  { %4296 = vmatpush2.msra.mxu1 %v4177_v29  ;;  %4409 = vmatpush2.msra.mxu0 %v4179_v48  ;;  %v352_v29 = vadd.f32 %v15838_v4, %v15801_v30  ;;  %v15844_v4 = vld [vmem:[#allocation16_spill] sm:$0xff] }
 0x781   :  { %4297 = vmatprep.subr.mxu1 %v4172_v2  ;;  %4410 = vmatprep.subr.mxu0 %v4174_v6 }
 0x782   :  { %4298 = vmatpush2.msra.mxu1 %v4171_v18  ;;  %4411 = vmatpush2.msra.mxu0 %v4173_v23 }
 0x783   :  { %4299 = vmatprep.subr.mxu1 %v4166_v24  ;;  %4412 = vmatprep.subr.mxu0 %v4168_v39 }
 0x784   :  { %4300 = vmatpush2.msra.mxu1 %v4165_v40  ;;  %4413 = vmatpush2.msra.mxu0 %v4167_v26  ;;  %v15839_v26 = vld [vmem:[#allocation61_spill] sm:$0xff] }
 0x785   :  { %4301 = vmatprep.subr.mxu1 %v4160_v11  ;;  %4414 = vmatprep.subr.mxu0 %v4162_v56 }
 0x786   :  { %4302 = vmatpush2.msra.mxu1 %v4159_v35  ;;  %4415 = vmatpush2.msra.mxu0 %v4161_v43  ;;  %v15840_v35 = vld [vmem:[#allocation63_spill] sm:$0xff] }
 0x787   :  { %4303 = vmatprep.subr.mxu1 %v4154_v31  ;;  %4416 = vmatprep.subr.mxu0 %v4156_v47 }
 0x788   :  { %4304 = vmatpush2.msra.mxu1 %v4153_v46  ;;  %4417 = vmatpush2.msra.mxu0 %v4155_v62 }
 0x789   :  { %4305 = vmatprep.subr.mxu1 %v4148_v7  ;;  %4418 = vmatprep.subr.mxu0 %v4150_v54 }
 0x78a   :  { %4306 = vmatpush2.msra.mxu1 %v4147_v41  ;;  %4419 = vmatpush2.msra.mxu0 %v4149_v19 }
 0x78b   :  { %4307 = vmatprep.subr.mxu1 %v4142_v42  ;;  %4420 = vmatprep.subr.mxu0 %v4144_v33 }
 0x78c   :  { %4308 = vmatpush2.msra.mxu1 %v4141_v57  ;;  %4421 = vmatpush2.msra.mxu0 %v4143_v38 }
 0x78d   :  { %4309 = vmatprep.subr.mxu1 %v4136_v13  ;;  %4422 = vmatprep.subr.mxu0 %v4138_v10  ;;  %v15841_v13 = vld [vmem:[#allocation64_spill] sm:$0xff] }
 0x78e   :  { %4310 = vmatpush2.msra.mxu1 %v4135_v34  ;;  %4423 = vmatpush2.msra.mxu0 %v4137_v50 }
 0x78f   :  { %4311 = vmatprep.subr.mxu1 %v4130_v17  ;;  %4424 = vmatprep.subr.mxu0 %v4132_v1 }
 0x790   :  { %4312 = vmatpush2.msra.mxu1 %v4129_v44  ;;  %4425 = vmatpush2.msra.mxu0 %v4131_v9 }
 0x791   :  { %4313 = vmatprep.subr.mxu1 %v4124_v12  ;;  %4426 = vmatprep.subr.mxu0 %v4126_v63  ;;  %v4121_v12 = vld [vmem:[#allocation7 + $0x2f0] sm:$0xff] }
 0x792   :  { %4314 = vmatpush2.msra.mxu1 %v4123_v58  ;;  %4427 = vmatpush2.msra.mxu0 %v4125_v59  ;;  %v12862_v63 = vld [vmem:[#allocation9 + $0x2d0] sm:$0xff]  ;;  %v4116_v58 = vld [vmem:[#allocation7 + $0x2c8] sm:$0xff] }
 0x793   :  { %4477 = vmatprep.subr.mxu1 %v4122_v51  ;;  %4706 = vmatprep.subr.mxu0 %v12844_v0  ;;  %v12868_v59 = vld [vmem:[#allocation9 + $0x2a8] sm:$0xff]  ;;  %v4115_v51 = vld [vmem:[#allocation7 + $0x2c0] sm:$0xff] }
 0x7f1   :  { %v3701_v37 = vpop.f32.mrf.mxu1  ;;  %v3772_v3 = vpop.f32.mrf.mxu0 }
 0x7f2   :  { %v3965_v22 = vadd.f32 %v3701_v37, %v15836_v60  ;;  %v3979_v48 = vadd.f32 %v12757_v25, %v3772_v3  ;;  %v12871_v37 = vld [vmem:[#allocation9 + $0x2a0] sm:$0xff]  ;;  %v4110_v3 = vld [vmem:[#allocation7 + $0x298] sm:$0xff] }
 0x7f3   :  { %v9429_v16 = vpop.f32.mrf.mxu0  ;;  %v3703_v36 = vpop.f32.mrf.mxu1  ;;  %v12875_v60 = vld [vmem:[#allocation9 + $0x278] sm:$0xff] }
 0x7f4   :  { %v8281_v53 = vmul.f32 -1.442695, %v3965_v22  ;;  %v3972_v14 = vadd.f32 %v3703_v36, %v15837_v32  ;;  %v4109_v22 = vld [vmem:[#allocation7 + $0x290] sm:$0xff]  ;;  %v4104_v36 = vld [vmem:[#allocation7 + $0x268] sm:$0xff] }
 0x7f5   :  { %v12879_v16 = vld [vmem:[#allocation9 + $0x270] sm:$0xff]  ;;  %v12884_v32 = vld [vmem:[#allocation9 + $0x248] sm:$0xff] }
 0x7f6   :  { %10175 = vpow2.f32 %v8281_v53  ;;  %v8282_v15 = vmul.f32 -1.442695, %v3972_v14  ;;  %v15843_v53 = vld [vmem:[#allocation28_spill] sm:$0xff]  ;;  %v4103_v14 = vld [vmem:[#allocation7 + $0x260] sm:$0xff] }
 0x7f8   :  { %10177 = vpow2.f32 %v8282_v15  ;;  %v12887_v15 = vld [vmem:[#allocation9 + $0x240] sm:$0xff] }
 0x803   :  { %v10176_v52 = vpop.eup %10175 }
 0x804   :  { %v3969_v61 = vadd.f32 1.0, %v10176_v52  ;;  %v4098_v52 = vld [vmem:[#allocation7 + $0x238] sm:$0xff] }
 0x805   :  { %v10178_v20 = vpop.eup %10177 }
 0x806   :  { %10179 = vrcp.f32 %v3969_v61  ;;  %v3976_v27 = vadd.f32 1.0, %v10178_v20  ;;  %v12891_v61 = vld [vmem:[#allocation9 + $0x218] sm:$0xff]  ;;  %v4097_v20 = vld [vmem:[#allocation7 + $0x230] sm:$0xff] }
 0x808   :  { %10181 = vrcp.f32 %v3976_v27  ;;  %v12895_v27 = vld [vmem:[#allocation9 + $0x210] sm:$0xff] }
 0x812   :  { %v3890_v2 = vpop.f32.mrf.mxu1  ;;  %v3961_v6 = vpop.f32.mrf.mxu0 }
 0x813   :  { %v10180_v18 = vpop.eup %10179  ;;  %v3987_v23 = vadd.f32 %v3890_v2, %v352_v29  ;;  %v4001_v33 = vadd.f32 %v12786_v8, %v3961_v6  ;;  %v15842_v8 = vld [vmem:[#allocation76_spill] sm:$0xff]  ;;  %v4091_v2 = vld [vmem:[#allocation7 + $0x200] sm:$0xff] }
 0x814   :  { %v3980_v24 = vmul.f32 %v10180_v18, %v3979_v48  ;;  %v9464_v39 = vpop.f32.mrf.mxu0  ;;  %v3892_v56 = vpop.f32.mrf.mxu1  ;;  %v4092_v29 = vld [vmem:[#allocation7 + $0x208] sm:$0xff]  ;;  %v12903_v6 = vld [vmem:[#allocation9 + $0x1e0] sm:$0xff]  ;;  %v4086_v18 = vld [vmem:[#allocation7 + $0x1d8] sm:$0xff] }
 0x815   :  { %v8283_v40 = vmul.f32 -1.442695, %v3987_v23  ;;  %v3994_v43 = vadd.f32 %v3892_v56, %v15840_v35  ;;  %v10182_v47 = vpop.eup %10181  ;;  %v12900_v48 = vld [vmem:[#allocation9 + $0x1e8] sm:$0xff]  ;;  %v12907_v23 = vld [vmem:[#allocation9 + $0x1b8] sm:$0xff]  ;;  %v12911_v39 = vld [vmem:[#allocation9 + $0x1b0] sm:$0xff] }
 0x816   :  { %v3981_v11 = vadd.f32 %v3980_v24, %v15839_v26  ;;  %v3983_v25 = vsub.f32 1.0, %v10182_v47  ;;  %v3985_v54 = vmul.f32 %v10182_v47, %v12763_v45  ;;  %v4085_v24 = vld [vmem:[#allocation7 + $0x1d0] sm:$0xff]  ;;  %v4080_v26 = vld [vmem:[#allocation7 + $0x1a8] sm:$0xff]  ;;  %v4079_v56 = vld [vmem:[#allocation7 + $0x1a0] sm:$0xff] }
 0x817   :  { %10183 = vpow2.f32 %v8283_v40  ;;  %v8284_v31 = vmul.f32 -1.442695, %v3994_v43  ;;  %v15845_v40 = vld [vmem:[#allocation43_spill] sm:$0xff]  ;;  %v15846_v43 = vld [vmem:[#allocation96_spill] sm:$0xff]  ;;  %v12923_v47 = vld [vmem:[#allocation9 + $0x158] sm:$0xff] }
 0x818   :  { %10185 = vtanh.f32 %v3981_v11  ;;  %v12916_v11 = vld [vmem:[#allocation9 + $0x188] sm:$0xff]  ;;  %v12919_v35 = vld [vmem:[#allocation9 + $0x180] sm:$0xff] }
 0x819   :  { %10187 = vpow2.f32 %v8284_v31  ;;  %v4074_v31 = vld [vmem:[#allocation7 + $0x178] sm:$0xff] }
 0x824   :  { %v10184_v30 = vpop.eup %10183 }
 0x825   :  { %v10186_v46 = vpop.eup %10185  ;;  %v3991_v62 = vadd.f32 1.0, %v10184_v30  ;;  %v4073_v30 = vld [vmem:[#allocation7 + $0x170] sm:$0xff] }
 0x826   :  { %v3984_v7 = vmul.f32 %v10186_v46, %v3983_v25  ;;  %v10188_v19 = vpop.eup %10187  ;;  %v12927_v25 = vld [vmem:[#allocation9 + $0x150] sm:$0xff] }
 0x827   :  { %10189 = vrcp.f32 %v3991_v62  ;;  %v3998_v42 = vadd.f32 1.0, %v10188_v19  ;;  %v15847_v46 = vld [vmem:[#allocation97_spill] sm:$0xff]  ;;  %v4068_v62 = vld [vmem:[#allocation7 + $0x148] sm:$0xff]  ;;  %v12935_v19 = vld [vmem:[#allocation9 + $0x120] sm:$0xff] }
 0x828   :  { %v12855_v41 = vadd.f32 %v3985_v54, %v3984_v7  ;;  %v12932_v7 = vld [vmem:[#allocation9 + $0x128] sm:$0xff]  ;;  %v4067_v54 = vld [vmem:[#allocation7 + $0x140] sm:$0xff] }
 0x829   :  { %10191 = vrcp.f32 %v3998_v42  ;;  %v15848_v42 = vld [vmem:[#allocation17_spill] sm:$0xff] }
 0x834   :  { %v10190_v57 = vpop.eup %10189 }
 0x835   :  { %v4002_v38 = vmul.f32 %v10190_v57, %v4001_v33  ;;  %v4062_v33 = vld [vmem:[#allocation7 + $0x118] sm:$0xff] }
 0x836   :  { %v10192_v34 = vpop.eup %10191  ;;  %v12939_v57 = vld [vmem:[#allocation9 + $0xf8] sm:$0xff] }
 0x837   :  { %v4003_v10 = vadd.f32 %v4002_v38, %v15841_v13  ;;  %v4005_v50 = vsub.f32 1.0, %v10192_v34  ;;  %v4007_v44 = vmul.f32 %v10192_v34, %v12837_v21  ;;  %v4061_v38 = vld [vmem:[#allocation7 + $0x110] sm:$0xff]  ;;  %v12948_v34 = vld [vmem:[#allocation9 + $0xc8] sm:$0xff] }
 0x838   :  { %v12943_v13 = vld [vmem:[#allocation9 + $0xf0] sm:$0xff] }
 0x839   :  { %10193 = vtanh.f32 %v4003_v10  ;;  %v4056_v10 = vld [vmem:[#allocation7 + $0xe8] sm:$0xff] }
 0x846   :  { %v10194_v17 = vpop.eup %10193 }
 0x847   :  { %v4006_v1 = vmul.f32 %v10194_v17, %v4005_v50  ;;  %v4055_v50 = vld [vmem:[#allocation7 + $0xe0] sm:$0xff] }
 0x848   :  { %v12951_v17 = vld [vmem:[#allocation9 + $0xc0] sm:$0xff] }
 0x849   :  { %v12860_v9 = vadd.f32 %v4007_v44, %v4006_v1  ;;  %v15849_v1 = vld [vmem:[#allocation99_spill] sm:$0xff]  ;;  %v4050_v44 = vld [vmem:[#allocation7 + $0xb8] sm:$0xff] }
 0x84b   :  { %4315 = vmatprep.mubr.f32.mxu1 %v12860_v9  ;;  %4428 = vmatprep.mubr.f32.mxu0 %v12860_v9 }
 0x84c   :  { %4316 = vmatmul.mubr.f32.vlgmr.msra.gmra.mxu1 %v15842_v8  ;;  %4429 = vmatmul.mubr.f32.vlgmr.msra.gmra.mxu0 %v15842_v8 }
 0x84d   :  { %4478 = vmatpush1.msra.mxu1 %v4121_v12  ;;  %4707 = vmatpush1.msra.mxu0 %v12862_v63  ;;  %v12955_v12 = vld [vmem:[#allocation9 + $0x98] sm:$0xff] }
 0x84e   :  { %4321 = vmatprep.mubr.f32.mxu1 %v12837_v21  ;;  %4434 = vmatprep.mubr.f32.mxu0 %v12837_v21 }
 0x84f   :  { %4479 = vmatprep.subr.mxu1 %v4116_v58  ;;  %4708 = vmatprep.subr.mxu0 %v12868_v59  ;;  %v4049_v58 = vld [vmem:[#allocation7 + $0xb0] sm:$0xff] }
 0x850   :  { %4480 = vmatpush1.msra.mxu1 %v4115_v51  ;;  %4709 = vmatpush1.msra.mxu0 %v12871_v37  ;;  %v12959_v51 = vld [vmem:[#allocation9 + $0x90] sm:$0xff] }
 0x851   :  { %4481 = vmatprep.subr.mxu1 %v4110_v3  ;;  %4710 = vmatprep.subr.mxu0 %v12875_v60  ;;  %v4044_v3 = vld [vmem:[#allocation7 + $0x88] sm:$0xff] }
 0x852   :  { %4322 = vmatmul.mubr.f32.gmra.mxu1 %v15843_v53  ;;  %4435 = vmatmul.mubr.f32.gmra.mxu0 %v15843_v53 }
 0x853   :  { %4482 = vmatpush1.msra.mxu1 %v4109_v22  ;;  %4711 = vmatpush1.msra.mxu0 %v12879_v16  ;;  %v12964_v22 = vld [vmem:[#allocation9 + $0x68] sm:$0xff] }
 0x854   :  { %4327 = vmatprep.mubr.f32.mxu1 %v12674_v55  ;;  %4440 = vmatprep.mubr.f32.mxu0 %v12674_v55 }
 0x855   :  { %4483 = vmatprep.subr.mxu1 %v4104_v36  ;;  %4712 = vmatprep.subr.mxu0 %v12884_v32  ;;  %v4043_v36 = vld [vmem:[#allocation7 + $0x80] sm:$0xff] }
 0x856   :  { %4484 = vmatpush1.msra.mxu1 %v4103_v14  ;;  %4713 = vmatpush1.msra.mxu0 %v12887_v15  ;;  %v12967_v14 = vld [vmem:[#allocation9 + $0x60] sm:$0xff] }
 0x857   :  { %4485 = vmatprep.subr.mxu1 %v4098_v52  ;;  %4714 = vmatprep.subr.mxu0 %v12891_v61  ;;  %v15850_v52 = vld [vmem:[#allocation15_spill] sm:$0xff] }
 0x858   :  { %4328 = vmatmul.mubr.f32.gmra.mxu1 %v15844_v4  ;;  %4441 = vmatmul.mubr.f32.gmra.mxu0 %v15844_v4 }
 0x859   :  { %4486 = vmatpush1.msra.mxu1 %v4097_v20  ;;  %4715 = vmatpush1.msra.mxu0 %v12895_v27  ;;  %v4038_v20 = vld [vmem:[#allocation7 + $0x58] sm:$0xff] }
 0x85a   :  { %4333 = vmatprep.mubr.f32.mxu1 %v12330_v5  ;;  %4446 = vmatprep.mubr.f32.mxu0 %v12330_v5 }
 0x85b   :  { %4487 = vmatprep.subr.mxu1 %v4092_v29  ;;  %4716 = vmatprep.subr.mxu0 %v12900_v48  ;;  %v12971_v29 = vld [vmem:[#allocation9 + $0x38] sm:$0xff] }
 0x85c   :  { %4488 = vmatpush1.msra.mxu1 %v4091_v2  ;;  %4717 = vmatpush1.msra.mxu0 %v12903_v6  ;;  %v4037_v2 = vld [vmem:[#allocation7 + $0x50] sm:$0xff] }
 0x85d   :  { %4489 = vmatprep.subr.mxu1 %v4086_v18  ;;  %4718 = vmatprep.subr.mxu0 %v12907_v23  ;;  %v12975_v18 = vld [vmem:[#allocation9 + $0x30] sm:$0xff] }
 0x85e   :  { %4334 = vmatmul.mubr.f32.gmra.mxu1 %v15845_v40  ;;  %4447 = vmatmul.mubr.f32.gmra.mxu0 %v15845_v40  ;;  %15851 = vst [vmem:[#allocation81_spill] sm:$0xff] %v12975_v18 }
 0x85f   :  { %4490 = vmatpush1.msra.mxu1 %v4085_v24  ;;  %4719 = vmatpush1.msra.mxu0 %v12911_v39  ;;  %v4032_v24 = vld [vmem:[#allocation7 + $0x28] sm:$0xff] }
 0x860   :  { %4339 = vmatprep.mubr.f32.mxu1 %v15846_v43  ;;  %4452 = vmatprep.mubr.f32.mxu0 %v15846_v43 }
 0x861   :  { %4491 = vmatprep.subr.mxu1 %v4080_v26  ;;  %4720 = vmatprep.subr.mxu0 %v12916_v11  ;;  %v12980_v26 = vld [vmem:[#allocation9 + $0x8] sm:$0xff] }
 0x862   :  { %4492 = vmatpush1.msra.mxu1 %v4079_v56  ;;  %4721 = vmatpush1.msra.mxu0 %v12919_v35  ;;  %15852 = vst [vmem:[#allocation82_spill] sm:$0xff] %v12980_v26  ;;  %v4031_v56 = vld [vmem:[#allocation7 + $0x20] sm:$0xff] }
 0x863   :  { %4493 = vmatprep.subr.mxu1 %v4074_v31  ;;  %4722 = vmatprep.subr.mxu0 %v12923_v47  ;;  %v12983_v31 = vld [vmem:[#allocation9] sm:$0xff] }
 0x864   :  { %4340 = vmatmul.mubr.f32.gmra.mxu1 %v15847_v46  ;;  %4453 = vmatmul.mubr.f32.gmra.mxu0 %v15847_v46  ;;  %15853 = vst [vmem:[#allocation83_spill] sm:$0xff] %v12983_v31 }
 0x865   :  { %4494 = vmatpush1.msra.mxu1 %v4073_v30  ;;  %4723 = vmatpush1.msra.mxu0 %v12927_v25  ;;  %v4218_v30 = vld [vmem:[#allocation7 + $0x5f8] sm:$0xff] }
 0x866   :  { %4345 = vmatprep.mubr.f32.mxu1 %v15848_v42  ;;  %4458 = vmatprep.mubr.f32.mxu0 %v15848_v42 }
 0x867   :  { %4495 = vmatprep.subr.mxu1 %v4068_v62  ;;  %4724 = vmatprep.subr.mxu0 %v12932_v7  ;;  %v4217_v62 = vld [vmem:[#allocation7 + $0x5f0] sm:$0xff] }
 0x868   :  { %4496 = vmatpush1.msra.mxu1 %v4067_v54  ;;  %4725 = vmatpush1.msra.mxu0 %v12935_v19  ;;  %v12988_v54 = vld [vmem:[#allocation9 + $0x2e0] sm:$0xff] }
 0x869   :  { %4497 = vmatprep.subr.mxu1 %v4062_v33  ;;  %4726 = vmatprep.subr.mxu0 %v12939_v57  ;;  %v4212_v33 = vld [vmem:[#allocation7 + $0x5c8] sm:$0xff] }
 0x86a   :  { %4346 = vmatmul.mubr.f32.gmra.mxu1 %v12511_v49  ;;  %4459 = vmatmul.mubr.f32.gmra.mxu0 %v12511_v49 }
 0x86b   :  { %4498 = vmatpush1.msra.mxu1 %v4061_v38  ;;  %4727 = vmatpush1.msra.mxu0 %v12943_v13  ;;  %v4211_v38 = vld [vmem:[#allocation7 + $0x5c0] sm:$0xff] }
 0x86c   :  { %4351 = vmatprep.mubr.f32.mxu1 %v15849_v1  ;;  %4464 = vmatprep.mubr.f32.mxu0 %v15849_v1 }
 0x86d   :  { %4499 = vmatprep.subr.mxu1 %v4056_v10  ;;  %4728 = vmatprep.subr.mxu0 %v12948_v34  ;;  %v12993_v10 = vld [vmem:[#allocation9 + $0x2b0] sm:$0xff] }
 0x86e   :  { %4500 = vmatpush1.msra.mxu1 %v4055_v50  ;;  %4729 = vmatpush1.msra.mxu0 %v12951_v17  ;;  %v4205_v50 = vld [vmem:[#allocation7 + $0x590] sm:$0xff] }
 0x86f   :  { %4501 = vmatprep.subr.mxu1 %v4050_v44  ;;  %4730 = vmatprep.subr.mxu0 %v12955_v12  ;;  %v12997_v44 = vld [vmem:[#allocation9 + $0x280] sm:$0xff] }
 0x870   :  { %4352 = vmatmul.mubr.f32.gmra.mxu1 %v12763_v45  ;;  %4465 = vmatmul.mubr.f32.gmra.mxu0 %v12763_v45 }
 0x871   :  { %4502 = vmatpush1.msra.mxu1 %v4049_v58  ;;  %4731 = vmatpush1.msra.mxu0 %v12959_v51  ;;  %v4200_v58 = vld [vmem:[#allocation7 + $0x568] sm:$0xff] }
 0x872   :  { %4357 = vmatprep.mubr.f32.mxu1 %v15850_v52  ;;  %4470 = vmatprep.mubr.f32.mxu0 %v15850_v52 }
 0x873   :  { %4503 = vmatprep.subr.mxu1 %v4044_v3  ;;  %4732 = vmatprep.subr.mxu0 %v12964_v22  ;;  %v4199_v3 = vld [vmem:[#allocation7 + $0x560] sm:$0xff] }
 0x874   :  { %4504 = vmatpush1.msra.mxu1 %v4043_v36  ;;  %4733 = vmatpush1.msra.mxu0 %v12967_v14  ;;  %v13001_v36 = vld [vmem:[#allocation9 + $0x250] sm:$0xff] }
 0x875   :  { %4505 = vmatprep.subr.mxu1 %v4038_v20  ;;  %4734 = vmatprep.subr.mxu0 %v12971_v29  ;;  %v4194_v20 = vld [vmem:[#allocation7 + $0x538] sm:$0xff] }
 0x876   :  { %4358 = vmatmul.mubr.f32.gmra.mxu1 %v12855_v41  ;;  %4471 = vmatmul.mubr.f32.gmra.mxu0 %v12855_v41 }
 0x877   :  { %4506 = vmatpush1.msra.mxu1 %v4037_v2  ;;  %4735 = vmatpush1.msra.mxu0 %v12975_v18  ;;  %v4193_v2 = vld [vmem:[#allocation7 + $0x530] sm:$0xff]  ;;  %v4146_v18 = vld [vmem:[#allocation7 + $0x3b8] sm:$0xff] }
 0x878   :  { %4507 = vmatprep.subr.mxu1 %v4032_v24  ;;  %4541 = vmatprep.mubr.f32.mxu1 %v12860_v9  ;;  %v4206_v9 = vld [vmem:[#allocation7 + $0x598] sm:$0xff]  ;;  %v13005_v24 = vld [vmem:[#allocation9 + $0x220] sm:$0xff] }
 0x879   :  { %4736 = vmatprep.subr.mxu0 %v12980_v26  ;;  %4508 = vmatpush1.msra.mxu1 %v4031_v56  ;;  %v4188_v56 = vld [vmem:[#allocation7 + $0x508] sm:$0xff] }
 0x87a   :  { %4737 = vmatpush1.msra.mxu0 %v12983_v31  ;;  %4509 = vmatprep.subr.mxu1 %v4218_v30  ;;  %v4187_v30 = vld [vmem:[#allocation7 + $0x500] sm:$0xff]  ;;  %v4158_v31 = vld [vmem:[#allocation7 + $0x418] sm:$0xff]  ;;  %v4152_v26 = vld [vmem:[#allocation7 + $0x3e8] sm:$0xff] }
 0x87b   :  { %4770 = vmatprep.mubr.f32.mxu0 %v15521_v28  ;;  %9465 = vmatprep.subr.mxu0 %v15521_v28 }
 0x87c   :  { %4510 = vmatpush2.msra.mxu1 %v4217_v62  ;;  %4771 = vmatmul.mubr.f32.vlgmr.msra.gmra.mxu0 %v15521_v28  ;;  %v13009_v62 = vld [vmem:[#allocation9 + $0x1f0] sm:$0xff] }
 0x87d   :  { %9466 = vmatpush3.msra.mxu0 %v12988_v54  ;;  %4511 = vmatprep.subr.mxu1 %v4212_v33  ;;  %v4182_v33 = vld [vmem:[#allocation7 + $0x4d8] sm:$0xff] }
 0x87e   :  { %9467 = vmatprep.subr.mxu0 %v15521_v28  ;;  %4512 = vmatpush2.msra.mxu1 %v4211_v38  ;;  %v4181_v38 = vld [vmem:[#allocation7 + $0x4d0] sm:$0xff] }
 0x87f   :  { %9468 = vmatpush3.msra.mxu0 %v12993_v10  ;;  %4513 = vmatprep.subr.mxu1 %v4206_v9  ;;  %v13013_v9 = vld [vmem:[#allocation9 + $0x1c0] sm:$0xff] }
 0x880   :  { %9469 = vmatprep.subr.mxu0 %v15521_v28  ;;  %4514 = vmatpush2.msra.mxu1 %v4205_v50  ;;  %v4176_v50 = vld [vmem:[#allocation7 + $0x4a8] sm:$0xff] }
 0x881   :  { %9470 = vmatpush3.msra.mxu0 %v12997_v44  ;;  %4515 = vmatprep.subr.mxu1 %v4200_v58  ;;  %v4175_v58 = vld [vmem:[#allocation7 + $0x4a0] sm:$0xff] }
 0x882   :  { %9471 = vmatprep.subr.mxu0 %v15521_v28  ;;  %4516 = vmatpush2.msra.mxu1 %v4199_v3  ;;  %v13017_v3 = vld [vmem:[#allocation9 + $0x190] sm:$0xff] }
 0x883   :  { %9472 = vmatpush3.msra.mxu0 %v13001_v36  ;;  %4517 = vmatprep.subr.mxu1 %v4194_v20  ;;  %v4170_v20 = vld [vmem:[#allocation7 + $0x478] sm:$0xff] }
 0x884   :  { %9473 = vmatprep.subr.mxu0 %v15521_v28  ;;  %4518 = vmatpush2.msra.mxu1 %v4193_v2  ;;  %v4169_v2 = vld [vmem:[#allocation7 + $0x470] sm:$0xff] }
 0x885   :  { %9474 = vmatpush3.msra.mxu0 %v13005_v24  ;;  %4519 = vmatprep.subr.mxu1 %v4188_v56  ;;  %v13021_v56 = vld [vmem:[#allocation9 + $0x160] sm:$0xff] }
 0x886   :  { %9475 = vmatprep.subr.mxu0 %v15521_v28  ;;  %4520 = vmatpush2.msra.mxu1 %v4187_v30  ;;  %15854 = vst [vmem:[#allocation84_spill] sm:$0xff] %v13021_v56  ;;  %v4164_v30 = vld [vmem:[#allocation7 + $0x448] sm:$0xff] }
 0x887   :  { %9476 = vmatpush3.msra.mxu0 %v13009_v62  ;;  %4521 = vmatprep.subr.mxu1 %v4182_v33  ;;  %v4163_v33 = vld [vmem:[#allocation7 + $0x440] sm:$0xff] }
 0x888   :  { %9477 = vmatprep.subr.mxu0 %v15521_v28  ;;  %4522 = vmatpush2.msra.mxu1 %v4181_v38  ;;  %v13025_v38 = vld [vmem:[#allocation9 + $0x130] sm:$0xff] }
 0x889   :  { %9478 = vmatpush3.msra.mxu0 %v13013_v9  ;;  %4523 = vmatprep.subr.mxu1 %v4176_v50  ;;  %15855 = vst [vmem:[#allocation85_spill] sm:$0xff] %v13025_v38  ;;  %v4157_v50 = vld [vmem:[#allocation7 + $0x410] sm:$0xff] }
 0x88a   :  { %9479 = vmatprep.subr.mxu0 %v15521_v28  ;;  %4524 = vmatpush2.msra.mxu1 %v4175_v58  ;;  %v13029_v58 = vld [vmem:[#allocation9 + $0x100] sm:$0xff] }
 0x88b   :  { %9480 = vmatpush3.msra.mxu0 %v13017_v3  ;;  %4525 = vmatprep.subr.mxu1 %v4170_v20  ;;  %15856 = vst [vmem:[#allocation86_spill] sm:$0xff] %v13029_v58  ;;  %v4151_v20 = vld [vmem:[#allocation7 + $0x3e0] sm:$0xff] }
 0x88c   :  { %9481 = vmatprep.subr.mxu0 %v15521_v28  ;;  %4526 = vmatpush2.msra.mxu1 %v4169_v2  ;;  %v13033_v2 = vld [vmem:[#allocation9 + $0xd0] sm:$0xff] }
 0x88d   :  { %9482 = vmatpush3.msra.mxu0 %v13021_v56  ;;  %4527 = vmatprep.subr.mxu1 %v4164_v30  ;;  %v4145_v30 = vld [vmem:[#allocation7 + $0x3b0] sm:$0xff]  ;;  %v4140_v56 = vld [vmem:[#allocation7 + $0x388] sm:$0xff] }
 0x88e   :  { %9483 = vmatprep.subr.mxu0 %v15521_v28  ;;  %4528 = vmatpush2.msra.mxu1 %v4163_v33  ;;  %v13037_v33 = vld [vmem:[#allocation9 + $0xa0] sm:$0xff] }
 0x88f   :  { %9484 = vmatpush3.msra.mxu0 %v13025_v38  ;;  %4529 = vmatprep.subr.mxu1 %v4158_v31  ;;  %v4139_v31 = vld [vmem:[#allocation7 + $0x380] sm:$0xff]  ;;  %v4134_v38 = vld [vmem:[#allocation7 + $0x358] sm:$0xff] }
 0x890   :  { %9485 = vmatprep.subr.mxu0 %v15521_v28  ;;  %4530 = vmatpush2.msra.mxu1 %v4157_v50  ;;  %v13041_v50 = vld [vmem:[#allocation9 + $0x70] sm:$0xff] }
 0x891   :  { %9486 = vmatpush3.msra.mxu0 %v13029_v58  ;;  %4531 = vmatprep.subr.mxu1 %v4152_v26  ;;  %v4133_v26 = vld [vmem:[#allocation7 + $0x350] sm:$0xff]  ;;  %v4128_v58 = vld [vmem:[#allocation7 + $0x328] sm:$0xff] }
 0x892   :  { %9487 = vmatprep.subr.mxu0 %v15521_v28  ;;  %4532 = vmatpush2.msra.mxu1 %v4151_v20  ;;  %v13045_v20 = vld [vmem:[#allocation9 + $0x40] sm:$0xff] }
 0x893   :  { %9488 = vmatpush3.msra.mxu0 %v13033_v2  ;;  %4533 = vmatprep.subr.mxu1 %v4146_v18  ;;  %v4127_v18 = vld [vmem:[#allocation7 + $0x320] sm:$0xff] }
 0x894   :  { %9489 = vmatprep.subr.mxu0 %v15521_v28  ;;  %4534 = vmatpush2.msra.mxu1 %v4145_v30  ;;  %v13049_v30 = vld [vmem:[#allocation9 + $0x10] sm:$0xff] }
 0x895   :  { %9490 = vmatpush3.msra.mxu0 %v13037_v33  ;;  %4535 = vmatprep.subr.mxu1 %v4140_v56  ;;  %15857 = vst [vmem:[#allocation87_spill] sm:$0xff] %v13049_v30  ;;  %v13053_v56 = vld [vmem:[#allocation9 + $0x2f0] sm:$0xff] }
 0x896   :  { %9491 = vmatprep.subr.mxu0 %v15521_v28  ;;  %4536 = vmatpush2.msra.mxu1 %v4139_v31  ;;  %v13062_v31 = vld [vmem:[#allocation9 + $0x2c0] sm:$0xff] }
 0x897   :  { %9492 = vmatpush3.msra.mxu0 %v13041_v50  ;;  %4537 = vmatprep.subr.mxu1 %v4134_v38  ;;  %v13058_v38 = vld [vmem:[#allocation9 + $0x2e8] sm:$0xff]  ;;  %15859 = vst [vmem:[#allocation89_spill] sm:$0xff] %v13062_v31 }
 0x898   :  { %9493 = vmatprep.subr.mxu0 %v15521_v28  ;;  %4538 = vmatpush2.msra.mxu1 %v4133_v26  ;;  %15858 = vst [vmem:[#allocation88_spill] sm:$0xff] %v13058_v38  ;;  %v13064_v26 = vld [vmem:[#allocation9 + $0x2f8] sm:$0xff] }
 0x899   :  { %9494 = vmatpush3.msra.mxu0 %v13045_v20  ;;  %4539 = vmatprep.subr.mxu1 %v4128_v58  ;;  %15860 = vst [vmem:[#allocation90_spill] sm:$0xff] %v13064_v26  ;;  %v13068_v58 = vld [vmem:[#allocation9 + $0x2b8] sm:$0xff] }
 0x89a   :  { %9495 = vmatprep.subr.mxu0 %v15521_v28  ;;  %4540 = vmatpush2.msra.mxu1 %v4127_v18  ;;  %15861 = vst [vmem:[#allocation91_spill] sm:$0xff] %v13068_v58  ;;  %v13071_v18 = vld [vmem:[#allocation9 + $0x290] sm:$0xff] }
 0x89b   :  { %9496 = vmatpush3.msra.mxu0 %v13049_v30  ;;  %9497 = vmatprep.mubr.msk.f32.mxu0 %vm10448_vm1, %v15521_v28  ;;  %v13079_v30 = vld [vmem:[#allocation9 + $0x260] sm:$0xff] }
 0x89c   :  { %4542 = vmatmul.mubr.f32.vlgmr.msra.gmra.mxu1 %v15842_v8  ;;  %9498 = vmatmul.mubr.f32.vlgmr.msra.gmra.mxu0 %v15521_v28  ;;  %v13075_v8 = vld [vmem:[#allocation9 + $0x288] sm:$0xff]  ;;  %15863 = vst [vmem:[#allocation93_spill] sm:$0xff] %v13079_v30 }
 0x89d   :  { %4895 = vmatprep.subr.mxu1 %v13053_v56  ;;  %4547 = vmatprep.mubr.f32.mxu1 %v12837_v21  ;;  %15862 = vst [vmem:[#allocation92_spill] sm:$0xff] %v13075_v8  ;;  %v13082_v21 = vld [vmem:[#allocation9 + $0x2c8] sm:$0xff] }
 0x89e   :  { %4896 = vmatpush1.msra.mxu1 %v13058_v38  ;;  %9500 = vmatprep.subr.mxu0 %v15521_v28  ;;  %v13086_v38 = vld [vmem:[#allocation9 + $0x258] sm:$0xff] }
 0x89f   :  { %4897 = vmatprep.subr.mxu1 %v13062_v31  ;;  %9501 = vmatpush3.msra.mxu0 %v13064_v26  ;;  %15864 = vst [vmem:[#allocation94_spill] sm:$0xff] %v13086_v38  ;;  %v13090_v31 = vld [vmem:[#allocation9 + $0x230] sm:$0xff]  ;;  %v13097_v26 = vld [vmem:[#allocation9 + $0x200] sm:$0xff] }
 0x8a0   :  { %4898 = vmatpush1.msra.mxu1 %v13068_v58  ;;  %9502 = vmatprep.subr.mxu0 %v15521_v28  ;;  %v13093_v58 = vld [vmem:[#allocation9 + $0x228] sm:$0xff]  ;;  %15866 = vst [vmem:[#allocation53_spill] sm:$0xff] %v13097_v26 }
 0x8a1   :  { %4548 = vmatmul.mubr.f32.gmra.mxu1 %v15843_v53  ;;  %4899 = vmatprep.subr.mxu1 %v13071_v18  ;;  %15865 = vst [vmem:[#allocation95_spill] sm:$0xff] %v13093_v58  ;;  %v13100_v53 = vld [vmem:[#allocation9 + $0x298] sm:$0xff] }
 0x8a2   :  { %4553 = vmatprep.mubr.f32.mxu1 %v12674_v55  ;;  %4900 = vmatpush1.msra.mxu1 %v13075_v8  ;;  %v13104_v55 = vld [vmem:[#allocation9 + $0x1f8] sm:$0xff]  ;;  %v13115_v8 = vld [vmem:[#allocation9 + $0x1a0] sm:$0xff] }
 0x8a3   :  { %4901 = vmatprep.subr.mxu1 %v13079_v30  ;;  %9503 = vmatpush3.msra.mxu0 %v13082_v21  ;;  %15867 = vst [vmem:[#allocation55_spill] sm:$0xff] %v13104_v55  ;;  %v13108_v30 = vld [vmem:[#allocation9 + $0x1d0] sm:$0xff]  ;;  %15869 = vst [vmem:[#allocation54_spill] sm:$0xff] %v13115_v8 }
 0x8a4   :  { %4902 = vmatpush1.msra.mxu1 %v13086_v38  ;;  %9504 = vmatprep.subr.mxu0 %v15521_v28  ;;  %v13111_v38 = vld [vmem:[#allocation9 + $0x1c8] sm:$0xff] }
 0x8a5   :  { %4554 = vmatmul.mubr.f32.gmra.mxu1 %v15844_v4  ;;  %4903 = vmatprep.subr.mxu1 %v13090_v31  ;;  %15868 = vst [vmem:[#allocation44_spill] sm:$0xff] %v13111_v38  ;;  %v13118_v4 = vld [vmem:[#allocation9 + $0x268] sm:$0xff] }
 0x8a6   :  { %4559 = vmatprep.mubr.f32.mxu1 %v12330_v5  ;;  %4904 = vmatpush1.msra.mxu1 %v13093_v58  ;;  %v13122_v5 = vld [vmem:[#allocation9 + $0x198] sm:$0xff]  ;;  %v13133_v58 = vld [vmem:[#allocation9 + $0x140] sm:$0xff] }
 0x8a7   :  { %4905 = vmatprep.subr.mxu1 %v13097_v26  ;;  %9505 = vmatpush3.msra.mxu0 %v13100_v53  ;;  %15870 = vst [vmem:[#allocation67_spill] sm:$0xff] %v13122_v5  ;;  %v13126_v26 = vld [vmem:[#allocation9 + $0x170] sm:$0xff]  ;;  %15872 = vst [vmem:[#allocation98_spill] sm:$0xff] %v13133_v58 }
 0x8a8   :  { %4906 = vmatpush1.msra.mxu1 %v13104_v55  ;;  %9506 = vmatprep.subr.mxu0 %v15521_v28  ;;  %v13129_v55 = vld [vmem:[#allocation9 + $0x168] sm:$0xff] }
 0x8a9   :  { %4560 = vmatmul.mubr.f32.gmra.mxu1 %v15845_v40  ;;  %4907 = vmatprep.subr.mxu1 %v13108_v30  ;;  %15871 = vst [vmem:[#allocation68_spill] sm:$0xff] %v13129_v55  ;;  %v13136_v40 = vld [vmem:[#allocation9 + $0x238] sm:$0xff] }
 0x8aa   :  { %4565 = vmatprep.mubr.f32.mxu1 %v15846_v43  ;;  %4908 = vmatpush1.msra.mxu1 %v13111_v38  ;;  %v13140_v43 = vld [vmem:[#allocation9 + $0x138] sm:$0xff]  ;;  %v13151_v38 = vld [vmem:[#allocation9 + $0xe0] sm:$0xff] }
 0x8ab   :  { %4909 = vmatprep.subr.mxu1 %v13115_v8  ;;  %9507 = vmatpush3.msra.mxu0 %v13118_v4  ;;  %15873 = vst [vmem:[#allocation45_spill] sm:$0xff] %v13140_v43  ;;  %v13144_v8 = vld [vmem:[#allocation9 + $0x110] sm:$0xff]  ;;  %15875 = vst [vmem:[#allocation52_spill] sm:$0xff] %v13151_v38 }
 0x8ac   :  { %4910 = vmatpush1.msra.mxu1 %v13122_v5  ;;  %9508 = vmatprep.subr.mxu0 %v15521_v28  ;;  %v13147_v5 = vld [vmem:[#allocation9 + $0x108] sm:$0xff] }
 0x8ad   :  { %4566 = vmatmul.mubr.f32.gmra.mxu1 %v15847_v46  ;;  %4911 = vmatprep.subr.mxu1 %v13126_v26  ;;  %15874 = vst [vmem:[#allocation47_spill] sm:$0xff] %v13147_v5  ;;  %v13154_v46 = vld [vmem:[#allocation9 + $0x208] sm:$0xff] }
 0x8ae   :  { %4571 = vmatprep.mubr.f32.mxu1 %v15848_v42  ;;  %4912 = vmatpush1.msra.mxu1 %v13129_v55  ;;  %v13158_v42 = vld [vmem:[#allocation9 + $0xd8] sm:$0xff]  ;;  %v13169_v55 = vld [vmem:[#allocation9 + $0x80] sm:$0xff] }
 0x8af   :  { %4913 = vmatprep.subr.mxu1 %v13133_v58  ;;  %9509 = vmatpush3.msra.mxu0 %v13136_v40  ;;  %15876 = vst [vmem:[#allocation46_spill] sm:$0xff] %v13158_v42  ;;  %v13162_v58 = vld [vmem:[#allocation9 + $0xb0] sm:$0xff]  ;;  %15877 = vst [vmem:[#allocation71_spill] sm:$0xff] %v13169_v55 }
 0x8b0   :  { %4914 = vmatpush1.msra.mxu1 %v13140_v43  ;;  %9510 = vmatprep.subr.mxu0 %v15521_v28  ;;  %v13165_v43 = vld [vmem:[#allocation9 + $0xa8] sm:$0xff] }
 0x8b1   :  { %4572 = vmatmul.mubr.f32.gmra.mxu1 %v12511_v49  ;;  %4915 = vmatprep.subr.mxu1 %v13144_v8  ;;  %v13172_v49 = vld [vmem:[#allocation9 + $0x1d8] sm:$0xff] }
 0x8b2   :  { %4577 = vmatprep.mubr.f32.mxu1 %v15849_v1  ;;  %4916 = vmatpush1.msra.mxu1 %v13147_v5  ;;  %v13176_v1 = vld [vmem:[#allocation9 + $0x78] sm:$0xff]  ;;  %v13187_v5 = vld [vmem:[#allocation9 + $0x20] sm:$0xff] }
 0x8b3   :  { %4917 = vmatprep.subr.mxu1 %v13151_v38  ;;  %9511 = vmatpush3.msra.mxu0 %v13154_v46  ;;  %15878 = vst [vmem:[#allocation72_spill] sm:$0xff] %v13176_v1  ;;  %v13180_v38 = vld [vmem:[#allocation9 + $0x50] sm:$0xff]  ;;  %15879 = vst [vmem:[#allocation18_spill] sm:$0xff] %v13187_v5 }
 0x8b4   :  { %4918 = vmatpush1.msra.mxu1 %v13158_v42  ;;  %9512 = vmatprep.subr.mxu0 %v15521_v28  ;;  %v13183_v42 = vld [vmem:[#allocation9 + $0x48] sm:$0xff] }
 0x8b5   :  { %4578 = vmatmul.mubr.f32.gmra.mxu1 %v12763_v45  ;;  %4919 = vmatprep.subr.mxu1 %v13162_v58  ;;  %v13190_v45 = vld [vmem:[#allocation9 + $0x1a8] sm:$0xff] }
 0x8b6   :  { %4583 = vmatprep.mubr.f32.mxu1 %v15850_v52  ;;  %4920 = vmatpush1.msra.mxu1 %v13165_v43  ;;  %v13194_v52 = vld [vmem:[#allocation9 + $0x18] sm:$0xff] }
 0x8b7   :  { %4921 = vmatprep.subr.mxu1 %v13169_v55  ;;  %9513 = vmatpush3.msra.mxu0 %v13172_v49  ;;  %15880 = vst [vmem:[#allocation19_spill] sm:$0xff] %v13194_v52  ;;  %v13198_v55 = vld [vmem:[#allocation9 + $0x178] sm:$0xff] }
 0x8b8   :  { %4922 = vmatpush1.msra.mxu1 %v13176_v1  ;;  %9514 = vmatprep.subr.mxu0 %v15521_v28  ;;  %v13204_v1 = vld [vmem:[#allocation9 + $0x148] sm:$0xff] }
 0x8b9   :  { %4584 = vmatmul.mubr.f32.gmra.mxu1 %v12855_v41  ;;  %4923 = vmatprep.subr.mxu1 %v13180_v38  ;;  %v13209_v41 = vld [vmem:[#allocation9 + $0x118] sm:$0xff] }
 0x8ba   :  { %4924 = vmatpush1.msra.mxu1 %v13183_v42  ;;  %4959 = vmatprep.mubr.f32.mxu1 %v15521_v28 }
 0x8bb   :  { %4925 = vmatprep.subr.mxu1 %v13187_v5  ;;  %9515 = vmatpush3.msra.mxu0 %v13190_v45  ;;  %v13222_v5 = vld [vmem:[#allocation9 + $0xb8] sm:$0xff] }
 0x8bc   :  { %4926 = vmatpush1.msra.mxu1 %v13194_v52  ;;  %9516 = vmatprep.subr.mxu0 %v15521_v28  ;;  %v13216_v52 = vld [vmem:[#allocation9 + $0xe8] sm:$0xff] }
 0x8bd   :  { %4960 = vmatmul.mubr.f32.vlgmr.msra.gmra.mxu1 %v15521_v28  ;;  %9517 = vmatpush3.msra.mxu0 %v13198_v55 }
 0x8be   :  { %9518 = vmatprep.subr.mxu0 %v15521_v28  ;;  %9532 = vmatprep.mubr.msk.f32.mxu0 %vm10448_vm1, %v15521_v28 }
 0x8bf   :  { %9519 = vmatpush3.msra.mxu0 %v13204_v1  ;;  %5136 = vmatprep.subr.mxu1 %v12844_v0  ;;  %v13228_v0 = vld [vmem:[#allocation9 + $0x88] sm:$0xff] }
 0x8c0   :  { %9520 = vmatprep.subr.mxu0 %v15521_v28  ;;  %5137 = vmatpush1.msra.mxu1 %v12862_v63  ;;  %v13234_v63 = vld [vmem:[#allocation9 + $0x58] sm:$0xff] }
 0x8c1   :  { %9521 = vmatpush3.msra.mxu0 %v13209_v41  ;;  %5138 = vmatprep.subr.mxu1 %v12868_v59  ;;  %v13240_v59 = vld [vmem:[#allocation9 + $0x28] sm:$0xff] }
 0x8c2   :  { %9522 = vmatprep.subr.mxu0 %v15521_v28  ;;  %5139 = vmatpush1.msra.mxu1 %v12871_v37  ;;  %v15881_v37 = vld [vmem:[#allocation84_spill] sm:$0xff] }
 0x8c3   :  { %9523 = vmatpush3.msra.mxu0 %v13216_v52  ;;  %5140 = vmatprep.subr.mxu1 %v12875_v60  ;;  %v15882_v60 = vld [vmem:[#allocation81_spill] sm:$0xff] }
 0x8c4   :  { %9524 = vmatprep.subr.mxu0 %v15521_v28  ;;  %5141 = vmatpush1.msra.mxu1 %v12879_v16  ;;  %v15883_v16 = vld [vmem:[#allocation82_spill] sm:$0xff] }
 0x8c5   :  { %9525 = vmatpush3.msra.mxu0 %v13222_v5  ;;  %5142 = vmatprep.subr.mxu1 %v12884_v32  ;;  %v15884_v32 = vld [vmem:[#allocation85_spill] sm:$0xff] }
 0x8c6   :  { %9526 = vmatprep.subr.mxu0 %v15521_v28  ;;  %5143 = vmatpush1.msra.mxu1 %v12887_v15  ;;  %v15885_v15 = vld [vmem:[#allocation83_spill] sm:$0xff] }
 0x8c7   :  { %9527 = vmatpush3.msra.mxu0 %v13228_v0  ;;  %5144 = vmatprep.subr.mxu1 %v12891_v61  ;;  %v15886_v61 = vld [vmem:[#allocation86_spill] sm:$0xff] }
 0x8c8   :  { %9528 = vmatprep.subr.mxu0 %v15521_v28  ;;  %5145 = vmatpush1.msra.mxu1 %v12895_v27  ;;  %v15887_v27 = vld [vmem:[#allocation87_spill] sm:$0xff] }
 0x8c9   :  { %9529 = vmatpush3.msra.mxu0 %v13234_v63  ;;  %5146 = vmatprep.subr.mxu1 %v12900_v48 }
 0x8ca   :  { %9530 = vmatprep.subr.mxu0 %v15521_v28  ;;  %5147 = vmatpush1.msra.mxu1 %v12903_v6 }
 0x8cb   :  { %9531 = vmatpush3.msra.mxu0 %v13240_v59  ;;  %5148 = vmatprep.subr.mxu1 %v12907_v23  ;;  %v13313_v23 = vld [vmem:[%s15092_s7] sm:$0x3f] }
 0x8cc   :  { %9533 = vmatmul.mubr.f32.vlgmr.msra.gmra.mxu0 %v15521_v28  ;;  %9535 = vmatprep.subr.mxu0 %v15521_v28 }
 0x8cd   :  { %9536 = vmatpush3.msra.mxu0 %v12988_v54  ;;  %5149 = vmatpush1.msra.mxu1 %v12911_v39 }
 0x8ce   :  { %9537 = vmatprep.subr.mxu0 %v15521_v28  ;;  %5150 = vmatprep.subr.mxu1 %v12916_v11 }
 0x8cf   :  { %9538 = vmatpush3.msra.mxu0 %v12993_v10  ;;  %5151 = vmatpush1.msra.mxu1 %v12919_v35  ;;  %v15888_v35 = vld [vmem:[#allocation37_spill] sm:$0xff] }
 0x8d0   :  { %9539 = vmatprep.subr.mxu0 %v15521_v28  ;;  %5152 = vmatprep.subr.mxu1 %v12923_v47  ;;  %v15889_v47 = vsub.s32 0, %v15888_v35 }
 0x8d1   :  { %9540 = vmatpush3.msra.mxu0 %v12997_v44  ;;  %5153 = vmatpush1.msra.mxu1 %v12927_v25 }
 0x8d2   :  { %9541 = vmatprep.subr.mxu0 %v15521_v28  ;;  %5154 = vmatprep.subr.mxu1 %v12932_v7  ;;  %v4224_v25 = vrot.slane %v13313_v23, %v15889_v47  ;;  %v15890_v7 = vsub.s32 2, %v15888_v35 }
 0x8d3   :  { %9542 = vmatpush3.msra.mxu0 %v13001_v36  ;;  %5155 = vmatpush1.msra.mxu1 %v12935_v19 }
 0x8d4   :  { %9543 = vmatprep.subr.mxu0 %v15521_v28  ;;  %5156 = vmatprep.subr.mxu1 %v12939_v57  ;;  %v13323_v19 = vrot.slane %v13313_v23, %v15890_v7  ;;  %v15891_v57 = vsub.s32 3, %v15888_v35 }
 0x8d5   :  { %9544 = vmatpush3.msra.mxu0 %v13005_v24  ;;  %5157 = vmatpush1.msra.mxu1 %v12943_v13 }
 0x8d6   :  { %9545 = vmatprep.subr.mxu0 %v15521_v28  ;;  %5158 = vmatprep.subr.mxu1 %v12948_v34  ;;  %v13328_v13 = vrot.slane %v13313_v23, %v15891_v57 }
 0x8d7   :  { %9546 = vmatpush3.msra.mxu0 %v13009_v62  ;;  %5159 = vmatpush1.msra.mxu1 %v12951_v17 }
 0x8d8   :  { %9547 = vmatprep.subr.mxu0 %v15521_v28  ;;  %5160 = vmatprep.subr.mxu1 %v12955_v12  ;;  %v15892_v12 = vsub.s32 1, %v15888_v35 }
 0x8d9   :  { %9548 = vmatpush3.msra.mxu0 %v13013_v9  ;;  %5161 = vmatpush1.msra.mxu1 %v12959_v51 }
 0x8da   :  { %9549 = vmatprep.subr.mxu0 %v15521_v28  ;;  %5162 = vmatprep.subr.mxu1 %v12964_v22  ;;  %v4228_v51 = vrot.slane %v13313_v23, %v15892_v12 }
 0x8db   :  { %9550 = vmatpush3.msra.mxu0 %v13017_v3  ;;  %5163 = vmatpush1.msra.mxu1 %v12967_v14 }
 0x8dc   :  { %9551 = vmatprep.subr.mxu0 %v15521_v28  ;;  %5164 = vmatprep.subr.mxu1 %v12971_v29 }
 0x8dd   :  { %9552 = vmatpush3.msra.mxu0 %v15881_v37  ;;  %5165 = vmatpush1.msra.mxu1 %v15882_v60 }
 0x8de   :  { %9553 = vmatprep.subr.mxu0 %v15521_v28  ;;  %5166 = vmatprep.subr.mxu1 %v15883_v16 }
 0x8df   :  { %9554 = vmatpush3.msra.mxu0 %v15884_v32  ;;  %5167 = vmatpush1.msra.mxu1 %v15885_v15 }
 0x8e0   :  { %9555 = vmatprep.subr.mxu0 %v15521_v28  ;;  %5200 = vmatprep.mubr.f32.mxu1 %v15521_v28 }
 0x8e1   :  { %9556 = vmatpush3.msra.mxu0 %v15886_v61  ;;  %9567 = vmatprep.mubr.msk.f32.mxu0 %vm10448_vm1, %v15521_v28 }
 0x8e2   :  { %9557 = vmatprep.subr.mxu0 %v15521_v28  ;;  %5325 = vmatprep.subr.mxu1 %v13053_v56 }
 0x8e3   :  { %9558 = vmatpush3.msra.mxu0 %v13033_v2 }
 0x8e4   :  { %9559 = vmatprep.subr.mxu0 %v15521_v28 }
 0x8e5   :  { %9560 = vmatpush3.msra.mxu0 %v13037_v33 }
 0x8e6   :  { %9561 = vmatprep.subr.mxu0 %v15521_v28 }
 0x8e7   :  { %9562 = vmatpush3.msra.mxu0 %v13041_v50 }
 0x8e8   :  { %9563 = vmatprep.subr.mxu0 %v15521_v28 }
 0x8e9   :  { %9564 = vmatpush3.msra.mxu0 %v13045_v20 }
 0x8ea   :  { %9565 = vmatprep.subr.mxu0 %v15521_v28 }
 0x8eb   :  { %9566 = vmatpush3.msra.mxu0 %v15887_v27 }
 0x8ec   :  { %9570 = vmatprep.subr.mxu0 %v15521_v28 }
 0x90c   :  { %v13306_v48 = vpop.f32.mrf.mxu1  ;;  %v13308_v6 = vpop.f32.mrf.mxu0 }
 0x90e   :  { %v13315_v39 = vpop.f32.mrf.mxu1  ;;  %v4432_v11 = vpop.f32.mrf.mxu0 }
 0x912   :  { %v4323_v34 = vpop.f32.mrf.mxu1  ;;  %v4436_v17 = vpop.f32.mrf.mxu0 }
 0x913   :  { %v13333_v22 = vadd.f32 %v4323_v34, %v4224_v25  ;;  %v13336_v14 = vadd.f32 %v4436_v17, %v13323_v19 }
 0x914   :  { %v4325_v29 = vpop.f32.mrf.mxu1  ;;  %v4438_v54 = vpop.f32.mrf.mxu0 }
 0x915   :  { %v13338_v10 = vadd.f32 %v4325_v29, %v4228_v51  ;;  %v13341_v44 = vadd.f32 %v4438_v54, %v13328_v13 }
 0x917   :  { %15893 = vst [vmem:[#allocation20_spill] sm:$0xff] %v13341_v44 }
 0x918   :  { %v4329_v36 = vpop.f32.mrf.mxu1  ;;  %v4442_v24 = vpop.f32.mrf.mxu0 }
 0x919   :  { %v13343_v62 = vadd.f32 %v4329_v36, %v4224_v25  ;;  %v13346_v9 = vadd.f32 %v4442_v24, %v13323_v19 }
 0x91a   :  { %v4331_v3 = vpop.f32.mrf.mxu1  ;;  %v4444_v2 = vpop.f32.mrf.mxu0 }
 0x91b   :  { %15894 = vst [vmem:[#allocation21_spill] sm:$0xff] %v13343_v62  ;;  %15895 = vst [vmem:[#allocation57_spill] sm:$0xff] %v13346_v9  ;;  %v13348_v33 = vadd.f32 %v4331_v3, %v4228_v51  ;;  %v13351_v50 = vadd.f32 %v4444_v2, %v13328_v13 }
 0x91d   :  { %15896 = vst [vmem:[#allocation59_spill] sm:$0xff] %v13348_v33  ;;  %15897 = vst [vmem:[#allocation41_spill] sm:$0xff] %v13351_v50 }
 0x91e   :  { %v4335_v20 = vpop.f32.mrf.mxu1  ;;  %v4448_v56 = vpop.f32.mrf.mxu0 }
 0x91f   :  { %v13353_v37 = vadd.f32 %v4335_v20, %v4224_v25  ;;  %v13356_v60 = vadd.f32 %v4448_v56, %v13323_v19 }
 0x920   :  { %v4337_v16 = vpop.f32.mrf.mxu1  ;;  %v4450_v32 = vpop.f32.mrf.mxu0 }
 0x921   :  { %15898 = vst [vmem:[#allocation39_spill] sm:$0xff] %v13353_v37  ;;  %15899 = vst [vmem:[#allocation58_spill] sm:$0xff] %v13356_v60  ;;  %v13358_v15 = vadd.f32 %v4337_v16, %v4228_v51  ;;  %v13361_v61 = vadd.f32 %v4450_v32, %v13328_v13  ;;  %v13689_v60 = vld [vmem:[#allocation9 + $0x40] sm:$0xff] }
 0x922   :  { %15958 = vst [vmem:[#allocation62_spill] sm:$0xff] %v13689_v60  ;;  %v13697_v37 = vld [vmem:[#allocation9] sm:$0xff] }
 0x923   :  { %15900 = vst [vmem:[#allocation65_spill] sm:$0xff] %v13358_v15  ;;  %15901 = vst [vmem:[#allocation22_spill] sm:$0xff] %v13361_v61  ;;  %v13667_v61 = vld [vmem:[#allocation9 + $0x90] sm:$0xff]  ;;  %v13693_v15 = vld [vmem:[#allocation9 + $0x8] sm:$0xff] }
 0x924   :  { %v4341_v27 = vpop.f32.mrf.mxu1  ;;  %v4454_v11 = vpop.f32.mrf.mxu0  ;;  %15959 = vst [vmem:[#allocation38_spill] sm:$0xff] %v13693_v15  ;;  %15960 = vst [vmem:[#allocation61_spill] sm:$0xff] %v13697_v37 }
 0x925   :  { %v13363_v47 = vadd.f32 %v4341_v27, %v4224_v25  ;;  %v13366_v7 = vadd.f32 %v4454_v11, %v13323_v19 }
 0x926   :  { %v4343_v57 = vpop.f32.mrf.mxu1  ;;  %v4456_v34 = vpop.f32.mrf.mxu0 }
 0x927   :  { %15902 = vst [vmem:[#allocation23_spill] sm:$0xff] %v13363_v47  ;;  %15903 = vst [vmem:[#allocation24_spill] sm:$0xff] %v13366_v7  ;;  %v13368_v17 = vadd.f32 %v4343_v57, %v4228_v51  ;;  %v13371_v12 = vadd.f32 %v4456_v34, %v13328_v13  ;;  %v13669_v7 = vld [vmem:[#allocation9 + $0xa0] sm:$0xff] }
 0x928   :  { %15952 = vst [vmem:[#allocation36_spill] sm:$0xff] %v13669_v7  ;;  %v13677_v47 = vld [vmem:[#allocation9 + $0x60] sm:$0xff] }
 0x929   :  { %15904 = vst [vmem:[#allocation25_spill] sm:$0xff] %v13368_v17  ;;  %15905 = vst [vmem:[#allocation26_spill] sm:$0xff] %v13371_v12  ;;  %v13673_v17 = vld [vmem:[#allocation9 + $0x68] sm:$0xff]  ;;  %v13687_v12 = vld [vmem:[#allocation9 + $0x30] sm:$0xff] }
 0x92a   :  { %v4347_v29 = vpop.f32.mrf.mxu1  ;;  %v4460_v54 = vpop.f32.mrf.mxu0  ;;  %15953 = vst [vmem:[#allocation77_spill] sm:$0xff] %v13673_v17  ;;  %15954 = vst [vmem:[#allocation78_spill] sm:$0xff] %v13677_v47 }
 0x92b   :  { %v13373_v36 = vadd.f32 %v4347_v29, %v4224_v25  ;;  %v13376_v24 = vadd.f32 %v4460_v54, %v13323_v19  ;;  %15957 = vst [vmem:[#allocation60_spill] sm:$0xff] %v13687_v12 }
 0x92c   :  { %v4349_v3 = vpop.f32.mrf.mxu1  ;;  %v4462_v2 = vpop.f32.mrf.mxu0 }
 0x92d   :  { %15906 = vst [vmem:[#allocation27_spill] sm:$0xff] %v13373_v36  ;;  %15907 = vst [vmem:[#allocation49_spill] sm:$0xff] %v13376_v24  ;;  %v13378_v20 = vadd.f32 %v4349_v3, %v4228_v51  ;;  %v13381_v56 = vadd.f32 %v4462_v2, %v13328_v13 }
 0x92f   :  { %15908 = vst [vmem:[#allocation66_spill] sm:$0xff] %v13378_v20  ;;  %15909 = vst [vmem:[#allocation51_spill] sm:$0xff] %v13381_v56 }
 0x930   :  { %v4353_v16 = vpop.f32.mrf.mxu1  ;;  %v4466_v32 = vpop.f32.mrf.mxu0 }
 0x931   :  { %v13383_v27 = vadd.f32 %v4353_v16, %v4224_v25  ;;  %v13386_v11 = vadd.f32 %v4466_v32, %v13323_v19  ;;  %v4318_v32 = vadd.f32 %v13306_v48, %v4224_v25 }
 0x932   :  { %v4355_v57 = vpop.f32.mrf.mxu1  ;;  %v4468_v34 = vpop.f32.mrf.mxu0 }
 0x933   :  { %15910 = vst [vmem:[#allocation40_spill] sm:$0xff] %v13383_v27  ;;  %15911 = vst [vmem:[#allocation48_spill] sm:$0xff] %v13386_v11  ;;  %v13388_v29 = vadd.f32 %v4355_v57, %v4228_v51  ;;  %v13391_v54 = vadd.f32 %v4468_v34, %v13328_v13  ;;  %v4320_v34 = vadd.f32 %v13315_v39, %v4228_v51 }
 0x935   :  { %15912 = vst [vmem:[#allocation50_spill] sm:$0xff] %v13388_v29 }
 0x936   :  { %v4359_v44 = vpop.f32.mrf.mxu1  ;;  %v4472_v3 = vpop.f32.mrf.mxu0 }
 0x937   :  { %v13393_v50 = vadd.f32 %v4359_v44, %v4224_v25  ;;  %v13396_v2 = vadd.f32 %v4472_v3, %v13323_v19 }
 0x938   :  { %v4361_v24 = vpop.f32.mrf.mxu1  ;;  %v13398_v16 = vpop.f32.mrf.mxu0 }
 0x939   :  { %15913 = vst [vmem:[#allocation69_spill] sm:$0xff] %v13393_v50  ;;  %15914 = vst [vmem:[#allocation75_spill] sm:$0xff] %v13396_v2  ;;  %v13400_v27 = vadd.f32 %v4361_v24, %v4228_v51  ;;  %v13407_v24 = vld [vmem:[%s15093_s8] ss:$0 sm:$0xff] }
 0x93b   :  { %15915 = vst [vmem:[#allocation56_spill] sm:$0xff] %v13400_v27 }
 0x93c   :  { %v4772_v11 = vpop.f32.mrf.mxu0 }
 0x93d   :  { %v5036_v57 = vadd.f32 %v4772_v11, %v4318_v32 }
 0x93e   :  { %v4774_v20 = vpop.f32.mrf.mxu0 }
 0x93f   :  { %v8287_v29 = vmul.f32 -1.442695, %v5036_v57  ;;  %v5043_v36 = vadd.f32 %v4774_v20, %v4320_v34  ;;  %v15917_v34 = vsub.s32 5, %v15888_v35 }
 0x941   :  { %10195 = vpow2.f32 %v8287_v29  ;;  %v8288_v44 = vmul.f32 -1.442695, %v5043_v36  ;;  %v15916_v36 = vsub.s32 4, %v15888_v35 }
 0x943   :  { %10197 = vpow2.f32 %v8288_v44  ;;  %v13413_v20 = vrot.slane %v13313_v23, %v15916_v36 }
 0x94e   :  { %v10196_v50 = vpop.eup %10195 }
 0x94f   :  { %v5040_v3 = vadd.f32 1.0, %v10196_v50  ;;  %v4431_v50 = vadd.f32 %v13308_v6, %v13323_v19 }
 0x950   :  { %v10198_v2 = vpop.eup %10197 }
 0x951   :  { %10199 = vrcp.f32 %v5040_v3  ;;  %v5047_v48 = vadd.f32 1.0, %v10198_v2  ;;  %v13420_v2 = vrot.slane %v13313_v23, %v15917_v34 }
 0x953   :  { %10201 = vrcp.f32 %v5047_v48 }
 0x95c   :  { %v4543_v25 = vpop.f32.mrf.mxu1  ;;  %v4843_v11 = vpop.f32.mrf.mxu0 }
 0x95d   :  { %v5050_v32 = vadd.f32 %v13407_v24, %v4843_v11 }
 0x95e   :  { %v10200_v57 = vpop.eup %10199  ;;  %v4545_v39 = vpop.f32.mrf.mxu1 }
 0x95f   :  { %v9499_v51 = vpop.f32.mrf.mxu0  ;;  %v5051_v29 = vmul.f32 %v10200_v57, %v5050_v32 }
 0x960   :  { %v10202_v57 = vpop.eup %10201 }
 0x961   :  { %v5052_v44 = vadd.f32 %v5051_v29, %v4431_v50  ;;  %v4549_v3 = vpop.f32.mrf.mxu1  ;;  %v5056_v27 = vmul.f32 0.0, %v10202_v57 }
 0x962   :  { %v13423_v25 = vadd.f32 %v4549_v3, %v13413_v20 }
 0x963   :  { %10203 = vtanh.f32 %v5052_v44  ;;  %v4551_v11 = vpop.f32.mrf.mxu1  ;;  %v5054_v44 = vsub.f32 1.0, %v10202_v57  ;;  %v15929_v57 = vld [vmem:[#allocation90_spill] sm:$0xff] }
 0x964   :  { %15918 = vst [vmem:[#allocation42_spill] sm:$0xff] %v13423_v25  ;;  %v13426_v39 = vadd.f32 %v4551_v11, %v13420_v2 }
 0x965   :  { %v4555_v51 = vpop.f32.mrf.mxu1 }
 0x966   :  { %15919 = vst [vmem:[#allocation73_spill] sm:$0xff] %v13426_v39  ;;  %v13429_v6 = vadd.f32 %v4555_v51, %v13413_v20 }
 0x967   :  { %v4557_v19 = vpop.f32.mrf.mxu1 }
 0x968   :  { %15920 = vst [vmem:[#allocation32_spill] sm:$0xff] %v13429_v6  ;;  %v13432_v35 = vadd.f32 %v4557_v19, %v13420_v2  ;;  %v13657_v6 = vld [vmem:[#allocation9 + $0xc0] sm:$0xff] }
 0x969   :  { %v4561_v23 = vpop.f32.mrf.mxu1 }
 0x96a   :  { %15921 = vst [vmem:[#allocation29_spill] sm:$0xff] %v13432_v35  ;;  %v13435_v48 = vadd.f32 %v4561_v23, %v13413_v20  ;;  %v15928_v35 = vld [vmem:[#allocation88_spill] sm:$0xff] }
 0x96b   :  { %v4563_v32 = vpop.f32.mrf.mxu1 }
 0x96c   :  { %15922 = vst [vmem:[#allocation30_spill] sm:$0xff] %v13435_v48  ;;  %v13438_v36 = vadd.f32 %v4563_v32, %v13420_v2  ;;  %v13663_v48 = vld [vmem:[#allocation9 + $0x98] sm:$0xff] }
 0x96d   :  { %v4567_v50 = vpop.f32.mrf.mxu1 }
 0x96e   :  { %15923 = vst [vmem:[#allocation31_spill] sm:$0xff] %v13438_v36  ;;  %v13441_v29 = vadd.f32 %v4567_v50, %v13413_v20  ;;  %v13659_v36 = vld [vmem:[#allocation9 + $0xd0] sm:$0xff] }
 0x96f   :  { %v4569_v34 = vpop.f32.mrf.mxu1 }
 0x970   :  { %15924 = vst [vmem:[#allocation33_spill] sm:$0xff] %v13441_v29  ;;  %v10204_v3 = vpop.eup %10203  ;;  %v13444_v11 = vadd.f32 %v4569_v34, %v13420_v2  ;;  %v13683_v29 = vld [vmem:[#allocation9 + $0x38] sm:$0xff] }
 0x971   :  { %v4573_v51 = vpop.f32.mrf.mxu1  ;;  %v5055_v19 = vmul.f32 %v10204_v3, %v5054_v44  ;;  %v15930_v3 = vld [vmem:[#allocation89_spill] sm:$0xff]  ;;  %15956 = vst [vmem:[#allocation80_spill] sm:$0xff] %v13683_v29 }
 0x972   :  { %15925 = vst [vmem:[#allocation70_spill] sm:$0xff] %v13444_v11  ;;  %v13447_v23 = vadd.f32 %v4573_v51, %v13413_v20  ;;  %v13679_v11 = vld [vmem:[#allocation9 + $0x70] sm:$0xff] }
 0x973   :  { %v4575_v39 = vpop.f32.mrf.mxu1  ;;  %v13449_v25 = vadd.f32 %v5056_v27, %v5055_v19  ;;  %15955 = vst [vmem:[#allocation79_spill] sm:$0xff] %v13679_v11 }
 0x974   :  { %15926 = vst [vmem:[#allocation34_spill] sm:$0xff] %v13447_v23  ;;  %v13452_v32 = vadd.f32 %v4575_v39, %v13420_v2  ;;  %v15931_v39 = vld [vmem:[#allocation91_spill] sm:$0xff]  ;;  %v13708_v23 = vld [vmem:[#allocation9 + $0x2f0] sm:$0xff] }
 0x975   :  { %v4579_v50 = vpop.f32.mrf.mxu1  ;;  %5201 = vmatmul.mubr.f32.vlgmr.msra.gmra.mxu1 %v13449_v25  ;;  %9568 = vmatmul.mubr.f32.vlgmr.msra.gmra.mxu0 %v13449_v25  ;;  %15962 = vst [vmem:[#allocation64_spill] sm:$0xff] %v13708_v23 }
 0x976   :  { %15927 = vst [vmem:[#allocation35_spill] sm:$0xff] %v13452_v32  ;;  %v13457_v34 = vadd.f32 %v4579_v50, %v13413_v20  ;;  %5326 = vmatpush1.msra.mxu1 %v15928_v35  ;;  %9571 = vmatpush3.msra.mxu0 %v15929_v57  ;;  %v15932_v35 = vld [vmem:[#allocation92_spill] sm:$0xff]  ;;  %v15933_v50 = vld [vmem:[#allocation93_spill] sm:$0xff]  ;;  %v4475_v57 = vadd.f32 %v13398_v16, %v13328_v13  ;;  %v15937_v13 = vld [vmem:[#allocation55_spill] sm:$0xff] }
 0x977   :  { %v4581_v44 = vpop.f32.mrf.mxu1  ;;  %5327 = vmatprep.subr.mxu1 %v15930_v3  ;;  %9572 = vmatprep.subr.mxu0 %v15521_v28  ;;  %v15936_v3 = vld [vmem:[#allocation53_spill] sm:$0xff]  ;;  %v15938_v16 = vld [vmem:[#allocation44_spill] sm:$0xff] }
 0x978   :  { %v13464_v27 = vadd.f32 %v4581_v44, %v13420_v2  ;;  %5328 = vmatpush1.msra.mxu1 %v15931_v39  ;;  %9573 = vmatpush3.msra.mxu0 %v13082_v21  ;;  %v15934_v44 = vld [vmem:[#allocation94_spill] sm:$0xff]  ;;  %v13699_v32 = vld [vmem:[#allocation9 + $0x10] sm:$0xff] }
 0x979   :  { %v4585_v51 = vpop.f32.mrf.mxu1  ;;  %5329 = vmatprep.subr.mxu1 %v13071_v18  ;;  %9574 = vmatprep.subr.mxu0 %v15521_v28  ;;  %15961 = vst [vmem:[#allocation63_spill] sm:$0xff] %v13699_v32 }
 0x97a   :  { %5330 = vmatpush1.msra.mxu1 %v15932_v35  ;;  %9575 = vmatpush3.msra.mxu0 %v13100_v53  ;;  %v15935_v53 = vld [vmem:[#allocation95_spill] sm:$0xff] }
 0x97b   :  { %v13472_v19 = vpop.f32.mrf.mxu1  ;;  %5331 = vmatprep.subr.mxu1 %v15933_v50  ;;  %9576 = vmatprep.subr.mxu0 %v15521_v28  ;;  %v15940_v50 = vld [vmem:[#allocation67_spill] sm:$0xff] }
 0x97c   :  { %5332 = vmatpush1.msra.mxu1 %v15934_v44  ;;  %9577 = vmatpush3.msra.mxu0 %v13118_v4  ;;  %v15948_v44 = vld [vmem:[#allocation72_spill] sm:$0xff] }
 0x97d   :  { %v4961_v18 = vpop.f32.mrf.mxu1  ;;  %5333 = vmatprep.subr.mxu1 %v13090_v31  ;;  %9578 = vmatprep.subr.mxu0 %v15521_v28  ;;  %v4586_v31 = vadd.f32 %v4585_v51, %v13413_v20  ;;  %v15943_v20 = vld [vmem:[#allocation45_spill] sm:$0xff]  ;;  %v15946_v51 = vld [vmem:[#allocation46_spill] sm:$0xff] }
 0x97e   :  { %v5058_v21 = vadd.f32 %v4961_v18, %v4475_v57  ;;  %5334 = vmatpush1.msra.mxu1 %v15935_v53  ;;  %9579 = vmatpush3.msra.mxu0 %v13136_v40  ;;  %v15939_v40 = vld [vmem:[#allocation54_spill] sm:$0xff] }
 0x97f   :  { %5335 = vmatprep.subr.mxu1 %v15936_v3  ;;  %9580 = vmatprep.subr.mxu0 %v15521_v28  ;;  %v4963_v4 = vpop.f32.mrf.mxu1 }
 0x980   :  { %v8289_v39 = vmul.f32 -1.442695, %v5058_v21  ;;  %5336 = vmatpush1.msra.mxu1 %v15937_v13  ;;  %9581 = vmatpush3.msra.mxu0 %v13154_v46  ;;  %v5065_v35 = vadd.f32 %v4963_v4, %v4586_v31  ;;  %v15942_v46 = vld [vmem:[#allocation98_spill] sm:$0xff]  ;;  %v13553_v31 = vld [vmem:[#allocation9 + $0x2e0] sm:$0xff] }
 0x981   :  { %5337 = vmatprep.subr.mxu1 %v13108_v30  ;;  %9582 = vmatprep.subr.mxu0 %v15521_v28  ;;  %v15941_v30 = vld [vmem:[#allocation68_spill] sm:$0xff] }
 0x982   :  { %10205 = vpow2.f32 %v8289_v39  ;;  %5338 = vmatpush1.msra.mxu1 %v15938_v16  ;;  %9583 = vmatpush3.msra.mxu0 %v13172_v49  ;;  %v8290_v49 = vmul.f32 -1.442695, %v5065_v35  ;;  %v13557_v16 = vld [vmem:[#allocation9 + $0x2a8] sm:$0xff]  ;;  %v13563_v35 = vld [vmem:[#allocation9 + $0x2b0] sm:$0xff] }
 0x983   :  { %5339 = vmatprep.subr.mxu1 %v15939_v40  ;;  %9584 = vmatprep.subr.mxu0 %v15521_v28  ;;  %v13561_v40 = vld [vmem:[#allocation9 + $0x2a0] sm:$0xff] }
 0x984   :  { %5340 = vmatpush1.msra.mxu1 %v15940_v50  ;;  %9585 = vmatpush3.msra.mxu0 %v13190_v45  ;;  %v15945_v45 = vld [vmem:[#allocation52_spill] sm:$0xff]  ;;  %10207 = vpow2.f32 %v8290_v49  ;;  %v13567_v50 = vld [vmem:[#allocation9 + $0x278] sm:$0xff] }
 0x985   :  { %5341 = vmatprep.subr.mxu1 %v13126_v26  ;;  %9586 = vmatprep.subr.mxu0 %v15521_v28  ;;  %v15944_v26 = vld [vmem:[#allocation47_spill] sm:$0xff]  ;;  %v13577_v49 = vld [vmem:[#allocation9 + $0x248] sm:$0xff] }
 0x986   :  { %5342 = vmatpush1.msra.mxu1 %v15941_v30  ;;  %9587 = vmatpush3.msra.mxu0 %v13198_v55  ;;  %v13571_v30 = vld [vmem:[#allocation9 + $0x270] sm:$0xff] }
 0x987   :  { %5343 = vmatprep.subr.mxu1 %v15942_v46  ;;  %9588 = vmatprep.subr.mxu0 %v15521_v28  ;;  %v13573_v46 = vld [vmem:[#allocation9 + $0x280] sm:$0xff] }
 0x988   :  { %5344 = vmatpush1.msra.mxu1 %v15943_v20  ;;  %9589 = vmatpush3.msra.mxu0 %v13204_v1  ;;  %v13581_v20 = vld [vmem:[#allocation9 + $0x240] sm:$0xff] }
 0x989   :  { %5345 = vmatprep.subr.mxu1 %v13144_v8  ;;  %9590 = vmatprep.subr.mxu0 %v15521_v28 }
 0x98a   :  { %5346 = vmatpush1.msra.mxu1 %v15944_v26  ;;  %9591 = vmatpush3.msra.mxu0 %v13209_v41  ;;  %v15947_v41 = vld [vmem:[#allocation71_spill] sm:$0xff]  ;;  %v13583_v26 = vld [vmem:[#allocation9 + $0x250] sm:$0xff] }
 0x98b   :  { %5347 = vmatprep.subr.mxu1 %v15945_v45  ;;  %9592 = vmatprep.subr.mxu0 %v15521_v28  ;;  %v13587_v45 = vld [vmem:[#allocation9 + $0x218] sm:$0xff] }
 0x98c   :  { %v5032_v55 = vpop.f32.mrf.mxu0  ;;  %5348 = vmatpush1.msra.mxu1 %v15946_v51  ;;  %9593 = vmatpush3.msra.mxu0 %v13216_v52  ;;  %v13593_v51 = vld [vmem:[#allocation9 + $0x220] sm:$0xff] }
 0x98d   :  { %5349 = vmatprep.subr.mxu1 %v13162_v58  ;;  %9594 = vmatprep.subr.mxu0 %v15521_v28  ;;  %v15949_v58 = vld [vmem:[#allocation18_spill] sm:$0xff] }
 0x98e   :  { %5350 = vmatpush1.msra.mxu1 %v13165_v43  ;;  %9595 = vmatpush3.msra.mxu0 %v13222_v5  ;;  %v9534_v8 = vpop.f32.mrf.mxu0  ;;  %v15950_v5 = vld [vmem:[#allocation19_spill] sm:$0xff] }
 0x98f   :  { %v10206_v1 = vpop.eup %10205  ;;  %5351 = vmatprep.subr.mxu1 %v15947_v41  ;;  %9596 = vmatprep.subr.mxu0 %v15521_v28  ;;  %v13536_v43 = vld [vmem:[%s15093_s8 + $0x1] ss:$0 sm:$0xff]  ;;  %v13597_v8 = vld [vmem:[#allocation9 + $0x1e8] sm:$0xff]  ;;  %v13603_v41 = vld [vmem:[#allocation9 + $0x1f0] sm:$0xff] }
 0x990   :  { %v5062_v57 = vadd.f32 1.0, %v10206_v1  ;;  %5352 = vmatpush1.msra.mxu1 %v15948_v44  ;;  %9597 = vmatpush3.msra.mxu0 %v13228_v0  ;;  %v5072_v52 = vadd.f32 %v13536_v43, %v5032_v55  ;;  %v13591_v55 = vld [vmem:[#allocation9 + $0x210] sm:$0xff]  ;;  %v13601_v1 = vld [vmem:[#allocation9 + $0x1e0] sm:$0xff] }
 0x991   :  { %5353 = vmatprep.subr.mxu1 %v13180_v38  ;;  %9598 = vmatprep.subr.mxu0 %v15521_v28  ;;  %v10208_v38 = vpop.eup %10207  ;;  %v13611_v44 = vld [vmem:[#allocation9 + $0x1b0] sm:$0xff] }
 0x992   :  { %10209 = vrcp.f32 %v5062_v57  ;;  %5354 = vmatpush1.msra.mxu1 %v13183_v42  ;;  %9599 = vmatpush3.msra.mxu0 %v13234_v63  ;;  %v5069_v42 = vadd.f32 1.0, %v10208_v38  ;;  %v4588_v63 = vadd.f32 %v13472_v19, %v13420_v2  ;;  %v13548_v2 = vld [vmem:[#allocation9 + $0x2d8] sm:$0xff]  ;;  %v13551_v19 = vld [vmem:[#allocation9 + $0x2d0] sm:$0xff]  ;;  %v13619_v38 = vld [vmem:[#allocation9 + $0x180] sm:$0xff] }
 0x993   :  { %5355 = vmatprep.subr.mxu1 %v15949_v58  ;;  %9600 = vmatprep.subr.mxu0 %v15521_v28  ;;  %v13607_v57 = vld [vmem:[#allocation9 + $0x1b8] sm:$0xff]  ;;  %v13613_v58 = vld [vmem:[#allocation9 + $0x1c0] sm:$0xff] }
 0x994   :  { %5356 = vmatpush1.msra.mxu1 %v15950_v5  ;;  %5389 = vmatprep.mubr.f32.mxu1 %v15521_v28  ;;  %10211 = vrcp.f32 %v5069_v42  ;;  %v13615_v5 = vld [vmem:[#allocation9 + $0x188] sm:$0xff]  ;;  %v13621_v42 = vld [vmem:[#allocation9 + $0x190] sm:$0xff] }
 0x995   :  { %9601 = vmatpush3.msra.mxu0 %v13240_v59  ;;  %9602 = vmatprep.mubr.msk.f32.mxu0 %vm10448_vm1, %v15521_v28 }
 0x996   :  { %9605 = vmatprep.subr.mxu0 %v15521_v28  ;;  %5566 = vmatprep.subr.mxu1 %v13548_v2 }
 0x99f   :  { %v10210_v0 = vpop.eup %10209 }
 0x9a0   :  { %v5073_v59 = vmul.f32 %v10210_v0, %v5072_v52  ;;  %v13623_v52 = vld [vmem:[#allocation9 + $0x158] sm:$0xff]  ;;  %v13627_v0 = vld [vmem:[#allocation9 + $0x150] sm:$0xff] }
 0x9a1   :  { %v10212_v21 = vpop.eup %10211 }
 0x9a2   :  { %v5074_v18 = vadd.f32 %v5073_v59, %v4588_v63  ;;  %v5076_v53 = vsub.f32 1.0, %v10212_v21  ;;  %v5078_v13 = vmul.f32 0.0, %v10212_v21  ;;  %v13629_v63 = vld [vmem:[#allocation9 + $0x160] sm:$0xff]  ;;  %v13633_v59 = vld [vmem:[#allocation9 + $0x128] sm:$0xff]  ;;  %v13639_v21 = vld [vmem:[#allocation9 + $0x130] sm:$0xff] }
 0x9a4   :  { %10213 = vtanh.f32 %v5074_v18  ;;  %v13637_v18 = vld [vmem:[#allocation9 + $0x120] sm:$0xff] }
 0x9b1   :  { %v10214_v3 = vpop.eup %10213 }
 0x9b2   :  { %v5077_v39 = vmul.f32 %v10214_v3, %v5076_v53  ;;  %v13643_v53 = vld [vmem:[#allocation9 + $0xf8] sm:$0xff]  ;;  %v13647_v3 = vld [vmem:[#allocation9 + $0xf0] sm:$0xff] }
 0x9b4   :  { %v13541_v4 = vadd.f32 %v5078_v13, %v5077_v39  ;;  %v13649_v39 = vld [vmem:[#allocation9 + $0x100] sm:$0xff]  ;;  %v13653_v13 = vld [vmem:[#allocation9 + $0xc8] sm:$0xff] }
 0x9b6   :  { %15951 = vst [vmem:[#allocation74_spill] sm:$0xff] %v13541_v4  ;;  %5390 = vmatmul.mubr.f32.vlgmr.msra.gmra.mxu1 %v13541_v4  ;;  %9603 = vmatmul.mubr.f32.vlgmr.msra.gmra.mxu0 %v13541_v4 }
 0x9b7   :  { %5630 = vmatprep.mubr.f32.mxu1 %v15521_v28  ;;  %9637 = vmatprep.mubr.msk.f32.mxu0 %vm10448_vm1, %v15521_v28 }
 0x9b8   :  { %5567 = vmatpush1.msra.mxu1 %v13551_v19  ;;  %9606 = vmatpush3.msra.mxu0 %v13553_v31 }
 0x9b9   :  { %5568 = vmatprep.subr.mxu1 %v13557_v16  ;;  %9607 = vmatprep.subr.mxu0 %v15521_v28 }
 0x9ba   :  { %5569 = vmatpush1.msra.mxu1 %v13561_v40  ;;  %9608 = vmatpush3.msra.mxu0 %v13563_v35 }
 0x9bb   :  { %5570 = vmatprep.subr.mxu1 %v13567_v50  ;;  %9609 = vmatprep.subr.mxu0 %v15521_v28 }
 0x9bc   :  { %5571 = vmatpush1.msra.mxu1 %v13571_v30  ;;  %9610 = vmatpush3.msra.mxu0 %v13573_v46 }
 0x9bd   :  { %5572 = vmatprep.subr.mxu1 %v13577_v49  ;;  %9611 = vmatprep.subr.mxu0 %v15521_v28 }
 0x9be   :  { %5573 = vmatpush1.msra.mxu1 %v13581_v20  ;;  %9612 = vmatpush3.msra.mxu0 %v13583_v26 }
 0x9bf   :  { %5574 = vmatprep.subr.mxu1 %v13587_v45  ;;  %9613 = vmatprep.subr.mxu0 %v15521_v28 }
 0x9c0   :  { %5575 = vmatpush1.msra.mxu1 %v13591_v55  ;;  %9614 = vmatpush3.msra.mxu0 %v13593_v51 }
 0x9c1   :  { %5576 = vmatprep.subr.mxu1 %v13597_v8  ;;  %9615 = vmatprep.subr.mxu0 %v15521_v28 }
 0x9c2   :  { %5577 = vmatpush1.msra.mxu1 %v13601_v1  ;;  %9616 = vmatpush3.msra.mxu0 %v13603_v41 }
 0x9c3   :  { %5578 = vmatprep.subr.mxu1 %v13607_v57  ;;  %9617 = vmatprep.subr.mxu0 %v15521_v28 }
 0x9c4   :  { %5579 = vmatpush1.msra.mxu1 %v13611_v44  ;;  %9618 = vmatpush3.msra.mxu0 %v13613_v58 }
 0x9c5   :  { %5580 = vmatprep.subr.mxu1 %v13615_v5  ;;  %9619 = vmatprep.subr.mxu0 %v15521_v28 }
 0x9c6   :  { %5581 = vmatpush1.msra.mxu1 %v13619_v38  ;;  %9620 = vmatpush3.msra.mxu0 %v13621_v42 }
 0x9c7   :  { %5582 = vmatprep.subr.mxu1 %v13623_v52  ;;  %9621 = vmatprep.subr.mxu0 %v15521_v28 }
 0x9c8   :  { %5583 = vmatpush1.msra.mxu1 %v13627_v0  ;;  %9622 = vmatpush3.msra.mxu0 %v13629_v63 }
 0x9c9   :  { %5584 = vmatprep.subr.mxu1 %v13633_v59  ;;  %9623 = vmatprep.subr.mxu0 %v15521_v28 }
 0x9ca   :  { %5585 = vmatpush1.msra.mxu1 %v13637_v18  ;;  %9624 = vmatpush3.msra.mxu0 %v13639_v21 }
 0x9cb   :  { %5586 = vmatprep.subr.mxu1 %v13643_v53  ;;  %9625 = vmatprep.subr.mxu0 %v15521_v28 }
 0x9cc   :  { %5587 = vmatpush1.msra.mxu1 %v13647_v3  ;;  %9626 = vmatpush3.msra.mxu0 %v13649_v39 }
 0x9cd   :  { %5588 = vmatprep.subr.mxu1 %v13653_v13  ;;  %9627 = vmatprep.subr.mxu0 %v15521_v28 }
 0x9ce   :  { %5589 = vmatpush1.msra.mxu1 %v13657_v6  ;;  %9628 = vmatpush3.msra.mxu0 %v13659_v36 }
 0x9cf   :  { %5590 = vmatprep.subr.mxu1 %v13663_v48  ;;  %9629 = vmatprep.subr.mxu0 %v15521_v28 }
 0x9d0   :  { %5591 = vmatpush1.msra.mxu1 %v13667_v61  ;;  %9630 = vmatpush3.msra.mxu0 %v13669_v7 }
 0x9d1   :  { %5592 = vmatprep.subr.mxu1 %v13673_v17  ;;  %9631 = vmatprep.subr.mxu0 %v15521_v28 }
 0x9d2   :  { %5593 = vmatpush1.msra.mxu1 %v13677_v47  ;;  %9632 = vmatpush3.msra.mxu0 %v13679_v11 }
 0x9d3   :  { %5594 = vmatprep.subr.mxu1 %v13683_v29  ;;  %9633 = vmatprep.subr.mxu0 %v15521_v28 }
 0x9d4   :  { %5595 = vmatpush1.msra.mxu1 %v13687_v12  ;;  %9634 = vmatpush3.msra.mxu0 %v13689_v60 }
 0x9d5   :  { %5596 = vmatprep.subr.mxu1 %v13693_v15  ;;  %9635 = vmatprep.subr.mxu0 %v15521_v28 }
 0x9d6   :  { %5597 = vmatpush1.msra.mxu1 %v13697_v37  ;;  %9636 = vmatpush3.msra.mxu0 %v13699_v32 }
 0x9d7   :  { %9640 = vmatprep.subr.mxu0 %v15521_v28  ;;  %5755 = vmatprep.subr.mxu1 %v13708_v23 }
 0xa35   :  { %v5202_v56 = vpop.f32.mrf.mxu1  ;;  %v5273_v9 = vpop.f32.mrf.mxu0 }
 0xa36   :  { %v5466_v33 = vadd.f32 %v5202_v56, %v13333_v22  ;;  %v5480_v17 = vadd.f32 %v13407_v24, %v5273_v9  ;;  %v13728_v9 = vld [vmem:[#allocation9 + $0x2c8] sm:$0xff]  ;;  %v13742_v24 = vld [vmem:[#allocation9 + $0x260] sm:$0xff] }
 0xa37   :  { %v9569_v62 = vpop.f32.mrf.mxu0  ;;  %v5204_v12 = vpop.f32.mrf.mxu1  ;;  %15965 = vst [vmem:[#allocation16_spill] sm:$0xff] %v13742_v24 }
 0xa38   :  { %v8291_v60 = vmul.f32 -1.442695, %v5466_v33  ;;  %v5473_v15 = vadd.f32 %v5204_v12, %v13338_v10  ;;  %v13720_v12 = vld [vmem:[#allocation9 + $0x2f8] sm:$0xff] }
 0xa3a   :  { %10215 = vpow2.f32 %v8291_v60  ;;  %v8292_v29 = vmul.f32 -1.442695, %v5473_v15 }
 0xa3c   :  { %10217 = vpow2.f32 %v8292_v29  ;;  %v13722_v29 = vld [vmem:[#allocation9 + $0x2c0] sm:$0xff] }
 0xa47   :  { %v10216_v37 = vpop.eup %10215 }
 0xa48   :  { %v5470_v32 = vadd.f32 1.0, %v10216_v37  ;;  %v13718_v37 = vld [vmem:[#allocation9 + $0x2e8] sm:$0xff] }
 0xa49   :  { %v10218_v11 = vpop.eup %10217 }
 0xa4a   :  { %10219 = vrcp.f32 %v5470_v32  ;;  %v5477_v47 = vadd.f32 1.0, %v10218_v11  ;;  %v13748_v11 = vld [vmem:[#allocation9 + $0x268] sm:$0xff] }
 0xa4b   :  { %15967 = vst [vmem:[#allocation96_spill] sm:$0xff] %v13748_v11  ;;  %v13756_v32 = vld [vmem:[#allocation9 + $0x228] sm:$0xff] }
 0xa4c   :  { %10221 = vrcp.f32 %v5477_v47  ;;  %v13732_v47 = vld [vmem:[#allocation9 + $0x290] sm:$0xff] }
 0xa57   :  { %v10220_v23 = vpop.eup %10219 }
 0xa58   :  { %v5481_v7 = vmul.f32 %v10220_v23, %v5480_v17  ;;  %v13738_v17 = vld [vmem:[#allocation9 + $0x298] sm:$0xff]  ;;  %v13752_v23 = vld [vmem:[#allocation9 + $0x230] sm:$0xff] }
 0xa59   :  { %v10222_v62 = vpop.eup %10221  ;;  %15964 = vst [vmem:[#allocation28_spill] sm:$0xff] %v13738_v17  ;;  %15968 = vst [vmem:[#allocation97_spill] sm:$0xff] %v13752_v23 }
 0xa5a   :  { %v5482_v22 = vadd.f32 %v5481_v7, %v13336_v14  ;;  %v5484_v33 = vsub.f32 1.0, %v10222_v62  ;;  %v5486_v10 = vmul.f32 %v10222_v62, %v13449_v25  ;;  %v13726_v14 = vld [vmem:[#allocation9 + $0x2b8] sm:$0xff]  ;;  %v13736_v7 = vld [vmem:[#allocation9 + $0x288] sm:$0xff]  ;;  %v13762_v62 = vld [vmem:[#allocation9 + $0x200] sm:$0xff] }
 0xa5b   :  { %15963 = vst [vmem:[#allocation76_spill] sm:$0xff] %v13736_v7  ;;  %v13746_v25 = vld [vmem:[#allocation9 + $0x258] sm:$0xff]  ;;  %15969 = vst [vmem:[#allocation17_spill] sm:$0xff] %v13762_v62 }
 0xa5c   :  { %10223 = vtanh.f32 %v5482_v22  ;;  %15966 = vst [vmem:[#allocation43_spill] sm:$0xff] %v13746_v25  ;;  %v13758_v22 = vld [vmem:[#allocation9 + $0x238] sm:$0xff] }
 0xa69   :  { %v10224_v60 = vpop.eup %10223 }
 0xa6a   :  { %v5485_v56 = vmul.f32 %v10224_v60, %v5484_v33 }
 0xa6c   :  { %v13716_v15 = vadd.f32 %v5486_v10, %v5485_v56  ;;  %v13768_v56 = vld [vmem:[#allocation9 + $0x1f8] sm:$0xff]  ;;  %v13770_v10 = vld [vmem:[#allocation9 + $0x208] sm:$0xff] }
 0xa6d   :  { %15970 = vst [vmem:[#allocation99_spill] sm:$0xff] %v13768_v56  ;;  %15971 = vst [vmem:[#allocation15_spill] sm:$0xff] %v13770_v10 }
 0xa6e   :  { %5631 = vmatmul.mubr.f32.vlgmr.msra.gmra.mxu1 %v13716_v15  ;;  %9638 = vmatmul.mubr.f32.vlgmr.msra.gmra.mxu0 %v13716_v15 }
 0xa6f   :  { %5756 = vmatpush1.msra.mxu1 %v13718_v37  ;;  %9641 = vmatpush3.msra.mxu0 %v13720_v12 }
 0xa70   :  { %5757 = vmatprep.subr.mxu1 %v13722_v29  ;;  %9642 = vmatprep.subr.mxu0 %v15521_v28 }
 0xa71   :  { %5758 = vmatpush1.msra.mxu1 %v13726_v14  ;;  %9643 = vmatpush3.msra.mxu0 %v13728_v9 }
 0xa72   :  { %5759 = vmatprep.subr.mxu1 %v13732_v47  ;;  %9644 = vmatprep.subr.mxu0 %v15521_v28 }
 0xa73   :  { %5760 = vmatpush1.msra.mxu1 %v13736_v7  ;;  %9645 = vmatpush3.msra.mxu0 %v13738_v17  ;;  %v13781_v17 = vld [vmem:[#allocation9 + $0x1d8] sm:$0xff] }
 0xa74   :  { %5761 = vmatprep.subr.mxu1 %v13742_v24  ;;  %9646 = vmatprep.subr.mxu0 %v15521_v28  ;;  %15974 = vst [vmem:[#allocation82_spill] sm:$0xff] %v13781_v17 }
 0xa75   :  { %5762 = vmatpush1.msra.mxu1 %v13746_v25  ;;  %9647 = vmatpush3.msra.mxu0 %v13748_v11  ;;  %v13775_v11 = vld [vmem:[#allocation9 + $0x1d0] sm:$0xff] }
 0xa76   :  { %v5391_v33 = vpop.f32.mrf.mxu1  ;;  %v13764_v60 = vpop.f32.mrf.mxu0  ;;  %5763 = vmatprep.subr.mxu1 %v13752_v23  ;;  %9648 = vmatprep.subr.mxu0 %v15521_v28  ;;  %15972 = vst [vmem:[#allocation84_spill] sm:$0xff] %v13775_v11  ;;  %v13779_v23 = vld [vmem:[#allocation9 + $0x1c8] sm:$0xff] }
 0xa77   :  { %v5488_v24 = vadd.f32 %v5391_v33, %v13391_v54  ;;  %5764 = vmatpush1.msra.mxu1 %v13756_v32  ;;  %9649 = vmatpush3.msra.mxu0 %v13758_v22  ;;  %15973 = vst [vmem:[#allocation81_spill] sm:$0xff] %v13779_v23  ;;  %v13785_v54 = vld [vmem:[#allocation9 + $0x1a0] sm:$0xff] }
 0xa78   :  { %v9604_v25 = vpop.f32.mrf.mxu0  ;;  %5765 = vmatprep.subr.mxu1 %v13762_v62  ;;  %9650 = vmatprep.subr.mxu0 %v15521_v28  ;;  %15975 = vst [vmem:[#allocation85_spill] sm:$0xff] %v13785_v54  ;;  %v5393_v33 = vpop.f32.mrf.mxu1  ;;  %v13791_v62 = vld [vmem:[#allocation9 + $0x1a8] sm:$0xff] }
 0xa79   :  { %v8293_v7 = vmul.f32 -1.442695, %v5488_v24  ;;  %5766 = vmatpush1.msra.mxu1 %v13768_v56  ;;  %9651 = vmatpush3.msra.mxu0 %v13770_v10  ;;  %v13789_v25 = vld [vmem:[#allocation9 + $0x198] sm:$0xff]  ;;  %15976 = vst [vmem:[#allocation83_spill] sm:$0xff] %v13791_v62  ;;  %v13795_v24 = vld [vmem:[#allocation9 + $0x170] sm:$0xff]  ;;  %v13799_v10 = vld [vmem:[#allocation9 + $0x168] sm:$0xff]  ;;  %v5495_v56 = vadd.f32 %v5393_v33, %v13457_v34 }
 0xa7a   :  { %5767 = vmatprep.subr.mxu1 %v13775_v11  ;;  %9652 = vmatprep.subr.mxu0 %v15521_v28  ;;  %15977 = vst [vmem:[#allocation86_spill] sm:$0xff] %v13795_v24  ;;  %15978 = vst [vmem:[#allocation87_spill] sm:$0xff] %v13799_v10  ;;  %v13801_v11 = vld [vmem:[#allocation9 + $0x178] sm:$0xff]  ;;  %v13820_v34 = vld [vmem:[#allocation9 + $0x108] sm:$0xff] }
 0xa7b   :  { %10225 = vpow2.f32 %v8293_v7  ;;  %5768 = vmatpush1.msra.mxu1 %v13779_v23  ;;  %9653 = vmatpush3.msra.mxu0 %v13781_v17  ;;  %15979 = vst [vmem:[#allocation37_spill] sm:$0xff] %v13801_v11  ;;  %v13806_v7 = vld [vmem:[#allocation9 + $0x140] sm:$0xff]  ;;  %v13810_v17 = vld [vmem:[#allocation9 + $0x138] sm:$0xff]  ;;  %v13816_v23 = vld [vmem:[#allocation9 + $0x110] sm:$0xff] }
 0xa7c   :  { %5769 = vmatprep.subr.mxu1 %v13785_v54  ;;  %9654 = vmatprep.subr.mxu0 %v15521_v28  ;;  %15980 = vst [vmem:[#allocation88_spill] sm:$0xff] %v13806_v7  ;;  %15981 = vst [vmem:[#allocation90_spill] sm:$0xff] %v13810_v17  ;;  %v13812_v54 = vld [vmem:[#allocation9 + $0x148] sm:$0xff]  ;;  %v13822_v33 = vld [vmem:[#allocation9 + $0x118] sm:$0xff] }
 0xa7d   :  { %5770 = vmatpush1.msra.mxu1 %v13789_v25  ;;  %9655 = vmatpush3.msra.mxu0 %v13791_v62  ;;  %15982 = vst [vmem:[#allocation89_spill] sm:$0xff] %v13812_v54  ;;  %15983 = vst [vmem:[#allocation91_spill] sm:$0xff] %v13816_v23  ;;  %v13826_v62 = vld [vmem:[#allocation9 + $0xe0] sm:$0xff] }
 0xa7e   :  { %5771 = vmatprep.subr.mxu1 %v13795_v24  ;;  %9656 = vmatprep.subr.mxu0 %v15521_v28  ;;  %15984 = vst [vmem:[#allocation92_spill] sm:$0xff] %v13820_v34  ;;  %15985 = vst [vmem:[#allocation93_spill] sm:$0xff] %v13822_v33  ;;  %v8294_v24 = vmul.f32 -1.442695, %v5495_v56  ;;  %v13840_v56 = vld [vmem:[#allocation9 + $0xa8] sm:$0xff] }
 0xa7f   :  { %5772 = vmatpush1.msra.mxu1 %v13799_v10  ;;  %9657 = vmatpush3.msra.mxu0 %v13801_v11  ;;  %15986 = vst [vmem:[#allocation94_spill] sm:$0xff] %v13826_v62  ;;  %v13830_v11 = vld [vmem:[#allocation9 + $0xd8] sm:$0xff]  ;;  %v13836_v10 = vld [vmem:[#allocation9 + $0xb0] sm:$0xff]  ;;  %15990 = vst [vmem:[#allocation44_spill] sm:$0xff] %v13840_v56 }
 0xa80   :  { %5773 = vmatprep.subr.mxu1 %v13806_v7  ;;  %9658 = vmatprep.subr.mxu0 %v15521_v28  ;;  %15987 = vst [vmem:[#allocation95_spill] sm:$0xff] %v13830_v11  ;;  %v13832_v7 = vld [vmem:[#allocation9 + $0xe8] sm:$0xff]  ;;  %15989 = vst [vmem:[#allocation55_spill] sm:$0xff] %v13836_v10  ;;  %10227 = vpow2.f32 %v8294_v24 }
 0xa81   :  { %5774 = vmatpush1.msra.mxu1 %v13810_v17  ;;  %9659 = vmatpush3.msra.mxu0 %v13812_v54  ;;  %15988 = vst [vmem:[#allocation53_spill] sm:$0xff] %v13832_v7  ;;  %v13842_v54 = vld [vmem:[#allocation9 + $0xb8] sm:$0xff]  ;;  %v13866_v17 = vld [vmem:[#allocation9 + $0x20] sm:$0xff] }
 0xa82   :  { %5775 = vmatprep.subr.mxu1 %v13816_v23  ;;  %9660 = vmatprep.subr.mxu0 %v15521_v28  ;;  %15991 = vst [vmem:[#allocation54_spill] sm:$0xff] %v13842_v54  ;;  %v13846_v23 = vld [vmem:[#allocation9 + $0x80] sm:$0xff]  ;;  %15998 = vst [vmem:[#allocation46_spill] sm:$0xff] %v13866_v17 }
 0xa83   :  { %5776 = vmatpush1.msra.mxu1 %v13820_v34  ;;  %9661 = vmatpush3.msra.mxu0 %v13822_v33  ;;  %15992 = vst [vmem:[#allocation67_spill] sm:$0xff] %v13846_v23  ;;  %v13850_v33 = vld [vmem:[#allocation9 + $0x78] sm:$0xff]  ;;  %v13856_v34 = vld [vmem:[#allocation9 + $0x50] sm:$0xff] }
 0xa84   :  { %5777 = vmatprep.subr.mxu1 %v13826_v62  ;;  %9662 = vmatprep.subr.mxu0 %v15521_v28  ;;  %15993 = vst [vmem:[#allocation68_spill] sm:$0xff] %v13850_v33  ;;  %v13852_v62 = vld [vmem:[#allocation9 + $0x88] sm:$0xff]  ;;  %15995 = vst [vmem:[#allocation45_spill] sm:$0xff] %v13856_v34 }
 0xa85   :  { %5778 = vmatpush1.msra.mxu1 %v13830_v11  ;;  %9663 = vmatpush3.msra.mxu0 %v13832_v7  ;;  %15994 = vst [vmem:[#allocation98_spill] sm:$0xff] %v13852_v62  ;;  %v13860_v7 = vld [vmem:[#allocation9 + $0x48] sm:$0xff] }
 0xa86   :  { %5779 = vmatprep.subr.mxu1 %v13836_v10  ;;  %9664 = vmatprep.subr.mxu0 %v15521_v28  ;;  %15996 = vst [vmem:[#allocation47_spill] sm:$0xff] %v13860_v7  ;;  %v13862_v10 = vld [vmem:[#allocation9 + $0x58] sm:$0xff] }
 0xa87   :  { %5780 = vmatpush1.msra.mxu1 %v13840_v56  ;;  %9665 = vmatpush3.msra.mxu0 %v13842_v54  ;;  %15997 = vst [vmem:[#allocation52_spill] sm:$0xff] %v13862_v10  ;;  %v13870_v54 = vld [vmem:[#allocation9 + $0x18] sm:$0xff] }
 0xa88   :  { %v10226_v24 = vpop.eup %10225  ;;  %5781 = vmatprep.subr.mxu1 %v13846_v23  ;;  %9666 = vmatprep.subr.mxu0 %v15521_v28  ;;  %15999 = vst [vmem:[#allocation71_spill] sm:$0xff] %v13870_v54  ;;  %v13874_v23 = vld [vmem:[#allocation9 + $0x28] sm:$0xff] }
 0xa89   :  { %v5492_v11 = vadd.f32 1.0, %v10226_v24  ;;  %5782 = vmatpush1.msra.mxu1 %v13850_v33  ;;  %9667 = vmatpush3.msra.mxu0 %v13852_v62  ;;  %16000 = vst [vmem:[#allocation72_spill] sm:$0xff] %v13874_v23 }
 0xa8a   :  { %5783 = vmatprep.subr.mxu1 %v13856_v34  ;;  %9668 = vmatprep.subr.mxu0 %v15521_v28 }
 0xa8b   :  { %10229 = vrcp.f32 %v5492_v11  ;;  %5784 = vmatpush1.msra.mxu1 %v13860_v7  ;;  %9669 = vmatpush3.msra.mxu0 %v13862_v10 }
 0xa8c   :  { %5785 = vmatprep.subr.mxu1 %v13866_v17  ;;  %9670 = vmatprep.subr.mxu0 %v15521_v28  ;;  %v5502_v17 = vadd.f32 %v13536_v43, %v13764_v60  ;;  %v16023_v60 = vld [vmem:[#allocation17_spill] sm:$0xff] }
 0xa8d   :  { %5786 = vmatpush1.msra.mxu1 %v13870_v54  ;;  %5819 = vmatprep.mubr.f32.mxu1 %v15521_v28  ;;  %v10228_v11 = vpop.eup %10227 }
 0xa8e   :  { %9671 = vmatpush3.msra.mxu0 %v13874_v23  ;;  %9672 = vmatprep.mubr.msk.f32.mxu0 %vm10448_vm1, %v15521_v28  ;;  %v5499_v24 = vadd.f32 1.0, %v10228_v11  ;;  %v16030_v11 = vld [vmem:[#allocation34_spill] sm:$0xff] }
 0xa8f   :  { %5996 = vmatprep.subr.mxu1 %v13548_v2  ;;  %9675 = vmatprep.subr.mxu0 %v15521_v28 }
 0xa90   :  { %10231 = vrcp.f32 %v5499_v24 }
 0xa98   :  { %v10230_v10 = vpop.eup %10229 }
 0xa99   :  { %v5503_v7 = vmul.f32 %v10230_v10, %v5502_v17  ;;  %v16018_v17 = vld [vmem:[#allocation16_spill] sm:$0xff] }
 0xa9b   :  { %v5504_v54 = vadd.f32 %v5503_v7, %v13464_v27  ;;  %v16002_v27 = vld [vmem:[#allocation36_spill] sm:$0xff]  ;;  %v16025_v7 = vld [vmem:[#allocation15_spill] sm:$0xff] }
 0xa9d   :  { %10233 = vtanh.f32 %v5504_v54  ;;  %v10232_v34 = vpop.eup %10231  ;;  %v16024_v54 = vld [vmem:[#allocation99_spill] sm:$0xff] }
 0xa9e   :  { %v5506_v23 = vsub.f32 1.0, %v10232_v34  ;;  %v5508_v56 = vmul.f32 %v10232_v34, %v13541_v4 }
 0xaaa   :  { %v10234_v62 = vpop.eup %10233 }
 0xaab   :  { %v5507_v33 = vmul.f32 %v10234_v62, %v5506_v23 }
 0xaad   :  { %v13889_v2 = vadd.f32 %v5508_v56, %v5507_v33  ;;  %v16026_v33 = vld [vmem:[#allocation84_spill] sm:$0xff]  ;;  %v16027_v56 = vld [vmem:[#allocation81_spill] sm:$0xff] }
 0xaaf   :  { %16001 = vst [vmem:[#allocation18_spill] sm:$0xff] %v13889_v2  ;;  %5820 = vmatmul.mubr.f32.vlgmr.msra.gmra.mxu1 %v13889_v2  ;;  %9673 = vmatmul.mubr.f32.vlgmr.msra.gmra.mxu0 %v13889_v2 }
 0xab0   :  { %5997 = vmatpush1.msra.mxu1 %v13551_v19  ;;  %9676 = vmatpush3.msra.mxu0 %v13553_v31  ;;  %v16003_v19 = vld [vmem:[#allocation77_spill] sm:$0xff]  ;;  %v16004_v31 = vld [vmem:[#allocation78_spill] sm:$0xff] }
 0xab1   :  { %5998 = vmatprep.subr.mxu1 %v13557_v16  ;;  %9677 = vmatprep.subr.mxu0 %v15521_v28  ;;  %v16005_v16 = vld [vmem:[#allocation79_spill] sm:$0xff] }
 0xab2   :  { %5999 = vmatpush1.msra.mxu1 %v13561_v40  ;;  %9678 = vmatpush3.msra.mxu0 %v13563_v35  ;;  %v16006_v40 = vld [vmem:[#allocation80_spill] sm:$0xff]  ;;  %v16011_v35 = vld [vmem:[#allocation63_spill] sm:$0xff] }
 0xab3   :  { %6000 = vmatprep.subr.mxu1 %v13567_v50  ;;  %9679 = vmatprep.subr.mxu0 %v15521_v28  ;;  %v16012_v50 = vld [vmem:[#allocation64_spill] sm:$0xff] }
 0xab4   :  { %6001 = vmatpush1.msra.mxu1 %v13571_v30  ;;  %9680 = vmatpush3.msra.mxu0 %v13573_v46 }
 0xab5   :  { %6002 = vmatprep.subr.mxu1 %v13577_v49  ;;  %9681 = vmatprep.subr.mxu0 %v15521_v28  ;;  %v16013_v49 = vld [vmem:[#allocation21_spill] sm:$0xff] }
 0xab6   :  { %6003 = vmatpush1.msra.mxu1 %v13581_v20  ;;  %9682 = vmatpush3.msra.mxu0 %v13583_v26 }
 0xab7   :  { %6004 = vmatprep.subr.mxu1 %v13587_v45  ;;  %9683 = vmatprep.subr.mxu0 %v15521_v28 }
 0xab8   :  { %6005 = vmatpush1.msra.mxu1 %v13591_v55  ;;  %9684 = vmatpush3.msra.mxu0 %v13593_v51  ;;  %v16014_v51 = vld [vmem:[#allocation59_spill] sm:$0xff] }
 0xab9   :  { %6006 = vmatprep.subr.mxu1 %v13597_v8  ;;  %9685 = vmatprep.subr.mxu0 %v15521_v28 }
 0xaba   :  { %6007 = vmatpush1.msra.mxu1 %v13601_v1  ;;  %9686 = vmatpush3.msra.mxu0 %v13603_v41 }
 0xabb   :  { %6008 = vmatprep.subr.mxu1 %v13607_v57  ;;  %9687 = vmatprep.subr.mxu0 %v15521_v28 }
 0xabc   :  { %6009 = vmatpush1.msra.mxu1 %v13611_v44  ;;  %9688 = vmatpush3.msra.mxu0 %v13613_v58 }
 0xabd   :  { %6010 = vmatprep.subr.mxu1 %v13615_v5  ;;  %9689 = vmatprep.subr.mxu0 %v15521_v28  ;;  %v13965_v5 = vld [vmem:[%s15093_s8] ss:$0 sm:$0xff] }
 0xabe   :  { %6011 = vmatpush1.msra.mxu1 %v13619_v38  ;;  %9690 = vmatpush3.msra.mxu0 %v13621_v42 }
 0xabf   :  { %6012 = vmatprep.subr.mxu1 %v13623_v52  ;;  %9691 = vmatprep.subr.mxu0 %v15521_v28 }
 0xac0   :  { %6013 = vmatpush1.msra.mxu1 %v13627_v0  ;;  %9692 = vmatpush3.msra.mxu0 %v13629_v63  ;;  %v16015_v0 = vld [vmem:[#allocation57_spill] sm:$0xff] }
 0xac1   :  { %6014 = vmatprep.subr.mxu1 %v13633_v59  ;;  %9693 = vmatprep.subr.mxu0 %v15521_v28 }
 0xac2   :  { %6015 = vmatpush1.msra.mxu1 %v13637_v18  ;;  %9694 = vmatpush3.msra.mxu0 %v13639_v21 }
 0xac3   :  { %6016 = vmatprep.subr.mxu1 %v13643_v53  ;;  %9695 = vmatprep.subr.mxu0 %v15521_v28 }
 0xac4   :  { %6017 = vmatpush1.msra.mxu1 %v13647_v3  ;;  %9696 = vmatpush3.msra.mxu0 %v13649_v39 }
 0xac5   :  { %6018 = vmatprep.subr.mxu1 %v13653_v13  ;;  %9697 = vmatprep.subr.mxu0 %v15521_v28  ;;  %v16016_v13 = vld [vmem:[#allocation76_spill] sm:$0xff] }
 0xac6   :  { %6019 = vmatpush1.msra.mxu1 %v13657_v6  ;;  %9698 = vmatpush3.msra.mxu0 %v13659_v36  ;;  %v16007_v6 = vld [vmem:[#allocation60_spill] sm:$0xff]  ;;  %v16009_v36 = vld [vmem:[#allocation38_spill] sm:$0xff] }
 0xac7   :  { %6020 = vmatprep.subr.mxu1 %v13663_v48  ;;  %9699 = vmatprep.subr.mxu0 %v15521_v28  ;;  %v16008_v48 = vld [vmem:[#allocation62_spill] sm:$0xff] }
 0xac8   :  { %6021 = vmatpush1.msra.mxu1 %v13667_v61  ;;  %9700 = vmatpush3.msra.mxu0 %v16002_v27  ;;  %v16010_v61 = vld [vmem:[#allocation61_spill] sm:$0xff]  ;;  %v16031_v27 = vld [vmem:[#allocation83_spill] sm:$0xff] }
 0xac9   :  { %6022 = vmatprep.subr.mxu1 %v16003_v19  ;;  %9701 = vmatprep.subr.mxu0 %v15521_v28  ;;  %v16032_v19 = vld [vmem:[#allocation86_spill] sm:$0xff] }
 0xaca   :  { %6023 = vmatpush1.msra.mxu1 %v16004_v31  ;;  %9702 = vmatpush3.msra.mxu0 %v16005_v16  ;;  %v16033_v31 = vld [vmem:[#allocation87_spill] sm:$0xff]  ;;  %v16034_v16 = vld [vmem:[#allocation37_spill] sm:$0xff] }
 0xacb   :  { %6024 = vmatprep.subr.mxu1 %v16006_v40  ;;  %9703 = vmatprep.subr.mxu0 %v15521_v28  ;;  %v16035_v40 = vld [vmem:[#allocation88_spill] sm:$0xff] }
 0xacc   :  { %6025 = vmatpush1.msra.mxu1 %v16007_v6  ;;  %9704 = vmatpush3.msra.mxu0 %v16008_v48  ;;  %v16036_v48 = vld [vmem:[#allocation90_spill] sm:$0xff] }
 0xacd   :  { %6026 = vmatprep.subr.mxu1 %v16009_v36  ;;  %9705 = vmatprep.subr.mxu0 %v15521_v28  ;;  %v16037_v36 = vld [vmem:[#allocation89_spill] sm:$0xff] }
 0xace   :  { %6027 = vmatpush1.msra.mxu1 %v16010_v61  ;;  %6060 = vmatprep.mubr.f32.mxu1 %v15521_v28  ;;  %v16039_v61 = vld [vmem:[#allocation92_spill] sm:$0xff] }
 0xacf   :  { %9706 = vmatpush3.msra.mxu0 %v16011_v35  ;;  %9707 = vmatprep.mubr.msk.f32.mxu0 %vm10448_vm1, %v15521_v28  ;;  %v16040_v35 = vld [vmem:[#allocation93_spill] sm:$0xff] }
 0xad0   :  { %6185 = vmatprep.subr.mxu1 %v16012_v50  ;;  %9710 = vmatprep.subr.mxu0 %v15521_v28  ;;  %v16041_v50 = vld [vmem:[#allocation94_spill] sm:$0xff] }
 0xb2e   :  { %v5632_v30 = vpop.f32.mrf.mxu1  ;;  %v5703_v46 = vpop.f32.mrf.mxu0 }
 0xb2f   :  { %v5896_v20 = vadd.f32 %v5632_v30, %v16013_v49  ;;  %v5910_v38 = vadd.f32 %v13965_v5, %v5703_v46  ;;  %v16042_v30 = vld [vmem:[#allocation95_spill] sm:$0xff]  ;;  %v16043_v46 = vld [vmem:[#allocation53_spill] sm:$0xff] }
 0xb30   :  { %v9639_v26 = vpop.f32.mrf.mxu0  ;;  %v5634_v55 = vpop.f32.mrf.mxu1  ;;  %v16044_v49 = vld [vmem:[#allocation55_spill] sm:$0xff] }
 0xb31   :  { %v8295_v45 = vmul.f32 -1.442695, %v5896_v20  ;;  %v5903_v8 = vadd.f32 %v5634_v55, %v16014_v51  ;;  %v16045_v20 = vld [vmem:[#allocation44_spill] sm:$0xff]  ;;  %v16046_v26 = vld [vmem:[#allocation54_spill] sm:$0xff]  ;;  %v16047_v55 = vld [vmem:[#allocation67_spill] sm:$0xff] }
 0xb33   :  { %10235 = vpow2.f32 %v8295_v45  ;;  %v8296_v1 = vmul.f32 -1.442695, %v5903_v8  ;;  %v16048_v8 = vld [vmem:[#allocation68_spill] sm:$0xff] }
 0xb35   :  { %10237 = vpow2.f32 %v8296_v1  ;;  %v16049_v1 = vld [vmem:[#allocation98_spill] sm:$0xff] }
 0xb40   :  { %v10236_v41 = vpop.eup %10235 }
 0xb41   :  { %v5900_v57 = vadd.f32 1.0, %v10236_v41  ;;  %v16050_v41 = vld [vmem:[#allocation45_spill] sm:$0xff] }
 0xb42   :  { %v10238_v44 = vpop.eup %10237 }
 0xb43   :  { %10239 = vrcp.f32 %v5900_v57  ;;  %v5907_v58 = vadd.f32 1.0, %v10238_v44  ;;  %v16051_v57 = vld [vmem:[#allocation47_spill] sm:$0xff]  ;;  %v16052_v44 = vld [vmem:[#allocation52_spill] sm:$0xff] }
 0xb45   :  { %10241 = vrcp.f32 %v5907_v58  ;;  %v16053_v58 = vld [vmem:[#allocation46_spill] sm:$0xff] }
 0xb50   :  { %v10240_v42 = vpop.eup %10239 }
 0xb51   :  { %v5911_v52 = vmul.f32 %v10240_v42, %v5910_v38  ;;  %v16054_v38 = vld [vmem:[#allocation71_spill] sm:$0xff]  ;;  %v16055_v42 = vld [vmem:[#allocation72_spill] sm:$0xff] }
 0xb52   :  { %v10242_v59 = vpop.eup %10241 }
 0xb53   :  { %v5912_v63 = vadd.f32 %v5911_v52, %v16015_v0  ;;  %v5914_v18 = vsub.f32 1.0, %v10242_v59  ;;  %v5916_v3 = vmul.f32 %v10242_v59, %v13716_v15  ;;  %v16017_v15 = vld [vmem:[#allocation28_spill] sm:$0xff] }
 0xb55   :  { %10243 = vtanh.f32 %v5912_v63 }
 0xb62   :  { %v10244_v21 = vpop.eup %10243 }
 0xb63   :  { %v5915_v53 = vmul.f32 %v10244_v21, %v5914_v18  ;;  %v16056_v21 = vld [vmem:[#allocation35_spill] sm:$0xff] }
 0xb65   :  { %v13970_v39 = vadd.f32 %v5916_v3, %v5915_v53 }
 0xb67   :  { %6061 = vmatmul.mubr.f32.vlgmr.msra.gmra.mxu1 %v13970_v39  ;;  %9708 = vmatmul.mubr.f32.vlgmr.msra.gmra.mxu0 %v13970_v39 }
 0xb68   :  { %6186 = vmatpush1.msra.mxu1 %v13718_v37  ;;  %9711 = vmatpush3.msra.mxu0 %v13720_v12  ;;  %v16019_v37 = vld [vmem:[#allocation43_spill] sm:$0xff]  ;;  %v16020_v12 = vld [vmem:[#allocation96_spill] sm:$0xff] }
 0xb69   :  { %6187 = vmatprep.subr.mxu1 %v13722_v29  ;;  %9712 = vmatprep.subr.mxu0 %v15521_v28 }
 0xb6a   :  { %6188 = vmatpush1.msra.mxu1 %v13726_v14  ;;  %9713 = vmatpush3.msra.mxu0 %v13728_v9  ;;  %v16021_v9 = vld [vmem:[#allocation97_spill] sm:$0xff] }
 0xb6b   :  { %6189 = vmatprep.subr.mxu1 %v13732_v47  ;;  %9714 = vmatprep.subr.mxu0 %v15521_v28  ;;  %v16022_v47 = vld [vmem:[#allocation51_spill] sm:$0xff] }
 0xb6c   :  { %6190 = vmatpush1.msra.mxu1 %v16016_v13  ;;  %9715 = vmatpush3.msra.mxu0 %v16017_v15 }
 0xb6d   :  { %6191 = vmatprep.subr.mxu1 %v16018_v17  ;;  %9716 = vmatprep.subr.mxu0 %v15521_v28 }
 0xb6e   :  { %6192 = vmatpush1.msra.mxu1 %v16019_v37  ;;  %9717 = vmatpush3.msra.mxu0 %v16020_v12 }
 0xb6f   :  { %v5821_v29 = vpop.f32.mrf.mxu1  ;;  %v13988_v14 = vpop.f32.mrf.mxu0  ;;  %6193 = vmatprep.subr.mxu1 %v16021_v9  ;;  %9718 = vmatprep.subr.mxu0 %v15521_v28  ;;  %v14064_v9 = vld [vmem:[#allocation9 + $0x2a8] sm:$0xff] }
 0xb70   :  { %v5918_v23 = vadd.f32 %v5821_v29, %v16022_v47  ;;  %6194 = vmatpush1.msra.mxu1 %v13756_v32  ;;  %9719 = vmatpush3.msra.mxu0 %v13758_v22  ;;  %v16028_v32 = vld [vmem:[#allocation82_spill] sm:$0xff]  ;;  %v16029_v22 = vld [vmem:[#allocation85_spill] sm:$0xff]  ;;  %v5932_v63 = vadd.f32 %v13536_v43, %v13988_v14  ;;  %v14060_v14 = vld [vmem:[#allocation9 + $0x2e0] sm:$0xff] }
 0xb71   :  { %v9674_v62 = vpop.f32.mrf.mxu0  ;;  %6195 = vmatprep.subr.mxu1 %v16023_v60  ;;  %9720 = vmatprep.subr.mxu0 %v15521_v28  ;;  %v5823_v34 = vpop.f32.mrf.mxu1  ;;  %v14055_v43 = vld [vmem:[#allocation9 + $0x2d8] sm:$0xff]  ;;  %v14058_v29 = vld [vmem:[#allocation9 + $0x2d0] sm:$0xff]  ;;  %v14068_v47 = vld [vmem:[#allocation9 + $0x2a0] sm:$0xff] }
 0xb72   :  { %v8297_v10 = vmul.f32 -1.442695, %v5918_v23  ;;  %6196 = vmatpush1.msra.mxu1 %v16024_v54  ;;  %9721 = vmatpush3.msra.mxu0 %v16025_v7  ;;  %v5925_v24 = vadd.f32 %v5823_v34, %v16030_v11  ;;  %v14070_v23 = vld [vmem:[#allocation9 + $0x2b0] sm:$0xff]  ;;  %v14074_v62 = vld [vmem:[#allocation9 + $0x278] sm:$0xff]  ;;  %v14084_v54 = vld [vmem:[#allocation9 + $0x248] sm:$0xff] }
 0xb73   :  { %6197 = vmatprep.subr.mxu1 %v16026_v33  ;;  %9722 = vmatprep.subr.mxu0 %v15521_v28  ;;  %v14078_v60 = vld [vmem:[#allocation9 + $0x270] sm:$0xff]  ;;  %v14088_v7 = vld [vmem:[#allocation9 + $0x240] sm:$0xff]  ;;  %v14094_v33 = vld [vmem:[#allocation9 + $0x218] sm:$0xff] }
 0xb74   :  { %10245 = vpow2.f32 %v8297_v10  ;;  %6198 = vmatpush1.msra.mxu1 %v16027_v56  ;;  %9723 = vmatpush3.msra.mxu0 %v16028_v32  ;;  %v8298_v6 = vmul.f32 -1.442695, %v5925_v24  ;;  %v14080_v10 = vld [vmem:[#allocation9 + $0x280] sm:$0xff]  ;;  %v14090_v34 = vld [vmem:[#allocation9 + $0x250] sm:$0xff] }
 0xb75   :  { %6199 = vmatprep.subr.mxu1 %v16029_v22  ;;  %9724 = vmatprep.subr.mxu0 %v15521_v28  ;;  %v14098_v56 = vld [vmem:[#allocation9 + $0x210] sm:$0xff]  ;;  %v14100_v32 = vld [vmem:[#allocation9 + $0x220] sm:$0xff]  ;;  %v14104_v22 = vld [vmem:[#allocation9 + $0x1e8] sm:$0xff] }
 0xb76   :  { %6200 = vmatpush1.msra.mxu1 %v13789_v25  ;;  %9725 = vmatpush3.msra.mxu0 %v16031_v27  ;;  %v16038_v25 = vld [vmem:[#allocation91_spill] sm:$0xff]  ;;  %10247 = vpow2.f32 %v8298_v6  ;;  %v14110_v24 = vld [vmem:[#allocation9 + $0x1f0] sm:$0xff]  ;;  %v14114_v27 = vld [vmem:[#allocation9 + $0x1b8] sm:$0xff] }
 0xb77   :  { %6201 = vmatprep.subr.mxu1 %v16032_v19  ;;  %9726 = vmatprep.subr.mxu0 %v15521_v28  ;;  %v14108_v11 = vld [vmem:[#allocation9 + $0x1e0] sm:$0xff]  ;;  %v14118_v19 = vld [vmem:[#allocation9 + $0x1b0] sm:$0xff] }
 0xb78   :  { %6202 = vmatpush1.msra.mxu1 %v16033_v31  ;;  %9727 = vmatpush3.msra.mxu0 %v16034_v16  ;;  %v14120_v31 = vld [vmem:[#allocation9 + $0x1c0] sm:$0xff]  ;;  %v14122_v16 = vld [vmem:[#allocation9 + $0x188] sm:$0xff]  ;;  %v14128_v6 = vld [vmem:[#allocation9 + $0x190] sm:$0xff] }
 0xb79   :  { %6203 = vmatprep.subr.mxu1 %v16035_v40  ;;  %9728 = vmatprep.subr.mxu0 %v15521_v28  ;;  %v14126_v40 = vld [vmem:[#allocation9 + $0x180] sm:$0xff] }
 0xb7a   :  { %6204 = vmatpush1.msra.mxu1 %v16036_v48  ;;  %9729 = vmatpush3.msra.mxu0 %v16037_v36  ;;  %v14130_v48 = vld [vmem:[#allocation9 + $0x158] sm:$0xff]  ;;  %v14134_v36 = vld [vmem:[#allocation9 + $0x150] sm:$0xff] }
 0xb7b   :  { %6205 = vmatprep.subr.mxu1 %v16038_v25  ;;  %9730 = vmatprep.subr.mxu0 %v15521_v28  ;;  %v14136_v25 = vld [vmem:[#allocation9 + $0x160] sm:$0xff] }
 0xb7c   :  { %6206 = vmatpush1.msra.mxu1 %v16039_v61  ;;  %9731 = vmatpush3.msra.mxu0 %v16040_v35  ;;  %v14140_v61 = vld [vmem:[#allocation9 + $0x128] sm:$0xff]  ;;  %v14144_v35 = vld [vmem:[#allocation9 + $0x120] sm:$0xff] }
 0xb7d   :  { %6207 = vmatprep.subr.mxu1 %v16041_v50  ;;  %9732 = vmatprep.subr.mxu0 %v15521_v28  ;;  %v14146_v50 = vld [vmem:[#allocation9 + $0x130] sm:$0xff] }
 0xb7e   :  { %6208 = vmatpush1.msra.mxu1 %v16042_v30  ;;  %9733 = vmatpush3.msra.mxu0 %v16043_v46  ;;  %v14150_v30 = vld [vmem:[#allocation9 + $0xf8] sm:$0xff]  ;;  %v14154_v46 = vld [vmem:[#allocation9 + $0xf0] sm:$0xff] }
 0xb7f   :  { %6209 = vmatprep.subr.mxu1 %v16044_v49  ;;  %9734 = vmatprep.subr.mxu0 %v15521_v28  ;;  %v14156_v49 = vld [vmem:[#allocation9 + $0x100] sm:$0xff] }
 0xb80   :  { %6210 = vmatpush1.msra.mxu1 %v16045_v20  ;;  %9735 = vmatpush3.msra.mxu0 %v16046_v26  ;;  %v14160_v20 = vld [vmem:[#allocation9 + $0xc8] sm:$0xff]  ;;  %v14164_v26 = vld [vmem:[#allocation9 + $0xc0] sm:$0xff] }
 0xb81   :  { %v10246_v45 = vpop.eup %10245  ;;  %6211 = vmatprep.subr.mxu1 %v16047_v55  ;;  %9736 = vmatprep.subr.mxu0 %v15521_v28  ;;  %v14170_v55 = vld [vmem:[#allocation9 + $0x98] sm:$0xff] }
 0xb82   :  { %v5922_v51 = vadd.f32 1.0, %v10246_v45  ;;  %6212 = vmatpush1.msra.mxu1 %v16048_v8  ;;  %9737 = vmatpush3.msra.mxu0 %v16049_v1  ;;  %v14166_v45 = vld [vmem:[#allocation9 + $0xd0] sm:$0xff]  ;;  %v14176_v8 = vld [vmem:[#allocation9 + $0xa0] sm:$0xff]  ;;  %v14180_v1 = vld [vmem:[#allocation9 + $0x68] sm:$0xff] }
 0xb83   :  { %6213 = vmatprep.subr.mxu1 %v16050_v41  ;;  %9738 = vmatprep.subr.mxu0 %v15521_v28  ;;  %v10248_v52 = vpop.eup %10247  ;;  %v14184_v41 = vld [vmem:[#allocation9 + $0x60] sm:$0xff] }
 0xb84   :  { %10249 = vrcp.f32 %v5922_v51  ;;  %6214 = vmatpush1.msra.mxu1 %v16051_v57  ;;  %9739 = vmatpush3.msra.mxu0 %v16052_v44  ;;  %v5929_v0 = vadd.f32 1.0, %v10248_v52  ;;  %v14174_v51 = vld [vmem:[#allocation9 + $0x90] sm:$0xff]  ;;  %v14190_v44 = vld [vmem:[#allocation9 + $0x38] sm:$0xff]  ;;  %v14204_v52 = vld [vmem:[#allocation9] sm:$0xff] }
 0xb85   :  { %6215 = vmatprep.subr.mxu1 %v16053_v58  ;;  %9740 = vmatprep.subr.mxu0 %v15521_v28  ;;  %v14186_v57 = vld [vmem:[#allocation9 + $0x70] sm:$0xff]  ;;  %16058 = vst [vmem:[#allocation36_spill] sm:$0xff] %v14190_v44  ;;  %16062 = vst [vmem:[#allocation80_spill] sm:$0xff] %v14204_v52 }
 0xb86   :  { %6216 = vmatpush1.msra.mxu1 %v16054_v38  ;;  %6249 = vmatprep.mubr.f32.mxu1 %v15521_v28  ;;  %10251 = vrcp.f32 %v5929_v0  ;;  %v14194_v58 = vld [vmem:[#allocation9 + $0x30] sm:$0xff]  ;;  %v14196_v38 = vld [vmem:[#allocation9 + $0x40] sm:$0xff] }
 0xb87   :  { %9741 = vmatpush3.msra.mxu0 %v16055_v42  ;;  %9742 = vmatprep.mubr.msk.f32.mxu0 %vm10448_vm1, %v15521_v28  ;;  %16059 = vst [vmem:[#allocation77_spill] sm:$0xff] %v14194_v58  ;;  %16060 = vst [vmem:[#allocation78_spill] sm:$0xff] %v14196_v38  ;;  %v14200_v42 = vld [vmem:[#allocation9 + $0x8] sm:$0xff]  ;;  %v14206_v0 = vld [vmem:[#allocation9 + $0x10] sm:$0xff] }
 0xb88   :  { %9745 = vmatprep.subr.mxu0 %v15521_v28  ;;  %6426 = vmatprep.subr.mxu1 %v14055_v43  ;;  %16061 = vst [vmem:[#allocation79_spill] sm:$0xff] %v14200_v42  ;;  %16063 = vst [vmem:[#allocation60_spill] sm:$0xff] %v14206_v0 }
 0xb91   :  { %v10250_v59 = vpop.eup %10249 }
 0xb92   :  { %v5933_v18 = vmul.f32 %v10250_v59, %v5932_v63  ;;  %v14215_v63 = vld [vmem:[#allocation9 + $0x2f0] sm:$0xff] }
 0xb93   :  { %v10252_v3 = vpop.eup %10251  ;;  %16064 = vst [vmem:[#allocation62_spill] sm:$0xff] %v14215_v63 }
 0xb94   :  { %v5934_v53 = vadd.f32 %v5933_v18, %v16056_v21  ;;  %v5936_v13 = vsub.f32 1.0, %v10252_v3  ;;  %v5938_v37 = vmul.f32 %v10252_v3, %v13889_v2  ;;  %v16065_v21 = vld [vmem:[#allocation39_spill] sm:$0xff] }
 0xb96   :  { %10253 = vtanh.f32 %v5934_v53 }
 0xba3   :  { %v10254_v15 = vpop.eup %10253 }
 0xba4   :  { %v5937_v17 = vmul.f32 %v10254_v15, %v5936_v13 }
 0xba6   :  { %v14048_v12 = vadd.f32 %v5938_v37, %v5937_v17  ;;  %v16066_v17 = vld [vmem:[#allocation65_spill] sm:$0xff] }
 0xba8   :  { %16057 = vst [vmem:[#allocation19_spill] sm:$0xff] %v14048_v12  ;;  %6250 = vmatmul.mubr.f32.vlgmr.msra.gmra.mxu1 %v14048_v12  ;;  %9743 = vmatmul.mubr.f32.vlgmr.msra.gmra.mxu0 %v14048_v12 }
 0xba9   :  { %6490 = vmatprep.mubr.f32.mxu1 %v15521_v28  ;;  %9777 = vmatprep.mubr.msk.f32.mxu0 %vm10448_vm1, %v15521_v28 }
 0xbaa   :  { %6427 = vmatpush1.msra.mxu1 %v14058_v29  ;;  %9746 = vmatpush3.msra.mxu0 %v14060_v14 }
 0xbab   :  { %6428 = vmatprep.subr.mxu1 %v14064_v9  ;;  %9747 = vmatprep.subr.mxu0 %v15521_v28 }
 0xbac   :  { %6429 = vmatpush1.msra.mxu1 %v14068_v47  ;;  %9748 = vmatpush3.msra.mxu0 %v14070_v23 }
 0xbad   :  { %6430 = vmatprep.subr.mxu1 %v14074_v62  ;;  %9749 = vmatprep.subr.mxu0 %v15521_v28 }
 0xbae   :  { %6431 = vmatpush1.msra.mxu1 %v14078_v60  ;;  %9750 = vmatpush3.msra.mxu0 %v14080_v10 }
 0xbaf   :  { %6432 = vmatprep.subr.mxu1 %v14084_v54  ;;  %9751 = vmatprep.subr.mxu0 %v15521_v28 }
 0xbb0   :  { %6433 = vmatpush1.msra.mxu1 %v14088_v7  ;;  %9752 = vmatpush3.msra.mxu0 %v14090_v34 }
 0xbb1   :  { %6434 = vmatprep.subr.mxu1 %v14094_v33  ;;  %9753 = vmatprep.subr.mxu0 %v15521_v28 }
 0xbb2   :  { %6435 = vmatpush1.msra.mxu1 %v14098_v56  ;;  %9754 = vmatpush3.msra.mxu0 %v14100_v32 }
 0xbb3   :  { %6436 = vmatprep.subr.mxu1 %v14104_v22  ;;  %9755 = vmatprep.subr.mxu0 %v15521_v28 }
 0xbb4   :  { %6437 = vmatpush1.msra.mxu1 %v14108_v11  ;;  %9756 = vmatpush3.msra.mxu0 %v14110_v24 }
 0xbb5   :  { %6438 = vmatprep.subr.mxu1 %v14114_v27  ;;  %9757 = vmatprep.subr.mxu0 %v15521_v28 }
 0xbb6   :  { %6439 = vmatpush1.msra.mxu1 %v14118_v19  ;;  %9758 = vmatpush3.msra.mxu0 %v14120_v31 }
 0xbb7   :  { %6440 = vmatprep.subr.mxu1 %v14122_v16  ;;  %9759 = vmatprep.subr.mxu0 %v15521_v28 }
 0xbb8   :  { %6441 = vmatpush1.msra.mxu1 %v14126_v40  ;;  %9760 = vmatpush3.msra.mxu0 %v14128_v6 }
 0xbb9   :  { %6442 = vmatprep.subr.mxu1 %v14130_v48  ;;  %9761 = vmatprep.subr.mxu0 %v15521_v28 }
 0xbba   :  { %6443 = vmatpush1.msra.mxu1 %v14134_v36  ;;  %9762 = vmatpush3.msra.mxu0 %v14136_v25 }
 0xbbb   :  { %6444 = vmatprep.subr.mxu1 %v14140_v61  ;;  %9763 = vmatprep.subr.mxu0 %v15521_v28 }
 0xbbc   :  { %6445 = vmatpush1.msra.mxu1 %v14144_v35  ;;  %9764 = vmatpush3.msra.mxu0 %v14146_v50 }
 0xbbd   :  { %6446 = vmatprep.subr.mxu1 %v14150_v30  ;;  %9765 = vmatprep.subr.mxu0 %v15521_v28 }
 0xbbe   :  { %6447 = vmatpush1.msra.mxu1 %v14154_v46  ;;  %9766 = vmatpush3.msra.mxu0 %v14156_v49 }
 0xbbf   :  { %6448 = vmatprep.subr.mxu1 %v14160_v20  ;;  %9767 = vmatprep.subr.mxu0 %v15521_v28 }
 0xbc0   :  { %6449 = vmatpush1.msra.mxu1 %v14164_v26  ;;  %9768 = vmatpush3.msra.mxu0 %v14166_v45 }
 0xbc1   :  { %6450 = vmatprep.subr.mxu1 %v14170_v55  ;;  %9769 = vmatprep.subr.mxu0 %v15521_v28 }
 0xbc2   :  { %6451 = vmatpush1.msra.mxu1 %v14174_v51  ;;  %9770 = vmatpush3.msra.mxu0 %v14176_v8 }
 0xbc3   :  { %6452 = vmatprep.subr.mxu1 %v14180_v1  ;;  %9771 = vmatprep.subr.mxu0 %v15521_v28 }
 0xbc4   :  { %6453 = vmatpush1.msra.mxu1 %v14184_v41  ;;  %9772 = vmatpush3.msra.mxu0 %v14186_v57 }
 0xbc5   :  { %6454 = vmatprep.subr.mxu1 %v14190_v44  ;;  %9773 = vmatprep.subr.mxu0 %v15521_v28  ;;  %v16067_v44 = vld [vmem:[#allocation58_spill] sm:$0xff] }
 0xbc6   :  { %6455 = vmatpush1.msra.mxu1 %v14194_v58  ;;  %9774 = vmatpush3.msra.mxu0 %v14196_v38 }
 0xbc7   :  { %6456 = vmatprep.subr.mxu1 %v14200_v42  ;;  %9775 = vmatprep.subr.mxu0 %v15521_v28 }
 0xbc8   :  { %6457 = vmatpush1.msra.mxu1 %v14204_v52  ;;  %9776 = vmatpush3.msra.mxu0 %v14206_v0 }
 0xbc9   :  { %9780 = vmatprep.subr.mxu0 %v15521_v28  ;;  %6615 = vmatprep.subr.mxu1 %v14215_v63 }
 0xc27   :  { %v6062_v59 = vpop.f32.mrf.mxu1  ;;  %v6133_v18 = vpop.f32.mrf.mxu0 }
 0xc28   :  { %v6326_v53 = vadd.f32 %v6062_v59, %v16065_v21  ;;  %v6340_v38 = vadd.f32 %v13965_v5, %v6133_v18  ;;  %v14253_v18 = vld [vmem:[#allocation9 + $0x258] sm:$0xff] }
 0xc29   :  { %v9709_v3 = vpop.f32.mrf.mxu0  ;;  %v6064_v15 = vpop.f32.mrf.mxu1  ;;  %16073 = vst [vmem:[#allocation59_spill] sm:$0xff] %v14253_v18 }
 0xc2a   :  { %v8299_v13 = vmul.f32 -1.442695, %v6326_v53  ;;  %v6333_v37 = vadd.f32 %v6064_v15, %v16066_v17  ;;  %v14255_v17 = vld [vmem:[#allocation9 + $0x268] sm:$0xff] }
 0xc2b   :  { %16074 = vst [vmem:[#allocation57_spill] sm:$0xff] %v14255_v17 }
 0xc2c   :  { %10255 = vpow2.f32 %v8299_v13  ;;  %v8300_v4 = vmul.f32 -1.442695, %v6333_v37  ;;  %v14259_v37 = vld [vmem:[#allocation9 + $0x230] sm:$0xff] }
 0xc2d   :  { %16075 = vst [vmem:[#allocation76_spill] sm:$0xff] %v14259_v37 }
 0xc2e   :  { %10257 = vpow2.f32 %v8300_v4 }
 0xc39   :  { %v10256_v2 = vpop.eup %10255 }
 0xc3a   :  { %v6330_v0 = vadd.f32 1.0, %v10256_v2  ;;  %v14225_v2 = vld [vmem:[#allocation9 + $0x2e8] sm:$0xff] }
 0xc3b   :  { %v10258_v52 = vpop.eup %10257 }
 0xc3c   :  { %10259 = vrcp.f32 %v6330_v0  ;;  %v6337_v42 = vadd.f32 1.0, %v10258_v52  ;;  %v14227_v0 = vld [vmem:[#allocation9 + $0x2f8] sm:$0xff]  ;;  %v14229_v52 = vld [vmem:[#allocation9 + $0x2c0] sm:$0xff] }
 0xc3e   :  { %10261 = vrcp.f32 %v6337_v42  ;;  %v14245_v42 = vld [vmem:[#allocation9 + $0x298] sm:$0xff] }
 0xc3f   :  { %16071 = vst [vmem:[#allocation64_spill] sm:$0xff] %v14245_v42 }
 0xc49   :  { %v10260_v63 = vpop.eup %10259 }
 0xc4a   :  { %v6341_v58 = vmul.f32 %v10260_v63, %v6340_v38  ;;  %v14243_v38 = vld [vmem:[#allocation9 + $0x288] sm:$0xff]  ;;  %v14249_v63 = vld [vmem:[#allocation9 + $0x260] sm:$0xff] }
 0xc4b   :  { %v10262_v21 = vpop.eup %10261  ;;  %16070 = vst [vmem:[#allocation63_spill] sm:$0xff] %v14243_v38  ;;  %16072 = vst [vmem:[#allocation21_spill] sm:$0xff] %v14249_v63 }
 0xc4c   :  { %v6342_v59 = vadd.f32 %v6341_v58, %v16067_v44  ;;  %v6344_v53 = vsub.f32 1.0, %v10262_v21  ;;  %v6346_v15 = vmul.f32 %v10262_v21, %v13970_v39  ;;  %v14233_v44 = vld [vmem:[#allocation9 + $0x2b8] sm:$0xff]  ;;  %v14235_v58 = vld [vmem:[#allocation9 + $0x2c8] sm:$0xff]  ;;  %v14239_v39 = vld [vmem:[#allocation9 + $0x290] sm:$0xff] }
 0xc4d   :  { %16068 = vst [vmem:[#allocation38_spill] sm:$0xff] %v14235_v58  ;;  %16069 = vst [vmem:[#allocation61_spill] sm:$0xff] %v14239_v39  ;;  %v14265_v21 = vld [vmem:[#allocation9 + $0x238] sm:$0xff] }
 0xc4e   :  { %10263 = vtanh.f32 %v6342_v59  ;;  %v14263_v59 = vld [vmem:[#allocation9 + $0x228] sm:$0xff]  ;;  %16076 = vst [vmem:[#allocation28_spill] sm:$0xff] %v14265_v21 }
 0xc5b   :  { %v10264_v3 = vpop.eup %10263 }
 0xc5c   :  { %v6345_v13 = vmul.f32 %v10264_v3, %v6344_v53  ;;  %v14269_v53 = vld [vmem:[#allocation9 + $0x200] sm:$0xff] }
 0xc5d   :  { %16077 = vst [vmem:[#allocation16_spill] sm:$0xff] %v14269_v53 }
 0xc5e   :  { %v14223_v4 = vadd.f32 %v6346_v15, %v6345_v13  ;;  %v14275_v15 = vld [vmem:[#allocation9 + $0x1f8] sm:$0xff] }
 0xc5f   :  { %16078 = vst [vmem:[#allocation43_spill] sm:$0xff] %v14275_v15 }
 0xc60   :  { %6491 = vmatmul.mubr.f32.vlgmr.msra.gmra.mxu1 %v14223_v4  ;;  %9778 = vmatmul.mubr.f32.vlgmr.msra.gmra.mxu0 %v14223_v4 }
 0xc61   :  { %6616 = vmatpush1.msra.mxu1 %v14225_v2  ;;  %9781 = vmatpush3.msra.mxu0 %v14227_v0 }
 0xc62   :  { %6617 = vmatprep.subr.mxu1 %v14229_v52  ;;  %9782 = vmatprep.subr.mxu0 %v15521_v28 }
 0xc63   :  { %6618 = vmatpush1.msra.mxu1 %v14233_v44  ;;  %9783 = vmatpush3.msra.mxu0 %v14235_v58 }
 0xc64   :  { %6619 = vmatprep.subr.mxu1 %v14239_v39  ;;  %9784 = vmatprep.subr.mxu0 %v15521_v28  ;;  %v14288_v39 = vld [vmem:[#allocation9 + $0x1d8] sm:$0xff] }
 0xc65   :  { %6620 = vmatpush1.msra.mxu1 %v14243_v38  ;;  %9785 = vmatpush3.msra.mxu0 %v14245_v42  ;;  %v16080_v42 = vld [vmem:[#allocation26_spill] sm:$0xff]  ;;  %16083 = vst [vmem:[#allocation17_spill] sm:$0xff] %v14288_v39 }
 0xc66   :  { %6621 = vmatprep.subr.mxu1 %v14249_v63  ;;  %9786 = vmatprep.subr.mxu0 %v15521_v28  ;;  %v14277_v63 = vld [vmem:[#allocation9 + $0x208] sm:$0xff] }
 0xc67   :  { %6622 = vmatpush1.msra.mxu1 %v14253_v18  ;;  %9787 = vmatpush3.msra.mxu0 %v14255_v17  ;;  %16079 = vst [vmem:[#allocation96_spill] sm:$0xff] %v14277_v63  ;;  %v14282_v17 = vld [vmem:[#allocation9 + $0x1d0] sm:$0xff] }
 0xc68   :  { %v6251_v3 = vpop.f32.mrf.mxu1  ;;  %v14271_v13 = vpop.f32.mrf.mxu0  ;;  %6623 = vmatprep.subr.mxu1 %v14259_v37  ;;  %9788 = vmatprep.subr.mxu0 %v15521_v28  ;;  %16081 = vst [vmem:[#allocation97_spill] sm:$0xff] %v14282_v17  ;;  %v14286_v37 = vld [vmem:[#allocation9 + $0x1c8] sm:$0xff] }
 0xc69   :  { %v6348_v38 = vadd.f32 %v6251_v3, %v16080_v42  ;;  %6624 = vmatpush1.msra.mxu1 %v14263_v59  ;;  %9789 = vmatpush3.msra.mxu0 %v14265_v21  ;;  %16082 = vst [vmem:[#allocation51_spill] sm:$0xff] %v14286_v37  ;;  %v14292_v42 = vld [vmem:[#allocation9 + $0x1a0] sm:$0xff] }
 0xc6a   :  { %v9744_v18 = vpop.f32.mrf.mxu0  ;;  %6625 = vmatprep.subr.mxu1 %v14269_v53  ;;  %9790 = vmatprep.subr.mxu0 %v15521_v28  ;;  %16084 = vst [vmem:[#allocation99_spill] sm:$0xff] %v14292_v42  ;;  %v6253_v3 = vpop.f32.mrf.mxu1  ;;  %v14298_v53 = vld [vmem:[#allocation9 + $0x1a8] sm:$0xff] }
 0xc6b   :  { %v8301_v58 = vmul.f32 -1.442695, %v6348_v38  ;;  %6626 = vmatpush1.msra.mxu1 %v14275_v15  ;;  %9791 = vmatpush3.msra.mxu0 %v14277_v63  ;;  %v14296_v18 = vld [vmem:[#allocation9 + $0x198] sm:$0xff]  ;;  %16086 = vst [vmem:[#allocation84_spill] sm:$0xff] %v14298_v53  ;;  %v14302_v38 = vld [vmem:[#allocation9 + $0x170] sm:$0xff]  ;;  %v14306_v63 = vld [vmem:[#allocation9 + $0x168] sm:$0xff] }
 0xc6c   :  { %6627 = vmatprep.subr.mxu1 %v14282_v17  ;;  %9792 = vmatprep.subr.mxu0 %v15521_v28  ;;  %16085 = vst [vmem:[#allocation15_spill] sm:$0xff] %v14296_v18  ;;  %16087 = vst [vmem:[#allocation81_spill] sm:$0xff] %v14302_v38  ;;  %v14308_v17 = vld [vmem:[#allocation9 + $0x178] sm:$0xff]  ;;  %v16090_v15 = vld [vmem:[#allocation33_spill] sm:$0xff] }
 0xc6d   :  { %10265 = vpow2.f32 %v8301_v58  ;;  %6628 = vmatpush1.msra.mxu1 %v14286_v37  ;;  %9793 = vmatpush3.msra.mxu0 %v14288_v39  ;;  %16088 = vst [vmem:[#allocation82_spill] sm:$0xff] %v14306_v63  ;;  %16089 = vst [vmem:[#allocation85_spill] sm:$0xff] %v14308_v17  ;;  %v6355_v21 = vadd.f32 %v6253_v3, %v16090_v15  ;;  %v14313_v58 = vld [vmem:[#allocation9 + $0x140] sm:$0xff]  ;;  %v14317_v39 = vld [vmem:[#allocation9 + $0x138] sm:$0xff] }
 0xc6e   :  { %6629 = vmatprep.subr.mxu1 %v14292_v42  ;;  %9794 = vmatprep.subr.mxu0 %v15521_v28  ;;  %16091 = vst [vmem:[#allocation34_spill] sm:$0xff] %v14313_v58  ;;  %16092 = vst [vmem:[#allocation83_spill] sm:$0xff] %v14317_v39  ;;  %v14319_v42 = vld [vmem:[#allocation9 + $0x148] sm:$0xff]  ;;  %v14323_v37 = vld [vmem:[#allocation9 + $0x110] sm:$0xff] }
 0xc6f   :  { %6630 = vmatpush1.msra.mxu1 %v14296_v18  ;;  %9795 = vmatpush3.msra.mxu0 %v14298_v53  ;;  %16093 = vst [vmem:[#allocation86_spill] sm:$0xff] %v14319_v42  ;;  %16094 = vst [vmem:[#allocation87_spill] sm:$0xff] %v14323_v37  ;;  %v14327_v15 = vld [vmem:[#allocation9 + $0x108] sm:$0xff]  ;;  %v14329_v3 = vld [vmem:[#allocation9 + $0x118] sm:$0xff] }
 0xc70   :  { %6631 = vmatprep.subr.mxu1 %v14302_v38  ;;  %9796 = vmatprep.subr.mxu0 %v15521_v28  ;;  %16095 = vst [vmem:[#allocation37_spill] sm:$0xff] %v14327_v15  ;;  %16096 = vst [vmem:[#allocation88_spill] sm:$0xff] %v14329_v3  ;;  %v8302_v38 = vmul.f32 -1.442695, %v6355_v21  ;;  %v14333_v53 = vld [vmem:[#allocation9 + $0xe0] sm:$0xff]  ;;  %v14347_v21 = vld [vmem:[#allocation9 + $0xa8] sm:$0xff] }
 0xc71   :  { %6632 = vmatpush1.msra.mxu1 %v14306_v63  ;;  %9797 = vmatpush3.msra.mxu0 %v14308_v17  ;;  %16097 = vst [vmem:[#allocation90_spill] sm:$0xff] %v14333_v53  ;;  %v14337_v17 = vld [vmem:[#allocation9 + $0xd8] sm:$0xff]  ;;  %v14343_v63 = vld [vmem:[#allocation9 + $0xb0] sm:$0xff]  ;;  %16101 = vst [vmem:[#allocation93_spill] sm:$0xff] %v14347_v21 }
 0xc72   :  { %6633 = vmatprep.subr.mxu1 %v14313_v58  ;;  %9798 = vmatprep.subr.mxu0 %v15521_v28  ;;  %16098 = vst [vmem:[#allocation89_spill] sm:$0xff] %v14337_v17  ;;  %v14339_v58 = vld [vmem:[#allocation9 + $0xe8] sm:$0xff]  ;;  %16100 = vst [vmem:[#allocation92_spill] sm:$0xff] %v14343_v63  ;;  %10267 = vpow2.f32 %v8302_v38 }
 0xc73   :  { %6634 = vmatpush1.msra.mxu1 %v14317_v39  ;;  %9799 = vmatpush3.msra.mxu0 %v14319_v42  ;;  %16099 = vst [vmem:[#allocation91_spill] sm:$0xff] %v14339_v58  ;;  %v14349_v42 = vld [vmem:[#allocation9 + $0xb8] sm:$0xff]  ;;  %v14373_v39 = vld [vmem:[#allocation9 + $0x20] sm:$0xff] }
 0xc74   :  { %6635 = vmatprep.subr.mxu1 %v14323_v37  ;;  %9800 = vmatprep.subr.mxu0 %v15521_v28  ;;  %16102 = vst [vmem:[#allocation94_spill] sm:$0xff] %v14349_v42  ;;  %v14353_v37 = vld [vmem:[#allocation9 + $0x80] sm:$0xff]  ;;  %16109 = vst [vmem:[#allocation68_spill] sm:$0xff] %v14373_v39 }
 0xc75   :  { %6636 = vmatpush1.msra.mxu1 %v14327_v15  ;;  %9801 = vmatpush3.msra.mxu0 %v14329_v3  ;;  %16103 = vst [vmem:[#allocation95_spill] sm:$0xff] %v14353_v37  ;;  %v14357_v3 = vld [vmem:[#allocation9 + $0x78] sm:$0xff]  ;;  %v14363_v15 = vld [vmem:[#allocation9 + $0x50] sm:$0xff] }
 0xc76   :  { %6637 = vmatprep.subr.mxu1 %v14333_v53  ;;  %9802 = vmatprep.subr.mxu0 %v15521_v28  ;;  %16104 = vst [vmem:[#allocation53_spill] sm:$0xff] %v14357_v3  ;;  %v14359_v53 = vld [vmem:[#allocation9 + $0x88] sm:$0xff]  ;;  %16106 = vst [vmem:[#allocation44_spill] sm:$0xff] %v14363_v15 }
 0xc77   :  { %6638 = vmatpush1.msra.mxu1 %v14337_v17  ;;  %9803 = vmatpush3.msra.mxu0 %v14339_v58  ;;  %16105 = vst [vmem:[#allocation55_spill] sm:$0xff] %v14359_v53  ;;  %v14367_v58 = vld [vmem:[#allocation9 + $0x48] sm:$0xff] }
 0xc78   :  { %6639 = vmatprep.subr.mxu1 %v14343_v63  ;;  %9804 = vmatprep.subr.mxu0 %v15521_v28  ;;  %16107 = vst [vmem:[#allocation54_spill] sm:$0xff] %v14367_v58  ;;  %v14369_v63 = vld [vmem:[#allocation9 + $0x58] sm:$0xff] }
 0xc79   :  { %6640 = vmatpush1.msra.mxu1 %v14347_v21  ;;  %9805 = vmatpush3.msra.mxu0 %v14349_v42  ;;  %16108 = vst [vmem:[#allocation67_spill] sm:$0xff] %v14369_v63  ;;  %v14377_v42 = vld [vmem:[#allocation9 + $0x18] sm:$0xff] }
 0xc7a   :  { %v10266_v38 = vpop.eup %10265  ;;  %6641 = vmatprep.subr.mxu1 %v14353_v37  ;;  %9806 = vmatprep.subr.mxu0 %v15521_v28  ;;  %16110 = vst [vmem:[#allocation98_spill] sm:$0xff] %v14377_v42  ;;  %v14381_v37 = vld [vmem:[#allocation9 + $0x28] sm:$0xff] }
 0xc7b   :  { %v6352_v17 = vadd.f32 1.0, %v10266_v38  ;;  %6642 = vmatpush1.msra.mxu1 %v14357_v3  ;;  %9807 = vmatpush3.msra.mxu0 %v14359_v53  ;;  %16111 = vst [vmem:[#allocation45_spill] sm:$0xff] %v14381_v37 }
 0xc7c   :  { %6643 = vmatprep.subr.mxu1 %v14363_v15  ;;  %9808 = vmatprep.subr.mxu0 %v15521_v28 }
 0xc7d   :  { %10269 = vrcp.f32 %v6352_v17  ;;  %6644 = vmatpush1.msra.mxu1 %v14367_v58  ;;  %9809 = vmatpush3.msra.mxu0 %v14369_v63 }
 0xc7e   :  { %6645 = vmatprep.subr.mxu1 %v14373_v39  ;;  %9810 = vmatprep.subr.mxu0 %v15521_v28  ;;  %v14395_v39 = vld [vmem:[%s15093_s8 + $0x1] ss:$0 sm:$0xff] }
 0xc7f   :  { %6646 = vmatpush1.msra.mxu1 %v14377_v42  ;;  %6679 = vmatprep.mubr.f32.mxu1 %v15521_v28  ;;  %v10268_v17 = vpop.eup %10267  ;;  %v6362_v42 = vadd.f32 %v14395_v39, %v14271_v13 }
 0xc80   :  { %9811 = vmatpush3.msra.mxu0 %v14381_v37  ;;  %9812 = vmatprep.mubr.msk.f32.mxu0 %vm10448_vm1, %v15521_v28  ;;  %v6359_v38 = vadd.f32 1.0, %v10268_v17  ;;  %v16112_v37 = vld [vmem:[#allocation70_spill] sm:$0xff] }
 0xc81   :  { %6856 = vmatprep.subr.mxu1 %v14055_v43  ;;  %9815 = vmatprep.subr.mxu0 %v15521_v28 }
 0xc82   :  { %10271 = vrcp.f32 %v6359_v38  ;;  %v16141_v38 = vld [vmem:[#allocation15_spill] sm:$0xff] }
 0xc8a   :  { %v10270_v63 = vpop.eup %10269 }
 0xc8b   :  { %v6363_v58 = vmul.f32 %v10270_v63, %v6362_v42  ;;  %v16136_v42 = vld [vmem:[#allocation97_spill] sm:$0xff] }
 0xc8d   :  { %v6364_v15 = vadd.f32 %v6363_v58, %v16112_v37  ;;  %v16134_v37 = vld [vmem:[#allocation43_spill] sm:$0xff] }
 0xc8e   :  { %v16137_v58 = vld [vmem:[#allocation51_spill] sm:$0xff] }
 0xc8f   :  { %10273 = vtanh.f32 %v6364_v15  ;;  %v10272_v53 = vpop.eup %10271  ;;  %v16139_v15 = vld [vmem:[#allocation99_spill] sm:$0xff] }
 0xc90   :  { %v6366_v43 = vsub.f32 1.0, %v10272_v53  ;;  %v6368_v17 = vmul.f32 %v10272_v53, %v14048_v12  ;;  %v16135_v53 = vld [vmem:[#allocation96_spill] sm:$0xff] }
 0xc9c   :  { %v10274_v3 = vpop.eup %10273 }
 0xc9d   :  { %v6367_v21 = vmul.f32 %v10274_v3, %v6366_v43  ;;  %v16140_v3 = vld [vmem:[#allocation30_spill] sm:$0xff]  ;;  %v16142_v43 = vld [vmem:[#allocation84_spill] sm:$0xff] }
 0xc9f   :  { %v14401_v18 = vadd.f32 %v6368_v17, %v6367_v21  ;;  %v16143_v17 = vld [vmem:[#allocation81_spill] sm:$0xff] }
 0xca1   :  { %6680 = vmatmul.mubr.f32.vlgmr.msra.gmra.mxu1 %v14401_v18  ;;  %9813 = vmatmul.mubr.f32.vlgmr.msra.gmra.mxu0 %v14401_v18 }
 0xca2   :  { %6857 = vmatpush1.msra.mxu1 %v14058_v29  ;;  %9816 = vmatpush3.msra.mxu0 %v14060_v14  ;;  %v16113_v29 = vld [vmem:[#allocation36_spill] sm:$0xff]  ;;  %v16114_v14 = vld [vmem:[#allocation77_spill] sm:$0xff] }
 0xca3   :  { %6858 = vmatprep.subr.mxu1 %v14064_v9  ;;  %9817 = vmatprep.subr.mxu0 %v15521_v28  ;;  %v16115_v9 = vld [vmem:[#allocation78_spill] sm:$0xff] }
 0xca4   :  { %6859 = vmatpush1.msra.mxu1 %v14068_v47  ;;  %9818 = vmatpush3.msra.mxu0 %v14070_v23  ;;  %v16116_v47 = vld [vmem:[#allocation79_spill] sm:$0xff]  ;;  %v16117_v23 = vld [vmem:[#allocation80_spill] sm:$0xff] }
 0xca5   :  { %6860 = vmatprep.subr.mxu1 %v14074_v62  ;;  %9819 = vmatprep.subr.mxu0 %v15521_v28  ;;  %v16118_v62 = vld [vmem:[#allocation60_spill] sm:$0xff] }
 0xca6   :  { %6861 = vmatpush1.msra.mxu1 %v14078_v60  ;;  %9820 = vmatpush3.msra.mxu0 %v14080_v10  ;;  %v16119_v60 = vld [vmem:[#allocation62_spill] sm:$0xff] }
 0xca7   :  { %6862 = vmatprep.subr.mxu1 %v14084_v54  ;;  %9821 = vmatprep.subr.mxu0 %v15521_v28 }
 0xca8   :  { %6863 = vmatpush1.msra.mxu1 %v14088_v7  ;;  %9822 = vmatpush3.msra.mxu0 %v14090_v34  ;;  %v16120_v7 = vld [vmem:[#allocation23_spill] sm:$0xff] }
 0xca9   :  { %6864 = vmatprep.subr.mxu1 %v14094_v33  ;;  %9823 = vmatprep.subr.mxu0 %v15521_v28 }
 0xcaa   :  { %6865 = vmatpush1.msra.mxu1 %v14098_v56  ;;  %9824 = vmatpush3.msra.mxu0 %v14100_v32 }
 0xcab   :  { %6866 = vmatprep.subr.mxu1 %v14104_v22  ;;  %9825 = vmatprep.subr.mxu0 %v15521_v28  ;;  %v16121_v22 = vld [vmem:[#allocation25_spill] sm:$0xff] }
 0xcac   :  { %6867 = vmatpush1.msra.mxu1 %v14108_v11  ;;  %9826 = vmatpush3.msra.mxu0 %v14110_v24 }
 0xcad   :  { %6868 = vmatprep.subr.mxu1 %v14114_v27  ;;  %9827 = vmatprep.subr.mxu0 %v15521_v28 }
 0xcae   :  { %6869 = vmatpush1.msra.mxu1 %v14118_v19  ;;  %9828 = vmatpush3.msra.mxu0 %v14120_v31 }
 0xcaf   :  { %6870 = vmatprep.subr.mxu1 %v14122_v16  ;;  %9829 = vmatprep.subr.mxu0 %v15521_v28 }
 0xcb0   :  { %6871 = vmatpush1.msra.mxu1 %v14126_v40  ;;  %9830 = vmatpush3.msra.mxu0 %v14128_v6 }
 0xcb1   :  { %6872 = vmatprep.subr.mxu1 %v14130_v48  ;;  %9831 = vmatprep.subr.mxu0 %v15521_v28 }
 0xcb2   :  { %6873 = vmatpush1.msra.mxu1 %v14134_v36  ;;  %9832 = vmatpush3.msra.mxu0 %v14136_v25  ;;  %v16122_v36 = vld [vmem:[#allocation24_spill] sm:$0xff] }
 0xcb3   :  { %6874 = vmatprep.subr.mxu1 %v14140_v61  ;;  %9833 = vmatprep.subr.mxu0 %v15521_v28 }
 0xcb4   :  { %6875 = vmatpush1.msra.mxu1 %v14144_v35  ;;  %9834 = vmatpush3.msra.mxu0 %v14146_v50 }
 0xcb5   :  { %6876 = vmatprep.subr.mxu1 %v14150_v30  ;;  %9835 = vmatprep.subr.mxu0 %v15521_v28 }
 0xcb6   :  { %6877 = vmatpush1.msra.mxu1 %v14154_v46  ;;  %9836 = vmatpush3.msra.mxu0 %v14156_v49 }
 0xcb7   :  { %6878 = vmatprep.subr.mxu1 %v14160_v20  ;;  %9837 = vmatprep.subr.mxu0 %v15521_v28  ;;  %v16124_v20 = vld [vmem:[#allocation61_spill] sm:$0xff] }
 0xcb8   :  { %6879 = vmatpush1.msra.mxu1 %v14164_v26  ;;  %9838 = vmatpush3.msra.mxu0 %v14166_v45  ;;  %v16125_v26 = vld [vmem:[#allocation63_spill] sm:$0xff]  ;;  %v16126_v45 = vld [vmem:[#allocation64_spill] sm:$0xff] }
 0xcb9   :  { %6880 = vmatprep.subr.mxu1 %v14170_v55  ;;  %9839 = vmatprep.subr.mxu0 %v15521_v28  ;;  %v16127_v55 = vld [vmem:[#allocation21_spill] sm:$0xff] }
 0xcba   :  { %6881 = vmatpush1.msra.mxu1 %v14174_v51  ;;  %9840 = vmatpush3.msra.mxu0 %v14176_v8  ;;  %v16128_v51 = vld [vmem:[#allocation59_spill] sm:$0xff]  ;;  %v16129_v8 = vld [vmem:[#allocation57_spill] sm:$0xff] }
 0xcbb   :  { %6882 = vmatprep.subr.mxu1 %v14180_v1  ;;  %9841 = vmatprep.subr.mxu0 %v15521_v28 }
 0xcbc   :  { %6883 = vmatpush1.msra.mxu1 %v14184_v41  ;;  %9842 = vmatpush3.msra.mxu0 %v14186_v57  ;;  %v16130_v57 = vld [vmem:[#allocation76_spill] sm:$0xff] }
 0xcbd   :  { %6884 = vmatprep.subr.mxu1 %v16113_v29  ;;  %9843 = vmatprep.subr.mxu0 %v15521_v28  ;;  %v16144_v29 = vld [vmem:[#allocation82_spill] sm:$0xff] }
 0xcbe   :  { %6885 = vmatpush1.msra.mxu1 %v16114_v14  ;;  %9844 = vmatpush3.msra.mxu0 %v16115_v9  ;;  %v16145_v14 = vld [vmem:[#allocation85_spill] sm:$0xff]  ;;  %v16146_v9 = vld [vmem:[#allocation34_spill] sm:$0xff] }
 0xcbf   :  { %6886 = vmatprep.subr.mxu1 %v16116_v47  ;;  %9845 = vmatprep.subr.mxu0 %v15521_v28 }
 0xcc0   :  { %6887 = vmatpush1.msra.mxu1 %v16117_v23  ;;  %6920 = vmatprep.mubr.f32.mxu1 %v15521_v28  ;;  %v16147_v23 = vld [vmem:[#allocation83_spill] sm:$0xff] }
 0xcc1   :  { %9846 = vmatpush3.msra.mxu0 %v16118_v62  ;;  %9847 = vmatprep.mubr.msk.f32.mxu0 %vm10448_vm1, %v15521_v28  ;;  %v16148_v62 = vld [vmem:[#allocation86_spill] sm:$0xff] }
 0xcc2   :  { %7045 = vmatprep.subr.mxu1 %v16119_v60  ;;  %9850 = vmatprep.subr.mxu0 %v15521_v28  ;;  %v16149_v60 = vld [vmem:[#allocation87_spill] sm:$0xff] }
 0xd20   :  { %v6492_v10 = vpop.f32.mrf.mxu1  ;;  %v6563_v54 = vpop.f32.mrf.mxu0 }
 0xd21   :  { %v6756_v34 = vadd.f32 %v6492_v10, %v16120_v7  ;;  %v6770_v40 = vadd.f32 %v13965_v5, %v6563_v54  ;;  %v16123_v5 = vld [vmem:[#allocation38_spill] sm:$0xff]  ;;  %v16150_v10 = vld [vmem:[#allocation37_spill] sm:$0xff]  ;;  %v16151_v54 = vld [vmem:[#allocation88_spill] sm:$0xff] }
 0xd22   :  { %v9779_v33 = vpop.f32.mrf.mxu0  ;;  %v6494_v32 = vpop.f32.mrf.mxu1  ;;  %v16152_v7 = vld [vmem:[#allocation90_spill] sm:$0xff] }
 0xd23   :  { %v8303_v56 = vmul.f32 -1.442695, %v6756_v34  ;;  %v6763_v11 = vadd.f32 %v6494_v32, %v16121_v22  ;;  %v16153_v34 = vld [vmem:[#allocation89_spill] sm:$0xff]  ;;  %v16154_v33 = vld [vmem:[#allocation91_spill] sm:$0xff]  ;;  %v16157_v22 = vld [vmem:[#allocation94_spill] sm:$0xff] }
 0xd24   :  { %v16156_v32 = vld [vmem:[#allocation93_spill] sm:$0xff] }
 0xd25   :  { %10275 = vpow2.f32 %v8303_v56  ;;  %v8304_v24 = vmul.f32 -1.442695, %v6763_v11  ;;  %v16155_v56 = vld [vmem:[#allocation92_spill] sm:$0xff] }
 0xd27   :  { %10277 = vpow2.f32 %v8304_v24  ;;  %v16158_v24 = vld [vmem:[#allocation95_spill] sm:$0xff] }
 0xd32   :  { %v10276_v27 = vpop.eup %10275 }
 0xd33   :  { %v6760_v19 = vadd.f32 1.0, %v10276_v27 }
 0xd34   :  { %v10278_v31 = vpop.eup %10277 }
 0xd35   :  { %10279 = vrcp.f32 %v6760_v19  ;;  %v6767_v16 = vadd.f32 1.0, %v10278_v31  ;;  %v16159_v19 = vld [vmem:[#allocation53_spill] sm:$0xff]  ;;  %v16160_v31 = vld [vmem:[#allocation55_spill] sm:$0xff] }
 0xd37   :  { %10281 = vrcp.f32 %v6767_v16  ;;  %v16161_v16 = vld [vmem:[#allocation44_spill] sm:$0xff] }
 0xd42   :  { %v10280_v6 = vpop.eup %10279 }
 0xd43   :  { %v6771_v48 = vmul.f32 %v10280_v6, %v6770_v40  ;;  %v16162_v40 = vld [vmem:[#allocation54_spill] sm:$0xff]  ;;  %v16163_v6 = vld [vmem:[#allocation67_spill] sm:$0xff] }
 0xd44   :  { %v10282_v61 = vpop.eup %10281 }
 0xd45   :  { %v6772_v25 = vadd.f32 %v6771_v48, %v16122_v36  ;;  %v6774_v35 = vsub.f32 1.0, %v10282_v61  ;;  %v6776_v46 = vmul.f32 %v10282_v61, %v14223_v4  ;;  %v16131_v4 = vld [vmem:[#allocation22_spill] sm:$0xff]  ;;  %v16164_v48 = vld [vmem:[#allocation68_spill] sm:$0xff] }
 0xd46   :  { %v16165_v36 = vld [vmem:[#allocation98_spill] sm:$0xff] }
 0xd47   :  { %10283 = vtanh.f32 %v6772_v25  ;;  %v16166_v25 = vld [vmem:[#allocation45_spill] sm:$0xff] }
 0xd54   :  { %v10284_v50 = vpop.eup %10283 }
 0xd55   :  { %v6775_v30 = vmul.f32 %v10284_v50, %v6774_v35 }
 0xd57   :  { %v14477_v49 = vadd.f32 %v6776_v46, %v6775_v30 }
 0xd59   :  { %6921 = vmatmul.mubr.f32.vlgmr.msra.gmra.mxu1 %v14477_v49  ;;  %9848 = vmatmul.mubr.f32.vlgmr.msra.gmra.mxu0 %v14477_v49 }
 0xd5a   :  { %7046 = vmatpush1.msra.mxu1 %v14225_v2  ;;  %9851 = vmatpush3.msra.mxu0 %v14227_v0  ;;  %v16132_v0 = vld [vmem:[#allocation28_spill] sm:$0xff] }
 0xd5b   :  { %7047 = vmatprep.subr.mxu1 %v14229_v52  ;;  %9852 = vmatprep.subr.mxu0 %v15521_v28 }
 0xd5c   :  { %7048 = vmatpush1.msra.mxu1 %v14233_v44  ;;  %9853 = vmatpush3.msra.mxu0 %v16123_v5  ;;  %v16133_v44 = vld [vmem:[#allocation16_spill] sm:$0xff]  ;;  %v16167_v5 = vld [vmem:[#allocation31_spill] sm:$0xff] }
 0xd5d   :  { %7049 = vmatprep.subr.mxu1 %v16124_v20  ;;  %9854 = vmatprep.subr.mxu0 %v15521_v28 }
 0xd5e   :  { %7050 = vmatpush1.msra.mxu1 %v16125_v26  ;;  %9855 = vmatpush3.msra.mxu0 %v16126_v45 }
 0xd5f   :  { %7051 = vmatprep.subr.mxu1 %v16127_v55  ;;  %9856 = vmatprep.subr.mxu0 %v15521_v28 }
 0xd60   :  { %7052 = vmatpush1.msra.mxu1 %v16128_v51  ;;  %9857 = vmatpush3.msra.mxu0 %v16129_v8 }
 0xd61   :  { %v6681_v1 = vpop.f32.mrf.mxu1  ;;  %v14495_v41 = vpop.f32.mrf.mxu0  ;;  %7053 = vmatprep.subr.mxu1 %v16130_v57  ;;  %9858 = vmatprep.subr.mxu0 %v15521_v28  ;;  %v14565_v57 = vld [vmem:[#allocation9 + $0x2d0] sm:$0xff] }
 0xd62   :  { %v6778_v2 = vadd.f32 %v6681_v1, %v16131_v4  ;;  %7054 = vmatpush1.msra.mxu1 %v14263_v59  ;;  %9859 = vmatpush3.msra.mxu0 %v16132_v0  ;;  %v16138_v59 = vld [vmem:[#allocation17_spill] sm:$0xff]  ;;  %v6792_v50 = vadd.f32 %v14395_v39, %v14495_v41  ;;  %v14562_v41 = vld [vmem:[#allocation9 + $0x2d8] sm:$0xff]  ;;  %v14567_v4 = vld [vmem:[#allocation9 + $0x2e0] sm:$0xff] }
 0xd63   :  { %v9814_v52 = vpop.f32.mrf.mxu0  ;;  %7055 = vmatprep.subr.mxu1 %v16133_v44  ;;  %9860 = vmatprep.subr.mxu0 %v15521_v28  ;;  %v6683_v13 = vpop.f32.mrf.mxu1  ;;  %v14577_v0 = vld [vmem:[#allocation9 + $0x2b0] sm:$0xff] }
 0xd64   :  { %v8305_v63 = vmul.f32 -1.442695, %v6778_v2  ;;  %7056 = vmatpush1.msra.mxu1 %v16134_v37  ;;  %9861 = vmatpush3.msra.mxu0 %v16135_v53  ;;  %v6785_v21 = vadd.f32 %v6683_v13, %v16140_v3  ;;  %v14575_v2 = vld [vmem:[#allocation9 + $0x2a0] sm:$0xff]  ;;  %v14581_v52 = vld [vmem:[#allocation9 + $0x278] sm:$0xff]  ;;  %v14585_v44 = vld [vmem:[#allocation9 + $0x270] sm:$0xff] }
 0xd65   :  { %7057 = vmatprep.subr.mxu1 %v16136_v42  ;;  %9862 = vmatprep.subr.mxu0 %v15521_v28  ;;  %v14591_v37 = vld [vmem:[#allocation9 + $0x248] sm:$0xff]  ;;  %v14595_v53 = vld [vmem:[#allocation9 + $0x240] sm:$0xff]  ;;  %v14597_v13 = vld [vmem:[#allocation9 + $0x250] sm:$0xff] }
 0xd66   :  { %10285 = vpow2.f32 %v8305_v63  ;;  %7058 = vmatpush1.msra.mxu1 %v16137_v58  ;;  %9863 = vmatpush3.msra.mxu0 %v16138_v59  ;;  %v8306_v47 = vmul.f32 -1.442695, %v6785_v21  ;;  %v14587_v63 = vld [vmem:[#allocation9 + $0x280] sm:$0xff]  ;;  %v14601_v42 = vld [vmem:[#allocation9 + $0x218] sm:$0xff]  ;;  %v14605_v58 = vld [vmem:[#allocation9 + $0x210] sm:$0xff] }
 0xd67   :  { %7059 = vmatprep.subr.mxu1 %v16139_v15  ;;  %9864 = vmatprep.subr.mxu0 %v15521_v28  ;;  %v14607_v59 = vld [vmem:[#allocation9 + $0x220] sm:$0xff]  ;;  %v14611_v15 = vld [vmem:[#allocation9 + $0x1e8] sm:$0xff]  ;;  %v14617_v21 = vld [vmem:[#allocation9 + $0x1f0] sm:$0xff] }
 0xd68   :  { %7060 = vmatpush1.msra.mxu1 %v16141_v38  ;;  %9865 = vmatpush3.msra.mxu0 %v16142_v43  ;;  %10287 = vpow2.f32 %v8306_v47  ;;  %v14615_v3 = vld [vmem:[#allocation9 + $0x1e0] sm:$0xff]  ;;  %v14621_v38 = vld [vmem:[#allocation9 + $0x1b8] sm:$0xff]  ;;  %v14625_v43 = vld [vmem:[#allocation9 + $0x1b0] sm:$0xff] }
 0xd69   :  { %7061 = vmatprep.subr.mxu1 %v16143_v17  ;;  %9866 = vmatprep.subr.mxu0 %v15521_v28  ;;  %v14627_v17 = vld [vmem:[#allocation9 + $0x1c0] sm:$0xff]  ;;  %v14637_v47 = vld [vmem:[#allocation9 + $0x158] sm:$0xff] }
 0xd6a   :  { %7062 = vmatpush1.msra.mxu1 %v16144_v29  ;;  %9867 = vmatpush3.msra.mxu0 %v16145_v14  ;;  %v14629_v29 = vld [vmem:[#allocation9 + $0x188] sm:$0xff]  ;;  %v14633_v14 = vld [vmem:[#allocation9 + $0x180] sm:$0xff] }
 0xd6b   :  { %7063 = vmatprep.subr.mxu1 %v16146_v9  ;;  %9868 = vmatprep.subr.mxu0 %v15521_v28  ;;  %v14635_v9 = vld [vmem:[#allocation9 + $0x190] sm:$0xff] }
 0xd6c   :  { %7064 = vmatpush1.msra.mxu1 %v16147_v23  ;;  %9869 = vmatpush3.msra.mxu0 %v16148_v62  ;;  %v14641_v23 = vld [vmem:[#allocation9 + $0x150] sm:$0xff]  ;;  %v14643_v62 = vld [vmem:[#allocation9 + $0x160] sm:$0xff] }
 0xd6d   :  { %7065 = vmatprep.subr.mxu1 %v16149_v60  ;;  %9870 = vmatprep.subr.mxu0 %v15521_v28  ;;  %v14647_v60 = vld [vmem:[#allocation9 + $0x128] sm:$0xff] }
 0xd6e   :  { %7066 = vmatpush1.msra.mxu1 %v16150_v10  ;;  %9871 = vmatpush3.msra.mxu0 %v16151_v54  ;;  %v14651_v10 = vld [vmem:[#allocation9 + $0x120] sm:$0xff]  ;;  %v14653_v54 = vld [vmem:[#allocation9 + $0x130] sm:$0xff] }
 0xd6f   :  { %7067 = vmatprep.subr.mxu1 %v16152_v7  ;;  %9872 = vmatprep.subr.mxu0 %v15521_v28  ;;  %v14657_v7 = vld [vmem:[#allocation9 + $0xf8] sm:$0xff] }
 0xd70   :  { %7068 = vmatpush1.msra.mxu1 %v16153_v34  ;;  %9873 = vmatpush3.msra.mxu0 %v16154_v33  ;;  %v14661_v34 = vld [vmem:[#allocation9 + $0xf0] sm:$0xff]  ;;  %v14663_v33 = vld [vmem:[#allocation9 + $0x100] sm:$0xff] }
 0xd71   :  { %7069 = vmatprep.subr.mxu1 %v16155_v56  ;;  %9874 = vmatprep.subr.mxu0 %v15521_v28  ;;  %v14667_v56 = vld [vmem:[#allocation9 + $0xc8] sm:$0xff] }
 0xd72   :  { %7070 = vmatpush1.msra.mxu1 %v16156_v32  ;;  %9875 = vmatpush3.msra.mxu0 %v16157_v22  ;;  %v14671_v32 = vld [vmem:[#allocation9 + $0xc0] sm:$0xff]  ;;  %v14673_v22 = vld [vmem:[#allocation9 + $0xd0] sm:$0xff] }
 0xd73   :  { %v10286_v11 = vpop.eup %10285  ;;  %7071 = vmatprep.subr.mxu1 %v16158_v24  ;;  %9876 = vmatprep.subr.mxu0 %v15521_v28  ;;  %v14681_v24 = vld [vmem:[#allocation9 + $0x90] sm:$0xff] }
 0xd74   :  { %v6782_v27 = vadd.f32 1.0, %v10286_v11  ;;  %7072 = vmatpush1.msra.mxu1 %v16159_v19  ;;  %9877 = vmatpush3.msra.mxu0 %v16160_v31  ;;  %v14677_v11 = vld [vmem:[#allocation9 + $0x98] sm:$0xff]  ;;  %v14687_v19 = vld [vmem:[#allocation9 + $0x68] sm:$0xff]  ;;  %v14691_v31 = vld [vmem:[#allocation9 + $0x60] sm:$0xff] }
 0xd75   :  { %7073 = vmatprep.subr.mxu1 %v16161_v16  ;;  %9878 = vmatprep.subr.mxu0 %v15521_v28  ;;  %v10288_v61 = vpop.eup %10287  ;;  %v14693_v16 = vld [vmem:[#allocation9 + $0x70] sm:$0xff] }
 0xd76   :  { %10289 = vrcp.f32 %v6782_v27  ;;  %7074 = vmatpush1.msra.mxu1 %v16162_v40  ;;  %9879 = vmatpush3.msra.mxu0 %v16163_v6  ;;  %v6789_v35 = vadd.f32 1.0, %v10288_v61  ;;  %v14683_v27 = vld [vmem:[#allocation9 + $0xa0] sm:$0xff]  ;;  %v14697_v40 = vld [vmem:[#allocation9 + $0x38] sm:$0xff]  ;;  %v14701_v6 = vld [vmem:[#allocation9 + $0x30] sm:$0xff] }
 0xd77   :  { %7075 = vmatprep.subr.mxu1 %v16164_v48  ;;  %9880 = vmatprep.subr.mxu0 %v15521_v28  ;;  %16168 = vst [vmem:[#allocation47_spill] sm:$0xff] %v14701_v6  ;;  %v14703_v48 = vld [vmem:[#allocation9 + $0x40] sm:$0xff]  ;;  %v14713_v61 = vld [vmem:[#allocation9 + $0x10] sm:$0xff] }
 0xd78   :  { %7076 = vmatpush1.msra.mxu1 %v16165_v36  ;;  %7109 = vmatprep.mubr.f32.mxu1 %v15521_v28  ;;  %10291 = vrcp.f32 %v6789_v35  ;;  %16169 = vst [vmem:[#allocation52_spill] sm:$0xff] %v14703_v48  ;;  %v14707_v36 = vld [vmem:[#allocation9 + $0x8] sm:$0xff]  ;;  %16172 = vst [vmem:[#allocation72_spill] sm:$0xff] %v14713_v61  ;;  %v14722_v35 = vld [vmem:[#allocation9 + $0x2f0] sm:$0xff] }
 0xd79   :  { %9881 = vmatpush3.msra.mxu0 %v16166_v25  ;;  %9882 = vmatprep.mubr.msk.f32.mxu0 %vm10448_vm1, %v15521_v28  ;;  %16170 = vst [vmem:[#allocation46_spill] sm:$0xff] %v14707_v36  ;;  %v14711_v25 = vld [vmem:[#allocation9] sm:$0xff]  ;;  %16173 = vst [vmem:[#allocation35_spill] sm:$0xff] %v14722_v35 }
 0xd7a   :  { %9885 = vmatprep.subr.mxu0 %v15521_v28  ;;  %7286 = vmatprep.subr.mxu1 %v14562_v41  ;;  %16171 = vst [vmem:[#allocation71_spill] sm:$0xff] %v14711_v25 }
 0xd83   :  { %v10290_v30 = vpop.eup %10289 }
 0xd84   :  { %v6793_v46 = vmul.f32 %v10290_v30, %v6792_v50 }
 0xd85   :  { %v10292_v26 = vpop.eup %10291 }
 0xd86   :  { %v6794_v20 = vadd.f32 %v6793_v46, %v16167_v5  ;;  %v6796_v45 = vsub.f32 1.0, %v10292_v26  ;;  %v6798_v8 = vmul.f32 %v10292_v26, %v14401_v18  ;;  %v14571_v18 = vld [vmem:[#allocation9 + $0x2a8] sm:$0xff]  ;;  %v16174_v46 = vld [vmem:[#allocation27_spill] sm:$0xff] }
 0xd88   :  { %10293 = vtanh.f32 %v6794_v20 }
 0xd95   :  { %v10294_v55 = vpop.eup %10293 }
 0xd96   :  { %v6797_v51 = vmul.f32 %v10294_v55, %v6796_v45  ;;  %v16175_v55 = vld [vmem:[#allocation66_spill] sm:$0xff] }
 0xd98   :  { %v14555_v1 = vadd.f32 %v6798_v8, %v6797_v51 }
 0xd9a   :  { %7110 = vmatmul.mubr.f32.vlgmr.msra.gmra.mxu1 %v14555_v1  ;;  %9883 = vmatmul.mubr.f32.vlgmr.msra.gmra.mxu0 %v14555_v1 }
 0xd9b   :  { %7350 = vmatprep.mubr.f32.mxu1 %v15521_v28  ;;  %9917 = vmatprep.mubr.msk.f32.mxu0 %vm10448_vm1, %v15521_v28 }
 0xd9c   :  { %7287 = vmatpush1.msra.mxu1 %v14565_v57  ;;  %9886 = vmatpush3.msra.mxu0 %v14567_v4 }
 0xd9d   :  { %7288 = vmatprep.subr.mxu1 %v14571_v18  ;;  %9887 = vmatprep.subr.mxu0 %v15521_v28 }
 0xd9e   :  { %7289 = vmatpush1.msra.mxu1 %v14575_v2  ;;  %9888 = vmatpush3.msra.mxu0 %v14577_v0 }
 0xd9f   :  { %7290 = vmatprep.subr.mxu1 %v14581_v52  ;;  %9889 = vmatprep.subr.mxu0 %v15521_v28 }
 0xda0   :  { %7291 = vmatpush1.msra.mxu1 %v14585_v44  ;;  %9890 = vmatpush3.msra.mxu0 %v14587_v63 }
 0xda1   :  { %7292 = vmatprep.subr.mxu1 %v14591_v37  ;;  %9891 = vmatprep.subr.mxu0 %v15521_v28 }
 0xda2   :  { %7293 = vmatpush1.msra.mxu1 %v14595_v53  ;;  %9892 = vmatpush3.msra.mxu0 %v14597_v13 }
 0xda3   :  { %7294 = vmatprep.subr.mxu1 %v14601_v42  ;;  %9893 = vmatprep.subr.mxu0 %v15521_v28 }
 0xda4   :  { %7295 = vmatpush1.msra.mxu1 %v14605_v58  ;;  %9894 = vmatpush3.msra.mxu0 %v14607_v59 }
 0xda5   :  { %7296 = vmatprep.subr.mxu1 %v14611_v15  ;;  %9895 = vmatprep.subr.mxu0 %v15521_v28 }
 0xda6   :  { %7297 = vmatpush1.msra.mxu1 %v14615_v3  ;;  %9896 = vmatpush3.msra.mxu0 %v14617_v21 }
 0xda7   :  { %7298 = vmatprep.subr.mxu1 %v14621_v38  ;;  %9897 = vmatprep.subr.mxu0 %v15521_v28 }
 0xda8   :  { %7299 = vmatpush1.msra.mxu1 %v14625_v43  ;;  %9898 = vmatpush3.msra.mxu0 %v14627_v17 }
 0xda9   :  { %7300 = vmatprep.subr.mxu1 %v14629_v29  ;;  %9899 = vmatprep.subr.mxu0 %v15521_v28 }
 0xdaa   :  { %7301 = vmatpush1.msra.mxu1 %v14633_v14  ;;  %9900 = vmatpush3.msra.mxu0 %v14635_v9 }
 0xdab   :  { %7302 = vmatprep.subr.mxu1 %v14637_v47  ;;  %9901 = vmatprep.subr.mxu0 %v15521_v28 }
 0xdac   :  { %7303 = vmatpush1.msra.mxu1 %v14641_v23  ;;  %9902 = vmatpush3.msra.mxu0 %v14643_v62 }
 0xdad   :  { %7304 = vmatprep.subr.mxu1 %v14647_v60  ;;  %9903 = vmatprep.subr.mxu0 %v15521_v28 }
 0xdae   :  { %7305 = vmatpush1.msra.mxu1 %v14651_v10  ;;  %9904 = vmatpush3.msra.mxu0 %v14653_v54 }
 0xdaf   :  { %7306 = vmatprep.subr.mxu1 %v14657_v7  ;;  %9905 = vmatprep.subr.mxu0 %v15521_v28 }
 0xdb0   :  { %7307 = vmatpush1.msra.mxu1 %v14661_v34  ;;  %9906 = vmatpush3.msra.mxu0 %v14663_v33 }
 0xdb1   :  { %7308 = vmatprep.subr.mxu1 %v14667_v56  ;;  %9907 = vmatprep.subr.mxu0 %v15521_v28 }
 0xdb2   :  { %7309 = vmatpush1.msra.mxu1 %v14671_v32  ;;  %9908 = vmatpush3.msra.mxu0 %v14673_v22 }
 0xdb3   :  { %7310 = vmatprep.subr.mxu1 %v14677_v11  ;;  %9909 = vmatprep.subr.mxu0 %v15521_v28 }
 0xdb4   :  { %7311 = vmatpush1.msra.mxu1 %v14681_v24  ;;  %9910 = vmatpush3.msra.mxu0 %v14683_v27 }
 0xdb5   :  { %7312 = vmatprep.subr.mxu1 %v14687_v19  ;;  %9911 = vmatprep.subr.mxu0 %v15521_v28 }
 0xdb6   :  { %7313 = vmatpush1.msra.mxu1 %v14691_v31  ;;  %9912 = vmatpush3.msra.mxu0 %v14693_v16 }
 0xdb7   :  { %7314 = vmatprep.subr.mxu1 %v14697_v40  ;;  %9913 = vmatprep.subr.mxu0 %v15521_v28 }
 0xdb8   :  { %7315 = vmatpush1.msra.mxu1 %v14701_v6  ;;  %9914 = vmatpush3.msra.mxu0 %v14703_v48  ;;  %v14739_v48 = vld [vmem:[#allocation9 + $0x2f8] sm:$0xff]  ;;  %v14741_v6 = vld [vmem:[#allocation9 + $0x2c0] sm:$0xff] }
 0xdb9   :  { %7316 = vmatprep.subr.mxu1 %v14707_v36  ;;  %9915 = vmatprep.subr.mxu0 %v15521_v28  ;;  %16177 = vst [vmem:[#allocation39_spill] sm:$0xff] %v14741_v6 }
 0xdba   :  { %7317 = vmatpush1.msra.mxu1 %v14711_v25  ;;  %9916 = vmatpush3.msra.mxu0 %v14713_v61 }
 0xdbb   :  { %9920 = vmatprep.subr.mxu0 %v15521_v28  ;;  %7475 = vmatprep.subr.mxu1 %v14722_v35  ;;  %v14730_v35 = vld [vmem:[%s15093_s8] ss:$0 sm:$0xff] }
 0xe19   :  { %v6922_v50 = vpop.f32.mrf.mxu1  ;;  %v6993_v30 = vpop.f32.mrf.mxu0 }
 0xe1a   :  { %v7186_v5 = vadd.f32 %v6922_v50, %v16174_v46  ;;  %v7200_v50 = vadd.f32 %v14730_v35, %v6993_v30  ;;  %v14747_v30 = vld [vmem:[#allocation9 + $0x2c8] sm:$0xff] }
 0xe1b   :  { %v9849_v20 = vpop.f32.mrf.mxu0  ;;  %v6924_v45 = vpop.f32.mrf.mxu1  ;;  %16179 = vst [vmem:[#allocation58_spill] sm:$0xff] %v14747_v30 }
 0xe1c   :  { %v8307_v26 = vmul.f32 -1.442695, %v7186_v5  ;;  %v7193_v51 = vadd.f32 %v6924_v45, %v16175_v55  ;;  %v16176_v20 = vld [vmem:[#allocation49_spill] sm:$0xff] }
 0xe1e   :  { %10295 = vpow2.f32 %v8307_v26  ;;  %v8308_v8 = vmul.f32 -1.442695, %v7193_v51 }
 0xe20   :  { %10297 = vpow2.f32 %v8308_v8  ;;  %v14737_v8 = vld [vmem:[#allocation9 + $0x2e8] sm:$0xff] }
 0xe2b   :  { %v10296_v12 = vpop.eup %10295 }
 0xe2c   :  { %v7190_v61 = vadd.f32 1.0, %v10296_v12 }
 0xe2d   :  { %v10298_v25 = vpop.eup %10297 }
 0xe2e   :  { %10299 = vrcp.f32 %v7190_v61  ;;  %v7197_v36 = vadd.f32 1.0, %v10298_v25 }
 0xe30   :  { %10301 = vrcp.f32 %v7197_v36  ;;  %v14745_v36 = vld [vmem:[#allocation9 + $0x2b8] sm:$0xff] }
 0xe31   :  { %16178 = vst [vmem:[#allocation65_spill] sm:$0xff] %v14745_v36 }
 0xe3b   :  { %v10300_v46 = vpop.eup %10299 }
 0xe3c   :  { %v7201_v5 = vmul.f32 %v10300_v46, %v7200_v50  ;;  %v14755_v50 = vld [vmem:[#allocation9 + $0x288] sm:$0xff]  ;;  %v14757_v46 = vld [vmem:[#allocation9 + $0x298] sm:$0xff] }
 0xe3d   :  { %v10302_v45 = vpop.eup %10301  ;;  %16181 = vst [vmem:[#allocation33_spill] sm:$0xff] %v14755_v50  ;;  %16182 = vst [vmem:[#allocation70_spill] sm:$0xff] %v14757_v46 }
 0xe3e   :  { %v7202_v26 = vadd.f32 %v7201_v5, %v16176_v20  ;;  %v7204_v55 = vsub.f32 1.0, %v10302_v45  ;;  %v7206_v61 = vmul.f32 %v10302_v45, %v14477_v49  ;;  %v14751_v49 = vld [vmem:[#allocation9 + $0x290] sm:$0xff]  ;;  %v14761_v5 = vld [vmem:[#allocation9 + $0x260] sm:$0xff]  ;;  %v14765_v20 = vld [vmem:[#allocation9 + $0x258] sm:$0xff] }
 0xe3f   :  { %16180 = vst [vmem:[#allocation26_spill] sm:$0xff] %v14751_v49  ;;  %16183 = vst [vmem:[#allocation36_spill] sm:$0xff] %v14761_v5  ;;  %v14771_v45 = vld [vmem:[#allocation9 + $0x230] sm:$0xff] }
 0xe40   :  { %10303 = vtanh.f32 %v7202_v26  ;;  %16184 = vst [vmem:[#allocation77_spill] sm:$0xff] %v14765_v20  ;;  %v14767_v26 = vld [vmem:[#allocation9 + $0x268] sm:$0xff]  ;;  %16186 = vst [vmem:[#allocation79_spill] sm:$0xff] %v14771_v45 }
 0xe41   :  { %16185 = vst [vmem:[#allocation78_spill] sm:$0xff] %v14767_v26 }
 0xe4d   :  { %v10304_v51 = vpop.eup %10303 }
 0xe4e   :  { %v7205_v12 = vmul.f32 %v10304_v51, %v7204_v55  ;;  %v14775_v55 = vld [vmem:[#allocation9 + $0x228] sm:$0xff]  ;;  %v14777_v51 = vld [vmem:[#allocation9 + $0x238] sm:$0xff] }
 0xe4f   :  { %16187 = vst [vmem:[#allocation80_spill] sm:$0xff] %v14777_v51 }
 0xe50   :  { %v14735_v25 = vadd.f32 %v7206_v61, %v7205_v12  ;;  %v14781_v12 = vld [vmem:[#allocation9 + $0x200] sm:$0xff] }
 0xe51   :  { %16188 = vst [vmem:[#allocation60_spill] sm:$0xff] %v14781_v12 }
 0xe52   :  { %7351 = vmatmul.mubr.f32.vlgmr.msra.gmra.mxu1 %v14735_v25  ;;  %9918 = vmatmul.mubr.f32.vlgmr.msra.gmra.mxu0 %v14735_v25 }
 0xe53   :  { %7476 = vmatpush1.msra.mxu1 %v14737_v8  ;;  %9921 = vmatpush3.msra.mxu0 %v14739_v48 }
 0xe54   :  { %7477 = vmatprep.subr.mxu1 %v14741_v6  ;;  %9922 = vmatprep.subr.mxu0 %v15521_v28 }
 0xe55   :  { %7478 = vmatpush1.msra.mxu1 %v14745_v36  ;;  %9923 = vmatpush3.msra.mxu0 %v14747_v30  ;;  %v14800_v36 = vld [vmem:[#allocation9 + $0x1d8] sm:$0xff] }
 0xe56   :  { %7479 = vmatprep.subr.mxu1 %v14751_v49  ;;  %9924 = vmatprep.subr.mxu0 %v15521_v28  ;;  %v16191_v49 = vld [vmem:[#allocation41_spill] sm:$0xff]  ;;  %16194 = vst [vmem:[#allocation38_spill] sm:$0xff] %v14800_v36 }
 0xe57   :  { %7480 = vmatpush1.msra.mxu1 %v14755_v50  ;;  %9925 = vmatpush3.msra.mxu0 %v14757_v46  ;;  %v14789_v46 = vld [vmem:[#allocation9 + $0x208] sm:$0xff] }
 0xe58   :  { %7481 = vmatprep.subr.mxu1 %v14761_v5  ;;  %9926 = vmatprep.subr.mxu0 %v15521_v28  ;;  %v14787_v5 = vld [vmem:[#allocation9 + $0x1f8] sm:$0xff]  ;;  %16190 = vst [vmem:[#allocation23_spill] sm:$0xff] %v14789_v46 }
 0xe59   :  { %7482 = vmatpush1.msra.mxu1 %v14765_v20  ;;  %9927 = vmatpush3.msra.mxu0 %v14767_v26  ;;  %16189 = vst [vmem:[#allocation62_spill] sm:$0xff] %v14787_v5  ;;  %v14794_v26 = vld [vmem:[#allocation9 + $0x1d0] sm:$0xff] }
 0xe5a   :  { %v7111_v61 = vpop.f32.mrf.mxu1  ;;  %v14783_v50 = vpop.f32.mrf.mxu0  ;;  %7483 = vmatprep.subr.mxu1 %v14771_v45  ;;  %9928 = vmatprep.subr.mxu0 %v15521_v28  ;;  %16192 = vst [vmem:[#allocation25_spill] sm:$0xff] %v14794_v26  ;;  %v14798_v45 = vld [vmem:[#allocation9 + $0x1c8] sm:$0xff] }
 0xe5b   :  { %v7208_v30 = vadd.f32 %v7111_v61, %v16191_v49  ;;  %7484 = vmatpush1.msra.mxu1 %v14775_v55  ;;  %9929 = vmatpush3.msra.mxu0 %v14777_v51  ;;  %16193 = vst [vmem:[#allocation24_spill] sm:$0xff] %v14798_v45  ;;  %v14804_v49 = vld [vmem:[#allocation9 + $0x1a0] sm:$0xff] }
 0xe5c   :  { %v9884_v20 = vpop.f32.mrf.mxu0  ;;  %7485 = vmatprep.subr.mxu1 %v14781_v12  ;;  %9930 = vmatprep.subr.mxu0 %v15521_v28  ;;  %16195 = vst [vmem:[#allocation61_spill] sm:$0xff] %v14804_v49  ;;  %v7113_v61 = vpop.f32.mrf.mxu1  ;;  %v14810_v12 = vld [vmem:[#allocation9 + $0x1a8] sm:$0xff] }
 0xe5d   :  { %v8309_v6 = vmul.f32 -1.442695, %v7208_v30  ;;  %7486 = vmatpush1.msra.mxu1 %v14787_v5  ;;  %9931 = vmatpush3.msra.mxu0 %v14789_v46  ;;  %v14808_v20 = vld [vmem:[#allocation9 + $0x198] sm:$0xff]  ;;  %16197 = vst [vmem:[#allocation64_spill] sm:$0xff] %v14810_v12  ;;  %v14814_v30 = vld [vmem:[#allocation9 + $0x170] sm:$0xff]  ;;  %v14818_v46 = vld [vmem:[#allocation9 + $0x168] sm:$0xff] }
 0xe5e   :  { %7487 = vmatprep.subr.mxu1 %v14794_v26  ;;  %9932 = vmatprep.subr.mxu0 %v15521_v28  ;;  %16196 = vst [vmem:[#allocation63_spill] sm:$0xff] %v14808_v20  ;;  %16198 = vst [vmem:[#allocation21_spill] sm:$0xff] %v14814_v30  ;;  %v14820_v26 = vld [vmem:[#allocation9 + $0x178] sm:$0xff]  ;;  %v16201_v5 = vld [vmem:[#allocation32_spill] sm:$0xff] }
 0xe5f   :  { %10305 = vpow2.f32 %v8309_v6  ;;  %7488 = vmatpush1.msra.mxu1 %v14798_v45  ;;  %9933 = vmatpush3.msra.mxu0 %v14800_v36  ;;  %16199 = vst [vmem:[#allocation59_spill] sm:$0xff] %v14818_v46  ;;  %16200 = vst [vmem:[#allocation57_spill] sm:$0xff] %v14820_v26  ;;  %v7215_v51 = vadd.f32 %v7113_v61, %v16201_v5  ;;  %v14825_v6 = vld [vmem:[#allocation9 + $0x140] sm:$0xff]  ;;  %v14829_v36 = vld [vmem:[#allocation9 + $0x138] sm:$0xff] }
 0xe60   :  { %7489 = vmatprep.subr.mxu1 %v14804_v49  ;;  %9934 = vmatprep.subr.mxu0 %v15521_v28  ;;  %16202 = vst [vmem:[#allocation76_spill] sm:$0xff] %v14825_v6  ;;  %16203 = vst [vmem:[#allocation22_spill] sm:$0xff] %v14829_v36  ;;  %v14831_v49 = vld [vmem:[#allocation9 + $0x148] sm:$0xff]  ;;  %v14835_v45 = vld [vmem:[#allocation9 + $0x110] sm:$0xff] }
 0xe61   :  { %7490 = vmatpush1.msra.mxu1 %v14808_v20  ;;  %9935 = vmatpush3.msra.mxu0 %v14810_v12  ;;  %16204 = vst [vmem:[#allocation28_spill] sm:$0xff] %v14831_v49  ;;  %16205 = vst [vmem:[#allocation16_spill] sm:$0xff] %v14835_v45  ;;  %v14839_v5 = vld [vmem:[#allocation9 + $0x108] sm:$0xff]  ;;  %v14841_v61 = vld [vmem:[#allocation9 + $0x118] sm:$0xff] }
 0xe62   :  { %7491 = vmatprep.subr.mxu1 %v14814_v30  ;;  %9936 = vmatprep.subr.mxu0 %v15521_v28  ;;  %16206 = vst [vmem:[#allocation43_spill] sm:$0xff] %v14839_v5  ;;  %16207 = vst [vmem:[#allocation96_spill] sm:$0xff] %v14841_v61  ;;  %v8310_v30 = vmul.f32 -1.442695, %v7215_v51  ;;  %v14845_v12 = vld [vmem:[#allocation9 + $0xe0] sm:$0xff]  ;;  %v14859_v51 = vld [vmem:[#allocation9 + $0xa8] sm:$0xff] }
 0xe63   :  { %7492 = vmatpush1.msra.mxu1 %v14818_v46  ;;  %9937 = vmatpush3.msra.mxu0 %v14820_v26  ;;  %16208 = vst [vmem:[#allocation97_spill] sm:$0xff] %v14845_v12  ;;  %v14849_v26 = vld [vmem:[#allocation9 + $0xd8] sm:$0xff]  ;;  %v14855_v46 = vld [vmem:[#allocation9 + $0xb0] sm:$0xff]  ;;  %16212 = vst [vmem:[#allocation30_spill] sm:$0xff] %v14859_v51 }
 0xe64   :  { %7493 = vmatprep.subr.mxu1 %v14825_v6  ;;  %9938 = vmatprep.subr.mxu0 %v15521_v28  ;;  %16209 = vst [vmem:[#allocation51_spill] sm:$0xff] %v14849_v26  ;;  %v14851_v6 = vld [vmem:[#allocation9 + $0xe8] sm:$0xff]  ;;  %16211 = vst [vmem:[#allocation99_spill] sm:$0xff] %v14855_v46  ;;  %10307 = vpow2.f32 %v8310_v30 }
 0xe65   :  { %7494 = vmatpush1.msra.mxu1 %v14829_v36  ;;  %9939 = vmatpush3.msra.mxu0 %v14831_v49  ;;  %16210 = vst [vmem:[#allocation17_spill] sm:$0xff] %v14851_v6  ;;  %v14861_v49 = vld [vmem:[#allocation9 + $0xb8] sm:$0xff]  ;;  %v14885_v36 = vld [vmem:[#allocation9 + $0x20] sm:$0xff] }
 0xe66   :  { %7495 = vmatprep.subr.mxu1 %v14835_v45  ;;  %9940 = vmatprep.subr.mxu0 %v15521_v28  ;;  %16213 = vst [vmem:[#allocation15_spill] sm:$0xff] %v14861_v49  ;;  %v14865_v45 = vld [vmem:[#allocation9 + $0x80] sm:$0xff]  ;;  %16220 = vst [vmem:[#allocation86_spill] sm:$0xff] %v14885_v36 }
 0xe67   :  { %7496 = vmatpush1.msra.mxu1 %v14839_v5  ;;  %9941 = vmatpush3.msra.mxu0 %v14841_v61  ;;  %16214 = vst [vmem:[#allocation84_spill] sm:$0xff] %v14865_v45  ;;  %v14869_v61 = vld [vmem:[#allocation9 + $0x78] sm:$0xff]  ;;  %v14875_v5 = vld [vmem:[#allocation9 + $0x50] sm:$0xff] }
 0xe68   :  { %7497 = vmatprep.subr.mxu1 %v14845_v12  ;;  %9942 = vmatprep.subr.mxu0 %v15521_v28  ;;  %16215 = vst [vmem:[#allocation81_spill] sm:$0xff] %v14869_v61  ;;  %v14871_v12 = vld [vmem:[#allocation9 + $0x88] sm:$0xff]  ;;  %16217 = vst [vmem:[#allocation85_spill] sm:$0xff] %v14875_v5 }
 0xe69   :  { %7498 = vmatpush1.msra.mxu1 %v14849_v26  ;;  %9943 = vmatpush3.msra.mxu0 %v14851_v6  ;;  %16216 = vst [vmem:[#allocation82_spill] sm:$0xff] %v14871_v12  ;;  %v14879_v6 = vld [vmem:[#allocation9 + $0x48] sm:$0xff] }
 0xe6a   :  { %7499 = vmatprep.subr.mxu1 %v14855_v46  ;;  %9944 = vmatprep.subr.mxu0 %v15521_v28  ;;  %16218 = vst [vmem:[#allocation34_spill] sm:$0xff] %v14879_v6  ;;  %v14881_v46 = vld [vmem:[#allocation9 + $0x58] sm:$0xff] }
 0xe6b   :  { %7500 = vmatpush1.msra.mxu1 %v14859_v51  ;;  %9945 = vmatpush3.msra.mxu0 %v14861_v49  ;;  %16219 = vst [vmem:[#allocation83_spill] sm:$0xff] %v14881_v46  ;;  %v14889_v49 = vld [vmem:[#allocation9 + $0x18] sm:$0xff] }
 0xe6c   :  { %v10306_v30 = vpop.eup %10305  ;;  %7501 = vmatprep.subr.mxu1 %v14865_v45  ;;  %9946 = vmatprep.subr.mxu0 %v15521_v28  ;;  %16221 = vst [vmem:[#allocation87_spill] sm:$0xff] %v14889_v49  ;;  %v14893_v45 = vld [vmem:[#allocation9 + $0x28] sm:$0xff] }
 0xe6d   :  { %v7212_v26 = vadd.f32 1.0, %v10306_v30  ;;  %7502 = vmatpush1.msra.mxu1 %v14869_v61  ;;  %9947 = vmatpush3.msra.mxu0 %v14871_v12  ;;  %16222 = vst [vmem:[#allocation37_spill] sm:$0xff] %v14893_v45 }
 0xe6e   :  { %7503 = vmatprep.subr.mxu1 %v14875_v5  ;;  %9948 = vmatprep.subr.mxu0 %v15521_v28 }
 0xe6f   :  { %10309 = vrcp.f32 %v7212_v26  ;;  %7504 = vmatpush1.msra.mxu1 %v14879_v6  ;;  %9949 = vmatpush3.msra.mxu0 %v14881_v46 }
 0xe70   :  { %7505 = vmatprep.subr.mxu1 %v14885_v36  ;;  %9950 = vmatprep.subr.mxu0 %v15521_v28  ;;  %v7222_v36 = vadd.f32 %v14395_v39, %v14783_v50  ;;  %v16224_v39 = vld [vmem:[#allocation47_spill] sm:$0xff]  ;;  %v16245_v50 = vld [vmem:[#allocation60_spill] sm:$0xff] }
 0xe71   :  { %7506 = vmatpush1.msra.mxu1 %v14889_v49  ;;  %7539 = vmatprep.mubr.f32.mxu1 %v15521_v28  ;;  %v10308_v26 = vpop.eup %10307  ;;  %v16223_v49 = vld [vmem:[#allocation29_spill] sm:$0xff] }
 0xe72   :  { %9951 = vmatpush3.msra.mxu0 %v14893_v45  ;;  %9952 = vmatprep.mubr.msk.f32.mxu0 %vm10448_vm1, %v15521_v28  ;;  %v7219_v30 = vadd.f32 1.0, %v10308_v26  ;;  %v16253_v26 = vld [vmem:[#allocation63_spill] sm:$0xff] }
 0xe73   :  { %7716 = vmatprep.subr.mxu1 %v14562_v41  ;;  %9955 = vmatprep.subr.mxu0 %v15521_v28 }
 0xe74   :  { %10311 = vrcp.f32 %v7219_v30  ;;  %v16254_v30 = vld [vmem:[#allocation64_spill] sm:$0xff] }
 0xe7c   :  { %v10310_v46 = vpop.eup %10309 }
 0xe7d   :  { %v7223_v6 = vmul.f32 %v10310_v46, %v7222_v36 }
 0xe7f   :  { %v7224_v5 = vadd.f32 %v7223_v6, %v16223_v49  ;;  %v16249_v6 = vld [vmem:[#allocation24_spill] sm:$0xff] }
 0xe81   :  { %10313 = vtanh.f32 %v7224_v5  ;;  %v10312_v12 = vpop.eup %10311  ;;  %v16251_v5 = vld [vmem:[#allocation61_spill] sm:$0xff] }
 0xe82   :  { %v7226_v45 = vsub.f32 1.0, %v10312_v12  ;;  %v7228_v20 = vmul.f32 %v10312_v12, %v14555_v1  ;;  %v16225_v1 = vld [vmem:[#allocation52_spill] sm:$0xff]  ;;  %v16247_v12 = vld [vmem:[#allocation23_spill] sm:$0xff] }
 0xe8e   :  { %v10314_v61 = vpop.eup %10313 }
 0xe8f   :  { %v7227_v51 = vmul.f32 %v10314_v61, %v7226_v45  ;;  %v16246_v45 = vld [vmem:[#allocation62_spill] sm:$0xff] }
 0xe90   :  { %v16252_v61 = vld [vmem:[#allocation42_spill] sm:$0xff] }
 0xe91   :  { %v14908_v41 = vadd.f32 %v7228_v20, %v7227_v51  ;;  %v16248_v20 = vld [vmem:[#allocation25_spill] sm:$0xff] }
 0xe93   :  { %7540 = vmatmul.mubr.f32.vlgmr.msra.gmra.mxu1 %v14908_v41  ;;  %9953 = vmatmul.mubr.f32.vlgmr.msra.gmra.mxu0 %v14908_v41 }
 0xe94   :  { %7717 = vmatpush1.msra.mxu1 %v14565_v57  ;;  %9956 = vmatpush3.msra.mxu0 %v14567_v4  ;;  %v16226_v57 = vld [vmem:[#allocation46_spill] sm:$0xff]  ;;  %v16227_v4 = vld [vmem:[#allocation71_spill] sm:$0xff] }
 0xe95   :  { %7718 = vmatprep.subr.mxu1 %v14571_v18  ;;  %9957 = vmatprep.subr.mxu0 %v15521_v28  ;;  %v16228_v18 = vld [vmem:[#allocation72_spill] sm:$0xff] }
 0xe96   :  { %7719 = vmatpush1.msra.mxu1 %v14575_v2  ;;  %9958 = vmatpush3.msra.mxu0 %v14577_v0  ;;  %v16229_v2 = vld [vmem:[#allocation35_spill] sm:$0xff] }
 0xe97   :  { %7720 = vmatprep.subr.mxu1 %v14581_v52  ;;  %9959 = vmatprep.subr.mxu0 %v15521_v28 }
 0xe98   :  { %7721 = vmatpush1.msra.mxu1 %v14585_v44  ;;  %9960 = vmatpush3.msra.mxu0 %v14587_v63  ;;  %v16230_v44 = vld [vmem:[#allocation40_spill] sm:$0xff] }
 0xe99   :  { %7722 = vmatprep.subr.mxu1 %v14591_v37  ;;  %9961 = vmatprep.subr.mxu0 %v15521_v28 }
 0xe9a   :  { %7723 = vmatpush1.msra.mxu1 %v14595_v53  ;;  %9962 = vmatpush3.msra.mxu0 %v14597_v13 }
 0xe9b   :  { %7724 = vmatprep.subr.mxu1 %v14601_v42  ;;  %9963 = vmatprep.subr.mxu0 %v15521_v28  ;;  %v16231_v42 = vld [vmem:[#allocation50_spill] sm:$0xff] }
 0xe9c   :  { %7725 = vmatpush1.msra.mxu1 %v14605_v58  ;;  %9964 = vmatpush3.msra.mxu0 %v14607_v59 }
 0xe9d   :  { %7726 = vmatprep.subr.mxu1 %v14611_v15  ;;  %9965 = vmatprep.subr.mxu0 %v15521_v28 }
 0xe9e   :  { %7727 = vmatpush1.msra.mxu1 %v14615_v3  ;;  %9966 = vmatpush3.msra.mxu0 %v14617_v21 }
 0xe9f   :  { %7728 = vmatprep.subr.mxu1 %v14621_v38  ;;  %9967 = vmatprep.subr.mxu0 %v15521_v28 }
 0xea0   :  { %7729 = vmatpush1.msra.mxu1 %v14625_v43  ;;  %9968 = vmatpush3.msra.mxu0 %v14627_v17 }
 0xea1   :  { %7730 = vmatprep.subr.mxu1 %v14629_v29  ;;  %9969 = vmatprep.subr.mxu0 %v15521_v28 }
 0xea2   :  { %7731 = vmatpush1.msra.mxu1 %v14633_v14  ;;  %9970 = vmatpush3.msra.mxu0 %v14635_v9  ;;  %v16232_v14 = vld [vmem:[#allocation48_spill] sm:$0xff] }
 0xea3   :  { %7732 = vmatprep.subr.mxu1 %v14637_v47  ;;  %9971 = vmatprep.subr.mxu0 %v15521_v28 }
 0xea4   :  { %7733 = vmatpush1.msra.mxu1 %v14641_v23  ;;  %9972 = vmatpush3.msra.mxu0 %v14643_v62 }
 0xea5   :  { %7734 = vmatprep.subr.mxu1 %v14647_v60  ;;  %9973 = vmatprep.subr.mxu0 %v15521_v28 }
 0xea6   :  { %7735 = vmatpush1.msra.mxu1 %v14651_v10  ;;  %9974 = vmatpush3.msra.mxu0 %v14653_v54 }
 0xea7   :  { %7736 = vmatprep.subr.mxu1 %v14657_v7  ;;  %9975 = vmatprep.subr.mxu0 %v15521_v28  ;;  %v16233_v7 = vld [vmem:[#allocation39_spill] sm:$0xff] }
 0xea8   :  { %7737 = vmatpush1.msra.mxu1 %v14661_v34  ;;  %9976 = vmatpush3.msra.mxu0 %v14663_v33  ;;  %v16234_v34 = vld [vmem:[#allocation65_spill] sm:$0xff]  ;;  %v16235_v33 = vld [vmem:[#allocation58_spill] sm:$0xff] }
 0xea9   :  { %7738 = vmatprep.subr.mxu1 %v14667_v56  ;;  %9977 = vmatprep.subr.mxu0 %v15521_v28  ;;  %v16236_v56 = vld [vmem:[#allocation26_spill] sm:$0xff] }
 0xeaa   :  { %7739 = vmatpush1.msra.mxu1 %v14671_v32  ;;  %9978 = vmatpush3.msra.mxu0 %v14673_v22  ;;  %v16237_v32 = vld [vmem:[#allocation33_spill] sm:$0xff]  ;;  %v16238_v22 = vld [vmem:[#allocation70_spill] sm:$0xff] }
 0xeab   :  { %7740 = vmatprep.subr.mxu1 %v14677_v11  ;;  %9979 = vmatprep.subr.mxu0 %v15521_v28  ;;  %v16239_v11 = vld [vmem:[#allocation36_spill] sm:$0xff] }
 0xeac   :  { %7741 = vmatpush1.msra.mxu1 %v14681_v24  ;;  %9980 = vmatpush3.msra.mxu0 %v14683_v27  ;;  %v16240_v24 = vld [vmem:[#allocation77_spill] sm:$0xff]  ;;  %v16241_v27 = vld [vmem:[#allocation78_spill] sm:$0xff] }
 0xead   :  { %7742 = vmatprep.subr.mxu1 %v14687_v19  ;;  %9981 = vmatprep.subr.mxu0 %v15521_v28 }
 0xeae   :  { %7743 = vmatpush1.msra.mxu1 %v14691_v31  ;;  %9982 = vmatpush3.msra.mxu0 %v14693_v16  ;;  %v16242_v16 = vld [vmem:[#allocation79_spill] sm:$0xff] }
 0xeaf   :  { %7744 = vmatprep.subr.mxu1 %v14697_v40  ;;  %9983 = vmatprep.subr.mxu0 %v15521_v28  ;;  %v16243_v40 = vld [vmem:[#allocation20_spill] sm:$0xff] }
 0xeb0   :  { %7745 = vmatpush1.msra.mxu1 %v16224_v39  ;;  %9984 = vmatpush3.msra.mxu0 %v16225_v1  ;;  %v16255_v39 = vld [vmem:[#allocation21_spill] sm:$0xff]  ;;  %v16256_v1 = vld [vmem:[#allocation59_spill] sm:$0xff] }
 0xeb1   :  { %7746 = vmatprep.subr.mxu1 %v16226_v57  ;;  %9985 = vmatprep.subr.mxu0 %v15521_v28  ;;  %v16257_v57 = vld [vmem:[#allocation57_spill] sm:$0xff] }
 0xeb2   :  { %7747 = vmatpush1.msra.mxu1 %v16227_v4  ;;  %7780 = vmatprep.mubr.f32.mxu1 %v15521_v28  ;;  %v16258_v4 = vld [vmem:[#allocation76_spill] sm:$0xff] }
 0xeb3   :  { %9986 = vmatpush3.msra.mxu0 %v16228_v18  ;;  %9987 = vmatprep.mubr.msk.f32.mxu0 %vm10448_vm1, %v15521_v28 }
 0xeb4   :  { %7905 = vmatprep.subr.mxu1 %v16229_v2  ;;  %9990 = vmatprep.subr.mxu0 %v15521_v28  ;;  %v16259_v2 = vld [vmem:[#allocation22_spill] sm:$0xff] }
 0xf12   :  { %v7352_v0 = vpop.f32.mrf.mxu1  ;;  %v7423_v52 = vpop.f32.mrf.mxu0 }
 0xf13   :  { %v7616_v63 = vadd.f32 %v7352_v0, %v16230_v44  ;;  %v7630_v43 = vadd.f32 %v14730_v35, %v7423_v52  ;;  %v16260_v0 = vld [vmem:[#allocation28_spill] sm:$0xff]  ;;  %v16262_v44 = vld [vmem:[#allocation43_spill] sm:$0xff] }
 0xf14   :  { %v9919_v37 = vpop.f32.mrf.mxu0  ;;  %v7354_v13 = vpop.f32.mrf.mxu1  ;;  %v16261_v52 = vld [vmem:[#allocation16_spill] sm:$0xff] }
 0xf15   :  { %v8311_v53 = vmul.f32 -1.442695, %v7616_v63  ;;  %v7623_v58 = vadd.f32 %v7354_v13, %v16231_v42  ;;  %v16263_v63 = vld [vmem:[#allocation96_spill] sm:$0xff]  ;;  %v16264_v37 = vld [vmem:[#allocation97_spill] sm:$0xff]  ;;  %v16267_v42 = vld [vmem:[#allocation99_spill] sm:$0xff] }
 0xf16   :  { %v16266_v13 = vld [vmem:[#allocation17_spill] sm:$0xff] }
 0xf17   :  { %10315 = vpow2.f32 %v8311_v53  ;;  %v8312_v59 = vmul.f32 -1.442695, %v7623_v58  ;;  %v16265_v53 = vld [vmem:[#allocation51_spill] sm:$0xff]  ;;  %v16268_v58 = vld [vmem:[#allocation30_spill] sm:$0xff] }
 0xf19   :  { %10317 = vpow2.f32 %v8312_v59  ;;  %v16269_v59 = vld [vmem:[#allocation15_spill] sm:$0xff] }
 0xf24   :  { %v10316_v15 = vpop.eup %10315 }
 0xf25   :  { %v7620_v3 = vadd.f32 1.0, %v10316_v15 }
 0xf26   :  { %v10318_v21 = vpop.eup %10317 }
 0xf27   :  { %10319 = vrcp.f32 %v7620_v3  ;;  %v7627_v38 = vadd.f32 1.0, %v10318_v21  ;;  %v16270_v3 = vld [vmem:[#allocation84_spill] sm:$0xff] }
 0xf29   :  { %10321 = vrcp.f32 %v7627_v38  ;;  %v16271_v38 = vld [vmem:[#allocation81_spill] sm:$0xff] }
 0xf34   :  { %v10320_v17 = vpop.eup %10319 }
 0xf35   :  { %v7631_v29 = vmul.f32 %v10320_v17, %v7630_v43  ;;  %v16272_v43 = vld [vmem:[#allocation82_spill] sm:$0xff]  ;;  %v16273_v17 = vld [vmem:[#allocation85_spill] sm:$0xff] }
 0xf36   :  { %v10322_v47 = vpop.eup %10321 }
 0xf37   :  { %v7632_v9 = vadd.f32 %v7631_v29, %v16232_v14  ;;  %v7634_v23 = vsub.f32 1.0, %v10322_v47  ;;  %v7636_v10 = vmul.f32 %v10322_v47, %v14735_v25  ;;  %v16274_v29 = vld [vmem:[#allocation34_spill] sm:$0xff]  ;;  %v16275_v14 = vld [vmem:[#allocation83_spill] sm:$0xff] }
 0xf38   :  { %v8129_v47 = vld [vmem:[#allocation10 + $0xf8] sm:$0xff] }
 0xf39   :  { %10323 = vtanh.f32 %v7632_v9  ;;  %v16276_v9 = vld [vmem:[#allocation86_spill] sm:$0xff] }
 0xf46   :  { %v10324_v62 = vpop.eup %10323 }
 0xf47   :  { %v7635_v60 = vmul.f32 %v10324_v62, %v7634_v23  ;;  %v16277_v23 = vld [vmem:[#allocation87_spill] sm:$0xff]  ;;  %v16278_v62 = vld [vmem:[#allocation37_spill] sm:$0xff] }
 0xf49   :  { %v14984_v54 = vadd.f32 %v7636_v10, %v7635_v60 }
 0xf4b   :  { %7781 = vmatmul.mubr.f32.vlgmr.msra.gmra.mxu1 %v14984_v54  ;;  %9988 = vmatmul.mubr.f32.vlgmr.msra.gmra.mxu0 %v14984_v54 }
 0xf4c   :  { %7906 = vmatpush1.msra.mxu1 %v14737_v8  ;;  %9991 = vmatpush3.msra.mxu0 %v14739_v48  ;;  %v16244_v8 = vld [vmem:[#allocation80_spill] sm:$0xff] }
 0xf4d   :  { %7907 = vmatprep.subr.mxu1 %v16233_v7  ;;  %9992 = vmatprep.subr.mxu0 %v15521_v28  ;;  %v10352_v7 = vld [vmem:[%s15093_s8 + $0x1] ss:$0 sm:$0xff] }
 0xf4e   :  { %7908 = vmatpush1.msra.mxu1 %v16234_v34  ;;  %9993 = vmatpush3.msra.mxu0 %v16235_v33 }
 0xf4f   :  { %7909 = vmatprep.subr.mxu1 %v16236_v56  ;;  %9994 = vmatprep.subr.mxu0 %v15521_v28 }
 0xf50   :  { %7910 = vmatpush1.msra.mxu1 %v16237_v32  ;;  %9995 = vmatpush3.msra.mxu0 %v16238_v22  ;;  %v16279_v32 = vld [vmem:[#allocation73_spill] sm:$0xff] }
 0xf51   :  { %7911 = vmatprep.subr.mxu1 %v16239_v11  ;;  %9996 = vmatprep.subr.mxu0 %v15521_v28 }
 0xf52   :  { %7912 = vmatpush1.msra.mxu1 %v16240_v24  ;;  %9997 = vmatpush3.msra.mxu0 %v16241_v27 }
 0xf53   :  { %v7541_v19 = vpop.f32.mrf.mxu1  ;;  %v15002_v31 = vpop.f32.mrf.mxu0  ;;  %7913 = vmatprep.subr.mxu1 %v16242_v16  ;;  %9998 = vmatprep.subr.mxu0 %v15521_v28 }
 0xf54   :  { %v7638_v48 = vadd.f32 %v7541_v19, %v16243_v40  ;;  %7914 = vmatpush1.msra.mxu1 %v14775_v55  ;;  %9999 = vmatpush3.msra.mxu0 %v16244_v8  ;;  %v16250_v55 = vld [vmem:[#allocation38_spill] sm:$0xff]  ;;  %v7652_v34 = vadd.f32 %v10352_v7, %v15002_v31  ;;  %v8112_v8 = vld [vmem:[#allocation10 + $0x70] sm:$0xff]  ;;  %v16280_v31 = vld [vmem:[#allocation19_spill] sm:$0xff] }
 0xf55   :  { %v9954_v36 = vpop.f32.mrf.mxu0  ;;  %7915 = vmatprep.subr.mxu1 %v16245_v50  ;;  %10000 = vmatprep.subr.mxu0 %v15521_v28  ;;  %v7543_v49 = vpop.f32.mrf.mxu1  ;;  %v8113_v40 = vld [vmem:[#allocation10 + $0x78] sm:$0xff]  ;;  %v8111_v50 = vld [vmem:[#allocation10 + $0x68] sm:$0xff] }
 0xf56   :  { %v8313_v46 = vmul.f32 -1.442695, %v7638_v48  ;;  %7916 = vmatpush1.msra.mxu1 %v16246_v45  ;;  %10001 = vmatpush3.msra.mxu0 %v16247_v12  ;;  %v7645_v51 = vadd.f32 %v7543_v49, %v16252_v61  ;;  %v8128_v48 = vld [vmem:[#allocation10 + $0xf0] sm:$0xff]  ;;  %v8127_v36 = vld [vmem:[#allocation10 + $0xe8] sm:$0xff]  ;;  %v8110_v45 = vld [vmem:[#allocation10 + $0x60] sm:$0xff] }
 0xf57   :  { %7917 = vmatprep.subr.mxu1 %v16248_v20  ;;  %10002 = vmatprep.subr.mxu0 %v15521_v28  ;;  %v8125_v12 = vld [vmem:[#allocation10 + $0xd8] sm:$0xff]  ;;  %v8124_v49 = vld [vmem:[#allocation10 + $0xd0] sm:$0xff]  ;;  %v8106_v61 = vld [vmem:[#allocation10 + $0x40] sm:$0xff] }
 0xf58   :  { %10325 = vpow2.f32 %v8313_v46  ;;  %7918 = vmatpush1.msra.mxu1 %v16249_v6  ;;  %10003 = vmatpush3.msra.mxu0 %v16250_v55  ;;  %v8314_v18 = vmul.f32 -1.442695, %v7645_v51  ;;  %v8126_v46 = vld [vmem:[#allocation10 + $0xe0] sm:$0xff]  ;;  %v8108_v20 = vld [vmem:[#allocation10 + $0x50] sm:$0xff]  ;;  %v8123_v6 = vld [vmem:[#allocation10 + $0xc8] sm:$0xff] }
 0xf59   :  { %7919 = vmatprep.subr.mxu1 %v16251_v5  ;;  %10004 = vmatprep.subr.mxu0 %v15521_v28  ;;  %v8107_v55 = vld [vmem:[#allocation10 + $0x48] sm:$0xff]  ;;  %v8122_v5 = vld [vmem:[#allocation10 + $0xc0] sm:$0xff]  ;;  %v8121_v51 = vld [vmem:[#allocation10 + $0xb8] sm:$0xff] }
 0xf5a   :  { %7920 = vmatpush1.msra.mxu1 %v16253_v26  ;;  %10005 = vmatpush3.msra.mxu0 %v16254_v30  ;;  %10327 = vpow2.f32 %v8314_v18  ;;  %v8105_v26 = vld [vmem:[#allocation10 + $0x38] sm:$0xff]  ;;  %v8120_v30 = vld [vmem:[#allocation10 + $0xb0] sm:$0xff]  ;;  %v8102_v18 = vld [vmem:[#allocation10 + $0x20] sm:$0xff] }
 0xf5b   :  { %7921 = vmatprep.subr.mxu1 %v16255_v39  ;;  %10006 = vmatprep.subr.mxu0 %v15521_v28  ;;  %v8104_v39 = vld [vmem:[#allocation10 + $0x30] sm:$0xff] }
 0xf5c   :  { %7922 = vmatpush1.msra.mxu1 %v16256_v1  ;;  %10007 = vmatpush3.msra.mxu0 %v16257_v57  ;;  %v8119_v1 = vld [vmem:[#allocation10 + $0xa8] sm:$0xff] }
 0xf5d   :  { %7923 = vmatprep.subr.mxu1 %v16258_v4  ;;  %10008 = vmatprep.subr.mxu0 %v15521_v28  ;;  %v8103_v57 = vld [vmem:[#allocation10 + $0x28] sm:$0xff]  ;;  %v8118_v4 = vld [vmem:[#allocation10 + $0xa0] sm:$0xff] }
 0xf5e   :  { %7924 = vmatpush1.msra.mxu1 %v16259_v2  ;;  %10009 = vmatpush3.msra.mxu0 %v16260_v0  ;;  %v8117_v2 = vld [vmem:[#allocation10 + $0x98] sm:$0xff] }
 0xf5f   :  { %7925 = vmatprep.subr.mxu1 %v16261_v52  ;;  %10010 = vmatprep.subr.mxu0 %v15521_v28  ;;  %v8101_v0 = vld [vmem:[#allocation10 + $0x18] sm:$0xff]  ;;  %v8116_v52 = vld [vmem:[#allocation10 + $0x90] sm:$0xff] }
 0xf60   :  { %7926 = vmatpush1.msra.mxu1 %v16262_v44  ;;  %10011 = vmatpush3.msra.mxu0 %v16263_v63  ;;  %v8100_v44 = vld [vmem:[#allocation10 + $0x10] sm:$0xff]  ;;  %v8115_v63 = vld [vmem:[#allocation10 + $0x88] sm:$0xff] }
 0xf61   :  { %7927 = vmatprep.subr.mxu1 %v16264_v37  ;;  %10012 = vmatprep.subr.mxu0 %v15521_v28  ;;  %v8099_v37 = vld [vmem:[#allocation10 + $0x8] sm:$0xff] }
 0xf62   :  { %7928 = vmatpush1.msra.mxu1 %v16265_v53  ;;  %10013 = vmatpush3.msra.mxu0 %v16266_v13  ;;  %v8114_v53 = vld [vmem:[#allocation10 + $0x80] sm:$0xff] }
 0xf63   :  { %7929 = vmatprep.subr.mxu1 %v16267_v42  ;;  %10014 = vmatprep.subr.mxu0 %v15521_v28  ;;  %v8098_v13 = vld [vmem:[#allocation10] sm:$0xff]  ;;  %v16281_v42 = vld [vmem:[#allocation18_spill] sm:$0xff] }
 0xf64   :  { %7930 = vmatpush1.msra.mxu1 %v16268_v58  ;;  %10015 = vmatpush3.msra.mxu0 %v16269_v59  ;;  %v16282_v58 = vld [vmem:[#allocation74_spill] sm:$0xff] }
 0xf65   :  { %v10326_v15 = vpop.eup %10325  ;;  %7931 = vmatprep.subr.mxu1 %v16270_v3  ;;  %10016 = vmatprep.subr.mxu0 %v15521_v28  ;;  %v16283_v3 = vld [vmem:[#allocation69_spill] sm:$0xff] }
 0xf66   :  { %v7642_v21 = vadd.f32 1.0, %v10326_v15  ;;  %7932 = vmatpush1.msra.mxu1 %v16271_v38  ;;  %10017 = vmatpush3.msra.mxu0 %v16272_v43 }
 0xf67   :  { %7933 = vmatprep.subr.mxu1 %v16273_v17  ;;  %10018 = vmatprep.subr.mxu0 %v15521_v28  ;;  %v10328_v60 = vpop.eup %10327 }
 0xf68   :  { %10329 = vrcp.f32 %v7642_v21  ;;  %7934 = vmatpush1.msra.mxu1 %v16274_v29  ;;  %10019 = vmatpush3.msra.mxu0 %v16275_v14  ;;  %v7649_v10 = vadd.f32 1.0, %v10328_v60  ;;  %v16284_v29 = vld [vmem:[#allocation56_spill] sm:$0xff] }
 0xf69   :  { %7935 = vmatprep.subr.mxu1 %v16276_v9  ;;  %10020 = vmatprep.subr.mxu0 %v15521_v28 }
 0xf6a   :  { %7936 = vmatpush1.msra.mxu1 %v16277_v23  ;;  %7969 = vmatprep.mubr.f32.mxu1 %v15521_v28  ;;  %10331 = vrcp.f32 %v7649_v10 }
 0xf6b   :  { %10021 = vmatpush3.msra.mxu0 %v16278_v62  ;;  %10022 = vmatprep.mubr.msk.f32.mxu0 %vm10448_vm1, %v15521_v28 }
 0xf6c   :  { %8864 = vmatprep.subr.mxu1 %v8129_v47 }
 0xf75   :  { %v10330_v33 = vpop.eup %10329 }
 0xf76   :  { %v7653_v56 = vmul.f32 %v10330_v33, %v7652_v34  ;;  %v16285_v34 = vld [vmem:[#allocation75_spill] sm:$0xff] }
 0xf77   :  { %v10332_v11 = vpop.eup %10331 }
 0xf78   :  { %v7654_v22 = vadd.f32 %v7653_v56, %v16279_v32  ;;  %v7656_v24 = vsub.f32 1.0, %v10332_v11  ;;  %v7658_v28 = vmul.f32 %v10332_v11, %v14908_v41  ;;  %v8109_v41 = vld [vmem:[#allocation10 + $0x58] sm:$0xff] }
 0xf7a   :  { %10333 = vtanh.f32 %v7654_v22 }
 0xf87   :  { %v10334_v27 = vpop.eup %10333 }
 0xf88   :  { %v7657_v19 = vmul.f32 %v10334_v27, %v7656_v24 }
 0xf8a   :  { %v7659_v16 = vadd.f32 %v7658_v28, %v7657_v19 }
 0xf8c   :  { %7970 = vmatmul.mubr.f32.vlgmr.msra.gmra.mxu1 %v7659_v16  ;;  %10023 = vmatmul.mubr.f32.vlgmr.msra.gmra.mxu0 %v7659_v16 }
 0xf8d   :  { %8865 = vmatpush3.msra.mxu1 %v8113_v40  ;;  %8201 = vmatprep.mubr.f32.mxu1 %v16280_v31 }
 0xf8e   :  { %8866 = vmatprep.subr.mxu1 %v8128_v48 }
 0xf8f   :  { %8867 = vmatpush3.msra.mxu1 %v8112_v8 }
 0xf90   :  { %8868 = vmatprep.subr.mxu1 %v8127_v36 }
 0xf91   :  { %8869 = vmatpush3.msra.mxu1 %v8111_v50 }
 0xf92   :  { %8870 = vmatprep.subr.mxu1 %v8126_v46 }
 0xf93   :  { %8871 = vmatpush3.msra.mxu1 %v8110_v45 }
 0xf94   :  { %8872 = vmatprep.subr.mxu1 %v8125_v12 }
 0xf95   :  { %8873 = vmatpush3.msra.mxu1 %v8109_v41 }
 0xf96   :  { %8874 = vmatprep.subr.mxu1 %v8124_v49 }
 0xf97   :  { %8875 = vmatpush3.msra.mxu1 %v8108_v20 }
 0xf98   :  { %8876 = vmatprep.subr.mxu1 %v8123_v6 }
 0xf99   :  { %8877 = vmatpush3.msra.mxu1 %v8107_v55 }
 0xf9a   :  { %8878 = vmatprep.subr.mxu1 %v8122_v5 }
 0xf9b   :  { %8879 = vmatpush3.msra.mxu1 %v8106_v61 }
 0xf9c   :  { %8880 = vmatprep.subr.mxu1 %v8121_v51 }
 0xf9d   :  { %8881 = vmatpush3.msra.mxu1 %v8105_v26 }
 0xf9e   :  { %8882 = vmatprep.subr.mxu1 %v8120_v30 }
 0xf9f   :  { %8883 = vmatpush3.msra.mxu1 %v8104_v39 }
 0xfa0   :  { %8884 = vmatprep.subr.mxu1 %v8119_v1 }
 0xfa1   :  { %8885 = vmatpush3.msra.mxu1 %v8103_v57 }
 0xfa2   :  { %8886 = vmatprep.subr.mxu1 %v8118_v4 }
 0xfa3   :  { %8887 = vmatpush3.msra.mxu1 %v8102_v18 }
 0xfa4   :  { %8888 = vmatprep.subr.mxu1 %v8117_v2 }
 0xfa5   :  { %8889 = vmatpush3.msra.mxu1 %v8101_v0 }
 0xfa6   :  { %8890 = vmatprep.subr.mxu1 %v8116_v52 }
 0xfa7   :  { %8891 = vmatpush3.msra.mxu1 %v8100_v44 }
 0xfa8   :  { %8892 = vmatprep.subr.mxu1 %v8115_v63 }
 0xfa9   :  { %8893 = vmatpush3.msra.mxu1 %v8099_v37 }
 0xfaa   :  { %8894 = vmatprep.subr.mxu1 %v8114_v53 }
 0xfab   :  { %8895 = vmatpush3.msra.mxu1 %v8098_v13 }
 0xfac   :  { %8202 = vmatmul.mubr.f32.vlgmr.msra.gmra.mxu1 %v14735_v25 }
 0xfad   :  { %8206 = vmatprep.mubr.f32.mxu1 %v16281_v42 }
 0xfb0   :  { %8207 = vmatmul.mubr.f32.gmra.mxu1 %v14984_v54 }
 0xfb1   :  { %8211 = vmatprep.mubr.f32.mxu1 %v16282_v58 }
0x100b   :  { %v7782_v59 = vpop.f32.mrf.mxu1  ;;  %v7853_v15 = vpop.f32.mrf.mxu0 }
0x100c   :  { %v8046_v21 = vadd.f32 %v7782_v59, %v16283_v3  ;;  %v8060_v60 = vadd.f32 %v14730_v35, %v7853_v15  ;;  %v8319_v35 = vld [vmem:[%s15095_s10] ss:$0 sm:$0xff] }
0x100d   :  { %v9989_v38 = vpop.f32.mrf.mxu0  ;;  %v7784_v17 = vpop.f32.mrf.mxu1 }
0x100e   :  { %v8315_v43 = vmul.f32 -1.442695, %v8046_v21  ;;  %v8053_v14 = vadd.f32 %v7784_v17, %v16284_v29 }
0x1010   :  { %10335 = vpow2.f32 %v8315_v43  ;;  %v8316_v9 = vmul.f32 -1.442695, %v8053_v14 }
0x1012   :  { %10337 = vpow2.f32 %v8316_v9 }
0x101d   :  { %v10336_v47 = vpop.eup %10335 }
0x101e   :  { %v8050_v25 = vadd.f32 1.0, %v10336_v47 }
0x101f   :  { %v10338_v23 = vpop.eup %10337 }
0x1020   :  { %10339 = vrcp.f32 %v8050_v25  ;;  %v8057_v62 = vadd.f32 1.0, %v10338_v23 }
0x1022   :  { %10341 = vrcp.f32 %v8057_v62 }
0x102d   :  { %v10340_v10 = vpop.eup %10339 }
0x102e   :  { %v8061_v7 = vmul.f32 %v10340_v10, %v8060_v60 }
0x102f   :  { %v10342_v56 = vpop.eup %10341 }
0x1030   :  { %v8062_v33 = vadd.f32 %v8061_v7, %v16285_v34  ;;  %v8064_v32 = vsub.f32 1.0, %v10342_v56  ;;  %v8066_v24 = vmul.f32 %v10342_v56, %v14984_v54 }
0x1032   :  { %10343 = vtanh.f32 %v8062_v33 }
0x103f   :  { %v10344_v22 = vpop.eup %10343 }
0x1040   :  { %v8065_v11 = vmul.f32 %v10344_v22, %v8064_v32 }
0x1042   :  { %v8067_v27 = vadd.f32 %v8066_v24, %v8065_v11 }
0x1044   :  { %8212 = vmatmul.mubr.f32.gmra.mxu1 %v8067_v27 }
0x104c   :  { %v7971_v19 = vpop.f32.mrf.mxu1  ;;  %v8042_v28 = vpop.f32.mrf.mxu0 }
0x104e   :  { %v7973_v16 = vpop.f32.mrf.mxu1  ;;  %v10024_v40 = vpop.f32.mrf.mxu0 }
0x106c   :  { %v8896_v48 = vpop.f32.mrf.mxu1 }
0x106e   :  { %v8897_v8 = vpop.f32.mrf.mxu1 }
0x106f   :  { %v8898_v31 = vadd.f32 %v8897_v8, %v8896_v48 }
0x1070   :  { %v8899_v36 = vpop.f32.mrf.mxu1 }
0x1071   :  { %v8204_v50 = vadd.f32 %v8898_v31, %v8319_v35 }
0x1072   :  { %v8900_v46 = vpop.f32.mrf.mxu1 }
0x1073   :  { %8217 = vst [vmem:[%s15096_s11] sm:$0xff] %v8204_v50  ;;  %v8901_v54 = vadd.f32 %v8900_v46, %v8899_v36 }
0x1075   :  { %v8209_v45 = vadd.f32 %v8901_v54, %v8319_v35 }
0x1077   :  { %8218 = vst [vmem:[%s15096_s11 + $0x8] sm:$0xff] %v8209_v45 }
0x1104   :  { %v8902_v12 = vpop.f32.mrf.mxu1 }
0x1106   :  { %v8903_v41 = vpop.f32.mrf.mxu1 }
0x1107   :  { %v8904_v49 = vadd.f32 %v8903_v41, %v8902_v12 }
0x1109   :  { %v8214_v20 = vadd.f32 %v8904_v49, %v8319_v35 }
0x110b   :  { %8219 = vst [vmem:[%s15096_s11 + $0x10] sm:$0xff] %v8214_v20 }
0x110c   :  { %8224 = vsyncpa [#allocation6], 1 }
0x110d   :  { %8225 = vsyncpa [#allocation8], 1 }
0x110e   :  { %8226 = vsyncpa [#allocation11], 1 }

</bundles_post_ra>
